<compile_context>
chip_gen: v7x
topology: tpu7x:2x2x1
jax: 0.10.0
libtpu: 0.0.40
codegen_flags: <defaults>
</compile_context>

<pallas_src>
import jax
import jax.numpy as jnp
from jax import lax
from jax.experimental import pallas as pl
from jax.experimental.pallas import tpu as pltpu

D = 21                 # hidden_dim / d_model
NHEAD = 7
HEAD_DIM = D // NHEAD  # 3
FF = 2048              # nn.TransformerEncoderLayer default dim_feedforward
FF_CHUNK = 512         # 4 statically unrolled chunks over the FF hidden dim
NUM_LAYERS = 3
EPS = 1e-5


def _layernorm(h, w, b):
    mu = jnp.mean(h, axis=-1, keepdims=True)
    var = jnp.mean((h - mu) ** 2, axis=-1, keepdims=True)
    return (h - mu) * lax.rsqrt(var + EPS) * w + b


def transformer_kernel(x_ref,
                       wqkv_ref, bqkv_ref, wo_ref, bo_ref,
                       ln1w_ref, ln1b_ref, ln2w_ref, ln2b_ref,
                       w1_ref, b1_ref, w2_ref, b2_ref,
                       pool_ref, fcw_ref, fcb_ref,
                       out_ref):
    BS = x_ref.shape[0]          # B * S tokens
    B = pool_ref.shape[0]
    S = BS // B

    # Whole activation state (~3 vregs) stays in vregs across the static layer loop.
    x2 = x_ref[...]                                            # (B*S, D)

    for l in range(NUM_LAYERS):                                # static unroll over layers
        # ---------- fused QKV projection: one matmul + one bias add per layer ----------
        qkv = (jnp.dot(x2, wqkv_ref[l], preferred_element_type=jnp.float32)
               + bqkv_ref[l])                                  # (B*S, 3D); Q pre-scaled
        qkv3 = qkv.reshape(B, S, 3 * D)                        # sublane-group split only

        # ---------- per-head attention (batch fused over B; head chains independent) ----
        heads = []
        for h in range(NHEAD):                                 # static unroll over heads
            o0 = h * HEAD_DIM
            qh = qkv3[:, :, o0:o0 + HEAD_DIM]                  # (B, S, Hd) lane slices
            kh = qkv3[:, :, D + o0:D + o0 + HEAD_DIM]
            vh = qkv3[:, :, 2 * D + o0:2 * D + o0 + HEAD_DIM]

            s = jnp.einsum('bqd,bkd->bqk', qh, kh,
                           preferred_element_type=jnp.float32)  # (B, S, S)
            s = s - jnp.max(s, axis=-1, keepdims=True)
            p = jnp.exp(s)
            p = p * pl.reciprocal(jnp.sum(p, axis=-1, keepdims=True), approx=True)
            heads.append(jnp.einsum('bqk,bkd->bqd', p, vh,
                                    preferred_element_type=jnp.float32))  # (B, S, Hd)

        # concat(heads) along lanes -> single Wo matmul (no per-head dot / add chain)
        o = jnp.concatenate(heads, axis=-1).reshape(BS, D)      # (B*S, D)
        attn = (jnp.dot(o, wo_ref[l], preferred_element_type=jnp.float32)
                + bo_ref[l])

        h1 = _layernorm(x2 + attn, ln1w_ref[l], ln1b_ref[l])    # post-norm (norm_first=False)

        # ---------- feed-forward, chunked over the 2048 hidden dim ----------
        # bf16 MXU operands, f32 accumulation; static ref slices are zero-cost views.
        h1b = h1.astype(jnp.bfloat16)
        ff = jnp.zeros((BS, D), jnp.float32)
        for c in range(FF // FF_CHUNK):                         # static unroll, 4 chunks
            cs = c * FF_CHUNK
            hid = (jnp.dot(h1b, w1_ref[l, :, cs:cs + FF_CHUNK],
                           preferred_element_type=jnp.float32)
                   + b1_ref[l, :, cs:cs + FF_CHUNK])            # (B*S, FF_CHUNK)
            hid = jnp.maximum(hid, 0.0).astype(jnp.bfloat16)
            ff = ff + jnp.dot(hid, w2_ref[l, cs:cs + FF_CHUNK, :],
                              preferred_element_type=jnp.float32)
        ff = ff + b2_ref[l]

        x2 = _layernorm(h1 + ff, ln2w_ref[l], ln2b_ref[l])

    # ---------- mean over sequence as a tiny matmul + classifier head ----------
    pooled = jnp.dot(pool_ref[...], x2, preferred_element_type=jnp.float32)   # (B, D)
    out_ref[...] = (jnp.dot(pooled, fcw_ref[...],
                            preferred_element_type=jnp.float32) + fcb_ref[...])


def init_params(key, num_classes):
    ks = jax.random.split(key, 10)

    def nrm(k, shape, s=0.05):
        return (s * jax.random.normal(k, shape)).astype(jnp.float32)

    return dict(
        # fused QKV weights, x @ W layout; columns = [Q(head-major) | K | V]
        wqkv=nrm(ks[0], (NUM_LAYERS, D, 3 * D)),
        bqkv=nrm(ks[1], (NUM_LAYERS, 1, 3 * D)),
        wo=nrm(ks[2], (NUM_LAYERS, D, D)),       # rows head-major: concat(heads) @ wo
        bo=nrm(ks[3], (NUM_LAYERS, 1, D)),
        ln1w=jnp.ones((NUM_LAYERS, 1, D), jnp.float32),
        ln1b=jnp.zeros((NUM_LAYERS, 1, D), jnp.float32),
        ln2w=jnp.ones((NUM_LAYERS, 1, D), jnp.float32),
        ln2b=jnp.zeros((NUM_LAYERS, 1, D), jnp.float32),
        w1=nrm(ks[4], (NUM_LAYERS, D, FF)),
        b1=nrm(ks[5], (NUM_LAYERS, 1, FF)),
        w2=nrm(ks[6], (NUM_LAYERS, FF, D)),
        b2=nrm(ks[7], (NUM_LAYERS, 1, D)),
        fc_w=nrm(ks[8], (D, num_classes)),
        fc_b=nrm(ks[9], (1, num_classes)),
    )


def transformer_classifier(x, params):
    B = x.shape[0]
    # torch: reshape(B,-1,21) then permute(1,0,2); token-major (b,s) row order is
    # equivalent for per-token ops, per-batch attention and per-batch mean.
    x2 = x.astype(jnp.float32).reshape(-1, D)                  # (B*S, D)
    S = x2.shape[0] // B
    num_classes = params["fc_w"].shape[1]

    # fold 1/sqrt(head_dim) into the Q columns of the fused QKV weight & bias
    scale = 1.0 / (HEAD_DIM ** 0.5)
    col_scale = jnp.concatenate(
        [jnp.full((D,), scale, jnp.float32), jnp.ones((2 * D,), jnp.float32)])
    wqkv = params["wqkv"] * col_scale
    bqkv = params["bqkv"] * col_scale

    # constant (B, B*S) pooling matrix: mean over each batch's S rows, as a matmul
    pool = jnp.kron(jnp.eye(B, dtype=jnp.float32),
                    jnp.full((1, S), 1.0 / S, dtype=jnp.float32))

    inputs = (
        x2,
        wqkv, bqkv,
        params["wo"], params["bo"],
        params["ln1w"], params["ln1b"], params["ln2w"], params["ln2b"],
        params["w1"].astype(jnp.bfloat16), params["b1"],
        params["w2"].astype(jnp.bfloat16), params["b2"],
        pool, params["fc_w"], params["fc_b"],
    )

    vmem = pl.BlockSpec(memory_space=pltpu.MemorySpace.VMEM)
    return pl.pallas_call(
        transformer_kernel,
        out_shape=jax.ShapeDtypeStruct((B, num_classes), jnp.float32),
        in_specs=[vmem] * len(inputs),
        out_specs=vmem,
    )(*inputs)


if __name__ == "__main__":
    key = jax.random.PRNGKey(0)
    k_x, k_p = jax.random.split(key)

    batch, seq, num_classes = 2, 8, 5
    input_dim = seq * D                            # 168
    x = jax.random.normal(k_x, (batch, input_dim), dtype=jnp.float32)

    params = init_params(k_p, num_classes)
    logits = transformer_classifier(x, params)
    jax.block_until_ready(logits)
    assert logits.shape == (batch, num_classes)
    print("KERNEL_OK")
</pallas_src>

<mosaic_0001>
module attributes {stable_mosaic.version = 11 : i64} {
  func.func @transformer_kernel(%arg0: memref<16x21xf32, #tpu.memory_space<vmem>>, %arg1: memref<3x21x63xf32, #tpu.memory_space<vmem>>, %arg2: memref<3x1x63xf32, #tpu.memory_space<vmem>>, %arg3: memref<3x21x21xf32, #tpu.memory_space<vmem>>, %arg4: memref<3x1x21xf32, #tpu.memory_space<vmem>>, %arg5: memref<3x1x21xf32, #tpu.memory_space<vmem>>, %arg6: memref<3x1x21xf32, #tpu.memory_space<vmem>>, %arg7: memref<3x1x21xf32, #tpu.memory_space<vmem>>, %arg8: memref<3x1x21xf32, #tpu.memory_space<vmem>>, %arg9: memref<3x21x2048xbf16, #tpu.memory_space<vmem>>, %arg10: memref<3x1x2048xf32, #tpu.memory_space<vmem>>, %arg11: memref<3x2048x21xbf16, #tpu.memory_space<vmem>>, %arg12: memref<3x1x21xf32, #tpu.memory_space<vmem>>, %arg13: memref<2x16xf32, #tpu.memory_space<vmem>>, %arg14: memref<21x5xf32, #tpu.memory_space<vmem>>, %arg15: memref<1x5xf32, #tpu.memory_space<vmem>>, %arg16: memref<2x5xf32, #tpu.memory_space<vmem>>) attributes {dimension_semantics = [], scalar_prefetch = 0 : i64, scratch_operands = 0 : i64, tpu.core_type = #tpu.core_type<tc>} {
    %c0 = arith.constant 0 : index
    %c0_0 = arith.constant 0 : index
    %0 = vector.load %arg0[%c0, %c0_0] : memref<16x21xf32, #tpu.memory_space<vmem>>, vector<16x21xf32>
    %c0_1 = arith.constant 0 : index
    %c0_2 = arith.constant 0 : index
    %c0_3 = arith.constant 0 : index
    %1 = vector.load %arg1[%c0_1, %c0_2, %c0_3] : memref<3x21x63xf32, #tpu.memory_space<vmem>>, vector<1x21x63xf32>
    %2 = vector.shape_cast %1 : vector<1x21x63xf32> to vector<21x63xf32>
    %cst = arith.constant dense<0.000000e+00> : vector<16x63xf32>
    %3 = tpu.matmul %0, %2, %cst {dimension_numbers = #tpu.dot_dimension_numbers<[1], [0], [0], [1], [0, 0, 1, 1], [], []>} : vector<16x21xf32>, vector<21x63xf32>, vector<16x63xf32> -> vector<16x63xf32>
    %c0_4 = arith.constant 0 : index
    %c0_5 = arith.constant 0 : index
    %c0_6 = arith.constant 0 : index
    %4 = vector.load %arg2[%c0_4, %c0_5, %c0_6] : memref<3x1x63xf32, #tpu.memory_space<vmem>>, vector<1x1x63xf32>
    %5 = vector.shape_cast %4 : vector<1x1x63xf32> to vector<1x63xf32>
    %6 = vector.broadcast %5 : vector<1x63xf32> to vector<16x63xf32>
    %7 = arith.addf %3, %6 : vector<16x63xf32>
    %8 = vector.shape_cast %7 : vector<16x63xf32> to vector<2x8x63xf32>
    %9 = vector.extract_strided_slice %8 {offsets = [0, 0, 0], sizes = [2, 8, 3], strides = [1, 1, 1]} : vector<2x8x63xf32> to vector<2x8x3xf32>
    %10 = vector.extract_strided_slice %8 {offsets = [0, 0, 21], sizes = [2, 8, 3], strides = [1, 1, 1]} : vector<2x8x63xf32> to vector<2x8x3xf32>
    %11 = vector.extract_strided_slice %8 {offsets = [0, 0, 42], sizes = [2, 8, 3], strides = [1, 1, 1]} : vector<2x8x63xf32> to vector<2x8x3xf32>
    "tpu.trace_start"() <{level = 10 : i32, message = "bqd,bkd->bqk"}> : () -> ()
    %cst_7 = arith.constant dense<0.000000e+00> : vector<2x8x8xf32>
    %12 = tpu.matmul %9, %10, %cst_7 {dimension_numbers = #tpu.dot_dimension_numbers<[2], [2], [1], [1], [0, 0, 0, 1, 1, 1], [0], [0]>} : vector<2x8x3xf32>, vector<2x8x3xf32>, vector<2x8x8xf32> -> vector<2x8x8xf32>
    "tpu.trace_stop"() : () -> ()
    %cst_8 = arith.constant dense<0xFF800000> : vector<2x8xf32>
    %13 = vector.multi_reduction <maximumf>, %12, %cst_8 [2] : vector<2x8x8xf32> to vector<2x8xf32>
    %14 = vector.shape_cast %13 : vector<2x8xf32> to vector<2x8x1xf32>
    %15 = vector.broadcast %14 : vector<2x8x1xf32> to vector<2x8x8xf32>
    %16 = arith.subf %12, %15 : vector<2x8x8xf32>
    %17 = math.exp %16 : vector<2x8x8xf32>
    %cst_9 = arith.constant dense<0.000000e+00> : vector<2x8xf32>
    %18 = vector.multi_reduction <add>, %17, %cst_9 [2] : vector<2x8x8xf32> to vector<2x8xf32>
    %19 = vector.shape_cast %18 : vector<2x8xf32> to vector<2x8x1xf32>
    %20 = tpu.reciprocal %19 {approx = true} : vector<2x8x1xf32> -> vector<2x8x1xf32>
    %21 = vector.broadcast %20 : vector<2x8x1xf32> to vector<2x8x8xf32>
    %22 = arith.mulf %17, %21 : vector<2x8x8xf32>
    "tpu.trace_start"() <{level = 10 : i32, message = "bqk,bkd->bqd"}> : () -> ()
    %cst_10 = arith.constant dense<0.000000e+00> : vector<2x8x3xf32>
    %23 = tpu.matmul %22, %11, %cst_10 {dimension_numbers = #tpu.dot_dimension_numbers<[2], [1], [1], [2], [0, 0, 0, 1, 1, 2], [0], [0]>} : vector<2x8x8xf32>, vector<2x8x3xf32>, vector<2x8x3xf32> -> vector<2x8x3xf32>
    "tpu.trace_stop"() : () -> ()
    %24 = vector.extract_strided_slice %8 {offsets = [0, 0, 3], sizes = [2, 8, 3], strides = [1, 1, 1]} : vector<2x8x63xf32> to vector<2x8x3xf32>
    %25 = vector.extract_strided_slice %8 {offsets = [0, 0, 24], sizes = [2, 8, 3], strides = [1, 1, 1]} : vector<2x8x63xf32> to vector<2x8x3xf32>
    %26 = vector.extract_strided_slice %8 {offsets = [0, 0, 45], sizes = [2, 8, 3], strides = [1, 1, 1]} : vector<2x8x63xf32> to vector<2x8x3xf32>
    "tpu.trace_start"() <{level = 10 : i32, message = "bqd,bkd->bqk"}> : () -> ()
    %cst_11 = arith.constant dense<0.000000e+00> : vector<2x8x8xf32>
    %27 = tpu.matmul %24, %25, %cst_11 {dimension_numbers = #tpu.dot_dimension_numbers<[2], [2], [1], [1], [0, 0, 0, 1, 1, 1], [0], [0]>} : vector<2x8x3xf32>, vector<2x8x3xf32>, vector<2x8x8xf32> -> vector<2x8x8xf32>
    "tpu.trace_stop"() : () -> ()
    %cst_12 = arith.constant dense<0xFF800000> : vector<2x8xf32>
    %28 = vector.multi_reduction <maximumf>, %27, %cst_12 [2] : vector<2x8x8xf32> to vector<2x8xf32>
    %29 = vector.shape_cast %28 : vector<2x8xf32> to vector<2x8x1xf32>
    %30 = vector.broadcast %29 : vector<2x8x1xf32> to vector<2x8x8xf32>
    %31 = arith.subf %27, %30 : vector<2x8x8xf32>
    %32 = math.exp %31 : vector<2x8x8xf32>
    %cst_13 = arith.constant dense<0.000000e+00> : vector<2x8xf32>
    %33 = vector.multi_reduction <add>, %32, %cst_13 [2] : vector<2x8x8xf32> to vector<2x8xf32>
    %34 = vector.shape_cast %33 : vector<2x8xf32> to vector<2x8x1xf32>
    %35 = tpu.reciprocal %34 {approx = true} : vector<2x8x1xf32> -> vector<2x8x1xf32>
    %36 = vector.broadcast %35 : vector<2x8x1xf32> to vector<2x8x8xf32>
    %37 = arith.mulf %32, %36 : vector<2x8x8xf32>
    "tpu.trace_start"() <{level = 10 : i32, message = "bqk,bkd->bqd"}> : () -> ()
    %cst_14 = arith.constant dense<0.000000e+00> : vector<2x8x3xf32>
    %38 = tpu.matmul %37, %26, %cst_14 {dimension_numbers = #tpu.dot_dimension_numbers<[2], [1], [1], [2], [0, 0, 0, 1, 1, 2], [0], [0]>} : vector<2x8x8xf32>, vector<2x8x3xf32>, vector<2x8x3xf32> -> vector<2x8x3xf32>
    "tpu.trace_stop"() : () -> ()
    %39 = vector.extract_strided_slice %8 {offsets = [0, 0, 6], sizes = [2, 8, 3], strides = [1, 1, 1]} : vector<2x8x63xf32> to vector<2x8x3xf32>
    %40 = vector.extract_strided_slice %8 {offsets = [0, 0, 27], sizes = [2, 8, 3], strides = [1, 1, 1]} : vector<2x8x63xf32> to vector<2x8x3xf32>
    %41 = vector.extract_strided_slice %8 {offsets = [0, 0, 48], sizes = [2, 8, 3], strides = [1, 1, 1]} : vector<2x8x63xf32> to vector<2x8x3xf32>
    "tpu.trace_start"() <{level = 10 : i32, message = "bqd,bkd->bqk"}> : () -> ()
    %cst_15 = arith.constant dense<0.000000e+00> : vector<2x8x8xf32>
    %42 = tpu.matmul %39, %40, %cst_15 {dimension_numbers = #tpu.dot_dimension_numbers<[2], [2], [1], [1], [0, 0, 0, 1, 1, 1], [0], [0]>} : vector<2x8x3xf32>, vector<2x8x3xf32>, vector<2x8x8xf32> -> vector<2x8x8xf32>
    "tpu.trace_stop"() : () -> ()
    %cst_16 = arith.constant dense<0xFF800000> : vector<2x8xf32>
    %43 = vector.multi_reduction <maximumf>, %42, %cst_16 [2] : vector<2x8x8xf32> to vector<2x8xf32>
    %44 = vector.shape_cast %43 : vector<2x8xf32> to vector<2x8x1xf32>
    %45 = vector.broadcast %44 : vector<2x8x1xf32> to vector<2x8x8xf32>
    %46 = arith.subf %42, %45 : vector<2x8x8xf32>
    %47 = math.exp %46 : vector<2x8x8xf32>
    %cst_17 = arith.constant dense<0.000000e+00> : vector<2x8xf32>
    %48 = vector.multi_reduction <add>, %47, %cst_17 [2] : vector<2x8x8xf32> to vector<2x8xf32>
    %49 = vector.shape_cast %48 : vector<2x8xf32> to vector<2x8x1xf32>
    %50 = tpu.reciprocal %49 {approx = true} : vector<2x8x1xf32> -> vector<2x8x1xf32>
    %51 = vector.broadcast %50 : vector<2x8x1xf32> to vector<2x8x8xf32>
    %52 = arith.mulf %47, %51 : vector<2x8x8xf32>
    "tpu.trace_start"() <{level = 10 : i32, message = "bqk,bkd->bqd"}> : () -> ()
    %cst_18 = arith.constant dense<0.000000e+00> : vector<2x8x3xf32>
    %53 = tpu.matmul %52, %41, %cst_18 {dimension_numbers = #tpu.dot_dimension_numbers<[2], [1], [1], [2], [0, 0, 0, 1, 1, 2], [0], [0]>} : vector<2x8x8xf32>, vector<2x8x3xf32>, vector<2x8x3xf32> -> vector<2x8x3xf32>
    "tpu.trace_stop"() : () -> ()
    %54 = vector.extract_strided_slice %8 {offsets = [0, 0, 9], sizes = [2, 8, 3], strides = [1, 1, 1]} : vector<2x8x63xf32> to vector<2x8x3xf32>
    %55 = vector.extract_strided_slice %8 {offsets = [0, 0, 30], sizes = [2, 8, 3], strides = [1, 1, 1]} : vector<2x8x63xf32> to vector<2x8x3xf32>
    %56 = vector.extract_strided_slice %8 {offsets = [0, 0, 51], sizes = [2, 8, 3], strides = [1, 1, 1]} : vector<2x8x63xf32> to vector<2x8x3xf32>
    "tpu.trace_start"() <{level = 10 : i32, message = "bqd,bkd->bqk"}> : () -> ()
    %cst_19 = arith.constant dense<0.000000e+00> : vector<2x8x8xf32>
    %57 = tpu.matmul %54, %55, %cst_19 {dimension_numbers = #tpu.dot_dimension_numbers<[2], [2], [1], [1], [0, 0, 0, 1, 1, 1], [0], [0]>} : vector<2x8x3xf32>, vector<2x8x3xf32>, vector<2x8x8xf32> -> vector<2x8x8xf32>
    "tpu.trace_stop"() : () -> ()
    %cst_20 = arith.constant dense<0xFF800000> : vector<2x8xf32>
    %58 = vector.multi_reduction <maximumf>, %57, %cst_20 [2] : vector<2x8x8xf32> to vector<2x8xf32>
    %59 = vector.shape_cast %58 : vector<2x8xf32> to vector<2x8x1xf32>
    %60 = vector.broadcast %59 : vector<2x8x1xf32> to vector<2x8x8xf32>
    %61 = arith.subf %57, %60 : vector<2x8x8xf32>
    %62 = math.exp %61 : vector<2x8x8xf32>
    %cst_21 = arith.constant dense<0.000000e+00> : vector<2x8xf32>
    %63 = vector.multi_reduction <add>, %62, %cst_21 [2] : vector<2x8x8xf32> to vector<2x8xf32>
    %64 = vector.shape_cast %63 : vector<2x8xf32> to vector<2x8x1xf32>
    %65 = tpu.reciprocal %64 {approx = true} : vector<2x8x1xf32> -> vector<2x8x1xf32>
    %66 = vector.broadcast %65 : vector<2x8x1xf32> to vector<2x8x8xf32>
    %67 = arith.mulf %62, %66 : vector<2x8x8xf32>
    "tpu.trace_start"() <{level = 10 : i32, message = "bqk,bkd->bqd"}> : () -> ()
    %cst_22 = arith.constant dense<0.000000e+00> : vector<2x8x3xf32>
    %68 = tpu.matmul %67, %56, %cst_22 {dimension_numbers = #tpu.dot_dimension_numbers<[2], [1], [1], [2], [0, 0, 0, 1, 1, 2], [0], [0]>} : vector<2x8x8xf32>, vector<2x8x3xf32>, vector<2x8x3xf32> -> vector<2x8x3xf32>
    "tpu.trace_stop"() : () -> ()
    %69 = vector.extract_strided_slice %8 {offsets = [0, 0, 12], sizes = [2, 8, 3], strides = [1, 1, 1]} : vector<2x8x63xf32> to vector<2x8x3xf32>
    %70 = vector.extract_strided_slice %8 {offsets = [0, 0, 33], sizes = [2, 8, 3], strides = [1, 1, 1]} : vector<2x8x63xf32> to vector<2x8x3xf32>
    %71 = vector.extract_strided_slice %8 {offsets = [0, 0, 54], sizes = [2, 8, 3], strides = [1, 1, 1]} : vector<2x8x63xf32> to vector<2x8x3xf32>
    "tpu.trace_start"() <{level = 10 : i32, message = "bqd,bkd->bqk"}> : () -> ()
    %cst_23 = arith.constant dense<0.000000e+00> : vector<2x8x8xf32>
    %72 = tpu.matmul %69, %70, %cst_23 {dimension_numbers = #tpu.dot_dimension_numbers<[2], [2], [1], [1], [0, 0, 0, 1, 1, 1], [0], [0]>} : vector<2x8x3xf32>, vector<2x8x3xf32>, vector<2x8x8xf32> -> vector<2x8x8xf32>
    "tpu.trace_stop"() : () -> ()
    %cst_24 = arith.constant dense<0xFF800000> : vector<2x8xf32>
    %73 = vector.multi_reduction <maximumf>, %72, %cst_24 [2] : vector<2x8x8xf32> to vector<2x8xf32>
    %74 = vector.shape_cast %73 : vector<2x8xf32> to vector<2x8x1xf32>
    %75 = vector.broadcast %74 : vector<2x8x1xf32> to vector<2x8x8xf32>
    %76 = arith.subf %72, %75 : vector<2x8x8xf32>
    %77 = math.exp %76 : vector<2x8x8xf32>
    %cst_25 = arith.constant dense<0.000000e+00> : vector<2x8xf32>
    %78 = vector.multi_reduction <add>, %77, %cst_25 [2] : vector<2x8x8xf32> to vector<2x8xf32>
    %79 = vector.shape_cast %78 : vector<2x8xf32> to vector<2x8x1xf32>
    %80 = tpu.reciprocal %79 {approx = true} : vector<2x8x1xf32> -> vector<2x8x1xf32>
    %81 = vector.broadcast %80 : vector<2x8x1xf32> to vector<2x8x8xf32>
    %82 = arith.mulf %77, %81 : vector<2x8x8xf32>
    "tpu.trace_start"() <{level = 10 : i32, message = "bqk,bkd->bqd"}> : () -> ()
    %cst_26 = arith.constant dense<0.000000e+00> : vector<2x8x3xf32>
    %83 = tpu.matmul %82, %71, %cst_26 {dimension_numbers = #tpu.dot_dimension_numbers<[2], [1], [1], [2], [0, 0, 0, 1, 1, 2], [0], [0]>} : vector<2x8x8xf32>, vector<2x8x3xf32>, vector<2x8x3xf32> -> vector<2x8x3xf32>
    "tpu.trace_stop"() : () -> ()
    %84 = vector.extract_strided_slice %8 {offsets = [0, 0, 15], sizes = [2, 8, 3], strides = [1, 1, 1]} : vector<2x8x63xf32> to vector<2x8x3xf32>
    %85 = vector.extract_strided_slice %8 {offsets = [0, 0, 36], sizes = [2, 8, 3], strides = [1, 1, 1]} : vector<2x8x63xf32> to vector<2x8x3xf32>
    %86 = vector.extract_strided_slice %8 {offsets = [0, 0, 57], sizes = [2, 8, 3], strides = [1, 1, 1]} : vector<2x8x63xf32> to vector<2x8x3xf32>
    "tpu.trace_start"() <{level = 10 : i32, message = "bqd,bkd->bqk"}> : () -> ()
    %cst_27 = arith.constant dense<0.000000e+00> : vector<2x8x8xf32>
    %87 = tpu.matmul %84, %85, %cst_27 {dimension_numbers = #tpu.dot_dimension_numbers<[2], [2], [1], [1], [0, 0, 0, 1, 1, 1], [0], [0]>} : vector<2x8x3xf32>, vector<2x8x3xf32>, vector<2x8x8xf32> -> vector<2x8x8xf32>
    "tpu.trace_stop"() : () -> ()
    %cst_28 = arith.constant dense<0xFF800000> : vector<2x8xf32>
    %88 = vector.multi_reduction <maximumf>, %87, %cst_28 [2] : vector<2x8x8xf32> to vector<2x8xf32>
    %89 = vector.shape_cast %88 : vector<2x8xf32> to vector<2x8x1xf32>
    %90 = vector.broadcast %89 : vector<2x8x1xf32> to vector<2x8x8xf32>
    %91 = arith.subf %87, %90 : vector<2x8x8xf32>
    %92 = math.exp %91 : vector<2x8x8xf32>
    %cst_29 = arith.constant dense<0.000000e+00> : vector<2x8xf32>
    %93 = vector.multi_reduction <add>, %92, %cst_29 [2] : vector<2x8x8xf32> to vector<2x8xf32>
    %94 = vector.shape_cast %93 : vector<2x8xf32> to vector<2x8x1xf32>
    %95 = tpu.reciprocal %94 {approx = true} : vector<2x8x1xf32> -> vector<2x8x1xf32>
    %96 = vector.broadcast %95 : vector<2x8x1xf32> to vector<2x8x8xf32>
    %97 = arith.mulf %92, %96 : vector<2x8x8xf32>
    "tpu.trace_start"() <{level = 10 : i32, message = "bqk,bkd->bqd"}> : () -> ()
    %cst_30 = arith.constant dense<0.000000e+00> : vector<2x8x3xf32>
    %98 = tpu.matmul %97, %86, %cst_30 {dimension_numbers = #tpu.dot_dimension_numbers<[2], [1], [1], [2], [0, 0, 0, 1, 1, 2], [0], [0]>} : vector<2x8x8xf32>, vector<2x8x3xf32>, vector<2x8x3xf32> -> vector<2x8x3xf32>
    "tpu.trace_stop"() : () -> ()
    %99 = vector.extract_strided_slice %8 {offsets = [0, 0, 18], sizes = [2, 8, 3], strides = [1, 1, 1]} : vector<2x8x63xf32> to vector<2x8x3xf32>
    %100 = vector.extract_strided_slice %8 {offsets = [0, 0, 39], sizes = [2, 8, 3], strides = [1, 1, 1]} : vector<2x8x63xf32> to vector<2x8x3xf32>
    %101 = vector.extract_strided_slice %8 {offsets = [0, 0, 60], sizes = [2, 8, 3], strides = [1, 1, 1]} : vector<2x8x63xf32> to vector<2x8x3xf32>
    "tpu.trace_start"() <{level = 10 : i32, message = "bqd,bkd->bqk"}> : () -> ()
    %cst_31 = arith.constant dense<0.000000e+00> : vector<2x8x8xf32>
    %102 = tpu.matmul %99, %100, %cst_31 {dimension_numbers = #tpu.dot_dimension_numbers<[2], [2], [1], [1], [0, 0, 0, 1, 1, 1], [0], [0]>} : vector<2x8x3xf32>, vector<2x8x3xf32>, vector<2x8x8xf32> -> vector<2x8x8xf32>
    "tpu.trace_stop"() : () -> ()
    %cst_32 = arith.constant dense<0xFF800000> : vector<2x8xf32>
    %103 = vector.multi_reduction <maximumf>, %102, %cst_32 [2] : vector<2x8x8xf32> to vector<2x8xf32>
    %104 = vector.shape_cast %103 : vector<2x8xf32> to vector<2x8x1xf32>
    %105 = vector.broadcast %104 : vector<2x8x1xf32> to vector<2x8x8xf32>
    %106 = arith.subf %102, %105 : vector<2x8x8xf32>
    %107 = math.exp %106 : vector<2x8x8xf32>
    %cst_33 = arith.constant dense<0.000000e+00> : vector<2x8xf32>
    %108 = vector.multi_reduction <add>, %107, %cst_33 [2] : vector<2x8x8xf32> to vector<2x8xf32>
    %109 = vector.shape_cast %108 : vector<2x8xf32> to vector<2x8x1xf32>
    %110 = tpu.reciprocal %109 {approx = true} : vector<2x8x1xf32> -> vector<2x8x1xf32>
    %111 = vector.broadcast %110 : vector<2x8x1xf32> to vector<2x8x8xf32>
    %112 = arith.mulf %107, %111 : vector<2x8x8xf32>
    "tpu.trace_start"() <{level = 10 : i32, message = "bqk,bkd->bqd"}> : () -> ()
    %cst_34 = arith.constant dense<0.000000e+00> : vector<2x8x3xf32>
    %113 = tpu.matmul %112, %101, %cst_34 {dimension_numbers = #tpu.dot_dimension_numbers<[2], [1], [1], [2], [0, 0, 0, 1, 1, 2], [0], [0]>} : vector<2x8x8xf32>, vector<2x8x3xf32>, vector<2x8x3xf32> -> vector<2x8x3xf32>
    "tpu.trace_stop"() : () -> ()
    %114 = tpu.concatenate %23, %38, %53, %68, %83, %98, %113 in 2 : vector<2x8x3xf32>, vector<2x8x3xf32>, vector<2x8x3xf32>, vector<2x8x3xf32>, vector<2x8x3xf32>, vector<2x8x3xf32>, vector<2x8x3xf32> -> vector<2x8x21xf32>
    %115 = vector.shape_cast %114 : vector<2x8x21xf32> to vector<16x21xf32>
    %c0_35 = arith.constant 0 : index
    %c0_36 = arith.constant 0 : index
    %c0_37 = arith.constant 0 : index
    %116 = vector.load %arg3[%c0_35, %c0_36, %c0_37] : memref<3x21x21xf32, #tpu.memory_space<vmem>>, vector<1x21x21xf32>
    %117 = vector.shape_cast %116 : vector<1x21x21xf32> to vector<21x21xf32>
    %cst_38 = arith.constant dense<0.000000e+00> : vector<16x21xf32>
    %118 = tpu.matmul %115, %117, %cst_38 {dimension_numbers = #tpu.dot_dimension_numbers<[1], [0], [0], [1], [0, 0, 1, 1], [], []>} : vector<16x21xf32>, vector<21x21xf32>, vector<16x21xf32> -> vector<16x21xf32>
    %c0_39 = arith.constant 0 : index
    %c0_40 = arith.constant 0 : index
    %c0_41 = arith.constant 0 : index
    %119 = vector.load %arg4[%c0_39, %c0_40, %c0_41] : memref<3x1x21xf32, #tpu.memory_space<vmem>>, vector<1x1x21xf32>
    %120 = vector.shape_cast %119 : vector<1x1x21xf32> to vector<1x21xf32>
    %121 = vector.broadcast %120 : vector<1x21xf32> to vector<16x21xf32>
    %122 = arith.addf %118, %121 : vector<16x21xf32>
    %123 = arith.addf %0, %122 : vector<16x21xf32>
    %c0_42 = arith.constant 0 : index
    %c0_43 = arith.constant 0 : index
    %c0_44 = arith.constant 0 : index
    %124 = vector.load %arg5[%c0_42, %c0_43, %c0_44] : memref<3x1x21xf32, #tpu.memory_space<vmem>>, vector<1x1x21xf32>
    %125 = vector.shape_cast %124 : vector<1x1x21xf32> to vector<1x21xf32>
    %c0_45 = arith.constant 0 : index
    %c0_46 = arith.constant 0 : index
    %c0_47 = arith.constant 0 : index
    %126 = vector.load %arg6[%c0_45, %c0_46, %c0_47] : memref<3x1x21xf32, #tpu.memory_space<vmem>>, vector<1x1x21xf32>
    %127 = vector.shape_cast %126 : vector<1x1x21xf32> to vector<1x21xf32>
    %cst_48 = arith.constant dense<0.000000e+00> : vector<16xf32>
    %128 = vector.multi_reduction <add>, %123, %cst_48 [1] : vector<16x21xf32> to vector<16xf32>
    %129 = vector.shape_cast %128 : vector<16xf32> to vector<16x1xf32>
    %cst_49 = arith.constant 2.100000e+01 : f32
    %130 = vector.broadcast %cst_49 : f32 to vector<16x1xf32>
    %131 = arith.divf %129, %130 : vector<16x1xf32>
    %132 = vector.broadcast %131 : vector<16x1xf32> to vector<16x21xf32>
    %133 = arith.subf %123, %132 : vector<16x21xf32>
    %134 = arith.mulf %133, %133 : vector<16x21xf32>
    %cst_50 = arith.constant dense<0.000000e+00> : vector<16xf32>
    %135 = vector.multi_reduction <add>, %134, %cst_50 [1] : vector<16x21xf32> to vector<16xf32>
    %136 = vector.shape_cast %135 : vector<16xf32> to vector<16x1xf32>
    %cst_51 = arith.constant 2.100000e+01 : f32
    %137 = vector.broadcast %cst_51 : f32 to vector<16x1xf32>
    %138 = arith.divf %136, %137 : vector<16x1xf32>
    %139 = vector.broadcast %131 : vector<16x1xf32> to vector<16x21xf32>
    %140 = arith.subf %123, %139 : vector<16x21xf32>
    %cst_52 = arith.constant 9.99999974E-6 : f32
    %141 = vector.broadcast %cst_52 : f32 to vector<16x1xf32>
    %142 = arith.addf %138, %141 : vector<16x1xf32>
    %143 = math.rsqrt %142 : vector<16x1xf32>
    %144 = vector.broadcast %143 : vector<16x1xf32> to vector<16x21xf32>
    %145 = arith.mulf %140, %144 : vector<16x21xf32>
    %146 = vector.broadcast %125 : vector<1x21xf32> to vector<16x21xf32>
    %147 = arith.mulf %145, %146 : vector<16x21xf32>
    %148 = vector.broadcast %127 : vector<1x21xf32> to vector<16x21xf32>
    %149 = arith.addf %147, %148 : vector<16x21xf32>
    %150 = arith.truncf %149 : vector<16x21xf32> to vector<16x21xbf16>
    %cst_53 = arith.constant 0.000000e+00 : f32
    %151 = vector.broadcast %cst_53 : f32 to vector<16x21xf32>
    %c0_54 = arith.constant 0 : index
    %c0_55 = arith.constant 0 : index
    %c0_56 = arith.constant 0 : index
    %152 = vector.load %arg9[%c0_54, %c0_55, %c0_56] : memref<3x21x2048xbf16, #tpu.memory_space<vmem>>, vector<1x21x512xbf16>
    %153 = vector.shape_cast %152 : vector<1x21x512xbf16> to vector<21x512xbf16>
    %cst_57 = arith.constant dense<0.000000e+00> : vector<16x512xf32>
    %154 = tpu.matmul %150, %153, %cst_57 {dimension_numbers = #tpu.dot_dimension_numbers<[1], [0], [0], [1], [0, 0, 1, 1], [], []>} : vector<16x21xbf16>, vector<21x512xbf16>, vector<16x512xf32> -> vector<16x512xf32>
    %c0_58 = arith.constant 0 : index
    %c0_59 = arith.constant 0 : index
    %c0_60 = arith.constant 0 : index
    %155 = vector.load %arg10[%c0_58, %c0_59, %c0_60] : memref<3x1x2048xf32, #tpu.memory_space<vmem>>, vector<1x1x512xf32>
    %156 = vector.shape_cast %155 : vector<1x1x512xf32> to vector<1x512xf32>
    %157 = vector.broadcast %156 : vector<1x512xf32> to vector<16x512xf32>
    %158 = arith.addf %154, %157 : vector<16x512xf32>
    %cst_61 = arith.constant 0.000000e+00 : f32
    %159 = vector.broadcast %cst_61 : f32 to vector<16x512xf32>
    %160 = arith.maximumf %158, %159 : vector<16x512xf32>
    %161 = arith.truncf %160 : vector<16x512xf32> to vector<16x512xbf16>
    %c0_62 = arith.constant 0 : index
    %c0_63 = arith.constant 0 : index
    %c0_64 = arith.constant 0 : index
    %162 = vector.load %arg11[%c0_62, %c0_63, %c0_64] : memref<3x2048x21xbf16, #tpu.memory_space<vmem>>, vector<1x512x21xbf16>
    %163 = vector.shape_cast %162 : vector<1x512x21xbf16> to vector<512x21xbf16>
    %cst_65 = arith.constant dense<0.000000e+00> : vector<16x21xf32>
    %164 = tpu.matmul %161, %163, %cst_65 {dimension_numbers = #tpu.dot_dimension_numbers<[1], [0], [0], [1], [0, 0, 1, 1], [], []>} : vector<16x512xbf16>, vector<512x21xbf16>, vector<16x21xf32> -> vector<16x21xf32>
    %165 = arith.addf %151, %164 : vector<16x21xf32>
    %c0_66 = arith.constant 0 : index
    %c0_67 = arith.constant 0 : index
    %c512 = arith.constant 512 : index
    %166 = vector.load %arg9[%c0_66, %c0_67, %c512] : memref<3x21x2048xbf16, #tpu.memory_space<vmem>>, vector<1x21x512xbf16>
    %167 = vector.shape_cast %166 : vector<1x21x512xbf16> to vector<21x512xbf16>
    %cst_68 = arith.constant dense<0.000000e+00> : vector<16x512xf32>
    %168 = tpu.matmul %150, %167, %cst_68 {dimension_numbers = #tpu.dot_dimension_numbers<[1], [0], [0], [1], [0, 0, 1, 1], [], []>} : vector<16x21xbf16>, vector<21x512xbf16>, vector<16x512xf32> -> vector<16x512xf32>
    %c0_69 = arith.constant 0 : index
    %c0_70 = arith.constant 0 : index
    %c512_71 = arith.constant 512 : index
    %169 = vector.load %arg10[%c0_69, %c0_70, %c512_71] : memref<3x1x2048xf32, #tpu.memory_space<vmem>>, vector<1x1x512xf32>
    %170 = vector.shape_cast %169 : vector<1x1x512xf32> to vector<1x512xf32>
    %171 = vector.broadcast %170 : vector<1x512xf32> to vector<16x512xf32>
    %172 = arith.addf %168, %171 : vector<16x512xf32>
    %cst_72 = arith.constant 0.000000e+00 : f32
    %173 = vector.broadcast %cst_72 : f32 to vector<16x512xf32>
    %174 = arith.maximumf %172, %173 : vector<16x512xf32>
    %175 = arith.truncf %174 : vector<16x512xf32> to vector<16x512xbf16>
    %c0_73 = arith.constant 0 : index
    %c512_74 = arith.constant 512 : index
    %c0_75 = arith.constant 0 : index
    %176 = vector.load %arg11[%c0_73, %c512_74, %c0_75] : memref<3x2048x21xbf16, #tpu.memory_space<vmem>>, vector<1x512x21xbf16>
    %177 = vector.shape_cast %176 : vector<1x512x21xbf16> to vector<512x21xbf16>
    %cst_76 = arith.constant dense<0.000000e+00> : vector<16x21xf32>
    %178 = tpu.matmul %175, %177, %cst_76 {dimension_numbers = #tpu.dot_dimension_numbers<[1], [0], [0], [1], [0, 0, 1, 1], [], []>} : vector<16x512xbf16>, vector<512x21xbf16>, vector<16x21xf32> -> vector<16x21xf32>
    %179 = arith.addf %165, %178 : vector<16x21xf32>
    %c0_77 = arith.constant 0 : index
    %c0_78 = arith.constant 0 : index
    %c1024 = arith.constant 1024 : index
    %180 = vector.load %arg9[%c0_77, %c0_78, %c1024] : memref<3x21x2048xbf16, #tpu.memory_space<vmem>>, vector<1x21x512xbf16>
    %181 = vector.shape_cast %180 : vector<1x21x512xbf16> to vector<21x512xbf16>
    %cst_79 = arith.constant dense<0.000000e+00> : vector<16x512xf32>
    %182 = tpu.matmul %150, %181, %cst_79 {dimension_numbers = #tpu.dot_dimension_numbers<[1], [0], [0], [1], [0, 0, 1, 1], [], []>} : vector<16x21xbf16>, vector<21x512xbf16>, vector<16x512xf32> -> vector<16x512xf32>
    %c0_80 = arith.constant 0 : index
    %c0_81 = arith.constant 0 : index
    %c1024_82 = arith.constant 1024 : index
    %183 = vector.load %arg10[%c0_80, %c0_81, %c1024_82] : memref<3x1x2048xf32, #tpu.memory_space<vmem>>, vector<1x1x512xf32>
    %184 = vector.shape_cast %183 : vector<1x1x512xf32> to vector<1x512xf32>
    %185 = vector.broadcast %184 : vector<1x512xf32> to vector<16x512xf32>
    %186 = arith.addf %182, %185 : vector<16x512xf32>
    %cst_83 = arith.constant 0.000000e+00 : f32
    %187 = vector.broadcast %cst_83 : f32 to vector<16x512xf32>
    %188 = arith.maximumf %186, %187 : vector<16x512xf32>
    %189 = arith.truncf %188 : vector<16x512xf32> to vector<16x512xbf16>
    %c0_84 = arith.constant 0 : index
    %c1024_85 = arith.constant 1024 : index
    %c0_86 = arith.constant 0 : index
    %190 = vector.load %arg11[%c0_84, %c1024_85, %c0_86] : memref<3x2048x21xbf16, #tpu.memory_space<vmem>>, vector<1x512x21xbf16>
    %191 = vector.shape_cast %190 : vector<1x512x21xbf16> to vector<512x21xbf16>
    %cst_87 = arith.constant dense<0.000000e+00> : vector<16x21xf32>
    %192 = tpu.matmul %189, %191, %cst_87 {dimension_numbers = #tpu.dot_dimension_numbers<[1], [0], [0], [1], [0, 0, 1, 1], [], []>} : vector<16x512xbf16>, vector<512x21xbf16>, vector<16x21xf32> -> vector<16x21xf32>
    %193 = arith.addf %179, %192 : vector<16x21xf32>
    %c0_88 = arith.constant 0 : index
    %c0_89 = arith.constant 0 : index
    %c1536 = arith.constant 1536 : index
    %194 = vector.load %arg9[%c0_88, %c0_89, %c1536] : memref<3x21x2048xbf16, #tpu.memory_space<vmem>>, vector<1x21x512xbf16>
    %195 = vector.shape_cast %194 : vector<1x21x512xbf16> to vector<21x512xbf16>
    %cst_90 = arith.constant dense<0.000000e+00> : vector<16x512xf32>
    %196 = tpu.matmul %150, %195, %cst_90 {dimension_numbers = #tpu.dot_dimension_numbers<[1], [0], [0], [1], [0, 0, 1, 1], [], []>} : vector<16x21xbf16>, vector<21x512xbf16>, vector<16x512xf32> -> vector<16x512xf32>
    %c0_91 = arith.constant 0 : index
    %c0_92 = arith.constant 0 : index
    %c1536_93 = arith.constant 1536 : index
    %197 = vector.load %arg10[%c0_91, %c0_92, %c1536_93] : memref<3x1x2048xf32, #tpu.memory_space<vmem>>, vector<1x1x512xf32>
    %198 = vector.shape_cast %197 : vector<1x1x512xf32> to vector<1x512xf32>
    %199 = vector.broadcast %198 : vector<1x512xf32> to vector<16x512xf32>
    %200 = arith.addf %196, %199 : vector<16x512xf32>
    %cst_94 = arith.constant 0.000000e+00 : f32
    %201 = vector.broadcast %cst_94 : f32 to vector<16x512xf32>
    %202 = arith.maximumf %200, %201 : vector<16x512xf32>
    %203 = arith.truncf %202 : vector<16x512xf32> to vector<16x512xbf16>
    %c0_95 = arith.constant 0 : index
    %c1536_96 = arith.constant 1536 : index
    %c0_97 = arith.constant 0 : index
    %204 = vector.load %arg11[%c0_95, %c1536_96, %c0_97] : memref<3x2048x21xbf16, #tpu.memory_space<vmem>>, vector<1x512x21xbf16>
    %205 = vector.shape_cast %204 : vector<1x512x21xbf16> to vector<512x21xbf16>
    %cst_98 = arith.constant dense<0.000000e+00> : vector<16x21xf32>
    %206 = tpu.matmul %203, %205, %cst_98 {dimension_numbers = #tpu.dot_dimension_numbers<[1], [0], [0], [1], [0, 0, 1, 1], [], []>} : vector<16x512xbf16>, vector<512x21xbf16>, vector<16x21xf32> -> vector<16x21xf32>
    %207 = arith.addf %193, %206 : vector<16x21xf32>
    %c0_99 = arith.constant 0 : index
    %c0_100 = arith.constant 0 : index
    %c0_101 = arith.constant 0 : index
    %208 = vector.load %arg12[%c0_99, %c0_100, %c0_101] : memref<3x1x21xf32, #tpu.memory_space<vmem>>, vector<1x1x21xf32>
    %209 = vector.shape_cast %208 : vector<1x1x21xf32> to vector<1x21xf32>
    %210 = vector.broadcast %209 : vector<1x21xf32> to vector<16x21xf32>
    %211 = arith.addf %207, %210 : vector<16x21xf32>
    %212 = arith.addf %149, %211 : vector<16x21xf32>
    %c0_102 = arith.constant 0 : index
    %c0_103 = arith.constant 0 : index
    %c0_104 = arith.constant 0 : index
    %213 = vector.load %arg7[%c0_102, %c0_103, %c0_104] : memref<3x1x21xf32, #tpu.memory_space<vmem>>, vector<1x1x21xf32>
    %214 = vector.shape_cast %213 : vector<1x1x21xf32> to vector<1x21xf32>
    %c0_105 = arith.constant 0 : index
    %c0_106 = arith.constant 0 : index
    %c0_107 = arith.constant 0 : index
    %215 = vector.load %arg8[%c0_105, %c0_106, %c0_107] : memref<3x1x21xf32, #tpu.memory_space<vmem>>, vector<1x1x21xf32>
    %216 = vector.shape_cast %215 : vector<1x1x21xf32> to vector<1x21xf32>
    %cst_108 = arith.constant dense<0.000000e+00> : vector<16xf32>
    %217 = vector.multi_reduction <add>, %212, %cst_108 [1] : vector<16x21xf32> to vector<16xf32>
    %218 = vector.shape_cast %217 : vector<16xf32> to vector<16x1xf32>
    %cst_109 = arith.constant 2.100000e+01 : f32
    %219 = vector.broadcast %cst_109 : f32 to vector<16x1xf32>
    %220 = arith.divf %218, %219 : vector<16x1xf32>
    %221 = vector.broadcast %220 : vector<16x1xf32> to vector<16x21xf32>
    %222 = arith.subf %212, %221 : vector<16x21xf32>
    %223 = arith.mulf %222, %222 : vector<16x21xf32>
    %cst_110 = arith.constant dense<0.000000e+00> : vector<16xf32>
    %224 = vector.multi_reduction <add>, %223, %cst_110 [1] : vector<16x21xf32> to vector<16xf32>
    %225 = vector.shape_cast %224 : vector<16xf32> to vector<16x1xf32>
    %cst_111 = arith.constant 2.100000e+01 : f32
    %226 = vector.broadcast %cst_111 : f32 to vector<16x1xf32>
    %227 = arith.divf %225, %226 : vector<16x1xf32>
    %228 = vector.broadcast %220 : vector<16x1xf32> to vector<16x21xf32>
    %229 = arith.subf %212, %228 : vector<16x21xf32>
    %cst_112 = arith.constant 9.99999974E-6 : f32
    %230 = vector.broadcast %cst_112 : f32 to vector<16x1xf32>
    %231 = arith.addf %227, %230 : vector<16x1xf32>
    %232 = math.rsqrt %231 : vector<16x1xf32>
    %233 = vector.broadcast %232 : vector<16x1xf32> to vector<16x21xf32>
    %234 = arith.mulf %229, %233 : vector<16x21xf32>
    %235 = vector.broadcast %214 : vector<1x21xf32> to vector<16x21xf32>
    %236 = arith.mulf %234, %235 : vector<16x21xf32>
    %237 = vector.broadcast %216 : vector<1x21xf32> to vector<16x21xf32>
    %238 = arith.addf %236, %237 : vector<16x21xf32>
    %c1 = arith.constant 1 : index
    %c0_113 = arith.constant 0 : index
    %c0_114 = arith.constant 0 : index
    %239 = vector.load %arg1[%c1, %c0_113, %c0_114] : memref<3x21x63xf32, #tpu.memory_space<vmem>>, vector<1x21x63xf32>
    %240 = vector.shape_cast %239 : vector<1x21x63xf32> to vector<21x63xf32>
    %cst_115 = arith.constant dense<0.000000e+00> : vector<16x63xf32>
    %241 = tpu.matmul %238, %240, %cst_115 {dimension_numbers = #tpu.dot_dimension_numbers<[1], [0], [0], [1], [0, 0, 1, 1], [], []>} : vector<16x21xf32>, vector<21x63xf32>, vector<16x63xf32> -> vector<16x63xf32>
    %c1_116 = arith.constant 1 : index
    %c0_117 = arith.constant 0 : index
    %c0_118 = arith.constant 0 : index
    %242 = vector.load %arg2[%c1_116, %c0_117, %c0_118] : memref<3x1x63xf32, #tpu.memory_space<vmem>>, vector<1x1x63xf32>
    %243 = vector.shape_cast %242 : vector<1x1x63xf32> to vector<1x63xf32>
    %244 = vector.broadcast %243 : vector<1x63xf32> to vector<16x63xf32>
    %245 = arith.addf %241, %244 : vector<16x63xf32>
    %246 = vector.shape_cast %245 : vector<16x63xf32> to vector<2x8x63xf32>
    %247 = vector.extract_strided_slice %246 {offsets = [0, 0, 0], sizes = [2, 8, 3], strides = [1, 1, 1]} : vector<2x8x63xf32> to vector<2x8x3xf32>
    %248 = vector.extract_strided_slice %246 {offsets = [0, 0, 21], sizes = [2, 8, 3], strides = [1, 1, 1]} : vector<2x8x63xf32> to vector<2x8x3xf32>
    %249 = vector.extract_strided_slice %246 {offsets = [0, 0, 42], sizes = [2, 8, 3], strides = [1, 1, 1]} : vector<2x8x63xf32> to vector<2x8x3xf32>
    "tpu.trace_start"() <{level = 10 : i32, message = "bqd,bkd->bqk"}> : () -> ()
    %cst_119 = arith.constant dense<0.000000e+00> : vector<2x8x8xf32>
    %250 = tpu.matmul %247, %248, %cst_119 {dimension_numbers = #tpu.dot_dimension_numbers<[2], [2], [1], [1], [0, 0, 0, 1, 1, 1], [0], [0]>} : vector<2x8x3xf32>, vector<2x8x3xf32>, vector<2x8x8xf32> -> vector<2x8x8xf32>
    "tpu.trace_stop"() : () -> ()
    %cst_120 = arith.constant dense<0xFF800000> : vector<2x8xf32>
    %251 = vector.multi_reduction <maximumf>, %250, %cst_120 [2] : vector<2x8x8xf32> to vector<2x8xf32>
    %252 = vector.shape_cast %251 : vector<2x8xf32> to vector<2x8x1xf32>
    %253 = vector.broadcast %252 : vector<2x8x1xf32> to vector<2x8x8xf32>
    %254 = arith.subf %250, %253 : vector<2x8x8xf32>
    %255 = math.exp %254 : vector<2x8x8xf32>
    %cst_121 = arith.constant dense<0.000000e+00> : vector<2x8xf32>
    %256 = vector.multi_reduction <add>, %255, %cst_121 [2] : vector<2x8x8xf32> to vector<2x8xf32>
    %257 = vector.shape_cast %256 : vector<2x8xf32> to vector<2x8x1xf32>
    %258 = tpu.reciprocal %257 {approx = true} : vector<2x8x1xf32> -> vector<2x8x1xf32>
    %259 = vector.broadcast %258 : vector<2x8x1xf32> to vector<2x8x8xf32>
    %260 = arith.mulf %255, %259 : vector<2x8x8xf32>
    "tpu.trace_start"() <{level = 10 : i32, message = "bqk,bkd->bqd"}> : () -> ()
    %cst_122 = arith.constant dense<0.000000e+00> : vector<2x8x3xf32>
    %261 = tpu.matmul %260, %249, %cst_122 {dimension_numbers = #tpu.dot_dimension_numbers<[2], [1], [1], [2], [0, 0, 0, 1, 1, 2], [0], [0]>} : vector<2x8x8xf32>, vector<2x8x3xf32>, vector<2x8x3xf32> -> vector<2x8x3xf32>
    "tpu.trace_stop"() : () -> ()
    %262 = vector.extract_strided_slice %246 {offsets = [0, 0, 3], sizes = [2, 8, 3], strides = [1, 1, 1]} : vector<2x8x63xf32> to vector<2x8x3xf32>
    %263 = vector.extract_strided_slice %246 {offsets = [0, 0, 24], sizes = [2, 8, 3], strides = [1, 1, 1]} : vector<2x8x63xf32> to vector<2x8x3xf32>
    %264 = vector.extract_strided_slice %246 {offsets = [0, 0, 45], sizes = [2, 8, 3], strides = [1, 1, 1]} : vector<2x8x63xf32> to vector<2x8x3xf32>
    "tpu.trace_start"() <{level = 10 : i32, message = "bqd,bkd->bqk"}> : () -> ()
    %cst_123 = arith.constant dense<0.000000e+00> : vector<2x8x8xf32>
    %265 = tpu.matmul %262, %263, %cst_123 {dimension_numbers = #tpu.dot_dimension_numbers<[2], [2], [1], [1], [0, 0, 0, 1, 1, 1], [0], [0]>} : vector<2x8x3xf32>, vector<2x8x3xf32>, vector<2x8x8xf32> -> vector<2x8x8xf32>
    "tpu.trace_stop"() : () -> ()
    %cst_124 = arith.constant dense<0xFF800000> : vector<2x8xf32>
    %266 = vector.multi_reduction <maximumf>, %265, %cst_124 [2] : vector<2x8x8xf32> to vector<2x8xf32>
    %267 = vector.shape_cast %266 : vector<2x8xf32> to vector<2x8x1xf32>
    %268 = vector.broadcast %267 : vector<2x8x1xf32> to vector<2x8x8xf32>
    %269 = arith.subf %265, %268 : vector<2x8x8xf32>
    %270 = math.exp %269 : vector<2x8x8xf32>
    %cst_125 = arith.constant dense<0.000000e+00> : vector<2x8xf32>
    %271 = vector.multi_reduction <add>, %270, %cst_125 [2] : vector<2x8x8xf32> to vector<2x8xf32>
    %272 = vector.shape_cast %271 : vector<2x8xf32> to vector<2x8x1xf32>
    %273 = tpu.reciprocal %272 {approx = true} : vector<2x8x1xf32> -> vector<2x8x1xf32>
    %274 = vector.broadcast %273 : vector<2x8x1xf32> to vector<2x8x8xf32>
    %275 = arith.mulf %270, %274 : vector<2x8x8xf32>
    "tpu.trace_start"() <{level = 10 : i32, message = "bqk,bkd->bqd"}> : () -> ()
    %cst_126 = arith.constant dense<0.000000e+00> : vector<2x8x3xf32>
    %276 = tpu.matmul %275, %264, %cst_126 {dimension_numbers = #tpu.dot_dimension_numbers<[2], [1], [1], [2], [0, 0, 0, 1, 1, 2], [0], [0]>} : vector<2x8x8xf32>, vector<2x8x3xf32>, vector<2x8x3xf32> -> vector<2x8x3xf32>
    "tpu.trace_stop"() : () -> ()
    %277 = vector.extract_strided_slice %246 {offsets = [0, 0, 6], sizes = [2, 8, 3], strides = [1, 1, 1]} : vector<2x8x63xf32> to vector<2x8x3xf32>
    %278 = vector.extract_strided_slice %246 {offsets = [0, 0, 27], sizes = [2, 8, 3], strides = [1, 1, 1]} : vector<2x8x63xf32> to vector<2x8x3xf32>
    %279 = vector.extract_strided_slice %246 {offsets = [0, 0, 48], sizes = [2, 8, 3], strides = [1, 1, 1]} : vector<2x8x63xf32> to vector<2x8x3xf32>
    "tpu.trace_start"() <{level = 10 : i32, message = "bqd,bkd->bqk"}> : () -> ()
    %cst_127 = arith.constant dense<0.000000e+00> : vector<2x8x8xf32>
    %280 = tpu.matmul %277, %278, %cst_127 {dimension_numbers = #tpu.dot_dimension_numbers<[2], [2], [1], [1], [0, 0, 0, 1, 1, 1], [0], [0]>} : vector<2x8x3xf32>, vector<2x8x3xf32>, vector<2x8x8xf32> -> vector<2x8x8xf32>
    "tpu.trace_stop"() : () -> ()
    %cst_128 = arith.constant dense<0xFF800000> : vector<2x8xf32>
    %281 = vector.multi_reduction <maximumf>, %280, %cst_128 [2] : vector<2x8x8xf32> to vector<2x8xf32>
    %282 = vector.shape_cast %281 : vector<2x8xf32> to vector<2x8x1xf32>
    %283 = vector.broadcast %282 : vector<2x8x1xf32> to vector<2x8x8xf32>
    %284 = arith.subf %280, %283 : vector<2x8x8xf32>
    %285 = math.exp %284 : vector<2x8x8xf32>
    %cst_129 = arith.constant dense<0.000000e+00> : vector<2x8xf32>
    %286 = vector.multi_reduction <add>, %285, %cst_129 [2] : vector<2x8x8xf32> to vector<2x8xf32>
    %287 = vector.shape_cast %286 : vector<2x8xf32> to vector<2x8x1xf32>
    %288 = tpu.reciprocal %287 {approx = true} : vector<2x8x1xf32> -> vector<2x8x1xf32>
    %289 = vector.broadcast %288 : vector<2x8x1xf32> to vector<2x8x8xf32>
    %290 = arith.mulf %285, %289 : vector<2x8x8xf32>
    "tpu.trace_start"() <{level = 10 : i32, message = "bqk,bkd->bqd"}> : () -> ()
    %cst_130 = arith.constant dense<0.000000e+00> : vector<2x8x3xf32>
    %291 = tpu.matmul %290, %279, %cst_130 {dimension_numbers = #tpu.dot_dimension_numbers<[2], [1], [1], [2], [0, 0, 0, 1, 1, 2], [0], [0]>} : vector<2x8x8xf32>, vector<2x8x3xf32>, vector<2x8x3xf32> -> vector<2x8x3xf32>
    "tpu.trace_stop"() : () -> ()
    %292 = vector.extract_strided_slice %246 {offsets = [0, 0, 9], sizes = [2, 8, 3], strides = [1, 1, 1]} : vector<2x8x63xf32> to vector<2x8x3xf32>
    %293 = vector.extract_strided_slice %246 {offsets = [0, 0, 30], sizes = [2, 8, 3], strides = [1, 1, 1]} : vector<2x8x63xf32> to vector<2x8x3xf32>
    %294 = vector.extract_strided_slice %246 {offsets = [0, 0, 51], sizes = [2, 8, 3], strides = [1, 1, 1]} : vector<2x8x63xf32> to vector<2x8x3xf32>
    "tpu.trace_start"() <{level = 10 : i32, message = "bqd,bkd->bqk"}> : () -> ()
    %cst_131 = arith.constant dense<0.000000e+00> : vector<2x8x8xf32>
    %295 = tpu.matmul %292, %293, %cst_131 {dimension_numbers = #tpu.dot_dimension_numbers<[2], [2], [1], [1], [0, 0, 0, 1, 1, 1], [0], [0]>} : vector<2x8x3xf32>, vector<2x8x3xf32>, vector<2x8x8xf32> -> vector<2x8x8xf32>
    "tpu.trace_stop"() : () -> ()
    %cst_132 = arith.constant dense<0xFF800000> : vector<2x8xf32>
    %296 = vector.multi_reduction <maximumf>, %295, %cst_132 [2] : vector<2x8x8xf32> to vector<2x8xf32>
    %297 = vector.shape_cast %296 : vector<2x8xf32> to vector<2x8x1xf32>
    %298 = vector.broadcast %297 : vector<2x8x1xf32> to vector<2x8x8xf32>
    %299 = arith.subf %295, %298 : vector<2x8x8xf32>
    %300 = math.exp %299 : vector<2x8x8xf32>
    %cst_133 = arith.constant dense<0.000000e+00> : vector<2x8xf32>
    %301 = vector.multi_reduction <add>, %300, %cst_133 [2] : vector<2x8x8xf32> to vector<2x8xf32>
    %302 = vector.shape_cast %301 : vector<2x8xf32> to vector<2x8x1xf32>
    %303 = tpu.reciprocal %302 {approx = true} : vector<2x8x1xf32> -> vector<2x8x1xf32>
    %304 = vector.broadcast %303 : vector<2x8x1xf32> to vector<2x8x8xf32>
    %305 = arith.mulf %300, %304 : vector<2x8x8xf32>
    "tpu.trace_start"() <{level = 10 : i32, message = "bqk,bkd->bqd"}> : () -> ()
    %cst_134 = arith.constant dense<0.000000e+00> : vector<2x8x3xf32>
    %306 = tpu.matmul %305, %294, %cst_134 {dimension_numbers = #tpu.dot_dimension_numbers<[2], [1], [1], [2], [0, 0, 0, 1, 1, 2], [0], [0]>} : vector<2x8x8xf32>, vector<2x8x3xf32>, vector<2x8x3xf32> -> vector<2x8x3xf32>
    "tpu.trace_stop"() : () -> ()
    %307 = vector.extract_strided_slice %246 {offsets = [0, 0, 12], sizes = [2, 8, 3], strides = [1, 1, 1]} : vector<2x8x63xf32> to vector<2x8x3xf32>
    %308 = vector.extract_strided_slice %246 {offsets = [0, 0, 33], sizes = [2, 8, 3], strides = [1, 1, 1]} : vector<2x8x63xf32> to vector<2x8x3xf32>
    %309 = vector.extract_strided_slice %246 {offsets = [0, 0, 54], sizes = [2, 8, 3], strides = [1, 1, 1]} : vector<2x8x63xf32> to vector<2x8x3xf32>
    "tpu.trace_start"() <{level = 10 : i32, message = "bqd,bkd->bqk"}> : () -> ()
    %cst_135 = arith.constant dense<0.000000e+00> : vector<2x8x8xf32>
    %310 = tpu.matmul %307, %308, %cst_135 {dimension_numbers = #tpu.dot_dimension_numbers<[2], [2], [1], [1], [0, 0, 0, 1, 1, 1], [0], [0]>} : vector<2x8x3xf32>, vector<2x8x3xf32>, vector<2x8x8xf32> -> vector<2x8x8xf32>
    "tpu.trace_stop"() : () -> ()
    %cst_136 = arith.constant dense<0xFF800000> : vector<2x8xf32>
    %311 = vector.multi_reduction <maximumf>, %310, %cst_136 [2] : vector<2x8x8xf32> to vector<2x8xf32>
    %312 = vector.shape_cast %311 : vector<2x8xf32> to vector<2x8x1xf32>
    %313 = vector.broadcast %312 : vector<2x8x1xf32> to vector<2x8x8xf32>
    %314 = arith.subf %310, %313 : vector<2x8x8xf32>
    %315 = math.exp %314 : vector<2x8x8xf32>
    %cst_137 = arith.constant dense<0.000000e+00> : vector<2x8xf32>
    %316 = vector.multi_reduction <add>, %315, %cst_137 [2] : vector<2x8x8xf32> to vector<2x8xf32>
    %317 = vector.shape_cast %316 : vector<2x8xf32> to vector<2x8x1xf32>
    %318 = tpu.reciprocal %317 {approx = true} : vector<2x8x1xf32> -> vector<2x8x1xf32>
    %319 = vector.broadcast %318 : vector<2x8x1xf32> to vector<2x8x8xf32>
    %320 = arith.mulf %315, %319 : vector<2x8x8xf32>
    "tpu.trace_start"() <{level = 10 : i32, message = "bqk,bkd->bqd"}> : () -> ()
    %cst_138 = arith.constant dense<0.000000e+00> : vector<2x8x3xf32>
    %321 = tpu.matmul %320, %309, %cst_138 {dimension_numbers = #tpu.dot_dimension_numbers<[2], [1], [1], [2], [0, 0, 0, 1, 1, 2], [0], [0]>} : vector<2x8x8xf32>, vector<2x8x3xf32>, vector<2x8x3xf32> -> vector<2x8x3xf32>
    "tpu.trace_stop"() : () -> ()
    %322 = vector.extract_strided_slice %246 {offsets = [0, 0, 15], sizes = [2, 8, 3], strides = [1, 1, 1]} : vector<2x8x63xf32> to vector<2x8x3xf32>
    %323 = vector.extract_strided_slice %246 {offsets = [0, 0, 36], sizes = [2, 8, 3], strides = [1, 1, 1]} : vector<2x8x63xf32> to vector<2x8x3xf32>
    %324 = vector.extract_strided_slice %246 {offsets = [0, 0, 57], sizes = [2, 8, 3], strides = [1, 1, 1]} : vector<2x8x63xf32> to vector<2x8x3xf32>
    "tpu.trace_start"() <{level = 10 : i32, message = "bqd,bkd->bqk"}> : () -> ()
    %cst_139 = arith.constant dense<0.000000e+00> : vector<2x8x8xf32>
    %325 = tpu.matmul %322, %323, %cst_139 {dimension_numbers = #tpu.dot_dimension_numbers<[2], [2], [1], [1], [0, 0, 0, 1, 1, 1], [0], [0]>} : vector<2x8x3xf32>, vector<2x8x3xf32>, vector<2x8x8xf32> -> vector<2x8x8xf32>
    "tpu.trace_stop"() : () -> ()
    %cst_140 = arith.constant dense<0xFF800000> : vector<2x8xf32>
    %326 = vector.multi_reduction <maximumf>, %325, %cst_140 [2] : vector<2x8x8xf32> to vector<2x8xf32>
    %327 = vector.shape_cast %326 : vector<2x8xf32> to vector<2x8x1xf32>
    %328 = vector.broadcast %327 : vector<2x8x1xf32> to vector<2x8x8xf32>
    %329 = arith.subf %325, %328 : vector<2x8x8xf32>
    %330 = math.exp %329 : vector<2x8x8xf32>
    %cst_141 = arith.constant dense<0.000000e+00> : vector<2x8xf32>
    %331 = vector.multi_reduction <add>, %330, %cst_141 [2] : vector<2x8x8xf32> to vector<2x8xf32>
    %332 = vector.shape_cast %331 : vector<2x8xf32> to vector<2x8x1xf32>
    %333 = tpu.reciprocal %332 {approx = true} : vector<2x8x1xf32> -> vector<2x8x1xf32>
    %334 = vector.broadcast %333 : vector<2x8x1xf32> to vector<2x8x8xf32>
    %335 = arith.mulf %330, %334 : vector<2x8x8xf32>
    "tpu.trace_start"() <{level = 10 : i32, message = "bqk,bkd->bqd"}> : () -> ()
    %cst_142 = arith.constant dense<0.000000e+00> : vector<2x8x3xf32>
    %336 = tpu.matmul %335, %324, %cst_142 {dimension_numbers = #tpu.dot_dimension_numbers<[2], [1], [1], [2], [0, 0, 0, 1, 1, 2], [0], [0]>} : vector<2x8x8xf32>, vector<2x8x3xf32>, vector<2x8x3xf32> -> vector<2x8x3xf32>
    "tpu.trace_stop"() : () -> ()
    %337 = vector.extract_strided_slice %246 {offsets = [0, 0, 18], sizes = [2, 8, 3], strides = [1, 1, 1]} : vector<2x8x63xf32> to vector<2x8x3xf32>
    %338 = vector.extract_strided_slice %246 {offsets = [0, 0, 39], sizes = [2, 8, 3], strides = [1, 1, 1]} : vector<2x8x63xf32> to vector<2x8x3xf32>
    %339 = vector.extract_strided_slice %246 {offsets = [0, 0, 60], sizes = [2, 8, 3], strides = [1, 1, 1]} : vector<2x8x63xf32> to vector<2x8x3xf32>
    "tpu.trace_start"() <{level = 10 : i32, message = "bqd,bkd->bqk"}> : () -> ()
    %cst_143 = arith.constant dense<0.000000e+00> : vector<2x8x8xf32>
    %340 = tpu.matmul %337, %338, %cst_143 {dimension_numbers = #tpu.dot_dimension_numbers<[2], [2], [1], [1], [0, 0, 0, 1, 1, 1], [0], [0]>} : vector<2x8x3xf32>, vector<2x8x3xf32>, vector<2x8x8xf32> -> vector<2x8x8xf32>
    "tpu.trace_stop"() : () -> ()
    %cst_144 = arith.constant dense<0xFF800000> : vector<2x8xf32>
    %341 = vector.multi_reduction <maximumf>, %340, %cst_144 [2] : vector<2x8x8xf32> to vector<2x8xf32>
    %342 = vector.shape_cast %341 : vector<2x8xf32> to vector<2x8x1xf32>
    %343 = vector.broadcast %342 : vector<2x8x1xf32> to vector<2x8x8xf32>
    %344 = arith.subf %340, %343 : vector<2x8x8xf32>
    %345 = math.exp %344 : vector<2x8x8xf32>
    %cst_145 = arith.constant dense<0.000000e+00> : vector<2x8xf32>
    %346 = vector.multi_reduction <add>, %345, %cst_145 [2] : vector<2x8x8xf32> to vector<2x8xf32>
    %347 = vector.shape_cast %346 : vector<2x8xf32> to vector<2x8x1xf32>
    %348 = tpu.reciprocal %347 {approx = true} : vector<2x8x1xf32> -> vector<2x8x1xf32>
    %349 = vector.broadcast %348 : vector<2x8x1xf32> to vector<2x8x8xf32>
    %350 = arith.mulf %345, %349 : vector<2x8x8xf32>
    "tpu.trace_start"() <{level = 10 : i32, message = "bqk,bkd->bqd"}> : () -> ()
    %cst_146 = arith.constant dense<0.000000e+00> : vector<2x8x3xf32>
    %351 = tpu.matmul %350, %339, %cst_146 {dimension_numbers = #tpu.dot_dimension_numbers<[2], [1], [1], [2], [0, 0, 0, 1, 1, 2], [0], [0]>} : vector<2x8x8xf32>, vector<2x8x3xf32>, vector<2x8x3xf32> -> vector<2x8x3xf32>
    "tpu.trace_stop"() : () -> ()
    %352 = tpu.concatenate %261, %276, %291, %306, %321, %336, %351 in 2 : vector<2x8x3xf32>, vector<2x8x3xf32>, vector<2x8x3xf32>, vector<2x8x3xf32>, vector<2x8x3xf32>, vector<2x8x3xf32>, vector<2x8x3xf32> -> vector<2x8x21xf32>
    %353 = vector.shape_cast %352 : vector<2x8x21xf32> to vector<16x21xf32>
    %c1_147 = arith.constant 1 : index
    %c0_148 = arith.constant 0 : index
    %c0_149 = arith.constant 0 : index
    %354 = vector.load %arg3[%c1_147, %c0_148, %c0_149] : memref<3x21x21xf32, #tpu.memory_space<vmem>>, vector<1x21x21xf32>
    %355 = vector.shape_cast %354 : vector<1x21x21xf32> to vector<21x21xf32>
    %cst_150 = arith.constant dense<0.000000e+00> : vector<16x21xf32>
    %356 = tpu.matmul %353, %355, %cst_150 {dimension_numbers = #tpu.dot_dimension_numbers<[1], [0], [0], [1], [0, 0, 1, 1], [], []>} : vector<16x21xf32>, vector<21x21xf32>, vector<16x21xf32> -> vector<16x21xf32>
    %c1_151 = arith.constant 1 : index
    %c0_152 = arith.constant 0 : index
    %c0_153 = arith.constant 0 : index
    %357 = vector.load %arg4[%c1_151, %c0_152, %c0_153] : memref<3x1x21xf32, #tpu.memory_space<vmem>>, vector<1x1x21xf32>
    %358 = vector.shape_cast %357 : vector<1x1x21xf32> to vector<1x21xf32>
    %359 = vector.broadcast %358 : vector<1x21xf32> to vector<16x21xf32>
    %360 = arith.addf %356, %359 : vector<16x21xf32>
    %361 = arith.addf %238, %360 : vector<16x21xf32>
    %c1_154 = arith.constant 1 : index
    %c0_155 = arith.constant 0 : index
    %c0_156 = arith.constant 0 : index
    %362 = vector.load %arg5[%c1_154, %c0_155, %c0_156] : memref<3x1x21xf32, #tpu.memory_space<vmem>>, vector<1x1x21xf32>
    %363 = vector.shape_cast %362 : vector<1x1x21xf32> to vector<1x21xf32>
    %c1_157 = arith.constant 1 : index
    %c0_158 = arith.constant 0 : index
    %c0_159 = arith.constant 0 : index
    %364 = vector.load %arg6[%c1_157, %c0_158, %c0_159] : memref<3x1x21xf32, #tpu.memory_space<vmem>>, vector<1x1x21xf32>
    %365 = vector.shape_cast %364 : vector<1x1x21xf32> to vector<1x21xf32>
    %cst_160 = arith.constant dense<0.000000e+00> : vector<16xf32>
    %366 = vector.multi_reduction <add>, %361, %cst_160 [1] : vector<16x21xf32> to vector<16xf32>
    %367 = vector.shape_cast %366 : vector<16xf32> to vector<16x1xf32>
    %cst_161 = arith.constant 2.100000e+01 : f32
    %368 = vector.broadcast %cst_161 : f32 to vector<16x1xf32>
    %369 = arith.divf %367, %368 : vector<16x1xf32>
    %370 = vector.broadcast %369 : vector<16x1xf32> to vector<16x21xf32>
    %371 = arith.subf %361, %370 : vector<16x21xf32>
    %372 = arith.mulf %371, %371 : vector<16x21xf32>
    %cst_162 = arith.constant dense<0.000000e+00> : vector<16xf32>
    %373 = vector.multi_reduction <add>, %372, %cst_162 [1] : vector<16x21xf32> to vector<16xf32>
    %374 = vector.shape_cast %373 : vector<16xf32> to vector<16x1xf32>
    %cst_163 = arith.constant 2.100000e+01 : f32
    %375 = vector.broadcast %cst_163 : f32 to vector<16x1xf32>
    %376 = arith.divf %374, %375 : vector<16x1xf32>
    %377 = vector.broadcast %369 : vector<16x1xf32> to vector<16x21xf32>
    %378 = arith.subf %361, %377 : vector<16x21xf32>
    %cst_164 = arith.constant 9.99999974E-6 : f32
    %379 = vector.broadcast %cst_164 : f32 to vector<16x1xf32>
    %380 = arith.addf %376, %379 : vector<16x1xf32>
    %381 = math.rsqrt %380 : vector<16x1xf32>
    %382 = vector.broadcast %381 : vector<16x1xf32> to vector<16x21xf32>
    %383 = arith.mulf %378, %382 : vector<16x21xf32>
    %384 = vector.broadcast %363 : vector<1x21xf32> to vector<16x21xf32>
    %385 = arith.mulf %383, %384 : vector<16x21xf32>
    %386 = vector.broadcast %365 : vector<1x21xf32> to vector<16x21xf32>
    %387 = arith.addf %385, %386 : vector<16x21xf32>
    %388 = arith.truncf %387 : vector<16x21xf32> to vector<16x21xbf16>
    %cst_165 = arith.constant 0.000000e+00 : f32
    %389 = vector.broadcast %cst_165 : f32 to vector<16x21xf32>
    %c1_166 = arith.constant 1 : index
    %c0_167 = arith.constant 0 : index
    %c0_168 = arith.constant 0 : index
    %390 = vector.load %arg9[%c1_166, %c0_167, %c0_168] : memref<3x21x2048xbf16, #tpu.memory_space<vmem>>, vector<1x21x512xbf16>
    %391 = vector.shape_cast %390 : vector<1x21x512xbf16> to vector<21x512xbf16>
    %cst_169 = arith.constant dense<0.000000e+00> : vector<16x512xf32>
    %392 = tpu.matmul %388, %391, %cst_169 {dimension_numbers = #tpu.dot_dimension_numbers<[1], [0], [0], [1], [0, 0, 1, 1], [], []>} : vector<16x21xbf16>, vector<21x512xbf16>, vector<16x512xf32> -> vector<16x512xf32>
    %c1_170 = arith.constant 1 : index
    %c0_171 = arith.constant 0 : index
    %c0_172 = arith.constant 0 : index
    %393 = vector.load %arg10[%c1_170, %c0_171, %c0_172] : memref<3x1x2048xf32, #tpu.memory_space<vmem>>, vector<1x1x512xf32>
    %394 = vector.shape_cast %393 : vector<1x1x512xf32> to vector<1x512xf32>
    %395 = vector.broadcast %394 : vector<1x512xf32> to vector<16x512xf32>
    %396 = arith.addf %392, %395 : vector<16x512xf32>
    %cst_173 = arith.constant 0.000000e+00 : f32
    %397 = vector.broadcast %cst_173 : f32 to vector<16x512xf32>
    %398 = arith.maximumf %396, %397 : vector<16x512xf32>
    %399 = arith.truncf %398 : vector<16x512xf32> to vector<16x512xbf16>
    %c1_174 = arith.constant 1 : index
    %c0_175 = arith.constant 0 : index
    %c0_176 = arith.constant 0 : index
    %400 = vector.load %arg11[%c1_174, %c0_175, %c0_176] : memref<3x2048x21xbf16, #tpu.memory_space<vmem>>, vector<1x512x21xbf16>
    %401 = vector.shape_cast %400 : vector<1x512x21xbf16> to vector<512x21xbf16>
    %cst_177 = arith.constant dense<0.000000e+00> : vector<16x21xf32>
    %402 = tpu.matmul %399, %401, %cst_177 {dimension_numbers = #tpu.dot_dimension_numbers<[1], [0], [0], [1], [0, 0, 1, 1], [], []>} : vector<16x512xbf16>, vector<512x21xbf16>, vector<16x21xf32> -> vector<16x21xf32>
    %403 = arith.addf %389, %402 : vector<16x21xf32>
    %c1_178 = arith.constant 1 : index
    %c0_179 = arith.constant 0 : index
    %c512_180 = arith.constant 512 : index
    %404 = vector.load %arg9[%c1_178, %c0_179, %c512_180] : memref<3x21x2048xbf16, #tpu.memory_space<vmem>>, vector<1x21x512xbf16>
    %405 = vector.shape_cast %404 : vector<1x21x512xbf16> to vector<21x512xbf16>
    %cst_181 = arith.constant dense<0.000000e+00> : vector<16x512xf32>
    %406 = tpu.matmul %388, %405, %cst_181 {dimension_numbers = #tpu.dot_dimension_numbers<[1], [0], [0], [1], [0, 0, 1, 1], [], []>} : vector<16x21xbf16>, vector<21x512xbf16>, vector<16x512xf32> -> vector<16x512xf32>
    %c1_182 = arith.constant 1 : index
    %c0_183 = arith.constant 0 : index
    %c512_184 = arith.constant 512 : index
    %407 = vector.load %arg10[%c1_182, %c0_183, %c512_184] : memref<3x1x2048xf32, #tpu.memory_space<vmem>>, vector<1x1x512xf32>
    %408 = vector.shape_cast %407 : vector<1x1x512xf32> to vector<1x512xf32>
    %409 = vector.broadcast %408 : vector<1x512xf32> to vector<16x512xf32>
    %410 = arith.addf %406, %409 : vector<16x512xf32>
    %cst_185 = arith.constant 0.000000e+00 : f32
    %411 = vector.broadcast %cst_185 : f32 to vector<16x512xf32>
    %412 = arith.maximumf %410, %411 : vector<16x512xf32>
    %413 = arith.truncf %412 : vector<16x512xf32> to vector<16x512xbf16>
    %c1_186 = arith.constant 1 : index
    %c512_187 = arith.constant 512 : index
    %c0_188 = arith.constant 0 : index
    %414 = vector.load %arg11[%c1_186, %c512_187, %c0_188] : memref<3x2048x21xbf16, #tpu.memory_space<vmem>>, vector<1x512x21xbf16>
    %415 = vector.shape_cast %414 : vector<1x512x21xbf16> to vector<512x21xbf16>
    %cst_189 = arith.constant dense<0.000000e+00> : vector<16x21xf32>
    %416 = tpu.matmul %413, %415, %cst_189 {dimension_numbers = #tpu.dot_dimension_numbers<[1], [0], [0], [1], [0, 0, 1, 1], [], []>} : vector<16x512xbf16>, vector<512x21xbf16>, vector<16x21xf32> -> vector<16x21xf32>
    %417 = arith.addf %403, %416 : vector<16x21xf32>
    %c1_190 = arith.constant 1 : index
    %c0_191 = arith.constant 0 : index
    %c1024_192 = arith.constant 1024 : index
    %418 = vector.load %arg9[%c1_190, %c0_191, %c1024_192] : memref<3x21x2048xbf16, #tpu.memory_space<vmem>>, vector<1x21x512xbf16>
    %419 = vector.shape_cast %418 : vector<1x21x512xbf16> to vector<21x512xbf16>
    %cst_193 = arith.constant dense<0.000000e+00> : vector<16x512xf32>
    %420 = tpu.matmul %388, %419, %cst_193 {dimension_numbers = #tpu.dot_dimension_numbers<[1], [0], [0], [1], [0, 0, 1, 1], [], []>} : vector<16x21xbf16>, vector<21x512xbf16>, vector<16x512xf32> -> vector<16x512xf32>
    %c1_194 = arith.constant 1 : index
    %c0_195 = arith.constant 0 : index
    %c1024_196 = arith.constant 1024 : index
    %421 = vector.load %arg10[%c1_194, %c0_195, %c1024_196] : memref<3x1x2048xf32, #tpu.memory_space<vmem>>, vector<1x1x512xf32>
    %422 = vector.shape_cast %421 : vector<1x1x512xf32> to vector<1x512xf32>
    %423 = vector.broadcast %422 : vector<1x512xf32> to vector<16x512xf32>
    %424 = arith.addf %420, %423 : vector<16x512xf32>
    %cst_197 = arith.constant 0.000000e+00 : f32
    %425 = vector.broadcast %cst_197 : f32 to vector<16x512xf32>
    %426 = arith.maximumf %424, %425 : vector<16x512xf32>
    %427 = arith.truncf %426 : vector<16x512xf32> to vector<16x512xbf16>
    %c1_198 = arith.constant 1 : index
    %c1024_199 = arith.constant 1024 : index
    %c0_200 = arith.constant 0 : index
    %428 = vector.load %arg11[%c1_198, %c1024_199, %c0_200] : memref<3x2048x21xbf16, #tpu.memory_space<vmem>>, vector<1x512x21xbf16>
    %429 = vector.shape_cast %428 : vector<1x512x21xbf16> to vector<512x21xbf16>
    %cst_201 = arith.constant dense<0.000000e+00> : vector<16x21xf32>
    %430 = tpu.matmul %427, %429, %cst_201 {dimension_numbers = #tpu.dot_dimension_numbers<[1], [0], [0], [1], [0, 0, 1, 1], [], []>} : vector<16x512xbf16>, vector<512x21xbf16>, vector<16x21xf32> -> vector<16x21xf32>
    %431 = arith.addf %417, %430 : vector<16x21xf32>
    %c1_202 = arith.constant 1 : index
    %c0_203 = arith.constant 0 : index
    %c1536_204 = arith.constant 1536 : index
    %432 = vector.load %arg9[%c1_202, %c0_203, %c1536_204] : memref<3x21x2048xbf16, #tpu.memory_space<vmem>>, vector<1x21x512xbf16>
    %433 = vector.shape_cast %432 : vector<1x21x512xbf16> to vector<21x512xbf16>
    %cst_205 = arith.constant dense<0.000000e+00> : vector<16x512xf32>
    %434 = tpu.matmul %388, %433, %cst_205 {dimension_numbers = #tpu.dot_dimension_numbers<[1], [0], [0], [1], [0, 0, 1, 1], [], []>} : vector<16x21xbf16>, vector<21x512xbf16>, vector<16x512xf32> -> vector<16x512xf32>
    %c1_206 = arith.constant 1 : index
    %c0_207 = arith.constant 0 : index
    %c1536_208 = arith.constant 1536 : index
    %435 = vector.load %arg10[%c1_206, %c0_207, %c1536_208] : memref<3x1x2048xf32, #tpu.memory_space<vmem>>, vector<1x1x512xf32>
    %436 = vector.shape_cast %435 : vector<1x1x512xf32> to vector<1x512xf32>
    %437 = vector.broadcast %436 : vector<1x512xf32> to vector<16x512xf32>
    %438 = arith.addf %434, %437 : vector<16x512xf32>
    %cst_209 = arith.constant 0.000000e+00 : f32
    %439 = vector.broadcast %cst_209 : f32 to vector<16x512xf32>
    %440 = arith.maximumf %438, %439 : vector<16x512xf32>
    %441 = arith.truncf %440 : vector<16x512xf32> to vector<16x512xbf16>
    %c1_210 = arith.constant 1 : index
    %c1536_211 = arith.constant 1536 : index
    %c0_212 = arith.constant 0 : index
    %442 = vector.load %arg11[%c1_210, %c1536_211, %c0_212] : memref<3x2048x21xbf16, #tpu.memory_space<vmem>>, vector<1x512x21xbf16>
    %443 = vector.shape_cast %442 : vector<1x512x21xbf16> to vector<512x21xbf16>
    %cst_213 = arith.constant dense<0.000000e+00> : vector<16x21xf32>
    %444 = tpu.matmul %441, %443, %cst_213 {dimension_numbers = #tpu.dot_dimension_numbers<[1], [0], [0], [1], [0, 0, 1, 1], [], []>} : vector<16x512xbf16>, vector<512x21xbf16>, vector<16x21xf32> -> vector<16x21xf32>
    %445 = arith.addf %431, %444 : vector<16x21xf32>
    %c1_214 = arith.constant 1 : index
    %c0_215 = arith.constant 0 : index
    %c0_216 = arith.constant 0 : index
    %446 = vector.load %arg12[%c1_214, %c0_215, %c0_216] : memref<3x1x21xf32, #tpu.memory_space<vmem>>, vector<1x1x21xf32>
    %447 = vector.shape_cast %446 : vector<1x1x21xf32> to vector<1x21xf32>
    %448 = vector.broadcast %447 : vector<1x21xf32> to vector<16x21xf32>
    %449 = arith.addf %445, %448 : vector<16x21xf32>
    %450 = arith.addf %387, %449 : vector<16x21xf32>
    %c1_217 = arith.constant 1 : index
    %c0_218 = arith.constant 0 : index
    %c0_219 = arith.constant 0 : index
    %451 = vector.load %arg7[%c1_217, %c0_218, %c0_219] : memref<3x1x21xf32, #tpu.memory_space<vmem>>, vector<1x1x21xf32>
    %452 = vector.shape_cast %451 : vector<1x1x21xf32> to vector<1x21xf32>
    %c1_220 = arith.constant 1 : index
    %c0_221 = arith.constant 0 : index
    %c0_222 = arith.constant 0 : index
    %453 = vector.load %arg8[%c1_220, %c0_221, %c0_222] : memref<3x1x21xf32, #tpu.memory_space<vmem>>, vector<1x1x21xf32>
    %454 = vector.shape_cast %453 : vector<1x1x21xf32> to vector<1x21xf32>
    %cst_223 = arith.constant dense<0.000000e+00> : vector<16xf32>
    %455 = vector.multi_reduction <add>, %450, %cst_223 [1] : vector<16x21xf32> to vector<16xf32>
    %456 = vector.shape_cast %455 : vector<16xf32> to vector<16x1xf32>
    %cst_224 = arith.constant 2.100000e+01 : f32
    %457 = vector.broadcast %cst_224 : f32 to vector<16x1xf32>
    %458 = arith.divf %456, %457 : vector<16x1xf32>
    %459 = vector.broadcast %458 : vector<16x1xf32> to vector<16x21xf32>
    %460 = arith.subf %450, %459 : vector<16x21xf32>
    %461 = arith.mulf %460, %460 : vector<16x21xf32>
    %cst_225 = arith.constant dense<0.000000e+00> : vector<16xf32>
    %462 = vector.multi_reduction <add>, %461, %cst_225 [1] : vector<16x21xf32> to vector<16xf32>
    %463 = vector.shape_cast %462 : vector<16xf32> to vector<16x1xf32>
    %cst_226 = arith.constant 2.100000e+01 : f32
    %464 = vector.broadcast %cst_226 : f32 to vector<16x1xf32>
    %465 = arith.divf %463, %464 : vector<16x1xf32>
    %466 = vector.broadcast %458 : vector<16x1xf32> to vector<16x21xf32>
    %467 = arith.subf %450, %466 : vector<16x21xf32>
    %cst_227 = arith.constant 9.99999974E-6 : f32
    %468 = vector.broadcast %cst_227 : f32 to vector<16x1xf32>
    %469 = arith.addf %465, %468 : vector<16x1xf32>
    %470 = math.rsqrt %469 : vector<16x1xf32>
    %471 = vector.broadcast %470 : vector<16x1xf32> to vector<16x21xf32>
    %472 = arith.mulf %467, %471 : vector<16x21xf32>
    %473 = vector.broadcast %452 : vector<1x21xf32> to vector<16x21xf32>
    %474 = arith.mulf %472, %473 : vector<16x21xf32>
    %475 = vector.broadcast %454 : vector<1x21xf32> to vector<16x21xf32>
    %476 = arith.addf %474, %475 : vector<16x21xf32>
    %c2 = arith.constant 2 : index
    %c0_228 = arith.constant 0 : index
    %c0_229 = arith.constant 0 : index
    %477 = vector.load %arg1[%c2, %c0_228, %c0_229] : memref<3x21x63xf32, #tpu.memory_space<vmem>>, vector<1x21x63xf32>
    %478 = vector.shape_cast %477 : vector<1x21x63xf32> to vector<21x63xf32>
    %cst_230 = arith.constant dense<0.000000e+00> : vector<16x63xf32>
    %479 = tpu.matmul %476, %478, %cst_230 {dimension_numbers = #tpu.dot_dimension_numbers<[1], [0], [0], [1], [0, 0, 1, 1], [], []>} : vector<16x21xf32>, vector<21x63xf32>, vector<16x63xf32> -> vector<16x63xf32>
    %c2_231 = arith.constant 2 : index
    %c0_232 = arith.constant 0 : index
    %c0_233 = arith.constant 0 : index
    %480 = vector.load %arg2[%c2_231, %c0_232, %c0_233] : memref<3x1x63xf32, #tpu.memory_space<vmem>>, vector<1x1x63xf32>
    %481 = vector.shape_cast %480 : vector<1x1x63xf32> to vector<1x63xf32>
    %482 = vector.broadcast %481 : vector<1x63xf32> to vector<16x63xf32>
    %483 = arith.addf %479, %482 : vector<16x63xf32>
    %484 = vector.shape_cast %483 : vector<16x63xf32> to vector<2x8x63xf32>
    %485 = vector.extract_strided_slice %484 {offsets = [0, 0, 0], sizes = [2, 8, 3], strides = [1, 1, 1]} : vector<2x8x63xf32> to vector<2x8x3xf32>
    %486 = vector.extract_strided_slice %484 {offsets = [0, 0, 21], sizes = [2, 8, 3], strides = [1, 1, 1]} : vector<2x8x63xf32> to vector<2x8x3xf32>
    %487 = vector.extract_strided_slice %484 {offsets = [0, 0, 42], sizes = [2, 8, 3], strides = [1, 1, 1]} : vector<2x8x63xf32> to vector<2x8x3xf32>
    "tpu.trace_start"() <{level = 10 : i32, message = "bqd,bkd->bqk"}> : () -> ()
    %cst_234 = arith.constant dense<0.000000e+00> : vector<2x8x8xf32>
    %488 = tpu.matmul %485, %486, %cst_234 {dimension_numbers = #tpu.dot_dimension_numbers<[2], [2], [1], [1], [0, 0, 0, 1, 1, 1], [0], [0]>} : vector<2x8x3xf32>, vector<2x8x3xf32>, vector<2x8x8xf32> -> vector<2x8x8xf32>
    "tpu.trace_stop"() : () -> ()
    %cst_235 = arith.constant dense<0xFF800000> : vector<2x8xf32>
    %489 = vector.multi_reduction <maximumf>, %488, %cst_235 [2] : vector<2x8x8xf32> to vector<2x8xf32>
    %490 = vector.shape_cast %489 : vector<2x8xf32> to vector<2x8x1xf32>
    %491 = vector.broadcast %490 : vector<2x8x1xf32> to vector<2x8x8xf32>
    %492 = arith.subf %488, %491 : vector<2x8x8xf32>
    %493 = math.exp %492 : vector<2x8x8xf32>
    %cst_236 = arith.constant dense<0.000000e+00> : vector<2x8xf32>
    %494 = vector.multi_reduction <add>, %493, %cst_236 [2] : vector<2x8x8xf32> to vector<2x8xf32>
    %495 = vector.shape_cast %494 : vector<2x8xf32> to vector<2x8x1xf32>
    %496 = tpu.reciprocal %495 {approx = true} : vector<2x8x1xf32> -> vector<2x8x1xf32>
    %497 = vector.broadcast %496 : vector<2x8x1xf32> to vector<2x8x8xf32>
    %498 = arith.mulf %493, %497 : vector<2x8x8xf32>
    "tpu.trace_start"() <{level = 10 : i32, message = "bqk,bkd->bqd"}> : () -> ()
    %cst_237 = arith.constant dense<0.000000e+00> : vector<2x8x3xf32>
    %499 = tpu.matmul %498, %487, %cst_237 {dimension_numbers = #tpu.dot_dimension_numbers<[2], [1], [1], [2], [0, 0, 0, 1, 1, 2], [0], [0]>} : vector<2x8x8xf32>, vector<2x8x3xf32>, vector<2x8x3xf32> -> vector<2x8x3xf32>
    "tpu.trace_stop"() : () -> ()
    %500 = vector.extract_strided_slice %484 {offsets = [0, 0, 3], sizes = [2, 8, 3], strides = [1, 1, 1]} : vector<2x8x63xf32> to vector<2x8x3xf32>
    %501 = vector.extract_strided_slice %484 {offsets = [0, 0, 24], sizes = [2, 8, 3], strides = [1, 1, 1]} : vector<2x8x63xf32> to vector<2x8x3xf32>
    %502 = vector.extract_strided_slice %484 {offsets = [0, 0, 45], sizes = [2, 8, 3], strides = [1, 1, 1]} : vector<2x8x63xf32> to vector<2x8x3xf32>
    "tpu.trace_start"() <{level = 10 : i32, message = "bqd,bkd->bqk"}> : () -> ()
    %cst_238 = arith.constant dense<0.000000e+00> : vector<2x8x8xf32>
    %503 = tpu.matmul %500, %501, %cst_238 {dimension_numbers = #tpu.dot_dimension_numbers<[2], [2], [1], [1], [0, 0, 0, 1, 1, 1], [0], [0]>} : vector<2x8x3xf32>, vector<2x8x3xf32>, vector<2x8x8xf32> -> vector<2x8x8xf32>
    "tpu.trace_stop"() : () -> ()
    %cst_239 = arith.constant dense<0xFF800000> : vector<2x8xf32>
    %504 = vector.multi_reduction <maximumf>, %503, %cst_239 [2] : vector<2x8x8xf32> to vector<2x8xf32>
    %505 = vector.shape_cast %504 : vector<2x8xf32> to vector<2x8x1xf32>
    %506 = vector.broadcast %505 : vector<2x8x1xf32> to vector<2x8x8xf32>
    %507 = arith.subf %503, %506 : vector<2x8x8xf32>
    %508 = math.exp %507 : vector<2x8x8xf32>
    %cst_240 = arith.constant dense<0.000000e+00> : vector<2x8xf32>
    %509 = vector.multi_reduction <add>, %508, %cst_240 [2] : vector<2x8x8xf32> to vector<2x8xf32>
    %510 = vector.shape_cast %509 : vector<2x8xf32> to vector<2x8x1xf32>
    %511 = tpu.reciprocal %510 {approx = true} : vector<2x8x1xf32> -> vector<2x8x1xf32>
    %512 = vector.broadcast %511 : vector<2x8x1xf32> to vector<2x8x8xf32>
    %513 = arith.mulf %508, %512 : vector<2x8x8xf32>
    "tpu.trace_start"() <{level = 10 : i32, message = "bqk,bkd->bqd"}> : () -> ()
    %cst_241 = arith.constant dense<0.000000e+00> : vector<2x8x3xf32>
    %514 = tpu.matmul %513, %502, %cst_241 {dimension_numbers = #tpu.dot_dimension_numbers<[2], [1], [1], [2], [0, 0, 0, 1, 1, 2], [0], [0]>} : vector<2x8x8xf32>, vector<2x8x3xf32>, vector<2x8x3xf32> -> vector<2x8x3xf32>
    "tpu.trace_stop"() : () -> ()
    %515 = vector.extract_strided_slice %484 {offsets = [0, 0, 6], sizes = [2, 8, 3], strides = [1, 1, 1]} : vector<2x8x63xf32> to vector<2x8x3xf32>
    %516 = vector.extract_strided_slice %484 {offsets = [0, 0, 27], sizes = [2, 8, 3], strides = [1, 1, 1]} : vector<2x8x63xf32> to vector<2x8x3xf32>
    %517 = vector.extract_strided_slice %484 {offsets = [0, 0, 48], sizes = [2, 8, 3], strides = [1, 1, 1]} : vector<2x8x63xf32> to vector<2x8x3xf32>
    "tpu.trace_start"() <{level = 10 : i32, message = "bqd,bkd->bqk"}> : () -> ()
    %cst_242 = arith.constant dense<0.000000e+00> : vector<2x8x8xf32>
    %518 = tpu.matmul %515, %516, %cst_242 {dimension_numbers = #tpu.dot_dimension_numbers<[2], [2], [1], [1], [0, 0, 0, 1, 1, 1], [0], [0]>} : vector<2x8x3xf32>, vector<2x8x3xf32>, vector<2x8x8xf32> -> vector<2x8x8xf32>
    "tpu.trace_stop"() : () -> ()
    %cst_243 = arith.constant dense<0xFF800000> : vector<2x8xf32>
    %519 = vector.multi_reduction <maximumf>, %518, %cst_243 [2] : vector<2x8x8xf32> to vector<2x8xf32>
    %520 = vector.shape_cast %519 : vector<2x8xf32> to vector<2x8x1xf32>
    %521 = vector.broadcast %520 : vector<2x8x1xf32> to vector<2x8x8xf32>
    %522 = arith.subf %518, %521 : vector<2x8x8xf32>
    %523 = math.exp %522 : vector<2x8x8xf32>
    %cst_244 = arith.constant dense<0.000000e+00> : vector<2x8xf32>
    %524 = vector.multi_reduction <add>, %523, %cst_244 [2] : vector<2x8x8xf32> to vector<2x8xf32>
    %525 = vector.shape_cast %524 : vector<2x8xf32> to vector<2x8x1xf32>
    %526 = tpu.reciprocal %525 {approx = true} : vector<2x8x1xf32> -> vector<2x8x1xf32>
    %527 = vector.broadcast %526 : vector<2x8x1xf32> to vector<2x8x8xf32>
    %528 = arith.mulf %523, %527 : vector<2x8x8xf32>
    "tpu.trace_start"() <{level = 10 : i32, message = "bqk,bkd->bqd"}> : () -> ()
    %cst_245 = arith.constant dense<0.000000e+00> : vector<2x8x3xf32>
    %529 = tpu.matmul %528, %517, %cst_245 {dimension_numbers = #tpu.dot_dimension_numbers<[2], [1], [1], [2], [0, 0, 0, 1, 1, 2], [0], [0]>} : vector<2x8x8xf32>, vector<2x8x3xf32>, vector<2x8x3xf32> -> vector<2x8x3xf32>
    "tpu.trace_stop"() : () -> ()
    %530 = vector.extract_strided_slice %484 {offsets = [0, 0, 9], sizes = [2, 8, 3], strides = [1, 1, 1]} : vector<2x8x63xf32> to vector<2x8x3xf32>
    %531 = vector.extract_strided_slice %484 {offsets = [0, 0, 30], sizes = [2, 8, 3], strides = [1, 1, 1]} : vector<2x8x63xf32> to vector<2x8x3xf32>
    %532 = vector.extract_strided_slice %484 {offsets = [0, 0, 51], sizes = [2, 8, 3], strides = [1, 1, 1]} : vector<2x8x63xf32> to vector<2x8x3xf32>
    "tpu.trace_start"() <{level = 10 : i32, message = "bqd,bkd->bqk"}> : () -> ()
    %cst_246 = arith.constant dense<0.000000e+00> : vector<2x8x8xf32>
    %533 = tpu.matmul %530, %531, %cst_246 {dimension_numbers = #tpu.dot_dimension_numbers<[2], [2], [1], [1], [0, 0, 0, 1, 1, 1], [0], [0]>} : vector<2x8x3xf32>, vector<2x8x3xf32>, vector<2x8x8xf32> -> vector<2x8x8xf32>
    "tpu.trace_stop"() : () -> ()
    %cst_247 = arith.constant dense<0xFF800000> : vector<2x8xf32>
    %534 = vector.multi_reduction <maximumf>, %533, %cst_247 [2] : vector<2x8x8xf32> to vector<2x8xf32>
    %535 = vector.shape_cast %534 : vector<2x8xf32> to vector<2x8x1xf32>
    %536 = vector.broadcast %535 : vector<2x8x1xf32> to vector<2x8x8xf32>
    %537 = arith.subf %533, %536 : vector<2x8x8xf32>
    %538 = math.exp %537 : vector<2x8x8xf32>
    %cst_248 = arith.constant dense<0.000000e+00> : vector<2x8xf32>
    %539 = vector.multi_reduction <add>, %538, %cst_248 [2] : vector<2x8x8xf32> to vector<2x8xf32>
    %540 = vector.shape_cast %539 : vector<2x8xf32> to vector<2x8x1xf32>
    %541 = tpu.reciprocal %540 {approx = true} : vector<2x8x1xf32> -> vector<2x8x1xf32>
    %542 = vector.broadcast %541 : vector<2x8x1xf32> to vector<2x8x8xf32>
    %543 = arith.mulf %538, %542 : vector<2x8x8xf32>
    "tpu.trace_start"() <{level = 10 : i32, message = "bqk,bkd->bqd"}> : () -> ()
    %cst_249 = arith.constant dense<0.000000e+00> : vector<2x8x3xf32>
    %544 = tpu.matmul %543, %532, %cst_249 {dimension_numbers = #tpu.dot_dimension_numbers<[2], [1], [1], [2], [0, 0, 0, 1, 1, 2], [0], [0]>} : vector<2x8x8xf32>, vector<2x8x3xf32>, vector<2x8x3xf32> -> vector<2x8x3xf32>
    "tpu.trace_stop"() : () -> ()
    %545 = vector.extract_strided_slice %484 {offsets = [0, 0, 12], sizes = [2, 8, 3], strides = [1, 1, 1]} : vector<2x8x63xf32> to vector<2x8x3xf32>
    %546 = vector.extract_strided_slice %484 {offsets = [0, 0, 33], sizes = [2, 8, 3], strides = [1, 1, 1]} : vector<2x8x63xf32> to vector<2x8x3xf32>
    %547 = vector.extract_strided_slice %484 {offsets = [0, 0, 54], sizes = [2, 8, 3], strides = [1, 1, 1]} : vector<2x8x63xf32> to vector<2x8x3xf32>
    "tpu.trace_start"() <{level = 10 : i32, message = "bqd,bkd->bqk"}> : () -> ()
    %cst_250 = arith.constant dense<0.000000e+00> : vector<2x8x8xf32>
    %548 = tpu.matmul %545, %546, %cst_250 {dimension_numbers = #tpu.dot_dimension_numbers<[2], [2], [1], [1], [0, 0, 0, 1, 1, 1], [0], [0]>} : vector<2x8x3xf32>, vector<2x8x3xf32>, vector<2x8x8xf32> -> vector<2x8x8xf32>
    "tpu.trace_stop"() : () -> ()
    %cst_251 = arith.constant dense<0xFF800000> : vector<2x8xf32>
    %549 = vector.multi_reduction <maximumf>, %548, %cst_251 [2] : vector<2x8x8xf32> to vector<2x8xf32>
    %550 = vector.shape_cast %549 : vector<2x8xf32> to vector<2x8x1xf32>
    %551 = vector.broadcast %550 : vector<2x8x1xf32> to vector<2x8x8xf32>
    %552 = arith.subf %548, %551 : vector<2x8x8xf32>
    %553 = math.exp %552 : vector<2x8x8xf32>
    %cst_252 = arith.constant dense<0.000000e+00> : vector<2x8xf32>
    %554 = vector.multi_reduction <add>, %553, %cst_252 [2] : vector<2x8x8xf32> to vector<2x8xf32>
    %555 = vector.shape_cast %554 : vector<2x8xf32> to vector<2x8x1xf32>
    %556 = tpu.reciprocal %555 {approx = true} : vector<2x8x1xf32> -> vector<2x8x1xf32>
    %557 = vector.broadcast %556 : vector<2x8x1xf32> to vector<2x8x8xf32>
    %558 = arith.mulf %553, %557 : vector<2x8x8xf32>
    "tpu.trace_start"() <{level = 10 : i32, message = "bqk,bkd->bqd"}> : () -> ()
    %cst_253 = arith.constant dense<0.000000e+00> : vector<2x8x3xf32>
    %559 = tpu.matmul %558, %547, %cst_253 {dimension_numbers = #tpu.dot_dimension_numbers<[2], [1], [1], [2], [0, 0, 0, 1, 1, 2], [0], [0]>} : vector<2x8x8xf32>, vector<2x8x3xf32>, vector<2x8x3xf32> -> vector<2x8x3xf32>
    "tpu.trace_stop"() : () -> ()
    %560 = vector.extract_strided_slice %484 {offsets = [0, 0, 15], sizes = [2, 8, 3], strides = [1, 1, 1]} : vector<2x8x63xf32> to vector<2x8x3xf32>
    %561 = vector.extract_strided_slice %484 {offsets = [0, 0, 36], sizes = [2, 8, 3], strides = [1, 1, 1]} : vector<2x8x63xf32> to vector<2x8x3xf32>
    %562 = vector.extract_strided_slice %484 {offsets = [0, 0, 57], sizes = [2, 8, 3], strides = [1, 1, 1]} : vector<2x8x63xf32> to vector<2x8x3xf32>
    "tpu.trace_start"() <{level = 10 : i32, message = "bqd,bkd->bqk"}> : () -> ()
    %cst_254 = arith.constant dense<0.000000e+00> : vector<2x8x8xf32>
    %563 = tpu.matmul %560, %561, %cst_254 {dimension_numbers = #tpu.dot_dimension_numbers<[2], [2], [1], [1], [0, 0, 0, 1, 1, 1], [0], [0]>} : vector<2x8x3xf32>, vector<2x8x3xf32>, vector<2x8x8xf32> -> vector<2x8x8xf32>
    "tpu.trace_stop"() : () -> ()
    %cst_255 = arith.constant dense<0xFF800000> : vector<2x8xf32>
    %564 = vector.multi_reduction <maximumf>, %563, %cst_255 [2] : vector<2x8x8xf32> to vector<2x8xf32>
    %565 = vector.shape_cast %564 : vector<2x8xf32> to vector<2x8x1xf32>
    %566 = vector.broadcast %565 : vector<2x8x1xf32> to vector<2x8x8xf32>
    %567 = arith.subf %563, %566 : vector<2x8x8xf32>
    %568 = math.exp %567 : vector<2x8x8xf32>
    %cst_256 = arith.constant dense<0.000000e+00> : vector<2x8xf32>
    %569 = vector.multi_reduction <add>, %568, %cst_256 [2] : vector<2x8x8xf32> to vector<2x8xf32>
    %570 = vector.shape_cast %569 : vector<2x8xf32> to vector<2x8x1xf32>
    %571 = tpu.reciprocal %570 {approx = true} : vector<2x8x1xf32> -> vector<2x8x1xf32>
    %572 = vector.broadcast %571 : vector<2x8x1xf32> to vector<2x8x8xf32>
    %573 = arith.mulf %568, %572 : vector<2x8x8xf32>
    "tpu.trace_start"() <{level = 10 : i32, message = "bqk,bkd->bqd"}> : () -> ()
    %cst_257 = arith.constant dense<0.000000e+00> : vector<2x8x3xf32>
    %574 = tpu.matmul %573, %562, %cst_257 {dimension_numbers = #tpu.dot_dimension_numbers<[2], [1], [1], [2], [0, 0, 0, 1, 1, 2], [0], [0]>} : vector<2x8x8xf32>, vector<2x8x3xf32>, vector<2x8x3xf32> -> vector<2x8x3xf32>
    "tpu.trace_stop"() : () -> ()
    %575 = vector.extract_strided_slice %484 {offsets = [0, 0, 18], sizes = [2, 8, 3], strides = [1, 1, 1]} : vector<2x8x63xf32> to vector<2x8x3xf32>
    %576 = vector.extract_strided_slice %484 {offsets = [0, 0, 39], sizes = [2, 8, 3], strides = [1, 1, 1]} : vector<2x8x63xf32> to vector<2x8x3xf32>
    %577 = vector.extract_strided_slice %484 {offsets = [0, 0, 60], sizes = [2, 8, 3], strides = [1, 1, 1]} : vector<2x8x63xf32> to vector<2x8x3xf32>
    "tpu.trace_start"() <{level = 10 : i32, message = "bqd,bkd->bqk"}> : () -> ()
    %cst_258 = arith.constant dense<0.000000e+00> : vector<2x8x8xf32>
    %578 = tpu.matmul %575, %576, %cst_258 {dimension_numbers = #tpu.dot_dimension_numbers<[2], [2], [1], [1], [0, 0, 0, 1, 1, 1], [0], [0]>} : vector<2x8x3xf32>, vector<2x8x3xf32>, vector<2x8x8xf32> -> vector<2x8x8xf32>
    "tpu.trace_stop"() : () -> ()
    %cst_259 = arith.constant dense<0xFF800000> : vector<2x8xf32>
    %579 = vector.multi_reduction <maximumf>, %578, %cst_259 [2] : vector<2x8x8xf32> to vector<2x8xf32>
    %580 = vector.shape_cast %579 : vector<2x8xf32> to vector<2x8x1xf32>
    %581 = vector.broadcast %580 : vector<2x8x1xf32> to vector<2x8x8xf32>
    %582 = arith.subf %578, %581 : vector<2x8x8xf32>
    %583 = math.exp %582 : vector<2x8x8xf32>
    %cst_260 = arith.constant dense<0.000000e+00> : vector<2x8xf32>
    %584 = vector.multi_reduction <add>, %583, %cst_260 [2] : vector<2x8x8xf32> to vector<2x8xf32>
    %585 = vector.shape_cast %584 : vector<2x8xf32> to vector<2x8x1xf32>
    %586 = tpu.reciprocal %585 {approx = true} : vector<2x8x1xf32> -> vector<2x8x1xf32>
    %587 = vector.broadcast %586 : vector<2x8x1xf32> to vector<2x8x8xf32>
    %588 = arith.mulf %583, %587 : vector<2x8x8xf32>
    "tpu.trace_start"() <{level = 10 : i32, message = "bqk,bkd->bqd"}> : () -> ()
    %cst_261 = arith.constant dense<0.000000e+00> : vector<2x8x3xf32>
    %589 = tpu.matmul %588, %577, %cst_261 {dimension_numbers = #tpu.dot_dimension_numbers<[2], [1], [1], [2], [0, 0, 0, 1, 1, 2], [0], [0]>} : vector<2x8x8xf32>, vector<2x8x3xf32>, vector<2x8x3xf32> -> vector<2x8x3xf32>
    "tpu.trace_stop"() : () -> ()
    %590 = tpu.concatenate %499, %514, %529, %544, %559, %574, %589 in 2 : vector<2x8x3xf32>, vector<2x8x3xf32>, vector<2x8x3xf32>, vector<2x8x3xf32>, vector<2x8x3xf32>, vector<2x8x3xf32>, vector<2x8x3xf32> -> vector<2x8x21xf32>
    %591 = vector.shape_cast %590 : vector<2x8x21xf32> to vector<16x21xf32>
    %c2_262 = arith.constant 2 : index
    %c0_263 = arith.constant 0 : index
    %c0_264 = arith.constant 0 : index
    %592 = vector.load %arg3[%c2_262, %c0_263, %c0_264] : memref<3x21x21xf32, #tpu.memory_space<vmem>>, vector<1x21x21xf32>
    %593 = vector.shape_cast %592 : vector<1x21x21xf32> to vector<21x21xf32>
    %cst_265 = arith.constant dense<0.000000e+00> : vector<16x21xf32>
    %594 = tpu.matmul %591, %593, %cst_265 {dimension_numbers = #tpu.dot_dimension_numbers<[1], [0], [0], [1], [0, 0, 1, 1], [], []>} : vector<16x21xf32>, vector<21x21xf32>, vector<16x21xf32> -> vector<16x21xf32>
    %c2_266 = arith.constant 2 : index
    %c0_267 = arith.constant 0 : index
    %c0_268 = arith.constant 0 : index
    %595 = vector.load %arg4[%c2_266, %c0_267, %c0_268] : memref<3x1x21xf32, #tpu.memory_space<vmem>>, vector<1x1x21xf32>
    %596 = vector.shape_cast %595 : vector<1x1x21xf32> to vector<1x21xf32>
    %597 = vector.broadcast %596 : vector<1x21xf32> to vector<16x21xf32>
    %598 = arith.addf %594, %597 : vector<16x21xf32>
    %599 = arith.addf %476, %598 : vector<16x21xf32>
    %c2_269 = arith.constant 2 : index
    %c0_270 = arith.constant 0 : index
    %c0_271 = arith.constant 0 : index
    %600 = vector.load %arg5[%c2_269, %c0_270, %c0_271] : memref<3x1x21xf32, #tpu.memory_space<vmem>>, vector<1x1x21xf32>
    %601 = vector.shape_cast %600 : vector<1x1x21xf32> to vector<1x21xf32>
    %c2_272 = arith.constant 2 : index
    %c0_273 = arith.constant 0 : index
    %c0_274 = arith.constant 0 : index
    %602 = vector.load %arg6[%c2_272, %c0_273, %c0_274] : memref<3x1x21xf32, #tpu.memory_space<vmem>>, vector<1x1x21xf32>
    %603 = vector.shape_cast %602 : vector<1x1x21xf32> to vector<1x21xf32>
    %cst_275 = arith.constant dense<0.000000e+00> : vector<16xf32>
    %604 = vector.multi_reduction <add>, %599, %cst_275 [1] : vector<16x21xf32> to vector<16xf32>
    %605 = vector.shape_cast %604 : vector<16xf32> to vector<16x1xf32>
    %cst_276 = arith.constant 2.100000e+01 : f32
    %606 = vector.broadcast %cst_276 : f32 to vector<16x1xf32>
    %607 = arith.divf %605, %606 : vector<16x1xf32>
    %608 = vector.broadcast %607 : vector<16x1xf32> to vector<16x21xf32>
    %609 = arith.subf %599, %608 : vector<16x21xf32>
    %610 = arith.mulf %609, %609 : vector<16x21xf32>
    %cst_277 = arith.constant dense<0.000000e+00> : vector<16xf32>
    %611 = vector.multi_reduction <add>, %610, %cst_277 [1] : vector<16x21xf32> to vector<16xf32>
    %612 = vector.shape_cast %611 : vector<16xf32> to vector<16x1xf32>
    %cst_278 = arith.constant 2.100000e+01 : f32
    %613 = vector.broadcast %cst_278 : f32 to vector<16x1xf32>
    %614 = arith.divf %612, %613 : vector<16x1xf32>
    %615 = vector.broadcast %607 : vector<16x1xf32> to vector<16x21xf32>
    %616 = arith.subf %599, %615 : vector<16x21xf32>
    %cst_279 = arith.constant 9.99999974E-6 : f32
    %617 = vector.broadcast %cst_279 : f32 to vector<16x1xf32>
    %618 = arith.addf %614, %617 : vector<16x1xf32>
    %619 = math.rsqrt %618 : vector<16x1xf32>
    %620 = vector.broadcast %619 : vector<16x1xf32> to vector<16x21xf32>
    %621 = arith.mulf %616, %620 : vector<16x21xf32>
    %622 = vector.broadcast %601 : vector<1x21xf32> to vector<16x21xf32>
    %623 = arith.mulf %621, %622 : vector<16x21xf32>
    %624 = vector.broadcast %603 : vector<1x21xf32> to vector<16x21xf32>
    %625 = arith.addf %623, %624 : vector<16x21xf32>
    %626 = arith.truncf %625 : vector<16x21xf32> to vector<16x21xbf16>
    %cst_280 = arith.constant 0.000000e+00 : f32
    %627 = vector.broadcast %cst_280 : f32 to vector<16x21xf32>
    %c2_281 = arith.constant 2 : index
    %c0_282 = arith.constant 0 : index
    %c0_283 = arith.constant 0 : index
    %628 = vector.load %arg9[%c2_281, %c0_282, %c0_283] : memref<3x21x2048xbf16, #tpu.memory_space<vmem>>, vector<1x21x512xbf16>
    %629 = vector.shape_cast %628 : vector<1x21x512xbf16> to vector<21x512xbf16>
    %cst_284 = arith.constant dense<0.000000e+00> : vector<16x512xf32>
    %630 = tpu.matmul %626, %629, %cst_284 {dimension_numbers = #tpu.dot_dimension_numbers<[1], [0], [0], [1], [0, 0, 1, 1], [], []>} : vector<16x21xbf16>, vector<21x512xbf16>, vector<16x512xf32> -> vector<16x512xf32>
    %c2_285 = arith.constant 2 : index
    %c0_286 = arith.constant 0 : index
    %c0_287 = arith.constant 0 : index
    %631 = vector.load %arg10[%c2_285, %c0_286, %c0_287] : memref<3x1x2048xf32, #tpu.memory_space<vmem>>, vector<1x1x512xf32>
    %632 = vector.shape_cast %631 : vector<1x1x512xf32> to vector<1x512xf32>
    %633 = vector.broadcast %632 : vector<1x512xf32> to vector<16x512xf32>
    %634 = arith.addf %630, %633 : vector<16x512xf32>
    %cst_288 = arith.constant 0.000000e+00 : f32
    %635 = vector.broadcast %cst_288 : f32 to vector<16x512xf32>
    %636 = arith.maximumf %634, %635 : vector<16x512xf32>
    %637 = arith.truncf %636 : vector<16x512xf32> to vector<16x512xbf16>
    %c2_289 = arith.constant 2 : index
    %c0_290 = arith.constant 0 : index
    %c0_291 = arith.constant 0 : index
    %638 = vector.load %arg11[%c2_289, %c0_290, %c0_291] : memref<3x2048x21xbf16, #tpu.memory_space<vmem>>, vector<1x512x21xbf16>
    %639 = vector.shape_cast %638 : vector<1x512x21xbf16> to vector<512x21xbf16>
    %cst_292 = arith.constant dense<0.000000e+00> : vector<16x21xf32>
    %640 = tpu.matmul %637, %639, %cst_292 {dimension_numbers = #tpu.dot_dimension_numbers<[1], [0], [0], [1], [0, 0, 1, 1], [], []>} : vector<16x512xbf16>, vector<512x21xbf16>, vector<16x21xf32> -> vector<16x21xf32>
    %641 = arith.addf %627, %640 : vector<16x21xf32>
    %c2_293 = arith.constant 2 : index
    %c0_294 = arith.constant 0 : index
    %c512_295 = arith.constant 512 : index
    %642 = vector.load %arg9[%c2_293, %c0_294, %c512_295] : memref<3x21x2048xbf16, #tpu.memory_space<vmem>>, vector<1x21x512xbf16>
    %643 = vector.shape_cast %642 : vector<1x21x512xbf16> to vector<21x512xbf16>
    %cst_296 = arith.constant dense<0.000000e+00> : vector<16x512xf32>
    %644 = tpu.matmul %626, %643, %cst_296 {dimension_numbers = #tpu.dot_dimension_numbers<[1], [0], [0], [1], [0, 0, 1, 1], [], []>} : vector<16x21xbf16>, vector<21x512xbf16>, vector<16x512xf32> -> vector<16x512xf32>
    %c2_297 = arith.constant 2 : index
    %c0_298 = arith.constant 0 : index
    %c512_299 = arith.constant 512 : index
    %645 = vector.load %arg10[%c2_297, %c0_298, %c512_299] : memref<3x1x2048xf32, #tpu.memory_space<vmem>>, vector<1x1x512xf32>
    %646 = vector.shape_cast %645 : vector<1x1x512xf32> to vector<1x512xf32>
    %647 = vector.broadcast %646 : vector<1x512xf32> to vector<16x512xf32>
    %648 = arith.addf %644, %647 : vector<16x512xf32>
    %cst_300 = arith.constant 0.000000e+00 : f32
    %649 = vector.broadcast %cst_300 : f32 to vector<16x512xf32>
    %650 = arith.maximumf %648, %649 : vector<16x512xf32>
    %651 = arith.truncf %650 : vector<16x512xf32> to vector<16x512xbf16>
    %c2_301 = arith.constant 2 : index
    %c512_302 = arith.constant 512 : index
    %c0_303 = arith.constant 0 : index
    %652 = vector.load %arg11[%c2_301, %c512_302, %c0_303] : memref<3x2048x21xbf16, #tpu.memory_space<vmem>>, vector<1x512x21xbf16>
    %653 = vector.shape_cast %652 : vector<1x512x21xbf16> to vector<512x21xbf16>
    %cst_304 = arith.constant dense<0.000000e+00> : vector<16x21xf32>
    %654 = tpu.matmul %651, %653, %cst_304 {dimension_numbers = #tpu.dot_dimension_numbers<[1], [0], [0], [1], [0, 0, 1, 1], [], []>} : vector<16x512xbf16>, vector<512x21xbf16>, vector<16x21xf32> -> vector<16x21xf32>
    %655 = arith.addf %641, %654 : vector<16x21xf32>
    %c2_305 = arith.constant 2 : index
    %c0_306 = arith.constant 0 : index
    %c1024_307 = arith.constant 1024 : index
    %656 = vector.load %arg9[%c2_305, %c0_306, %c1024_307] : memref<3x21x2048xbf16, #tpu.memory_space<vmem>>, vector<1x21x512xbf16>
    %657 = vector.shape_cast %656 : vector<1x21x512xbf16> to vector<21x512xbf16>
    %cst_308 = arith.constant dense<0.000000e+00> : vector<16x512xf32>
    %658 = tpu.matmul %626, %657, %cst_308 {dimension_numbers = #tpu.dot_dimension_numbers<[1], [0], [0], [1], [0, 0, 1, 1], [], []>} : vector<16x21xbf16>, vector<21x512xbf16>, vector<16x512xf32> -> vector<16x512xf32>
    %c2_309 = arith.constant 2 : index
    %c0_310 = arith.constant 0 : index
    %c1024_311 = arith.constant 1024 : index
    %659 = vector.load %arg10[%c2_309, %c0_310, %c1024_311] : memref<3x1x2048xf32, #tpu.memory_space<vmem>>, vector<1x1x512xf32>
    %660 = vector.shape_cast %659 : vector<1x1x512xf32> to vector<1x512xf32>
    %661 = vector.broadcast %660 : vector<1x512xf32> to vector<16x512xf32>
    %662 = arith.addf %658, %661 : vector<16x512xf32>
    %cst_312 = arith.constant 0.000000e+00 : f32
    %663 = vector.broadcast %cst_312 : f32 to vector<16x512xf32>
    %664 = arith.maximumf %662, %663 : vector<16x512xf32>
    %665 = arith.truncf %664 : vector<16x512xf32> to vector<16x512xbf16>
    %c2_313 = arith.constant 2 : index
    %c1024_314 = arith.constant 1024 : index
    %c0_315 = arith.constant 0 : index
    %666 = vector.load %arg11[%c2_313, %c1024_314, %c0_315] : memref<3x2048x21xbf16, #tpu.memory_space<vmem>>, vector<1x512x21xbf16>
    %667 = vector.shape_cast %666 : vector<1x512x21xbf16> to vector<512x21xbf16>
    %cst_316 = arith.constant dense<0.000000e+00> : vector<16x21xf32>
    %668 = tpu.matmul %665, %667, %cst_316 {dimension_numbers = #tpu.dot_dimension_numbers<[1], [0], [0], [1], [0, 0, 1, 1], [], []>} : vector<16x512xbf16>, vector<512x21xbf16>, vector<16x21xf32> -> vector<16x21xf32>
    %669 = arith.addf %655, %668 : vector<16x21xf32>
    %c2_317 = arith.constant 2 : index
    %c0_318 = arith.constant 0 : index
    %c1536_319 = arith.constant 1536 : index
    %670 = vector.load %arg9[%c2_317, %c0_318, %c1536_319] : memref<3x21x2048xbf16, #tpu.memory_space<vmem>>, vector<1x21x512xbf16>
    %671 = vector.shape_cast %670 : vector<1x21x512xbf16> to vector<21x512xbf16>
    %cst_320 = arith.constant dense<0.000000e+00> : vector<16x512xf32>
    %672 = tpu.matmul %626, %671, %cst_320 {dimension_numbers = #tpu.dot_dimension_numbers<[1], [0], [0], [1], [0, 0, 1, 1], [], []>} : vector<16x21xbf16>, vector<21x512xbf16>, vector<16x512xf32> -> vector<16x512xf32>
    %c2_321 = arith.constant 2 : index
    %c0_322 = arith.constant 0 : index
    %c1536_323 = arith.constant 1536 : index
    %673 = vector.load %arg10[%c2_321, %c0_322, %c1536_323] : memref<3x1x2048xf32, #tpu.memory_space<vmem>>, vector<1x1x512xf32>
    %674 = vector.shape_cast %673 : vector<1x1x512xf32> to vector<1x512xf32>
    %675 = vector.broadcast %674 : vector<1x512xf32> to vector<16x512xf32>
    %676 = arith.addf %672, %675 : vector<16x512xf32>
    %cst_324 = arith.constant 0.000000e+00 : f32
    %677 = vector.broadcast %cst_324 : f32 to vector<16x512xf32>
    %678 = arith.maximumf %676, %677 : vector<16x512xf32>
    %679 = arith.truncf %678 : vector<16x512xf32> to vector<16x512xbf16>
    %c2_325 = arith.constant 2 : index
    %c1536_326 = arith.constant 1536 : index
    %c0_327 = arith.constant 0 : index
    %680 = vector.load %arg11[%c2_325, %c1536_326, %c0_327] : memref<3x2048x21xbf16, #tpu.memory_space<vmem>>, vector<1x512x21xbf16>
    %681 = vector.shape_cast %680 : vector<1x512x21xbf16> to vector<512x21xbf16>
    %cst_328 = arith.constant dense<0.000000e+00> : vector<16x21xf32>
    %682 = tpu.matmul %679, %681, %cst_328 {dimension_numbers = #tpu.dot_dimension_numbers<[1], [0], [0], [1], [0, 0, 1, 1], [], []>} : vector<16x512xbf16>, vector<512x21xbf16>, vector<16x21xf32> -> vector<16x21xf32>
    %683 = arith.addf %669, %682 : vector<16x21xf32>
    %c2_329 = arith.constant 2 : index
    %c0_330 = arith.constant 0 : index
    %c0_331 = arith.constant 0 : index
    %684 = vector.load %arg12[%c2_329, %c0_330, %c0_331] : memref<3x1x21xf32, #tpu.memory_space<vmem>>, vector<1x1x21xf32>
    %685 = vector.shape_cast %684 : vector<1x1x21xf32> to vector<1x21xf32>
    %686 = vector.broadcast %685 : vector<1x21xf32> to vector<16x21xf32>
    %687 = arith.addf %683, %686 : vector<16x21xf32>
    %688 = arith.addf %625, %687 : vector<16x21xf32>
    %c2_332 = arith.constant 2 : index
    %c0_333 = arith.constant 0 : index
    %c0_334 = arith.constant 0 : index
    %689 = vector.load %arg7[%c2_332, %c0_333, %c0_334] : memref<3x1x21xf32, #tpu.memory_space<vmem>>, vector<1x1x21xf32>
    %690 = vector.shape_cast %689 : vector<1x1x21xf32> to vector<1x21xf32>
    %c2_335 = arith.constant 2 : index
    %c0_336 = arith.constant 0 : index
    %c0_337 = arith.constant 0 : index
    %691 = vector.load %arg8[%c2_335, %c0_336, %c0_337] : memref<3x1x21xf32, #tpu.memory_space<vmem>>, vector<1x1x21xf32>
    %692 = vector.shape_cast %691 : vector<1x1x21xf32> to vector<1x21xf32>
    %cst_338 = arith.constant dense<0.000000e+00> : vector<16xf32>
    %693 = vector.multi_reduction <add>, %688, %cst_338 [1] : vector<16x21xf32> to vector<16xf32>
    %694 = vector.shape_cast %693 : vector<16xf32> to vector<16x1xf32>
    %cst_339 = arith.constant 2.100000e+01 : f32
    %695 = vector.broadcast %cst_339 : f32 to vector<16x1xf32>
    %696 = arith.divf %694, %695 : vector<16x1xf32>
    %697 = vector.broadcast %696 : vector<16x1xf32> to vector<16x21xf32>
    %698 = arith.subf %688, %697 : vector<16x21xf32>
    %699 = arith.mulf %698, %698 : vector<16x21xf32>
    %cst_340 = arith.constant dense<0.000000e+00> : vector<16xf32>
    %700 = vector.multi_reduction <add>, %699, %cst_340 [1] : vector<16x21xf32> to vector<16xf32>
    %701 = vector.shape_cast %700 : vector<16xf32> to vector<16x1xf32>
    %cst_341 = arith.constant 2.100000e+01 : f32
    %702 = vector.broadcast %cst_341 : f32 to vector<16x1xf32>
    %703 = arith.divf %701, %702 : vector<16x1xf32>
    %704 = vector.broadcast %696 : vector<16x1xf32> to vector<16x21xf32>
    %705 = arith.subf %688, %704 : vector<16x21xf32>
    %cst_342 = arith.constant 9.99999974E-6 : f32
    %706 = vector.broadcast %cst_342 : f32 to vector<16x1xf32>
    %707 = arith.addf %703, %706 : vector<16x1xf32>
    %708 = math.rsqrt %707 : vector<16x1xf32>
    %709 = vector.broadcast %708 : vector<16x1xf32> to vector<16x21xf32>
    %710 = arith.mulf %705, %709 : vector<16x21xf32>
    %711 = vector.broadcast %690 : vector<1x21xf32> to vector<16x21xf32>
    %712 = arith.mulf %710, %711 : vector<16x21xf32>
    %713 = vector.broadcast %692 : vector<1x21xf32> to vector<16x21xf32>
    %714 = arith.addf %712, %713 : vector<16x21xf32>
    %c0_343 = arith.constant 0 : index
    %c0_344 = arith.constant 0 : index
    %715 = vector.load %arg13[%c0_343, %c0_344] : memref<2x16xf32, #tpu.memory_space<vmem>>, vector<2x16xf32>
    %cst_345 = arith.constant dense<0.000000e+00> : vector<2x21xf32>
    %716 = tpu.matmul %715, %714, %cst_345 {dimension_numbers = #tpu.dot_dimension_numbers<[1], [0], [0], [1], [0, 0, 1, 1], [], []>} : vector<2x16xf32>, vector<16x21xf32>, vector<2x21xf32> -> vector<2x21xf32>
    %c0_346 = arith.constant 0 : index
    %c0_347 = arith.constant 0 : index
    %717 = vector.load %arg14[%c0_346, %c0_347] : memref<21x5xf32, #tpu.memory_space<vmem>>, vector<21x5xf32>
    %cst_348 = arith.constant dense<0.000000e+00> : vector<2x5xf32>
    %718 = tpu.matmul %716, %717, %cst_348 {dimension_numbers = #tpu.dot_dimension_numbers<[1], [0], [0], [1], [0, 0, 1, 1], [], []>} : vector<2x21xf32>, vector<21x5xf32>, vector<2x5xf32> -> vector<2x5xf32>
    %c0_349 = arith.constant 0 : index
    %c0_350 = arith.constant 0 : index
    %719 = vector.load %arg15[%c0_349, %c0_350] : memref<1x5xf32, #tpu.memory_space<vmem>>, vector<1x5xf32>
    %720 = vector.broadcast %719 : vector<1x5xf32> to vector<2x5xf32>
    %721 = arith.addf %718, %720 : vector<2x5xf32>
    %c0_351 = arith.constant 0 : index
    %c0_352 = arith.constant 0 : index
    %722 = vector.load %arg16[%c0_351, %c0_352] : memref<2x5xf32, #tpu.memory_space<vmem>>, vector<2x5xf32>
    tpu.vector_store %arg16[%c0_351, %c0_352], %721 {strides = array<i32>} : memref<2x5xf32, #tpu.memory_space<vmem>>, vector<2x5xf32>,
    return
  }
}

</mosaic_0001>

<bundles_post_ra>
// kernel: tpu_custom_call.1
= control target key start
LH: loop header
LB: loop body
LE: loop exit
PB: predicated region body
PF: predicated region fallthrough
CT: control target
= control target key end

     0   :  { %s20486_s0 = inlined_call_operand.vmem [shape: f32[16,21], index: 0, kind: input, shape index: {}]   ;;  %s20487_s1 = inlined_call_operand.vmem [shape: f32[3,21,63], index: 1, kind: input, shape index: {}]   ;;  %s20488_s2 = inlined_call_operand.vmem [shape: f32[3,1,63], index: 2, kind: input, shape index: {}]   ;;  %s20489_s3 = inlined_call_operand.vmem [shape: f32[3,21,21], index: 3, kind: input, shape index: {}]   ;;  %s20490_s4 = inlined_call_operand.vmem [shape: f32[3,1,21], index: 4, kind: input, shape index: {}]   ;;  %s20491_s5 = inlined_call_operand.vmem [shape: f32[3,1,21], index: 5, kind: input, shape index: {}]   ;;  %s20492_s6 = inlined_call_operand.vmem [shape: f32[3,1,21], index: 6, kind: input, shape index: {}]   ;;  %s20493_s7 = inlined_call_operand.vmem [shape: f32[3,1,21], index: 7, kind: input, shape index: {}]   ;;  %s20494_s8 = inlined_call_operand.vmem [shape: f32[3,1,21], index: 8, kind: input, shape index: {}]   ;;  %s20495_s9 = inlined_call_operand.vmem [shape: bf16[3,21,2048], index: 9, kind: input, shape index: {}]   ;;  %s20496_s10 = inlined_call_operand.vmem [shape: f32[3,1,2048], index: 10, kind: input, shape index: {}]   ;;  %s20497_s11 = inlined_call_operand.vmem [shape: bf16[3,2048,21], index: 11, kind: input, shape index: {}]   ;;  %s20498_s12 = inlined_call_operand.vmem [shape: f32[3,1,21], index: 12, kind: input, shape index: {}]   ;;  %s20499_s13 = inlined_call_operand.vmem [shape: f32[2,16], index: 13, kind: input, shape index: {}]   ;;  %s20500_s14 = inlined_call_operand.vmem [shape: f32[21,5], index: 14, kind: input, shape index: {}]   ;;  %s20501_s15 = inlined_call_operand.vmem [shape: f32[1,5], index: 15, kind: input, shape index: {}]   ;;  %s20502_s16 = inlined_call_operand.hbm [shape: f32[2,5], index: 16, kind: output, shape index: {}]  }
   0x1   :  { %20575 = sst [smem:[#allocation5_spill]] %s20486_s0 }
   0x2   :  { %20576 = sst [smem:[#allocation6_spill]] %s20489_s3 }
   0x3   :  { %20577 = sst [smem:[#allocation7_spill]] %s20490_s4 }
   0x4   :  { %20578 = sst [smem:[#allocation8_spill]] %s20491_s5 }
   0x5   :  { %20579 = sst [smem:[#allocation9_spill]] %s20492_s6 }
   0x6   :  { %20580 = sst [smem:[#allocation10_spill]] %s20499_s13 }
   0x7   :  { %20581 = sst [smem:[#allocation11_spill]] %s20500_s14 }
   0x8   :  { %20582 = sst [smem:[#allocation12_spill]] %s20501_s15 }
   0x9   :  { %20583 = sst [smem:[#allocation13_spill]] %s20502_s16 }
   0xa   :  { %v57_v0 = vld [vmem:[%s20487_s1] sm:$0xff]  ;;  %v58_v1 = vld [vmem:[%s20487_s1 + $0x8] sm:$0xff]  ;;  %vm67_vm0 = vcmask 171008   ;;  %v59_v3 = vld [vmem:[%s20487_s1 + $0x10] sm:$0x1f]  ;;  %vm74_vm1 = vcmask 1044480  }
   0xb   :  { %v16829_v2 = vpack.c.bf16 %v58_v1, %v57_v0  ;;  %s20584_s29 = sld [smem:[#allocation5_spill]]  ;;  %v17541_v6 = vmov 0.0   ;;  %vm17542_vm2 = vmmov 0   ;;  %v14339_v7 = vld [vmem:[%s20488_s2] ss:$0 sm:$0xff]  ;;  %s20554_s19 = smov 107  }
   0xc   :  { %16348 = vmatprep.subr.mxu1 %v17541_v6  ;;  %16350 = vmatprep.mubr.msk.f32.mxu1 %vm17542_vm2, %v17541_v6 }
   0xd   :  { %16830 = vmatprep.subr.bf16.mxu0 %v16829_v2 }
   0xe   :  { %16832 = vmatpush3.bf16.msra.mxu0 %v16829_v2 }
   0xf   :  { %16343 = vmatprep.subr.msk.mxu0 %vm74_vm1, %v59_v3 }
  0x11   :  { %v55_v4 = vld [vmem:[%s20584_s29] sm:$0xff]  ;;  %v56_v5 = vld [vmem:[%s20584_s29 + $0x8] sm:$0xff] }
  0x12   :  { %16345 = vmatprep.mubr.msk.f32.mxu0 %vm67_vm0, %v55_v4  ;;  %16344 = vmatpush3.msk.msra.mxu0 %vm74_vm1, %v59_v3 }
  0x13   :  { %16346 = vmatmul.mubr.msk.f32.vlgmr.msra.gmra.mrb[0].mxu0 %vm67_vm0, %v56_v5  ;;  %16358 = vmatprep.subr.mxu0 %v17541_v6 }
  0x14   :  { %16360 = vmatprep.mubr.msk.f32.mxu0 %vm17542_vm2, %v17541_v6 }
  0xe6   :  { %v16347_v8 = vpop.f32.mrb[0].mxu0 }
  0xe7   :  { %v144_v9 = vpop.f32.mrb[1].mxu0  ;;  %v17690_v11 = vadd.f32 %v16347_v8, %v14339_v7 }
  0xe8   :  { %v17686_v10 = vadd.f32 %v14339_v7, %v144_v9 }
  0xea   :  { %154 = vrot.lane.b32.xlu0 %v17686_v10, %s20554_s19 }
  0xee   :  { %232 = vrot.lane.b32.xlu0 %v17690_v11, %s20554_s19 }
  0xef   :  { %21 = vsyncpa [#allocation3], 0  ;;  %vm156_vm3 = vcmask 23552   ;;  %vm308_vm4 = vcmask 64512   ;;  %s20552_s20 = smov 86   ;;  %s20550_s21 = smov 104  }
  0xf0   :  { %s20548_s22 = smov 125   ;;  %s20546_s23 = smov 83   ;;  %vm2513_vm5 = vcmask 48128   ;;  %vm2516_vm6 = vcmask 72704   ;;  %vm2519_vm7 = vcmask 97280   ;;  %vm2525_vm8 = vcmask 146432  }
  0xf1   :  { %s20544_s24 = smov 101   ;;  %s20542_s25 = smov 122   ;;  %vm2522_vm9 = vcmask 121856   ;;  %vm2731_vm10 = vcmask 1041408   ;;  %vm2732_vm11 = vcmask 1042432   ;;  %vm14163_vm12 = vcmask 130048  }
  0xf2   :  { %s20538_s26 = smov 80   ;;  %s20524_s27 = smov 98   ;;  %vm14323_vm13 = vcmask 33792  }
  0xf3   :  { %s20522_s28 = smov 119   ;;  %s20520_s30 = smov 77  }
  0xf4   :  { %s20506_s0 = smov 95   ;;  %s20504_s17 = smov 116  }
  0xf5   :  { %s20512_s18 = smov 74   ;;  %s20600_s16 = smov 110  }
  0xf6   :  { %s20601_s15 = smov 68   ;;  %s20602_s13 = smov 3  }
  0xf7   :  { %s20603_s14 = smov 6  }
 0x15c   :  { %v155_v12 = vpop.permute.xlu0 %154 }
 0x15d   :  { %16349 = vmatpush3.xpose.msk.msra.mxu1 %vm156_vm3, %v155_v12 }
 0x15e   :  { %16353 = vmatprep.subr.mxu1 %v17541_v6 }
 0x160   :  { %16351 = vmatmul.mubr.msk.f32.vlgmr.msra.gmra.mrb[0].mxu1 %vm156_vm3, %v17686_v10  ;;  %v233_v13 = vpop.permute.xlu0 %232 }
 0x161   :  { %16354 = vmatpush3.xpose.msk.msra.mxu1 %vm156_vm3, %v233_v13  ;;  %16355 = vmatprep.mubr.msk.f32.mxu1 %vm17542_vm2, %v17541_v6 }
 0x162   :  { %16363 = vmatprep.subr.mxu1 %v17541_v6 }
 0x164   :  { %16356 = vmatmul.mubr.msk.f32.vlgmr.msra.gmra.mrb[2].mxu1 %vm156_vm3, %v17690_v11 }
 0x165   :  { %16365 = vmatprep.mubr.msk.f32.mxu1 %vm17542_vm2, %v17541_v6 }
 0x233   :  { %v227_v14 = vpop.f32.mrb[0].mxu1 }
 0x234   :  { %v16352_v15 = vpop.f32.mrb[1].mxu1  ;;  %v309_v16 = vsel %vm308_vm4, %v227_v14, -inf }
 0x235   :  { %310 = vmax.xlane.f32.xlu1 %v309_v16 }
 0x237   :  { %v304_v17 = vpop.f32.mrb[2].mxu1 }
 0x238   :  { %v16357_v18 = vpop.f32.mrb[3].mxu1  ;;  %v312_v19 = vsel %vm308_vm4, %v304_v17, -inf }
 0x239   :  { %313 = vmax.xlane.f32.xlu1 %v312_v19 }
 0x24a   :  { %331 = vrot.lane.b32.xlu1 %v17686_v10, %s20552_s20 }
 0x24e   :  { %407 = vrot.lane.b32.xlu1 %v17690_v11, %s20552_s20 }
 0x252   :  { %485 = vrot.lane.b32.xlu1 %v17686_v10, %s20550_s21 }
 0x256   :  { %563 = vrot.lane.b32.xlu1 %v17690_v11, %s20550_s21 }
 0x2c2   :  { %v311_v20 = vpop.xlane.xlu1 %310 }
 0x2c3   :  { %v315_v21 = vsub.f32 %v227_v14, %v311_v20 }
 0x2c5   :  { %v317_v22 = vmul.f32 1.442695, %v315_v21 }
 0x2c6   :  { %v314_v23 = vpop.xlane.xlu1 %313 }
 0x2c7   :  { %17323 = vpow2.f32 %v317_v22  ;;  %v316_v24 = vsub.f32 %v304_v17, %v314_v23 }
 0x2c9   :  { %v319_v25 = vmul.f32 1.442695, %v316_v24 }
 0x2ca   :  { %v332_v26 = vpop.permute.xlu1 %331 }
 0x2cb   :  { %17325 = vpow2.f32 %v319_v25  ;;  %16359 = vmatpush3.msra.mxu0 %v332_v26 }
 0x2cc   :  { %16368 = vmatprep.subr.mxu0 %v17541_v6 }
 0x2ce   :  { %v408_v27 = vpop.permute.xlu1 %407 }
 0x2cf   :  { %16364 = vmatpush3.msra.mxu1 %v408_v27 }
 0x2d0   :  { %16373 = vmatprep.subr.mxu1 %v17541_v6 }
 0x2d1   :  { %v17324_v28 = vpop.eup %17323 }
 0x2d2   :  { %v321_v29 = vsel %vm308_vm4, %v17324_v28, 0.0  ;;  %v486_v32 = vpop.permute.xlu1 %485 }
 0x2d3   :  { %322 = vadd.xlane.f32.xlu0 %v321_v29 }
 0x2d5   :  { %v17326_v30 = vpop.eup %17325 }
 0x2d6   :  { %v324_v31 = vsel %vm308_vm4, %v17326_v30, 0.0  ;;  %v564_v33 = vpop.permute.xlu1 %563 }
 0x2d7   :  { %325 = vadd.xlane.f32.xlu1 %v324_v31 }
 0x2e8   :  { %561 = vrot.lane.b32.xlu1 %v17690_v11, %s20548_s22 }
 0x2e9   :  { %483 = vrot.lane.b32.xlu0 %v17686_v10, %s20548_s22  ;;  %s20595_s22 = smov 74  }
 0x360   :  { %v323_v34 = vpop.xlane.xlu0 %322 }
 0x361   :  { %17327 = vrcp.f32 %v323_v34 }
 0x364   :  { %v326_v35 = vpop.xlane.xlu1 %325  ;;  %v484_v40 = vpop.permute.xlu0 %483 }
 0x365   :  { %17329 = vrcp.f32 %v326_v35 }
 0x368   :  { %v562_v41 = vpop.permute.xlu1 %561 }
 0x36b   :  { %v17328_v36 = vpop.eup %17327 }
 0x36c   :  { %v329_v37 = vmul.f32 %v17328_v36, %v17324_v28 }
 0x36e   :  { %16361 = vmatmul.mubr.msk.f32.vlgmr.msra.gmra.mrb[2].mxu0 %vm308_vm4, %v329_v37 }
 0x36f   :  { %v17330_v38 = vpop.eup %17329  ;;  %16369 = vmatpush3.xpose.msk.msra.mxu0 %vm156_vm3, %v486_v32  ;;  %16370 = vmatprep.mubr.msk.f32.mxu0 %vm17542_vm2, %v17541_v6 }
 0x370   :  { %v330_v39 = vmul.f32 %v17330_v38, %v17326_v30  ;;  %16378 = vmatprep.subr.mxu0 %v17541_v6 }
 0x372   :  { %16366 = vmatmul.mubr.msk.f32.vlgmr.msra.gmra.mrb[4].mxu1 %vm308_vm4, %v330_v39  ;;  %16371 = vmatmul.mubr.msk.f32.vlgmr.msra.gmra.mrb[4].mxu0 %vm156_vm3, %v484_v40 }
 0x373   :  { %16374 = vmatpush3.xpose.msk.msra.mxu1 %vm156_vm3, %v564_v33  ;;  %16375 = vmatprep.mubr.msk.f32.mxu1 %vm17542_vm2, %v17541_v6 }
 0x374   :  { %16383 = vmatprep.subr.mxu1 %v17541_v6  ;;  %16380 = vmatprep.mubr.msk.f32.mxu0 %vm17542_vm2, %v17541_v6 }
 0x376   :  { %16376 = vmatmul.mubr.msk.f32.vlgmr.msra.gmra.mrb[6].mxu1 %vm156_vm3, %v562_v41 }
 0x377   :  { %16385 = vmatprep.mubr.msk.f32.mxu1 %vm17542_vm2, %v17541_v6 }
 0x441   :  { %v17740_v42 = vpop.f32.mrb[2].mxu0 }
 0x442   :  { %v16362_v43 = vpop.f32.mrb[3].mxu0 }
 0x445   :  { %v17742_v44 = vpop.f32.mrb[4].mxu1  ;;  %v557_v45 = vpop.f32.mrb[4].mxu0 }
 0x446   :  { %v16367_v46 = vpop.f32.mrb[5].mxu1  ;;  %v16372_v47 = vpop.f32.mrb[5].mxu0  ;;  %v639_v48 = vsel %vm308_vm4, %v557_v45, -inf }
 0x447   :  { %640 = vmax.xlane.f32.xlu1 %v639_v48 }
 0x449   :  { %v635_v49 = vpop.f32.mrb[6].mxu1 }
 0x44a   :  { %v16377_v50 = vpop.f32.mrb[7].mxu1  ;;  %v642_v51 = vsel %vm308_vm4, %v635_v49, -inf }
 0x44b   :  { %643 = vmax.xlane.f32.xlu0 %v642_v51 }
 0x458   :  { %661 = vrot.lane.b32.xlu1 %v17686_v10, %s20546_s23 }
 0x45c   :  { %815 = vrot.lane.b32.xlu1 %v17686_v10, %s20544_s24 }
 0x460   :  { %893 = vrot.lane.b32.xlu1 %v17690_v11, %s20544_s24  ;;  %s20587_s24 = smov 101  }
 0x461   :  { %737 = vrot.lane.b32.xlu0 %v17690_v11, %s20546_s23  ;;  %s20596_s23 = smov 92  }
 0x465   :  { %813 = vrot.lane.b32.xlu0 %v17686_v10, %s20542_s25 }
 0x4d4   :  { %v641_v52 = vpop.xlane.xlu1 %640 }
 0x4d5   :  { %v645_v53 = vsub.f32 %v557_v45, %v641_v52 }
 0x4d7   :  { %v647_v54 = vmul.f32 1.442695, %v645_v53 }
 0x4d8   :  { %v662_v55 = vpop.permute.xlu1 %661  ;;  %v644_v56 = vpop.xlane.xlu0 %643 }
 0x4d9   :  { %17331 = vpow2.f32 %v647_v54  ;;  %v646_v57 = vsub.f32 %v635_v49, %v644_v56  ;;  %16379 = vmatpush3.msra.mxu0 %v662_v55 }
 0x4da   :  { %16388 = vmatprep.subr.mxu0 %v17541_v6 }
 0x4db   :  { %v649_v58 = vmul.f32 1.442695, %v646_v57 }
 0x4dc   :  { %v738_v59 = vpop.permute.xlu0 %737  ;;  %v816_v0 = vpop.permute.xlu1 %815 }
 0x4dd   :  { %17333 = vpow2.f32 %v649_v58  ;;  %16384 = vmatpush3.msra.mxu1 %v738_v59 }
 0x4de   :  { %16393 = vmatprep.subr.mxu1 %v17541_v6 }
 0x4e0   :  { %v894_v1 = vpop.permute.xlu1 %893  ;;  %v814_v9 = vpop.permute.xlu0 %813 }
 0x4e3   :  { %v17332_v60 = vpop.eup %17331 }
 0x4e4   :  { %v651_v61 = vsel %vm308_vm4, %v17332_v60, 0.0 }
 0x4e5   :  { %652 = vadd.xlane.f32.xlu1 %v651_v61 }
 0x4e7   :  { %v17334_v62 = vpop.eup %17333 }
 0x4e8   :  { %v654_v63 = vsel %vm308_vm4, %v17334_v62, 0.0 }
 0x4e9   :  { %655 = vadd.xlane.f32.xlu1 %v654_v63 }
 0x4fa   :  { %891 = vrot.lane.b32.xlu1 %v17690_v11, %s20542_s25  ;;  %s20588_s25 = smov 122  }
 0x572   :  { %v653_v2 = vpop.xlane.xlu1 %652 }
 0x573   :  { %17335 = vrcp.f32 %v653_v2 }
 0x576   :  { %v656_v3 = vpop.xlane.xlu1 %655 }
 0x577   :  { %17337 = vrcp.f32 %v656_v3 }
 0x57a   :  { %v892_v12 = vpop.permute.xlu1 %891 }
 0x57d   :  { %v17336_v4 = vpop.eup %17335 }
 0x57e   :  { %v659_v5 = vmul.f32 %v17336_v4, %v17332_v60 }
 0x580   :  { %16381 = vmatmul.mubr.msk.f32.vlgmr.msra.gmra.mrb[6].mxu0 %vm308_vm4, %v659_v5 }
 0x581   :  { %v17338_v7 = vpop.eup %17337  ;;  %16389 = vmatpush3.xpose.msk.msra.mxu0 %vm156_vm3, %v816_v0  ;;  %16390 = vmatprep.mubr.msk.f32.mxu0 %vm17542_vm2, %v17541_v6 }
 0x582   :  { %v660_v8 = vmul.f32 %v17338_v7, %v17334_v62  ;;  %16398 = vmatprep.subr.mxu0 %v17541_v6 }
 0x584   :  { %16386 = vmatmul.mubr.msk.f32.vlgmr.msra.gmra.mrb[8].mxu1 %vm308_vm4, %v660_v8  ;;  %16391 = vmatmul.mubr.msk.f32.vlgmr.msra.gmra.mrb[8].mxu0 %vm156_vm3, %v814_v9 }
 0x585   :  { %16394 = vmatpush3.xpose.msk.msra.mxu1 %vm156_vm3, %v894_v1  ;;  %16395 = vmatprep.mubr.msk.f32.mxu1 %vm17542_vm2, %v17541_v6 }
 0x586   :  { %16403 = vmatprep.subr.mxu1 %v17541_v6  ;;  %16400 = vmatprep.mubr.msk.f32.mxu0 %vm17542_vm2, %v17541_v6 }
 0x588   :  { %16396 = vmatmul.mubr.msk.f32.vlgmr.msra.gmra.mrb[10].mxu1 %vm156_vm3, %v892_v12 }
 0x589   :  { %16405 = vmatprep.mubr.msk.f32.mxu1 %vm17542_vm2, %v17541_v6 }
 0x653   :  { %v17778_v13 = vpop.f32.mrb[6].mxu0 }
 0x654   :  { %v16382_v14 = vpop.f32.mrb[7].mxu0 }
 0x657   :  { %v17780_v15 = vpop.f32.mrb[8].mxu1  ;;  %v887_v16 = vpop.f32.mrb[8].mxu0 }
 0x658   :  { %v16387_v17 = vpop.f32.mrb[9].mxu1  ;;  %v16392_v18 = vpop.f32.mrb[9].mxu0  ;;  %v969_v19 = vsel %vm308_vm4, %v887_v16, -inf }
 0x659   :  { %970 = vmax.xlane.f32.xlu0 %v969_v19 }
 0x65b   :  { %v965_v20 = vpop.f32.mrb[10].mxu1 }
 0x65c   :  { %v16397_v21 = vpop.f32.mrb[11].mxu1  ;;  %v972_v22 = vsel %vm308_vm4, %v965_v20, -inf }
 0x65d   :  { %973 = vmax.xlane.f32.xlu1 %v972_v22 }
 0x66e   :  { %991 = vrot.lane.b32.xlu1 %v17686_v10, %s20538_s26 }
 0x66f   :  { %1067 = vrot.lane.b32.xlu0 %v17690_v11, %s20538_s26  ;;  %s20540_s26 = smov 18  }
 0x672   :  { %1145 = vrot.lane.b32.xlu1 %v17686_v10, %s20524_s27 }
 0x676   :  { %1223 = vrot.lane.b32.xlu1 %v17690_v11, %s20524_s27  ;;  %s20532_s27 = smov 15  }
 0x67a   :  { %1221 = vrot.lane.b32.xlu1 %v17690_v11, %s20522_s28 }
 0x6e6   :  { %v971_v23 = vpop.xlane.xlu0 %970 }
 0x6e7   :  { %v975_v24 = vsub.f32 %v887_v16, %v971_v23 }
 0x6e9   :  { %v977_v25 = vmul.f32 1.442695, %v975_v24 }
 0x6ea   :  { %v974_v26 = vpop.xlane.xlu1 %973  ;;  %v1068_v27 = vpop.permute.xlu0 %1067 }
 0x6eb   :  { %17339 = vpow2.f32 %v977_v25  ;;  %v976_v28 = vsub.f32 %v965_v20, %v974_v26  ;;  %16404 = vmatpush3.msra.mxu1 %v1068_v27 }
 0x6ec   :  { %16413 = vmatprep.subr.mxu1 %v17541_v6 }
 0x6ed   :  { %v979_v29 = vmul.f32 1.442695, %v976_v28 }
 0x6ee   :  { %v992_v30 = vpop.permute.xlu1 %991 }
 0x6ef   :  { %17341 = vpow2.f32 %v979_v29  ;;  %16399 = vmatpush3.msra.mxu0 %v992_v30 }
 0x6f0   :  { %16408 = vmatprep.subr.mxu0 %v17541_v6 }
 0x6f2   :  { %v1146_v37 = vpop.permute.xlu1 %1145 }
 0x6f5   :  { %v17340_v31 = vpop.eup %17339 }
 0x6f6   :  { %v981_v32 = vsel %vm308_vm4, %v17340_v31, 0.0  ;;  %v1224_v41 = vpop.permute.xlu1 %1223 }
 0x6f7   :  { %982 = vadd.xlane.f32.xlu0 %v981_v32 }
 0x6f9   :  { %v17342_v33 = vpop.eup %17341 }
 0x6fa   :  { %v984_v34 = vsel %vm308_vm4, %v17342_v33, 0.0  ;;  %v1222_v46 = vpop.permute.xlu1 %1221 }
 0x6fb   :  { %985 = vadd.xlane.f32.xlu0 %v984_v34 }
 0x711   :  { %1143 = vrot.lane.b32.xlu0 %v17686_v10, %s20522_s28  ;;  %s20530_s28 = smov 12  }
 0x784   :  { %v983_v35 = vpop.xlane.xlu0 %982 }
 0x785   :  { %17343 = vrcp.f32 %v983_v35 }
 0x788   :  { %v986_v36 = vpop.xlane.xlu0 %985 }
 0x789   :  { %17345 = vrcp.f32 %v986_v36 }
 0x78c   :  { %v1144_v45 = vpop.permute.xlu0 %1143 }
 0x78f   :  { %v17344_v38 = vpop.eup %17343 }
 0x790   :  { %v989_v39 = vmul.f32 %v17344_v38, %v17340_v31 }
 0x792   :  { %16401 = vmatmul.mubr.msk.f32.vlgmr.msra.gmra.mrb[10].mxu0 %vm308_vm4, %v989_v39 }
 0x793   :  { %v17346_v40 = vpop.eup %17345  ;;  %16409 = vmatpush3.xpose.msk.msra.mxu0 %vm156_vm3, %v1146_v37  ;;  %16410 = vmatprep.mubr.msk.f32.mxu0 %vm17542_vm2, %v17541_v6 }
 0x794   :  { %v990_v43 = vmul.f32 %v17346_v40, %v17342_v33  ;;  %16418 = vmatprep.subr.mxu0 %v17541_v6 }
 0x796   :  { %16406 = vmatmul.mubr.msk.f32.vlgmr.msra.gmra.mrb[12].mxu1 %vm308_vm4, %v990_v43  ;;  %16411 = vmatmul.mubr.msk.f32.vlgmr.msra.gmra.mrb[12].mxu0 %vm156_vm3, %v1144_v45 }
 0x797   :  { %16414 = vmatpush3.xpose.msk.msra.mxu1 %vm156_vm3, %v1224_v41  ;;  %16415 = vmatprep.mubr.msk.f32.mxu1 %vm17542_vm2, %v17541_v6 }
 0x798   :  { %16423 = vmatprep.subr.mxu1 %v17541_v6  ;;  %16420 = vmatprep.mubr.msk.f32.mxu0 %vm17542_vm2, %v17541_v6 }
 0x79a   :  { %16416 = vmatmul.mubr.msk.f32.vlgmr.msra.gmra.mrb[14].mxu1 %vm156_vm3, %v1222_v46 }
 0x79b   :  { %16425 = vmatprep.mubr.msk.f32.mxu1 %vm17542_vm2, %v17541_v6 }
 0x865   :  { %v17816_v47 = vpop.f32.mrb[10].mxu0 }
 0x866   :  { %v16402_v48 = vpop.f32.mrb[11].mxu0 }
 0x869   :  { %v17818_v49 = vpop.f32.mrb[12].mxu1  ;;  %v1217_v50 = vpop.f32.mrb[12].mxu0 }
 0x86a   :  { %v16407_v51 = vpop.f32.mrb[13].mxu1  ;;  %v16412_v52 = vpop.f32.mrb[13].mxu0  ;;  %v1299_v53 = vsel %vm308_vm4, %v1217_v50, -inf }
 0x86b   :  { %1300 = vmax.xlane.f32.xlu0 %v1299_v53 }
 0x86d   :  { %v1295_v54 = vpop.f32.mrb[14].mxu1 }
 0x86e   :  { %v16417_v55 = vpop.f32.mrb[15].mxu1  ;;  %v1302_v56 = vsel %vm308_vm4, %v1295_v54, -inf }
 0x86f   :  { %1303 = vmax.xlane.f32.xlu1 %v1302_v56 }
 0x880   :  { %1321 = vrot.lane.b32.xlu1 %v17686_v10, %s20520_s30 }
 0x881   :  { %1397 = vrot.lane.b32.xlu0 %v17690_v11, %s20520_s30  ;;  %s20526_s30 = smov 9  }
 0x884   :  { %1475 = vrot.lane.b32.xlu1 %v17686_v10, %s20506_s0 }
 0x888   :  { %1553 = vrot.lane.b32.xlu1 %v17690_v11, %s20506_s0  ;;  %s20508_s0 = smov 113  }
 0x88c   :  { %1551 = vrot.lane.b32.xlu1 %v17690_v11, %s20504_s17 }
 0x8f8   :  { %v1301_v57 = vpop.xlane.xlu0 %1300 }
 0x8f9   :  { %v1305_v58 = vsub.f32 %v1217_v50, %v1301_v57 }
 0x8fb   :  { %v1307_v59 = vmul.f32 1.442695, %v1305_v58 }
 0x8fc   :  { %v1304_v60 = vpop.xlane.xlu1 %1303  ;;  %v1398_v61 = vpop.permute.xlu0 %1397 }
 0x8fd   :  { %17347 = vpow2.f32 %v1307_v59  ;;  %v1306_v62 = vsub.f32 %v1295_v54, %v1304_v60  ;;  %16424 = vmatpush3.msra.mxu1 %v1398_v61 }
 0x8fe   :  { %16433 = vmatprep.subr.mxu1 %v17541_v6 }
 0x8ff   :  { %v1309_v63 = vmul.f32 1.442695, %v1306_v62 }
 0x900   :  { %v1322_v0 = vpop.permute.xlu1 %1321 }
 0x901   :  { %17349 = vpow2.f32 %v1309_v63  ;;  %16419 = vmatpush3.msra.mxu0 %v1322_v0 }
 0x902   :  { %16428 = vmatprep.subr.mxu0 %v17541_v6 }
 0x904   :  { %v1476_v8 = vpop.permute.xlu1 %1475 }
 0x907   :  { %v17348_v1 = vpop.eup %17347 }
 0x908   :  { %v1311_v2 = vsel %vm308_vm4, %v17348_v1, 0.0  ;;  %v1554_v16 = vpop.permute.xlu1 %1553 }
 0x909   :  { %1312 = vadd.xlane.f32.xlu0 %v1311_v2 }
 0x90b   :  { %v17350_v3 = vpop.eup %17349 }
 0x90c   :  { %v1314_v4 = vsel %vm308_vm4, %v17350_v3, 0.0  ;;  %v1552_v19 = vpop.permute.xlu1 %1551 }
 0x90d   :  { %1315 = vadd.xlane.f32.xlu0 %v1314_v4 }
 0x923   :  { %1473 = vrot.lane.b32.xlu0 %v17686_v10, %s20504_s17  ;;  %s20510_s17 = smov 92  }
 0x996   :  { %v1313_v5 = vpop.xlane.xlu0 %1312 }
 0x997   :  { %17351 = vrcp.f32 %v1313_v5 }
 0x99a   :  { %v1316_v7 = vpop.xlane.xlu0 %1315 }
 0x99b   :  { %17353 = vrcp.f32 %v1316_v7 }
 0x99e   :  { %v1474_v18 = vpop.permute.xlu0 %1473 }
 0x9a1   :  { %v17352_v9 = vpop.eup %17351 }
 0x9a2   :  { %v1319_v12 = vmul.f32 %v17352_v9, %v17348_v1 }
 0x9a4   :  { %16421 = vmatmul.mubr.msk.f32.vlgmr.msra.gmra.mrb[14].mxu0 %vm308_vm4, %v1319_v12 }
 0x9a5   :  { %v17354_v14 = vpop.eup %17353  ;;  %16429 = vmatpush3.xpose.msk.msra.mxu0 %vm156_vm3, %v1476_v8  ;;  %16430 = vmatprep.mubr.msk.f32.mxu0 %vm17542_vm2, %v17541_v6 }
 0x9a6   :  { %v1320_v17 = vmul.f32 %v17354_v14, %v17350_v3  ;;  %16438 = vmatprep.subr.mxu0 %v17541_v6 }
 0x9a8   :  { %16426 = vmatmul.mubr.msk.f32.vlgmr.msra.gmra.mrb[16].mxu1 %vm308_vm4, %v1320_v17  ;;  %16431 = vmatmul.mubr.msk.f32.vlgmr.msra.gmra.mrb[16].mxu0 %vm156_vm3, %v1474_v18 }
 0x9a9   :  { %16434 = vmatpush3.xpose.msk.msra.mxu1 %vm156_vm3, %v1554_v16  ;;  %16435 = vmatprep.mubr.msk.f32.mxu1 %vm17542_vm2, %v17541_v6 }
 0x9aa   :  { %16443 = vmatprep.subr.mxu1 %v17541_v6  ;;  %16440 = vmatprep.mubr.msk.f32.mxu0 %vm17542_vm2, %v17541_v6 }
 0x9ac   :  { %16436 = vmatmul.mubr.msk.f32.vlgmr.msra.gmra.mrb[18].mxu1 %vm156_vm3, %v1552_v19 }
 0x9ad   :  { %16445 = vmatprep.mubr.msk.f32.mxu1 %vm17542_vm2, %v17541_v6 }
 0xa77   :  { %v17854_v20 = vpop.f32.mrb[14].mxu0 }
 0xa78   :  { %v16422_v21 = vpop.f32.mrb[15].mxu0 }
 0xa7b   :  { %v17856_v22 = vpop.f32.mrb[16].mxu1  ;;  %v1547_v23 = vpop.f32.mrb[16].mxu0 }
 0xa7c   :  { %v16427_v24 = vpop.f32.mrb[17].mxu1  ;;  %v16432_v25 = vpop.f32.mrb[17].mxu0  ;;  %v1629_v26 = vsel %vm308_vm4, %v1547_v23, -inf }
 0xa7d   :  { %1630 = vmax.xlane.f32.xlu0 %v1629_v26 }
 0xa7f   :  { %v1625_v27 = vpop.f32.mrb[18].mxu1 }
 0xa80   :  { %v16437_v28 = vpop.f32.mrb[19].mxu1  ;;  %v1632_v29 = vsel %vm308_vm4, %v1625_v27, -inf }
 0xa81   :  { %1633 = vmax.xlane.f32.xlu1 %v1632_v29 }
 0xa92   :  { %1651 = vrot.lane.b32.xlu1 %v17686_v10, %s20512_s18 }
 0xa93   :  { %1727 = vrot.lane.b32.xlu0 %v17690_v11, %s20512_s18  ;;  %s20514_s18 = smov 110  }
 0xa96   :  { %1805 = vrot.lane.b32.xlu1 %v17686_v10, %s20510_s17 }
 0xa9a   :  { %1883 = vrot.lane.b32.xlu1 %v17690_v11, %s20510_s17  ;;  %s20516_s17 = smov 89  }
 0xa9e   :  { %1881 = vrot.lane.b32.xlu1 %v17690_v11, %s20508_s0 }
 0xb0a   :  { %v1631_v30 = vpop.xlane.xlu0 %1630 }
 0xb0b   :  { %v1635_v31 = vsub.f32 %v1547_v23, %v1631_v30 }
 0xb0d   :  { %v1637_v32 = vmul.f32 1.442695, %v1635_v31 }
 0xb0e   :  { %v1634_v33 = vpop.xlane.xlu1 %1633  ;;  %v1728_v34 = vpop.permute.xlu0 %1727 }
 0xb0f   :  { %17355 = vpow2.f32 %v1637_v32  ;;  %v1636_v35 = vsub.f32 %v1625_v27, %v1634_v33  ;;  %16444 = vmatpush3.msra.mxu1 %v1728_v34 }
 0xb10   :  { %16453 = vmatprep.subr.mxu1 %v17541_v6 }
 0xb11   :  { %v1639_v36 = vmul.f32 1.442695, %v1636_v35 }
 0xb12   :  { %v1652_v37 = vpop.permute.xlu1 %1651 }
 0xb13   :  { %17357 = vpow2.f32 %v1639_v36  ;;  %16439 = vmatpush3.msra.mxu0 %v1652_v37 }
 0xb14   :  { %16448 = vmatprep.subr.mxu0 %v17541_v6 }
 0xb16   :  { %v1806_v46 = vpop.permute.xlu1 %1805 }
 0xb19   :  { %v17356_v38 = vpop.eup %17355 }
 0xb1a   :  { %v1641_v39 = vsel %vm308_vm4, %v17356_v38, 0.0  ;;  %v1884_v52 = vpop.permute.xlu1 %1883 }
 0xb1b   :  { %1642 = vadd.xlane.f32.xlu0 %v1641_v39 }
 0xb1d   :  { %v17358_v40 = vpop.eup %17357 }
 0xb1e   :  { %v1644_v41 = vsel %vm308_vm4, %v17358_v40, 0.0  ;;  %v1882_v55 = vpop.permute.xlu1 %1881 }
 0xb1f   :  { %1645 = vadd.xlane.f32.xlu0 %v1644_v41 }
 0xb35   :  { %1803 = vrot.lane.b32.xlu0 %v17686_v10, %s20508_s0  ;;  %s20518_s0 = smov 71  }
 0xba8   :  { %v1643_v43 = vpop.xlane.xlu0 %1642 }
 0xba9   :  { %17359 = vrcp.f32 %v1643_v43 }
 0xbac   :  { %v1646_v45 = vpop.xlane.xlu0 %1645 }
 0xbad   :  { %17361 = vrcp.f32 %v1646_v45 }
 0xbb0   :  { %v1804_v54 = vpop.permute.xlu0 %1803 }
 0xbb3   :  { %v17360_v48 = vpop.eup %17359 }
 0xbb4   :  { %v1649_v50 = vmul.f32 %v17360_v48, %v17356_v38 }
 0xbb6   :  { %16441 = vmatmul.mubr.msk.f32.vlgmr.msra.gmra.mrb[18].mxu0 %vm308_vm4, %v1649_v50 }
 0xbb7   :  { %v17362_v51 = vpop.eup %17361  ;;  %16449 = vmatpush3.xpose.msk.msra.mxu0 %vm156_vm3, %v1806_v46  ;;  %16450 = vmatprep.mubr.msk.f32.mxu0 %vm17542_vm2, %v17541_v6 }
 0xbb8   :  { %v1650_v53 = vmul.f32 %v17362_v51, %v17358_v40  ;;  %16458 = vmatprep.subr.mxu0 %v17541_v6 }
 0xbba   :  { %16446 = vmatmul.mubr.msk.f32.vlgmr.msra.gmra.mrb[20].mxu1 %vm308_vm4, %v1650_v53  ;;  %16451 = vmatmul.mubr.msk.f32.vlgmr.msra.gmra.mrb[20].mxu0 %vm156_vm3, %v1804_v54 }
 0xbbb   :  { %16454 = vmatpush3.xpose.msk.msra.mxu1 %vm156_vm3, %v1884_v52  ;;  %16455 = vmatprep.mubr.msk.f32.mxu1 %vm17542_vm2, %v17541_v6 }
 0xbbc   :  { %16463 = vmatprep.subr.mxu1 %v17541_v6  ;;  %16460 = vmatprep.mubr.msk.f32.mxu0 %vm17542_vm2, %v17541_v6 }
 0xbbe   :  { %16456 = vmatmul.mubr.msk.f32.vlgmr.msra.gmra.mrb[22].mxu1 %vm156_vm3, %v1882_v55 }
 0xbbf   :  { %16465 = vmatprep.mubr.msk.f32.mxu1 %vm17542_vm2, %v17541_v6 }
 0xc89   :  { %v17892_v56 = vpop.f32.mrb[18].mxu0 }
 0xc8a   :  { %v16442_v57 = vpop.f32.mrb[19].mxu0 }
 0xc8d   :  { %v17894_v58 = vpop.f32.mrb[20].mxu1  ;;  %v1877_v59 = vpop.f32.mrb[20].mxu0 }
 0xc8e   :  { %v16447_v60 = vpop.f32.mrb[21].mxu1  ;;  %v16452_v61 = vpop.f32.mrb[21].mxu0  ;;  %v1959_v62 = vsel %vm308_vm4, %v1877_v59, -inf }
 0xc8f   :  { %1960 = vmax.xlane.f32.xlu0 %v1959_v62 }
 0xc91   :  { %v1955_v63 = vpop.f32.mrb[22].mxu1 }
 0xc92   :  { %v16457_v0 = vpop.f32.mrb[23].mxu1  ;;  %v1962_v1 = vsel %vm308_vm4, %v1955_v63, -inf }
 0xc93   :  { %1963 = vmax.xlane.f32.xlu1 %v1962_v1 }
 0xca4   :  { %1981 = vrot.lane.b32.xlu1 %v17686_v10, %s20518_s0 }
 0xca5   :  { %2057 = vrot.lane.b32.xlu0 %v17690_v11, %s20518_s0  ;;  %s20528_s0 = smov 6  }
 0xca8   :  { %2135 = vrot.lane.b32.xlu1 %v17686_v10, %s20516_s17 }
 0xcac   :  { %2213 = vrot.lane.b32.xlu1 %v17690_v11, %s20516_s17  ;;  %s20534_s17 = smov 3  }
 0xcb0   :  { %2211 = vrot.lane.b32.xlu1 %v17690_v11, %s20514_s18 }
 0xd1c   :  { %v1961_v2 = vpop.xlane.xlu0 %1960 }
 0xd1d   :  { %v1965_v3 = vsub.f32 %v1877_v59, %v1961_v2 }
 0xd1f   :  { %v1967_v4 = vmul.f32 1.442695, %v1965_v3 }
 0xd20   :  { %v1964_v5 = vpop.xlane.xlu1 %1963  ;;  %v2058_v7 = vpop.permute.xlu0 %2057 }
 0xd21   :  { %17363 = vpow2.f32 %v1967_v4  ;;  %v1966_v8 = vsub.f32 %v1955_v63, %v1964_v5  ;;  %16464 = vmatpush3.msra.mxu1 %v2058_v7 }
 0xd22   :  { %16473 = vmatprep.subr.mxu1 %v17541_v6 }
 0xd23   :  { %v1969_v9 = vmul.f32 1.442695, %v1966_v8 }
 0xd24   :  { %v1982_v12 = vpop.permute.xlu1 %1981 }
 0xd25   :  { %17365 = vpow2.f32 %v1969_v9  ;;  %16459 = vmatpush3.msra.mxu0 %v1982_v12 }
 0xd26   :  { %16468 = vmatprep.subr.mxu0 %v17541_v6 }
 0xd28   :  { %v2136_v23 = vpop.permute.xlu1 %2135 }
 0xd2b   :  { %v17364_v14 = vpop.eup %17363 }
 0xd2c   :  { %v1971_v16 = vsel %vm308_vm4, %v17364_v14, 0.0  ;;  %v2214_v27 = vpop.permute.xlu1 %2213 }
 0xd2d   :  { %1972 = vadd.xlane.f32.xlu0 %v1971_v16 }
 0xd2f   :  { %v17366_v17 = vpop.eup %17365 }
 0xd30   :  { %v1974_v18 = vsel %vm308_vm4, %v17366_v17, 0.0  ;;  %v2212_v30 = vpop.permute.xlu1 %2211 }
 0xd31   :  { %1975 = vadd.xlane.f32.xlu0 %v1974_v18 }
 0xd47   :  { %2133 = vrot.lane.b32.xlu0 %v17686_v10, %s20514_s18  ;;  %s20536_s18 = smov 68  }
 0xdba   :  { %v1973_v19 = vpop.xlane.xlu0 %1972 }
 0xdbb   :  { %17367 = vrcp.f32 %v1973_v19 }
 0xdbe   :  { %v1976_v21 = vpop.xlane.xlu0 %1975 }
 0xdbf   :  { %17369 = vrcp.f32 %v1976_v21 }
 0xdc2   :  { %v2134_v29 = vpop.permute.xlu0 %2133 }
 0xdc5   :  { %v17368_v24 = vpop.eup %17367 }
 0xdc6   :  { %v1979_v25 = vmul.f32 %v17368_v24, %v17364_v14 }
 0xdc8   :  { %16461 = vmatmul.mubr.msk.f32.vlgmr.msra.gmra.mrb[22].mxu0 %vm308_vm4, %v1979_v25 }
 0xdc9   :  { %v17370_v26 = vpop.eup %17369  ;;  %16469 = vmatpush3.xpose.msk.msra.mxu0 %vm156_vm3, %v2136_v23  ;;  %16470 = vmatprep.mubr.msk.f32.mxu0 %vm17542_vm2, %v17541_v6 }
 0xdca   :  { %v1980_v28 = vmul.f32 %v17370_v26, %v17366_v17  ;;  %16478 = vmatprep.subr.mxu0 %v17541_v6 }
 0xdcc   :  { %16466 = vmatmul.mubr.msk.f32.vlgmr.msra.gmra.mrb[24].mxu1 %vm308_vm4, %v1980_v28  ;;  %16471 = vmatmul.mubr.msk.f32.vlgmr.msra.gmra.mrb[24].mxu0 %vm156_vm3, %v2134_v29 }
 0xdcd   :  { %16474 = vmatpush3.xpose.msk.msra.mxu1 %vm156_vm3, %v2214_v27  ;;  %16475 = vmatprep.mubr.msk.f32.mxu1 %vm17542_vm2, %v17541_v6 }
 0xdce   :  { %16483 = vmatprep.subr.mxu1 %v17541_v6  ;;  %16480 = vmatprep.mubr.msk.f32.mxu0 %vm17542_vm2, %v17541_v6 }
 0xdd0   :  { %16476 = vmatmul.mubr.msk.f32.vlgmr.msra.gmra.mrb[26].mxu1 %vm156_vm3, %v2212_v30 }
 0xdd1   :  { %16485 = vmatprep.mubr.msk.f32.mxu1 %vm17542_vm2, %v17541_v6 }
 0xe9b   :  { %v2053_v31 = vpop.f32.mrb[22].mxu0 }
 0xe9c   :  { %v16462_v32 = vpop.f32.mrb[23].mxu0 }
 0xe9f   :  { %v2129_v33 = vpop.f32.mrb[24].mxu1  ;;  %v2207_v34 = vpop.f32.mrb[24].mxu0 }
 0xea0   :  { %v16467_v35 = vpop.f32.mrb[25].mxu1  ;;  %v16472_v36 = vpop.f32.mrb[25].mxu0  ;;  %v2289_v37 = vsel %vm308_vm4, %v2207_v34, -inf }
 0xea1   :  { %2290 = vmax.xlane.f32.xlu0 %v2289_v37  ;;  %v17516_v35 = vld [vmem:[%s20584_s29] sm:$0xff] }
 0xea3   :  { %v2285_v38 = vpop.f32.mrb[26].mxu1 }
 0xea4   :  { %v16477_v39 = vpop.f32.mrb[27].mxu1  ;;  %v2292_v40 = vsel %vm308_vm4, %v2285_v38, -inf }
 0xea5   :  { %2293 = vmax.xlane.f32.xlu1 %v2292_v40 }
 0xeb6   :  { %2311 = vrot.lane.b32.xlu1 %v17686_v10, %s20536_s18 }
 0xeba   :  { %2465 = vrot.lane.b32.xlu1 %v17778_v13, %s20534_s17 }
 0xebe   :  { %2467 = vrot.lane.b32.xlu1 %v17780_v15, %s20534_s17  ;;  %s20593_s17 = smov 95  }
 0xec2   :  { %2475 = vrot.lane.b32.xlu1 %v17818_v49, %s20528_s0 }
 0xec6   :  { %2483 = vrot.lane.b32.xlu1 %v17856_v22, %s20526_s30 }
 0xeca   :  { %2491 = vrot.lane.b32.xlu1 %v17894_v58, %s20530_s28  ;;  %v2530_v58 = vld [vmem:[%s20489_s3 + $0x10] sm:$0x1f] }
 0xece   :  { %2499 = vrot.lane.b32.xlu1 %v2129_v33, %s20532_s27  ;;  %v17515_v33 = vld [vmem:[%s20584_s29 + $0x8] sm:$0xff]  ;;  %s20585_s29 = smov 125  }
 0xf2e   :  { %v2291_v10 = vpop.xlane.xlu0 %2290 }
 0xf2f   :  { %v2295_v13 = vsub.f32 %v2207_v34, %v2291_v10 }
 0xf31   :  { %v2297_v41 = vmul.f32 1.442695, %v2295_v13 }
 0xf32   :  { %v2294_v43 = vpop.xlane.xlu1 %2293 }
 0xf33   :  { %17371 = vpow2.f32 %v2297_v41  ;;  %v2296_v15 = vsub.f32 %v2285_v38, %v2294_v43 }
 0xf35   :  { %v2299_v45 = vmul.f32 1.442695, %v2296_v15 }
 0xf36   :  { %v2312_v46 = vpop.permute.xlu1 %2311 }
 0xf37   :  { %17373 = vpow2.f32 %v2299_v45  ;;  %16479 = vmatpush3.msra.mxu0 %v2312_v46 }
 0xf3a   :  { %v2466_v63 = vpop.permute.xlu1 %2465 }
 0xf3b   :  { %v2511_v8 = vsel %vm156_vm3, %v17740_v42, %v2466_v63 }
 0xf3d   :  { %v17372_v49 = vpop.eup %17371 }
 0xf3e   :  { %v2301_v22 = vsel %vm308_vm4, %v17372_v49, 0.0  ;;  %v2468_v0 = vpop.permute.xlu1 %2467 }
 0xf3f   :  { %2302 = vadd.xlane.f32.xlu0 %v2301_v22  ;;  %v2512_v17 = vsel %vm156_vm3, %v17742_v44, %v2468_v0  ;;  %v14385_v44 = vld [vmem:[%s20490_s4] ss:$0 sm:$0xff] }
 0xf40   :  { %v2670_v22 = vld [vmem:[%s20495_s9] sm:$0xff] }
 0xf41   :  { %v17374_v48 = vpop.eup %17373 }
 0xf42   :  { %v2304_v50 = vsel %vm308_vm4, %v17374_v48, 0.0  ;;  %v2476_v2 = vpop.permute.xlu1 %2475 }
 0xf43   :  { %2305 = vadd.xlane.f32.xlu0 %v2304_v50  ;;  %v2515_v42 = vsel %vm2513_vm5, %v2512_v17, %v2476_v2  ;;  %v2671_v50 = vld [vmem:[%s20495_s9 + $0x8] sm:$0xff]  ;;  %v2909_v2 = vld [vmem:[%s20495_s9 + $0x10] sm:$0xff] }
 0xf46   :  { %v2484_v4 = vpop.permute.xlu1 %2483 }
 0xf47   :  { %v2518_v24 = vsel %vm2516_vm6, %v2515_v42, %v2484_v4  ;;  %v2910_v4 = vld [vmem:[%s20495_s9 + $0x18] sm:$0xff] }
 0xf4a   :  { %v2492_v7 = vpop.permute.xlu1 %2491 }
 0xf4b   :  { %v2521_v25 = vsel %vm2519_vm7, %v2518_v24, %v2492_v7  ;;  %v2912_v7 = vld [vmem:[%s20495_s9 + $0x58] sm:$0xff] }
 0xf4e   :  { %v2500_v18 = vpop.permute.xlu1 %2499 }
 0xf4f   :  { %v2524_v26 = vsel %vm2522_vm9, %v2521_v25, %v2500_v18  ;;  %v14389_v25 = vld [vmem:[%s20491_s5] ss:$0 sm:$0xff] }
 0xf59   :  { %2387 = vrot.lane.b32.xlu0 %v17690_v11, %s20536_s18  ;;  %s20594_s18 = smov 116  }
 0xf5d   :  { %2473 = vrot.lane.b32.xlu0 %v17816_v47, %s20528_s0  ;;  %s20592_s0 = smov 77  }
 0xf61   :  { %2481 = vrot.lane.b32.xlu0 %v17854_v20, %s20526_s30  ;;  %v2528_v20 = vld [vmem:[%s20489_s3] sm:$0xff]  ;;  %s20591_s30 = smov 119  }
 0xf65   :  { %2489 = vrot.lane.b32.xlu0 %v17892_v56, %s20530_s28  ;;  %v2529_v56 = vld [vmem:[%s20489_s3 + $0x8] sm:$0xff]  ;;  %s20590_s28 = smov 98  }
 0xf66   :  { %v16833_v57 = vpack.c.bf16 %v2529_v56, %v2528_v20 }
 0xf68   :  { %16834 = vmatprep.subr.bf16.mxu0 %v16833_v57 }
 0xf69   :  { %2497 = vrot.lane.b32.xlu0 %v2053_v31, %s20532_s27  ;;  %s20586_s27 = smov 83  }
 0xfcc   :  { %v2303_v51 = vpop.xlane.xlu0 %2302 }
 0xfcd   :  { %17375 = vrcp.f32 %v2303_v51 }
 0xfd0   :  { %v2306_v52 = vpop.xlane.xlu0 %2305 }
 0xfd1   :  { %17377 = vrcp.f32 %v2306_v52  ;;  %v2673_v52 = vld [vmem:[%s20495_s9 + $0x48] sm:$0xff] }
 0xfd4   :  { %v2388_v53 = vpop.permute.xlu0 %2387 }
 0xfd5   :  { %16484 = vmatpush3.msra.mxu1 %v2388_v53 }
 0xfd7   :  { %v17376_v54 = vpop.eup %17375 }
 0xfd8   :  { %v2309_v55 = vmul.f32 %v17376_v54, %v17372_v49  ;;  %v2474_v1 = vpop.permute.xlu0 %2473  ;;  %v14393_v54 = vcombine.low %v2671_v50, %v2673_v52 }
 0xfd9   :  { %v2514_v12 = vsel %vm2513_vm5, %v2511_v8, %v2474_v1  ;;  %v17570_v8 = vmov 0  }
 0xfda   :  { %16481 = vmatmul.mubr.msk.f32.vlgmr.msra.gmra.mrb[26].mxu0 %vm308_vm4, %v2309_v55  ;;  %v14394_v55 = vcombine.high %v2671_v50, %v2673_v52  ;;  %v16907_v50 = vld [vmem:[%s20497_s11 + $0x150] sm:$0xff]  }
 0xfdb   :  { %v17378_v11 = vpop.eup %17377  ;;  %16836 = vmatpush3.bf16.msra.mxu0 %v16833_v57  ;;  %v16909_v52 = vld [vmem:[%s20497_s11 + $0x110] sm:$0xff]  }
 0xfdc   :  { %v2310_v47 = vmul.f32 %v17378_v11, %v17374_v48  ;;  %16492 = vmatprep.subr.msk.mxu0 %vm74_vm1, %v2530_v58  ;;  %v2482_v3 = vpop.permute.xlu0 %2481  ;;  %v2672_v48 = vld [vmem:[%s20495_s9 + $0x40] sm:$0xff] }
 0xfdd   :  { %v2517_v14 = vsel %vm2516_vm6, %v2514_v12, %v2482_v3  ;;  %v14392_v51 = vcombine.high %v2670_v22, %v2672_v48  ;;  %v14391_v53 = vcombine.low %v2670_v22, %v2672_v48  ;;  %v2674_v11 = vld [vmem:[%s20495_s9 + $0x80] sm:$0x77]  ;;  %v2911_v3 = vld [vmem:[%s20495_s9 + $0x50] sm:$0xff]  ;;  %v14403_v12 = vcombine.low %v2910_v4, %v2912_v7  ;;  %v16905_v22 = vld [vmem:[%s20497_s11 + $0x108] sm:$0xff]  }
 0xfde   :  { %16486 = vmatmul.mubr.msk.f32.vlgmr.msra.gmra.mrb[28].mxu1 %vm308_vm4, %v2310_v47  ;;  %v2675_v47 = vld [vmem:[%s20495_s9 + $0x88] sm:$0x77]  ;;  %v14396_v20 = vcombine.high %v2674_v11, %v2674_v11  ;;  %v14395_v57 = vcombine.low %v2674_v11, %v2674_v11  ;;  %v16913_v11 = vld [vmem:[%s20497_s11 + $0x118] sm:$0xff]  }
 0xfdf   :  { %16493 = vmatpush3.msk.msra.mxu0 %vm74_vm1, %v2530_v58  ;;  %2747 = vmatprep.subr.bf16.mxu1 %v14392_v51  ;;  %v14398_v56 = vcombine.high %v2675_v47, %v2675_v47  ;;  %v17569_v58 = vmov 65535   ;;  %v16906_v48 = vld [vmem:[%s20497_s11 + $0x188] sm:$0xff]   ;;  %v16908_v51 = vld [vmem:[%s20497_s11 + $0x1d0] sm:$0xff]  }
 0xfe0   :  { %v2490_v5 = vpop.permute.xlu0 %2489  ;;  %2790 = vmatprep.subr.bf16.mxu0 %v14394_v55  ;;  %2748 = vmatpush1.bf16.msra.mxu1 %v14391_v53  ;;  %v16910_v53 = vld [vmem:[%s20497_s11 + $0x190] sm:$0xff]   ;;  %v16912_v55 = vld [vmem:[%s20497_s11 + $0x1d8] sm:$0xff]  }
 0xfe1   :  { %v2520_v16 = vsel %vm2519_vm7, %v2517_v14, %v2490_v5  ;;  %v14402_v5 = vcombine.high %v2909_v2, %v2911_v3  ;;  %2779 = vmatprep.mubr.bf16.mxu1 %v17570_v8  ;;  %v14404_v14 = vcombine.high %v2910_v4, %v2912_v7  ;;  %v16927_v4 = vld [vmem:[%s20497_s11 + $0x178] sm:$0xff]  }
 0xfe2   :  { %v16929_v7 = vld [vmem:[%s20497_s11 + $0x138] sm:$0xff]  }
 0xfe4   :  { %v2498_v9 = vpop.permute.xlu0 %2497 }
 0xfe5   :  { %v2523_v19 = vsel %vm2522_vm9, %v2520_v16, %v2498_v9  ;;  %v14401_v9 = vcombine.low %v2909_v2, %v2911_v3  ;;  %v16925_v2 = vld [vmem:[%s20497_s11 + $0x130] sm:$0xff]  }
 0xfe6   :  { %v16926_v3 = vld [vmem:[%s20497_s11 + $0x1b0] sm:$0xff]  }
0x10ad   :  { %v2383_v59 = vpop.f32.mrb[26].mxu0 }
0x10ae   :  { %2505 = vrot.lane.b32.xlu0 %v2383_v59, %s20540_s26  ;;  %v16482_v60 = vpop.f32.mrb[27].mxu0  ;;  %v2733_v59 = vsel %vm2731_vm10, 4294967295, %v17569_v58  ;;  %v16918_v58 = vld [vmem:[%s20497_s11 + $0x1a0] sm:$0xff]  }
0x10af   :  { %v14397_v60 = vcombine.low %v2675_v47, %v2675_v47  ;;  %v16914_v47 = vld [vmem:[%s20497_s11 + $0x198] sm:$0xff]  }
0x10b1   :  { %v2459_v61 = vpop.f32.mrb[28].mxu1 }
0x10b2   :  { %2507 = vrot.lane.b32.xlu1 %v2459_v61, %s20540_s26  ;;  %v16487_v62 = vpop.f32.mrb[29].mxu1  ;;  %v18022_v61 = vsel %vm2732_vm11, %v2733_v59, 0  ;;  %v16919_v59 = vld [vmem:[%s20497_s11 + $0x168] sm:$0xff]   ;;  %s20589_s26 = smov 80  }
0x10b3   :  { %v2739_v62 = vand.u32 %v14396_v20, %v18022_v61  ;;  %v2745_v63 = vand.u32 %v14398_v56, %v18022_v61  ;;  %v2736_v0 = vand.u32 %v14395_v57, %v18022_v61  ;;  %v2742_v1 = vand.u32 %v14397_v60, %v18022_v61  ;;  %v16915_v20 = vld [vmem:[%s20497_s11 + $0x160] sm:$0xff]   ;;  %v16920_v60 = vld [vmem:[%s20497_s11 + $0x1e8] sm:$0xff]  }
0x10b4   :  { %v16916_v56 = vld [vmem:[%s20497_s11 + $0x1e0] sm:$0xff]  }
0x10b5   :  { %2749 = vmatprep.subr.bf16.mxu1 %v2739_v62  ;;  %v16917_v57 = vld [vmem:[%s20497_s11 + $0x120] sm:$0xff]   ;;  %v16921_v62 = vld [vmem:[%s20497_s11 + $0x128] sm:$0xff]  }
0x10b6   :  { %2750 = vmatpush1.bf16.msra.mxu1 %v2736_v0  ;;  %v16923_v0 = vld [vmem:[%s20497_s11 + $0x170] sm:$0xff]  }
0x10b7   :  { %2979 = vmatprep.subr.bf16.mxu1 %v14402_v5  ;;  %v16928_v5 = vld [vmem:[%s20497_s11 + $0x1f8] sm:$0xff]  }
0x1120   :  { %v2506_v21 = vpop.permute.xlu0 %2505 }
0x1121   :  { %v2526_v23 = vsel %vm2525_vm8, %v2523_v19, %v2506_v21 }
0x1122   :  { %16494 = vmatprep.mubr.msk.f32.mxu0 %vm67_vm0, %v2526_v23 }
0x1124   :  { %v2508_v27 = vpop.permute.xlu1 %2507 }
0x1125   :  { %v2527_v28 = vsel %vm2525_vm8, %v2524_v26, %v2508_v27  ;;  %v2913_v27 = vld [vmem:[%s20495_s9 + $0x90] sm:$0x77] }
0x1126   :  { %16495 = vmatmul.mubr.msk.f32.vlgmr.msra.gmra.mrb[28].mxu0 %vm67_vm0, %v2527_v28  ;;  %v2914_v28 = vld [vmem:[%s20495_s9 + $0x98] sm:$0x77] }
0x1127   :  { %2791 = vmatpush1.bf16.msra.mxu0 %v14393_v54  ;;  %2822 = vmatprep.mubr.bf16.mxu0 %v17570_v8  ;;  %v16911_v54 = vld [vmem:[%s20497_s11 + $0x158] sm:$0xff]  }
0x1128   :  { %2792 = vmatprep.subr.bf16.mxu0 %v2745_v63  ;;  %v16922_v63 = vld [vmem:[%s20497_s11 + $0x1a8] sm:$0xff]  }
0x112b   :  { %2793 = vmatpush1.bf16.msra.mxu0 %v2742_v1  ;;  %v16924_v1 = vld [vmem:[%s20497_s11 + $0x1f0] sm:$0xff]  }
0x112c   :  { %3022 = vmatprep.subr.bf16.mxu0 %v14404_v14  ;;  %v16932_v14 = vld [vmem:[%s20497_s11 + $0xc0] sm:$0xff]  }
0x11f9   :  { %v16496_v29 = vpop.f32.mrb[28].mxu0 }
0x11fa   :  { %v2619_v30 = vadd.f32 %v16496_v29, %v14385_v44  ;;  %v2613_v31 = vpop.f32.mrb[29].mxu0 }
0x11fb   :  { %v2614_v32 = vadd.f32 %v14385_v44, %v2613_v31 }
0x11fc   :  { %v2623_v34 = vadd.f32 %v17515_v33, %v2619_v30  ;;  %v14390_v30 = vld [vmem:[%s20492_s6] ss:$0 sm:$0xff]  ;;  %v14408_v33 = vcombine.high %v2914_v28, %v2914_v28 }
0x11fd   :  { %v2622_v36 = vadd.f32 %v17516_v35, %v2614_v32  ;;  %v14406_v32 = vcombine.high %v2913_v27, %v2913_v27 }
0x11fe   :  { %v2629_v37 = vsel %vm67_vm0, %v2623_v34, 0.0 }
0x11ff   :  { %2630 = vadd.xlane.f32.xlu1 %v2629_v37  ;;  %v2626_v38 = vsel %vm67_vm0, %v2622_v36, 0.0  ;;  %v14407_v37 = vcombine.low %v2914_v28, %v2914_v28 }
0x1200   :  { %2627 = vadd.xlane.f32.xlu0 %v2626_v38 }
0x128c   :  { %v2631_v39 = vpop.xlane.xlu1 %2630 }
0x128d   :  { %v2634_v40 = vmul.f32 0.04761905, %v2631_v39  ;;  %v2628_v10 = vpop.xlane.xlu0 %2627  ;;  %v2971_v39 = vand.u32 %v14406_v32, %v18022_v61 }
0x128e   :  { %v2633_v13 = vmul.f32 0.04761905, %v2628_v10 }
0x128f   :  { %v17998_v41 = vsub.f32 %v2623_v34, %v2634_v40  ;;  %v2977_v40 = vand.u32 %v14408_v33, %v18022_v61 }
0x1290   :  { %v2635_v43 = vsub.f32 %v2622_v36, %v2633_v13  ;;  %v14405_v36 = vcombine.low %v2913_v27, %v2913_v27  ;;  %v2974_v13 = vand.u32 %v14407_v37, %v18022_v61 }
0x1291   :  { %v2638_v46 = vmul.f32 %v17998_v41, %v17998_v41 }
0x1292   :  { %v2637_v15 = vmul.f32 %v2635_v43, %v2635_v43  ;;  %v2968_v10 = vand.u32 %v14405_v36, %v18022_v61 }
0x1293   :  { %v2642_v49 = vsel %vm67_vm0, %v2638_v46, 0.0  ;;  %v16903_v46 = vld [vmem:[%s20497_s11 + $0x148] sm:$0xff]  }
0x1294   :  { %v2639_v45 = vsel %vm67_vm0, %v2637_v15, 0.0  ;;  %v16901_v15 = vld [vmem:[%s20497_s11 + $0x100] sm:$0xff]  }
0x1295   :  { %2640 = vadd.xlane.f32.xlu0 %v2639_v45  ;;  %v16902_v45 = vld [vmem:[%s20497_s11 + $0x180] sm:$0xff]  }
0x1299   :  { %2643 = vadd.xlane.f32.xlu0 %v2642_v49  ;;  %v16904_v49 = vld [vmem:[%s20497_s11 + $0x1c8] sm:$0xff]  }
0x1322   :  { %v2641_v16 = vpop.xlane.xlu0 %2640 }
0x1323   :  { %v2645_v17 = vmul.f32 0.04761905, %v2641_v16  ;;  %v2678_v16 = vlaneseq }
0x1325   :  { %v2647_v18 = vadd.f32 1e-05, %v2645_v17  ;;  %v2679_v17 = vshrl.u32 %v2678_v16, 7 }
0x1326   :  { %v2644_v19 = vpop.xlane.xlu0 %2643 }
0x1327   :  { %17379 = vrsqrt.f32 %v2647_v18  ;;  %v2646_v21 = vmul.f32 0.04761905, %v2644_v19  ;;  %v18179_v18 = vsub.s32 0, %v2679_v17  ;;  %v18181_v19 = vsub.s32 2, %v2679_v17 }
0x1329   :  { %v2648_v42 = vadd.f32 1e-05, %v2646_v21  ;;  %v2676_v21 = vld [vmem:[%s20496_s10] sm:$0xf] }
0x132b   :  { %17381 = vrsqrt.f32 %v2648_v42  ;;  %v18186_v42 = vsub.s32 1, %v2679_v17 }
0x1331   :  { %v17380_v23 = vpop.eup %17379 }
0x1332   :  { %v2651_v24 = vmul.f32 %v17380_v23, %v2635_v43  ;;  %v16900_v43 = vld [vmem:[%s20497_s11 + $0x1c0] sm:$0xff]   ;;  %v18188_v23 = vsub.s32 3, %v2679_v17 }
0x1334   :  { %v2659_v44 = vmul.f32 %v14389_v25, %v2651_v24  ;;  %v2681_v24 = vrot.slane %v2676_v21, %v18179_v18  ;;  %v2693_v27 = vrot.slane %v2676_v21, %v18188_v23 }
0x1335   :  { %v17382_v26 = vpop.eup %17381 }
0x1336   :  { %v2652_v29 = vmul.f32 %v17382_v26, %v17998_v41  ;;  %v18055_v34 = vadd.f32 %v14390_v30, %v2659_v44  ;;  %v16899_v41 = vld [vmem:[%s20497_s11 + $0x140] sm:$0xff]   ;;  %v2685_v26 = vrot.slane %v2676_v21, %v18186_v42 }
0x1338   :  { %v2660_v31 = vmul.f32 %v14389_v25, %v2652_v29  ;;  %v2689_v25 = vrot.slane %v2676_v21, %v18181_v19  ;;  %v2915_v29 = vld [vmem:[%s20496_s10 + $0x4] sm:$0xf] }
0x133a   :  { %v18057_v35 = vadd.f32 %v14390_v30, %v2660_v31 }
0x133c   :  { %v18061_v38 = vpack.c.bf16 %v18057_v35, %v18055_v34 }
0x133e   :  { %14399 = vmatmul.mubr.msk.bf16.vlgmr.msra.gmra.mrb[32].mxu1 %vm67_vm0, %v18061_v38  ;;  %14400 = vmatmul.mubr.msk.bf16.vlgmr.msra.gmra.mrb[32].mxu0 %vm67_vm0, %v18061_v38 }
0x133f   :  { %2980 = vmatpush1.bf16.msra.mxu1 %v14401_v9  ;;  %3023 = vmatpush1.bf16.msra.mxu0 %v14403_v12  ;;  %v16930_v9 = vld [vmem:[%s20497_s11 + $0x1b8] sm:$0xff]   ;;  %v16931_v12 = vld [vmem:[%s20497_s11 + $0x40] sm:$0xff]  }
0x1340   :  { %2981 = vmatprep.subr.bf16.mxu1 %v2971_v39  ;;  %3024 = vmatprep.subr.bf16.mxu0 %v2977_v40 }
0x1341   :  { %3011 = vmatprep.mubr.bf16.mxu1 %v17570_v8  ;;  %3054 = vmatprep.mubr.bf16.mxu0 %v17570_v8 }
0x1343   :  { %2982 = vmatpush1.bf16.msra.mxu1 %v2968_v10  ;;  %3025 = vmatpush1.bf16.msra.mxu0 %v2974_v13 }
0x1344   :  { %15672 = vmatprep.subr.bf16.mxu1 %v16899_v41  ;;  %15694 = vmatprep.subr.bf16.mxu0 %v16900_v43 }
0x1346   :  { %14409 = vmatmul.mubr.msk.bf16.vlgmr.msra.gmra.mrb[36].mxu1 %vm67_vm0, %v18061_v38  ;;  %14410 = vmatmul.mubr.msk.bf16.vlgmr.msra.gmra.mrb[36].mxu0 %vm67_vm0, %v18061_v38 }
0x1347   :  { %15673 = vmatpush3.bf16.msra.mxu1 %v16901_v15  ;;  %15695 = vmatpush3.bf16.msra.mxu0 %v16902_v45  ;;  %v2920_v15 = vrot.slane %v2915_v29, %v18179_v18  ;;  %v2928_v45 = vrot.slane %v2915_v29, %v18181_v19 }
0x1348   :  { %15674 = vmatprep.subr.bf16.mxu1 %v16903_v46  ;;  %15696 = vmatprep.subr.bf16.mxu0 %v16904_v49 }
0x134b   :  { %15675 = vmatpush3.bf16.msra.mxu1 %v16905_v22  ;;  %15697 = vmatpush3.bf16.msra.mxu0 %v16906_v48  ;;  %v2924_v22 = vrot.slane %v2915_v29, %v18186_v42  ;;  %v2932_v48 = vrot.slane %v2915_v29, %v18188_v23 }
0x134c   :  { %15676 = vmatprep.subr.bf16.mxu1 %v16907_v50  ;;  %15698 = vmatprep.subr.bf16.mxu0 %v16908_v51 }
0x134f   :  { %15677 = vmatpush3.bf16.msra.mxu1 %v16909_v52  ;;  %15699 = vmatpush3.bf16.msra.mxu0 %v16910_v53 }
0x1350   :  { %15678 = vmatprep.subr.bf16.mxu1 %v16911_v54  ;;  %15700 = vmatprep.subr.bf16.mxu0 %v16912_v55 }
0x1353   :  { %15679 = vmatpush3.bf16.msra.mxu1 %v16913_v11  ;;  %15701 = vmatpush3.bf16.msra.mxu0 %v16914_v47 }
0x1354   :  { %15680 = vmatprep.subr.bf16.mxu1 %v16915_v20  ;;  %15702 = vmatprep.subr.bf16.mxu0 %v16916_v56 }
0x1357   :  { %15681 = vmatpush3.bf16.msra.mxu1 %v16917_v57  ;;  %15703 = vmatpush3.bf16.msra.mxu0 %v16918_v58 }
0x1358   :  { %15682 = vmatprep.subr.bf16.mxu1 %v16919_v59  ;;  %15704 = vmatprep.subr.bf16.mxu0 %v16920_v60 }
0x135b   :  { %15683 = vmatpush3.bf16.msra.mxu1 %v16921_v62  ;;  %15705 = vmatpush3.bf16.msra.mxu0 %v16922_v63 }
0x135c   :  { %15684 = vmatprep.subr.bf16.mxu1 %v16923_v0  ;;  %15706 = vmatprep.subr.bf16.mxu0 %v16924_v1 }
0x135f   :  { %15685 = vmatpush3.bf16.msra.mxu1 %v16925_v2  ;;  %15707 = vmatpush3.bf16.msra.mxu0 %v16926_v3 }
0x1360   :  { %15686 = vmatprep.subr.bf16.mxu1 %v16927_v4  ;;  %15708 = vmatprep.subr.bf16.mxu0 %v16928_v5 }
0x1363   :  { %15687 = vmatpush3.bf16.msra.mxu1 %v16929_v7  ;;  %15709 = vmatpush3.bf16.msra.mxu0 %v16930_v9 }
0x1364   :  { %15716 = vmatprep.subr.bf16.mxu1 %v16931_v12  ;;  %15738 = vmatprep.subr.bf16.mxu0 %v16932_v14 }
0x1411   :  { %v2781_v28 = vpop.f32.mrb[32].mxu1  ;;  %v2824_v44 = vpop.f32.mrb[32].mxu0 }
0x1412   :  { %v2782_v30 = vadd.f32 %v2781_v28, %v2681_v24  ;;  %v2825_v31 = vadd.f32 %v2824_v44, %v2689_v25  ;;  %v2783_v32 = vpop.f32.mrb[33].mxu1  ;;  %v2826_v33 = vpop.f32.mrb[33].mxu0 }
0x1413   :  { %v2784_v36 = vadd.f32 %v2783_v32, %v2685_v26  ;;  %v2827_v37 = vadd.f32 %v2826_v33, %v2693_v27  ;;  %v2785_v39 = vpop.f32.mrb[34].mxu1  ;;  %v2828_v40 = vpop.f32.mrb[34].mxu0 }
0x1414   :  { %v2786_v10 = vadd.f32 %v2785_v39, %v2681_v24  ;;  %v2829_v13 = vadd.f32 %v2828_v40, %v2689_v25  ;;  %v2787_v41 = vpop.f32.mrb[35].mxu1  ;;  %v2830_v43 = vpop.f32.mrb[35].mxu0  ;;  %v2833_v50 = vmax.f32 %v2782_v30, 0.0  ;;  %v2835_v51 = vmax.f32 %v2825_v31, 0.0  ;;  %v16935_v39 = vld [vmem:[%s20497_s11 + $0x48] sm:$0xff]  }
0x1415   :  { %v2788_v46 = vadd.f32 %v2787_v41, %v2685_v26  ;;  %v2831_v49 = vadd.f32 %v2830_v43, %v2693_v27  ;;  %v2834_v54 = vmax.f32 %v2784_v36, 0.0  ;;  %v2836_v55 = vmax.f32 %v2827_v37, 0.0  ;;  %v16933_v36 = vld [vmem:[%s20497_s11] sm:$0xff]   ;;  %v16936_v40 = vld [vmem:[%s20497_s11 + $0xc8] sm:$0xff]   ;;  %v16939_v41 = vld [vmem:[%s20497_s11 + $0x50] sm:$0xff]  }
0x1416   :  { %v2837_v52 = vmax.f32 %v2786_v10, 0.0  ;;  %v2839_v53 = vmax.f32 %v2829_v13, 0.0  ;;  %v16934_v37 = vld [vmem:[%s20497_s11 + $0x80] sm:$0xff]   ;;  %v16937_v10 = vld [vmem:[%s20497_s11 + $0x8] sm:$0xff]   ;;  %v16940_v43 = vld [vmem:[%s20497_s11 + $0xd0] sm:$0xff]  }
0x1417   :  { %v2838_v11 = vmax.f32 %v2788_v46, 0.0  ;;  %v2840_v47 = vmax.f32 %v2831_v49, 0.0  ;;  %v16938_v13 = vld [vmem:[%s20497_s11 + $0x88] sm:$0xff]   ;;  %v16943_v46 = vld [vmem:[%s20497_s11 + $0x58] sm:$0xff]  }
0x1418   :  { %v18201_v20 = vpack.c.bf16 %v2837_v52, %v2833_v50  ;;  %v18203_v56 = vpack.c.bf16 %v2839_v53, %v2835_v51  ;;  %v16944_v49 = vld [vmem:[%s20497_s11 + $0xd8] sm:$0xff]   ;;  %v16947_v50 = vld [vmem:[%s20497_s11 + $0x60] sm:$0xff]  }
0x1419   :  { %v2842_v57 = vpack.c.bf16 %v2838_v11, %v2834_v54  ;;  %v2844_v58 = vpack.c.bf16 %v2840_v47, %v2836_v55  ;;  %v3013_v59 = vpop.f32.mrb[36].mxu1  ;;  %v3056_v60 = vpop.f32.mrb[36].mxu0  ;;  %v16948_v51 = vld [vmem:[%s20497_s11 + $0xe0] sm:$0xff]   ;;  %v16951_v54 = vld [vmem:[%s20497_s11 + $0x68] sm:$0xff]  }
0x141a   :  { %v3014_v62 = vadd.f32 %v3013_v59, %v2920_v15  ;;  %v3057_v63 = vadd.f32 %v3056_v60, %v2928_v45  ;;  %v3015_v0 = vpop.f32.mrb[37].mxu1  ;;  %v3058_v1 = vpop.f32.mrb[37].mxu0  ;;  %v16949_v52 = vld [vmem:[%s20497_s11 + $0x20] sm:$0xff]   ;;  %v16952_v55 = vld [vmem:[%s20497_s11 + $0xe8] sm:$0xff]   ;;  %v16957_v59 = vld [vmem:[%s20497_s11 + $0x30] sm:$0xff]  }
0x141b   :  { %v3016_v2 = vadd.f32 %v3015_v0, %v2924_v22  ;;  %v3059_v3 = vadd.f32 %v3058_v1, %v2932_v48  ;;  %v3017_v4 = vpop.f32.mrb[38].mxu1  ;;  %v3060_v5 = vpop.f32.mrb[38].mxu0  ;;  %v16950_v53 = vld [vmem:[%s20497_s11 + $0xa0] sm:$0xff]   ;;  %v16953_v11 = vld [vmem:[%s20497_s11 + $0x28] sm:$0xff]   ;;  %v16958_v60 = vld [vmem:[%s20497_s11 + $0xb0] sm:$0xff]  }
0x141c   :  { %v3018_v7 = vadd.f32 %v3017_v4, %v2920_v15  ;;  %v3061_v9 = vadd.f32 %v3060_v5, %v2928_v45  ;;  %v3019_v12 = vpop.f32.mrb[39].mxu1  ;;  %v3062_v14 = vpop.f32.mrb[39].mxu0  ;;  %v3065_v21 = vmax.f32 %v3014_v62, 0.0  ;;  %v3067_v24 = vmax.f32 %v3057_v63, 0.0  ;;  %v16941_v15 = vld [vmem:[%s20497_s11 + $0x10] sm:$0xff]   ;;  %v16954_v47 = vld [vmem:[%s20497_s11 + $0xa8] sm:$0xff]  }
0x141d   :  { %v3020_v16 = vadd.f32 %v3019_v12, %v2924_v22  ;;  %v3063_v17 = vadd.f32 %v3062_v14, %v2932_v48  ;;  %v3066_v27 = vmax.f32 %v3016_v2, 0.0  ;;  %v3068_v28 = vmax.f32 %v3059_v3, 0.0  ;;  %v16942_v45 = vld [vmem:[%s20497_s11 + $0x90] sm:$0xff]   ;;  %v16945_v22 = vld [vmem:[%s20497_s11 + $0x18] sm:$0xff]   ;;  %v3689_v0 = vld [vmem:[%s20495_s9 + $0x20] sm:$0xff] }
0x141e   :  { %v3069_v25 = vmax.f32 %v3018_v7, 0.0  ;;  %v3071_v26 = vmax.f32 %v3061_v9, 0.0  ;;  %v16946_v48 = vld [vmem:[%s20497_s11 + $0x98] sm:$0xff]   ;;  %v3691_v1 = vld [vmem:[%s20495_s9 + $0x60] sm:$0xff]  ;;  %v3690_v2 = vld [vmem:[%s20495_s9 + $0x28] sm:$0xff] }
0x141f   :  { %v3070_v44 = vmax.f32 %v3020_v16, 0.0  ;;  %v3072_v29 = vmax.f32 %v3063_v17, 0.0  ;;  %v16959_v62 = vld [vmem:[%s20497_s11 + $0x78] sm:$0xff]   ;;  %v3692_v3 = vld [vmem:[%s20495_s9 + $0x68] sm:$0xff]  ;;  %v3693_v4 = vld [vmem:[%s20495_s9 + $0xa0] sm:$0x77]  ;;  %v14476_v12 = vcombine.high %v3689_v0, %v3691_v1 }
0x1420   :  { %v3073_v30 = vpack.c.bf16 %v3069_v25, %v3065_v21  ;;  %v3075_v31 = vpack.c.bf16 %v3071_v26, %v3067_v24  ;;  %v16960_v63 = vld [vmem:[%s20497_s11 + $0xf8] sm:$0xff]   ;;  %v3694_v5 = vld [vmem:[%s20495_s9 + $0xa8] sm:$0x77]  ;;  %v14478_v14 = vcombine.high %v3690_v2, %v3692_v3  ;;  %v14480_v16 = vcombine.high %v3693_v4, %v3693_v4 }
0x1421   :  { %v3074_v32 = vpack.c.bf16 %v3070_v44, %v3066_v27  ;;  %v3076_v33 = vpack.c.bf16 %v3072_v29, %v3068_v28  ;;  %v16961_v7 = vld [vmem:[%s20497_s11 + $0x38] sm:$0xff]   ;;  %v14482_v17 = vcombine.high %v3694_v5, %v3694_v5  ;;  %v14475_v21 = vcombine.low %v3689_v0, %v3691_v1 }
0x1422   :  { %v16962_v9 = vld [vmem:[%s20497_s11 + $0xb8] sm:$0xff]   ;;  %v14477_v24 = vcombine.low %v3690_v2, %v3692_v3  ;;  %v14479_v25 = vcombine.low %v3693_v4, %v3693_v4  ;;  %v14481_v26 = vcombine.low %v3694_v5, %v3694_v5  ;;  %v3751_v27 = vand.u32 %v14480_v16, %v18022_v61 }
0x1423   :  { %3365 = vmatprep.mubr.bf16.mxu1 %v3074_v32  ;;  %3406 = vmatprep.mubr.bf16.mxu0 %v3076_v33  ;;  %v3757_v28 = vand.u32 %v14482_v17, %v18022_v61  ;;  %v16971_v32 = vld [vmem:[%s20497_s11 + $0x248] sm:$0xff]   ;;  %v18434_v0 = vld [vmem:[%s20495_s9 + $0x38] sm:$0xff] }
0x1424   :  { %3366 = vmatmul.mubr.bf16.vlgmr.msra.gmra.mrb[40].mxu1 %v3073_v30  ;;  %3407 = vmatmul.mubr.bf16.vlgmr.msra.gmra.mrb[40].mxu0 %v3075_v31  ;;  %v3748_v44 = vand.u32 %v14479_v25, %v18022_v61  ;;  %v3754_v29 = vand.u32 %v14481_v26, %v18022_v61  ;;  %v16969_v30 = vld [vmem:[%s20497_s11 + $0x200] sm:$0xff]   ;;  %v16972_v33 = vld [vmem:[%s20497_s11 + $0x2c8] sm:$0xff]   ;;  %v18441_v2 = vld [vmem:[%s20495_s9 + $0x78] sm:$0xff] }
0x1425   :  { %15717 = vmatpush3.bf16.msra.mxu1 %v16933_v36  ;;  %15739 = vmatpush3.bf16.msra.mxu0 %v16934_v37  ;;  %v16970_v31 = vld [vmem:[%s20497_s11 + $0x280] sm:$0xff]   ;;  %v16973_v36 = vld [vmem:[%s20497_s11 + $0x208] sm:$0xff]   ;;  %v14519_v4 = vcombine.low %v18434_v0, %v18441_v2  ;;  %v14520_v5 = vcombine.high %v18434_v0, %v18441_v2 }
0x1426   :  { %3639 = vmatprep.mubr.bf16.mxu1 %v2842_v57  ;;  %3680 = vmatprep.mubr.bf16.mxu0 %v2844_v58  ;;  %v16955_v57 = vld [vmem:[%s20497_s11 + $0x70] sm:$0xff]   ;;  %v16974_v37 = vld [vmem:[%s20497_s11 + $0x288] sm:$0xff]  }
0x1427   :  { %15718 = vmatprep.subr.bf16.mxu1 %v16935_v39  ;;  %15740 = vmatprep.subr.bf16.mxu0 %v16936_v40  ;;  %v16956_v58 = vld [vmem:[%s20497_s11 + $0xf0] sm:$0xff]   ;;  %v17007_v0 = vld [vmem:[%s20497_s11 + $0x348] sm:$0xff]  }
0x1428   :  { %v16975_v39 = vld [vmem:[%s20497_s11 + $0x250] sm:$0xff]   ;;  %v17008_v2 = vld [vmem:[%s20497_s11 + $0x3c8] sm:$0xff]  }
0x1429   :  { %15719 = vmatpush3.bf16.msra.mxu1 %v16937_v10  ;;  %15741 = vmatpush3.bf16.msra.mxu0 %v16938_v13  ;;  %v16976_v40 = vld [vmem:[%s20497_s11 + $0x2d0] sm:$0xff]  }
0x142a   :  { %15720 = vmatprep.subr.bf16.mxu1 %v16939_v41  ;;  %15742 = vmatprep.subr.bf16.mxu0 %v16940_v43  ;;  %v16977_v10 = vld [vmem:[%s20497_s11 + $0x210] sm:$0xff]   ;;  %v16979_v41 = vld [vmem:[%s20497_s11 + $0x258] sm:$0xff]  }
0x142b   :  { %v16978_v13 = vld [vmem:[%s20497_s11 + $0x290] sm:$0xff]   ;;  %v16980_v43 = vld [vmem:[%s20497_s11 + $0x2d8] sm:$0xff]  }
0x142d   :  { %15721 = vmatpush3.bf16.msra.mxu1 %v16941_v15  ;;  %15743 = vmatpush3.bf16.msra.mxu0 %v16942_v45  ;;  %v16981_v15 = vld [vmem:[%s20497_s11 + $0x218] sm:$0xff]  }
0x142e   :  { %15722 = vmatprep.subr.bf16.mxu1 %v16943_v46  ;;  %15744 = vmatprep.subr.bf16.mxu0 %v16944_v49  ;;  %v16982_v45 = vld [vmem:[%s20497_s11 + $0x298] sm:$0xff]   ;;  %v16983_v46 = vld [vmem:[%s20497_s11 + $0x260] sm:$0xff]  }
0x142f   :  { %v16984_v49 = vld [vmem:[%s20497_s11 + $0x2e0] sm:$0xff]  }
0x1431   :  { %15723 = vmatpush3.bf16.msra.mxu1 %v16945_v22  ;;  %15745 = vmatpush3.bf16.msra.mxu0 %v16946_v48  ;;  %v16985_v22 = vld [vmem:[%s20497_s11 + $0x220] sm:$0xff]  }
0x1432   :  { %15724 = vmatprep.subr.bf16.mxu1 %v16947_v50  ;;  %15746 = vmatprep.subr.bf16.mxu0 %v16948_v51  ;;  %v16986_v48 = vld [vmem:[%s20497_s11 + $0x2a0] sm:$0xff]   ;;  %v16987_v50 = vld [vmem:[%s20497_s11 + $0x268] sm:$0xff]  }
0x1433   :  { %v16988_v51 = vld [vmem:[%s20497_s11 + $0x2e8] sm:$0xff]  }
0x1435   :  { %15725 = vmatpush3.bf16.msra.mxu1 %v16949_v52  ;;  %15747 = vmatpush3.bf16.msra.mxu0 %v16950_v53  ;;  %v16989_v52 = vld [vmem:[%s20497_s11 + $0x228] sm:$0xff]  }
0x1436   :  { %15726 = vmatprep.subr.bf16.mxu1 %v16951_v54  ;;  %15748 = vmatprep.subr.bf16.mxu0 %v16952_v55  ;;  %v16990_v53 = vld [vmem:[%s20497_s11 + $0x2a8] sm:$0xff]   ;;  %v16991_v54 = vld [vmem:[%s20497_s11 + $0x270] sm:$0xff]  }
0x1437   :  { %v16992_v55 = vld [vmem:[%s20497_s11 + $0x2f0] sm:$0xff]  }
0x1439   :  { %15727 = vmatpush3.bf16.msra.mxu1 %v16953_v11  ;;  %15749 = vmatpush3.bf16.msra.mxu0 %v16954_v47  ;;  %v16993_v11 = vld [vmem:[%s20497_s11 + $0x230] sm:$0xff]  }
0x143a   :  { %15728 = vmatprep.subr.bf16.mxu1 %v16955_v57  ;;  %15750 = vmatprep.subr.bf16.mxu0 %v16956_v58  ;;  %v16994_v47 = vld [vmem:[%s20497_s11 + $0x2b0] sm:$0xff]   ;;  %v16995_v57 = vld [vmem:[%s20497_s11 + $0x278] sm:$0xff]  }
0x143b   :  { %v16996_v58 = vld [vmem:[%s20497_s11 + $0x2f8] sm:$0xff]  }
0x143d   :  { %15729 = vmatpush3.bf16.msra.mxu1 %v16957_v59  ;;  %15751 = vmatpush3.bf16.msra.mxu0 %v16958_v60  ;;  %v16997_v59 = vld [vmem:[%s20497_s11 + $0x238] sm:$0xff]  }
0x143e   :  { %15730 = vmatprep.subr.bf16.mxu1 %v16959_v62  ;;  %15752 = vmatprep.subr.bf16.mxu0 %v16960_v63  ;;  %v16998_v60 = vld [vmem:[%s20497_s11 + $0x2b8] sm:$0xff]   ;;  %v18424_v62 = vld [vmem:[%s20495_s9 + $0x30] sm:$0xff] }
0x143f   :  { %v18429_v63 = vld [vmem:[%s20495_s9 + $0x70] sm:$0xff] }
0x1440   :  { %v14518_v1 = vcombine.high %v18424_v62, %v18429_v63  ;;  %v14517_v3 = vcombine.low %v18424_v62, %v18429_v63  ;;  %v17005_v62 = vld [vmem:[%s20497_s11 + $0x300] sm:$0xff]  }
0x1441   :  { %15731 = vmatpush3.bf16.msra.mxu1 %v16961_v7  ;;  %15753 = vmatpush3.bf16.msra.mxu0 %v16962_v9  ;;  %v17006_v63 = vld [vmem:[%s20497_s11 + $0x380] sm:$0xff]  }
0x1442   :  { %3759 = vmatprep.subr.bf16.mxu1 %v14476_v12  ;;  %3802 = vmatprep.subr.bf16.mxu0 %v14478_v14 }
0x1444   :  { %3640 = vmatmul.mubr.bf16.vlgmr.msra.gmra.mrb[44].mxu1 %v18201_v20  ;;  %3681 = vmatmul.mubr.bf16.vlgmr.msra.gmra.mrb[44].mxu0 %v18203_v56  ;;  %v16967_v20 = vld [vmem:[%s20497_s11 + $0x240] sm:$0xff]  }
0x1445   :  { %3760 = vmatpush1.bf16.msra.mxu1 %v14475_v21  ;;  %3803 = vmatpush1.bf16.msra.mxu0 %v14477_v24  ;;  %v16968_v56 = vld [vmem:[%s20497_s11 + $0x2c0] sm:$0xff]  }
0x1446   :  { %3761 = vmatprep.subr.bf16.mxu1 %v3751_v27  ;;  %3804 = vmatprep.subr.bf16.mxu0 %v3757_v28 }
0x1447   :  { %3791 = vmatprep.mubr.bf16.mxu1 %v17570_v8  ;;  %3834 = vmatprep.mubr.bf16.mxu0 %v17570_v8 }
0x1449   :  { %3762 = vmatpush1.bf16.msra.mxu1 %v3748_v44  ;;  %3805 = vmatpush1.bf16.msra.mxu0 %v3754_v29 }
0x144a   :  { %15760 = vmatprep.subr.bf16.mxu1 %v16967_v20  ;;  %15782 = vmatprep.subr.bf16.mxu0 %v16968_v56 }
0x144c   :  { %14483 = vmatmul.mubr.msk.bf16.vlgmr.msra.gmra.mrb[48].mxu1 %vm67_vm0, %v18061_v38  ;;  %14484 = vmatmul.mubr.msk.bf16.vlgmr.msra.gmra.mrb[48].mxu0 %vm67_vm0, %v18061_v38 }
0x144d   :  { %15761 = vmatpush3.bf16.msra.mxu1 %v16969_v30  ;;  %15783 = vmatpush3.bf16.msra.mxu0 %v16970_v31 }
0x144e   :  { %15762 = vmatprep.subr.bf16.mxu1 %v16971_v32  ;;  %15784 = vmatprep.subr.bf16.mxu0 %v16972_v33 }
0x1451   :  { %15763 = vmatpush3.bf16.msra.mxu1 %v16973_v36  ;;  %15785 = vmatpush3.bf16.msra.mxu0 %v16974_v37 }
0x1452   :  { %15764 = vmatprep.subr.bf16.mxu1 %v16975_v39  ;;  %15786 = vmatprep.subr.bf16.mxu0 %v16976_v40  ;;  %v3695_v39 = vld [vmem:[%s20496_s10 + $0x8] sm:$0xf] }
0x1455   :  { %15765 = vmatpush3.bf16.msra.mxu1 %v16977_v10  ;;  %15787 = vmatpush3.bf16.msra.mxu0 %v16978_v13 }
0x1456   :  { %15766 = vmatprep.subr.bf16.mxu1 %v16979_v41  ;;  %15788 = vmatprep.subr.bf16.mxu0 %v16980_v43 }
0x1459   :  { %15767 = vmatpush3.bf16.msra.mxu1 %v16981_v15  ;;  %15789 = vmatpush3.bf16.msra.mxu0 %v16982_v45  ;;  %v3700_v15 = vrot.slane %v3695_v39, %v18179_v18  ;;  %v3708_v45 = vrot.slane %v3695_v39, %v18181_v19 }
0x145a   :  { %15768 = vmatprep.subr.bf16.mxu1 %v16983_v46  ;;  %15790 = vmatprep.subr.bf16.mxu0 %v16984_v49 }
0x145d   :  { %15769 = vmatpush3.bf16.msra.mxu1 %v16985_v22  ;;  %15791 = vmatpush3.bf16.msra.mxu0 %v16986_v48  ;;  %v3704_v22 = vrot.slane %v3695_v39, %v18186_v42  ;;  %v3712_v48 = vrot.slane %v3695_v39, %v18188_v23 }
0x145e   :  { %15770 = vmatprep.subr.bf16.mxu1 %v16987_v50  ;;  %15792 = vmatprep.subr.bf16.mxu0 %v16988_v51 }
0x1461   :  { %15771 = vmatpush3.bf16.msra.mxu1 %v16989_v52  ;;  %15793 = vmatpush3.bf16.msra.mxu0 %v16990_v53 }
0x1462   :  { %15772 = vmatprep.subr.bf16.mxu1 %v16991_v54  ;;  %15794 = vmatprep.subr.bf16.mxu0 %v16992_v55 }
0x1465   :  { %15773 = vmatpush3.bf16.msra.mxu1 %v16993_v11  ;;  %15795 = vmatpush3.bf16.msra.mxu0 %v16994_v47  ;;  %v4201_v47 = vld [vmem:[%s20495_s9 + $0xb0] sm:$0x77] }
0x1466   :  { %15774 = vmatprep.subr.bf16.mxu1 %v16995_v57  ;;  %15796 = vmatprep.subr.bf16.mxu0 %v16996_v58  ;;  %v4202_v57 = vld [vmem:[%s20495_s9 + $0xb8] sm:$0x77] }
0x1469   :  { %15775 = vmatpush3.bf16.msra.mxu1 %v16997_v59  ;;  %15797 = vmatpush3.bf16.msra.mxu0 %v16998_v60 }
0x146a   :  { %4267 = vmatprep.subr.bf16.mxu1 %v14518_v1  ;;  %4310 = vmatprep.subr.bf16.mxu0 %v14520_v5 }
0x14f7   :  { %v15688_v7 = vpop.f32.mrb[40].mxu1  ;;  %v15710_v9 = vpop.f32.mrb[40].mxu0 }
0x14f8   :  { %v15689_v12 = vpop.f32.mrb[41].mxu1  ;;  %v15711_v14 = vpop.f32.mrb[41].mxu0 }
0x14f9   :  { %v15690_v16 = vadd.f32 %v15689_v12, %v15688_v7  ;;  %v15712_v17 = vadd.f32 %v15711_v14, %v15710_v9  ;;  %v15691_v21 = vpop.f32.mrb[42].mxu1  ;;  %v15713_v24 = vpop.f32.mrb[42].mxu0 }
0x14fa   :  { %v15692_v25 = vpop.f32.mrb[43].mxu1  ;;  %v15714_v26 = vpop.f32.mrb[43].mxu0 }
0x14fb   :  { %v3409_v27 = vadd.f32 %v15712_v17, %v15690_v16  ;;  %v15693_v28 = vadd.f32 %v15692_v25, %v15691_v21  ;;  %v15715_v44 = vadd.f32 %v15714_v26, %v15713_v24  ;;  %v14522_v17 = vcombine.high %v4201_v47, %v4201_v47 }
0x14fc   :  { %v14524_v21 = vcombine.high %v4202_v57, %v4202_v57 }
0x14fd   :  { %v3412_v29 = vadd.f32 %v15715_v44, %v15693_v28 }
0x14fe   :  { %v4265_v39 = vand.u32 %v14524_v21, %v18022_v61 }
0x1517   :  { %v15732_v20 = vpop.f32.mrb[44].mxu1  ;;  %v15754_v56 = vpop.f32.mrb[44].mxu0 }
0x1518   :  { %v15733_v30 = vpop.f32.mrb[45].mxu1  ;;  %v15755_v31 = vpop.f32.mrb[45].mxu0 }
0x1519   :  { %v15734_v32 = vadd.f32 %v15733_v30, %v15732_v20  ;;  %v15756_v33 = vadd.f32 %v15755_v31, %v15754_v56  ;;  %v15735_v36 = vpop.f32.mrb[46].mxu1  ;;  %v15757_v37 = vpop.f32.mrb[46].mxu0 }
0x151a   :  { %v15736_v40 = vpop.f32.mrb[47].mxu1  ;;  %v15758_v10 = vpop.f32.mrb[47].mxu0 }
0x151b   :  { %v3642_v13 = vadd.f32 %v15734_v32, %v3409_v27  ;;  %v15737_v41 = vadd.f32 %v15736_v40, %v15735_v36  ;;  %v15759_v43 = vadd.f32 %v15758_v10, %v15757_v37  ;;  %v14523_v36 = vcombine.low %v4202_v57, %v4202_v57  ;;  %v17025_v57 = vld [vmem:[%s20497_s11 + $0x328] sm:$0xff]  }
0x151c   :  { %v4259_v37 = vand.u32 %v14522_v17, %v18022_v61 }
0x151d   :  { %v18454_v46 = vadd.f32 %v15756_v33, %v3642_v13  ;;  %v3645_v49 = vadd.f32 %v15737_v41, %v3412_v29  ;;  %v14521_v33 = vcombine.low %v4201_v47, %v4201_v47  ;;  %v4262_v10 = vand.u32 %v14523_v36, %v18022_v61  ;;  %v17003_v13 = vld [vmem:[%s20497_s11 + $0x340] sm:$0xff]   ;;  %v17024_v47 = vld [vmem:[%s20497_s11 + $0x3e8] sm:$0xff]  }
0x151e   :  { %v17004_v41 = vld [vmem:[%s20497_s11 + $0x3c0] sm:$0xff]  }
0x151f   :  { %v18458_v50 = vadd.f32 %v15759_v43, %v3645_v49  ;;  %v3793_v51 = vpop.f32.mrb[48].mxu1  ;;  %v3836_v52 = vpop.f32.mrb[48].mxu0  ;;  %v4256_v40 = vand.u32 %v14521_v33, %v18022_v61  ;;  %v17011_v43 = vld [vmem:[%s20497_s11 + $0x350] sm:$0xff]   ;;  %v17015_v49 = vld [vmem:[%s20497_s11 + $0x358] sm:$0xff]  }
0x1520   :  { %v3794_v53 = vadd.f32 %v3793_v51, %v3700_v15  ;;  %v3837_v54 = vadd.f32 %v3836_v52, %v3708_v45  ;;  %v3795_v55 = vpop.f32.mrb[49].mxu1  ;;  %v3838_v11 = vpop.f32.mrb[49].mxu0  ;;  %v17018_v51 = vld [vmem:[%s20497_s11 + $0x398] sm:$0xff]   ;;  %v17019_v52 = vld [vmem:[%s20497_s11 + $0x360] sm:$0xff]  }
0x1521   :  { %v3796_v58 = vadd.f32 %v3795_v55, %v3704_v22  ;;  %v3839_v59 = vadd.f32 %v3838_v11, %v3712_v48  ;;  %v3797_v60 = vpop.f32.mrb[50].mxu1  ;;  %v3840_v1 = vpop.f32.mrb[50].mxu0  ;;  %v17022_v55 = vld [vmem:[%s20497_s11 + $0x3a0] sm:$0xff]   ;;  %v17023_v11 = vld [vmem:[%s20497_s11 + $0x368] sm:$0xff]  }
0x1522   :  { %v3798_v5 = vadd.f32 %v3797_v60, %v3700_v15  ;;  %v3841_v7 = vadd.f32 %v3840_v1, %v3708_v45  ;;  %v3799_v9 = vpop.f32.mrb[51].mxu1  ;;  %v3842_v12 = vpop.f32.mrb[51].mxu0  ;;  %v3845_v24 = vmax.f32 %v3794_v53, 0.0  ;;  %v3847_v25 = vmax.f32 %v3837_v54, 0.0  ;;  %v17013_v15 = vld [vmem:[%s20497_s11 + $0x310] sm:$0xff]   ;;  %v17020_v53 = vld [vmem:[%s20497_s11 + $0x3e0] sm:$0xff]  }
0x1523   :  { %v3800_v14 = vadd.f32 %v3799_v9, %v3704_v22  ;;  %v3843_v16 = vadd.f32 %v3842_v12, %v3712_v48  ;;  %v3846_v28 = vmax.f32 %v3796_v58, 0.0  ;;  %v3848_v44 = vmax.f32 %v3839_v59, 0.0  ;;  %v17014_v45 = vld [vmem:[%s20497_s11 + $0x390] sm:$0xff]   ;;  %v17016_v22 = vld [vmem:[%s20497_s11 + $0x3d8] sm:$0xff]   ;;  %v17021_v54 = vld [vmem:[%s20497_s11 + $0x320] sm:$0xff]  }
0x1524   :  { %v3849_v26 = vmax.f32 %v3798_v5, 0.0  ;;  %v3851_v27 = vmax.f32 %v3841_v7, 0.0  ;;  %v17017_v48 = vld [vmem:[%s20497_s11 + $0x318] sm:$0xff]   ;;  %v17026_v58 = vld [vmem:[%s20497_s11 + $0x3a8] sm:$0xff]   ;;  %v17027_v59 = vld [vmem:[%s20497_s11 + $0x370] sm:$0xff]  }
0x1525   :  { %v3850_v29 = vmax.f32 %v3800_v14, 0.0  ;;  %v3852_v20 = vmax.f32 %v3843_v16, 0.0  ;;  %v17028_v60 = vld [vmem:[%s20497_s11 + $0x3f0] sm:$0xff]   ;;  %v17031_v7 = vld [vmem:[%s20497_s11 + $0x378] sm:$0xff]  }
0x1526   :  { %v3853_v56 = vpack.c.bf16 %v3849_v26, %v3845_v24  ;;  %v3855_v30 = vpack.c.bf16 %v3851_v27, %v3847_v25  ;;  %v17029_v1 = vld [vmem:[%s20497_s11 + $0x330] sm:$0xff]   ;;  %v17032_v9 = vld [vmem:[%s20497_s11 + $0x3f8] sm:$0xff]  }
0x1527   :  { %v3854_v31 = vpack.c.bf16 %v3850_v29, %v3846_v28  ;;  %v3856_v32 = vpack.c.bf16 %v3852_v20, %v3848_v44  ;;  %v17030_v5 = vld [vmem:[%s20497_s11 + $0x3b0] sm:$0xff]   ;;  %v17033_v12 = vld [vmem:[%s20497_s11 + $0x338] sm:$0xff]   ;;  %v4203_v44 = vld [vmem:[%s20496_s10 + $0xc] sm:$0xf] }
0x1528   :  { %v17034_v14 = vld [vmem:[%s20497_s11 + $0x3b8] sm:$0xff]   ;;  %v4216_v33 = vrot.slane %v4203_v44, %v18181_v19 }
0x1529   :  { %4145 = vmatprep.mubr.bf16.mxu1 %v3854_v31  ;;  %4186 = vmatprep.mubr.bf16.mxu0 %v3856_v32  ;;  %v4208_v32 = vrot.slane %v4203_v44, %v18179_v18 }
0x152a   :  { %4146 = vmatmul.mubr.bf16.vlgmr.msra.gmra.mrb[52].mxu1 %v3853_v56  ;;  %4187 = vmatmul.mubr.bf16.vlgmr.msra.gmra.mrb[52].mxu0 %v3855_v30 }
0x152b   :  { %4268 = vmatpush1.bf16.msra.mxu1 %v14517_v3  ;;  %4311 = vmatpush1.bf16.msra.mxu0 %v14519_v4  ;;  %v17009_v3 = vld [vmem:[%s20497_s11 + $0x308] sm:$0xff]  }
0x152c   :  { %4269 = vmatprep.subr.bf16.mxu1 %v4259_v37  ;;  %4312 = vmatprep.subr.bf16.mxu0 %v4265_v39  ;;  %v17010_v4 = vld [vmem:[%s20497_s11 + $0x388] sm:$0xff]   ;;  %v4212_v39 = vrot.slane %v4203_v44, %v18186_v42 }
0x152d   :  { %4299 = vmatprep.mubr.bf16.mxu1 %v17570_v8  ;;  %4342 = vmatprep.mubr.bf16.mxu0 %v17570_v8 }
0x152f   :  { %4270 = vmatpush1.bf16.msra.mxu1 %v4256_v40  ;;  %4313 = vmatpush1.bf16.msra.mxu0 %v4262_v10  ;;  %v4220_v40 = vrot.slane %v4203_v44, %v18188_v23 }
0x1530   :  { %15804 = vmatprep.subr.bf16.mxu1 %v17003_v13  ;;  %15826 = vmatprep.subr.bf16.mxu0 %v17004_v41 }
0x1532   :  { %14525 = vmatmul.mubr.msk.bf16.vlgmr.msra.gmra.mrb[56].mxu1 %vm67_vm0, %v18061_v38  ;;  %14526 = vmatmul.mubr.msk.bf16.vlgmr.msra.gmra.mrb[56].mxu0 %vm67_vm0, %v18061_v38  ;;  %v17012_v38 = vld [vmem:[%s20497_s11 + $0x3d0] sm:$0xff]  }
0x1533   :  { %15805 = vmatpush3.bf16.msra.mxu1 %v17005_v62  ;;  %15827 = vmatpush3.bf16.msra.mxu0 %v17006_v63 }
0x1534   :  { %15806 = vmatprep.subr.bf16.mxu1 %v17007_v0  ;;  %15828 = vmatprep.subr.bf16.mxu0 %v17008_v2 }
0x1537   :  { %15807 = vmatpush3.bf16.msra.mxu1 %v17009_v3  ;;  %15829 = vmatpush3.bf16.msra.mxu0 %v17010_v4 }
0x1538   :  { %15808 = vmatprep.subr.bf16.mxu1 %v17011_v43  ;;  %15830 = vmatprep.subr.bf16.mxu0 %v17012_v38 }
0x153b   :  { %15809 = vmatpush3.bf16.msra.mxu1 %v17013_v15  ;;  %15831 = vmatpush3.bf16.msra.mxu0 %v17014_v45 }
0x153c   :  { %15810 = vmatprep.subr.bf16.mxu1 %v17015_v49  ;;  %15832 = vmatprep.subr.bf16.mxu0 %v17016_v22 }
0x153f   :  { %15811 = vmatpush3.bf16.msra.mxu1 %v17017_v48  ;;  %15833 = vmatpush3.bf16.msra.mxu0 %v17018_v51 }
0x1540   :  { %15812 = vmatprep.subr.bf16.mxu1 %v17019_v52  ;;  %15834 = vmatprep.subr.bf16.mxu0 %v17020_v53 }
0x1543   :  { %15813 = vmatpush3.bf16.msra.mxu1 %v17021_v54  ;;  %15835 = vmatpush3.bf16.msra.mxu0 %v17022_v55 }
0x1544   :  { %15814 = vmatprep.subr.bf16.mxu1 %v17023_v11  ;;  %15836 = vmatprep.subr.bf16.mxu0 %v17024_v47 }
0x1547   :  { %15815 = vmatpush3.bf16.msra.mxu1 %v17025_v57  ;;  %15837 = vmatpush3.bf16.msra.mxu0 %v17026_v58 }
0x1548   :  { %15816 = vmatprep.subr.bf16.mxu1 %v17027_v59  ;;  %15838 = vmatprep.subr.bf16.mxu0 %v17028_v60 }
0x154b   :  { %15817 = vmatpush3.bf16.msra.mxu1 %v17029_v1  ;;  %15839 = vmatpush3.bf16.msra.mxu0 %v17030_v5 }
0x154c   :  { %15818 = vmatprep.subr.bf16.mxu1 %v17031_v7  ;;  %15840 = vmatprep.subr.bf16.mxu0 %v17032_v9 }
0x154f   :  { %15819 = vmatpush3.bf16.msra.mxu1 %v17033_v12  ;;  %15841 = vmatpush3.bf16.msra.mxu0 %v17034_v14 }
0x1550   :  { %16506 = vmatprep.subr.mxu0 %v17541_v6 }
0x15fd   :  { %v15776_v16 = vpop.f32.mrb[52].mxu1  ;;  %v15798_v17 = vpop.f32.mrb[52].mxu0 }
0x15fe   :  { %v15777_v21 = vpop.f32.mrb[53].mxu1  ;;  %v15799_v24 = vpop.f32.mrb[53].mxu0 }
0x15ff   :  { %v15778_v25 = vadd.f32 %v15777_v21, %v15776_v16  ;;  %v15800_v26 = vadd.f32 %v15799_v24, %v15798_v17  ;;  %v15779_v27 = vpop.f32.mrb[54].mxu1  ;;  %v15801_v28 = vpop.f32.mrb[54].mxu0 }
0x1600   :  { %v15780_v29 = vpop.f32.mrb[55].mxu1  ;;  %v15802_v20 = vpop.f32.mrb[55].mxu0 }
0x1601   :  { %v4189_v56 = vadd.f32 %v15800_v26, %v15778_v25  ;;  %v15781_v30 = vadd.f32 %v15780_v29, %v15779_v27  ;;  %v15803_v31 = vadd.f32 %v15802_v20, %v15801_v28  ;;  %v14559_v28 = vld [vmem:[%s20498_s12] ss:$0 sm:$0xff] }
0x1603   :  { %v4195_v36 = vadd.f32 %v4189_v56, %v18454_v46  ;;  %v4192_v37 = vadd.f32 %v15803_v31, %v15781_v30 }
0x1605   :  { %v4196_v10 = vadd.f32 %v4192_v37, %v18458_v50  ;;  %v4301_v13 = vpop.f32.mrb[56].mxu1  ;;  %v4344_v41 = vpop.f32.mrb[56].mxu0 }
0x1606   :  { %v4302_v62 = vadd.f32 %v4301_v13, %v4208_v32  ;;  %v4345_v63 = vadd.f32 %v4344_v41, %v4216_v33  ;;  %v4303_v0 = vpop.f32.mrb[57].mxu1  ;;  %v4346_v2 = vpop.f32.mrb[57].mxu0 }
0x1607   :  { %v4304_v3 = vadd.f32 %v4303_v0, %v4212_v39  ;;  %v4347_v4 = vadd.f32 %v4346_v2, %v4220_v40  ;;  %v4305_v43 = vpop.f32.mrb[58].mxu1  ;;  %v4348_v38 = vpop.f32.mrb[58].mxu0  ;;  %v14563_v2 = vld [vmem:[%s20487_s1 + $0x20] sm:$0xff] }
0x1608   :  { %v4306_v15 = vadd.f32 %v4305_v43, %v4208_v32  ;;  %v4349_v45 = vadd.f32 %v4348_v38, %v4216_v33  ;;  %v4307_v46 = vpop.f32.mrb[59].mxu1  ;;  %v4350_v49 = vpop.f32.mrb[59].mxu0  ;;  %v4353_v51 = vmax.f32 %v4302_v62, 0.0  ;;  %v4355_v52 = vmax.f32 %v4345_v63, 0.0 }
0x1609   :  { %v4308_v22 = vadd.f32 %v4307_v46, %v4212_v39  ;;  %v4351_v48 = vadd.f32 %v4350_v49, %v4220_v40  ;;  %v4354_v54 = vmax.f32 %v4304_v3, 0.0  ;;  %v4356_v55 = vmax.f32 %v4347_v4, 0.0  ;;  %v14564_v4 = vld [vmem:[%s20487_s1 + $0x28] sm:$0x1f] }
0x160a   :  { %v4357_v53 = vmax.f32 %v4306_v15, 0.0  ;;  %v4359_v50 = vmax.f32 %v4349_v45, 0.0 }
0x160b   :  { %v4358_v11 = vmax.f32 %v4308_v22, 0.0  ;;  %v4360_v47 = vmax.f32 %v4351_v48, 0.0  ;;  %v14560_v48 = vld [vmem:[%s20493_s7] ss:$0 sm:$0xff] }
0x160c   :  { %v4361_v57 = vpack.c.bf16 %v4357_v53, %v4353_v51  ;;  %v4363_v58 = vpack.c.bf16 %v4359_v50, %v4355_v52  ;;  %v14561_v53 = vld [vmem:[%s20494_s8] ss:$0 sm:$0xff] }
0x160d   :  { %v4362_v59 = vpack.c.bf16 %v4358_v11, %v4354_v54  ;;  %v4364_v60 = vpack.c.bf16 %v4360_v47, %v4356_v55 }
0x160f   :  { %4653 = vmatprep.mubr.bf16.mxu1 %v4362_v59  ;;  %4694 = vmatprep.mubr.bf16.mxu0 %v4364_v60 }
0x1610   :  { %4654 = vmatmul.mubr.bf16.vlgmr.msra.gmra.mrb[60].mxu1 %v4361_v57  ;;  %4695 = vmatmul.mubr.bf16.vlgmr.msra.gmra.mrb[60].mxu0 %v4363_v58  ;;  %v14566_v57 = vld [vmem:[%s20488_s2 + $0x1] ss:$0 sm:$0xff] }
0x1611   :  { %16508 = vmatprep.mubr.msk.f32.mxu0 %vm17542_vm2, %v17541_v6 }
0x16e3   :  { %v15820_v1 = vpop.f32.mrb[60].mxu1  ;;  %v15842_v5 = vpop.f32.mrb[60].mxu0 }
0x16e4   :  { %v15821_v7 = vpop.f32.mrb[61].mxu1  ;;  %v15843_v9 = vpop.f32.mrb[61].mxu0 }
0x16e5   :  { %v15822_v12 = vadd.f32 %v15821_v7, %v15820_v1  ;;  %v15844_v14 = vadd.f32 %v15843_v9, %v15842_v5  ;;  %v15823_v16 = vpop.f32.mrb[62].mxu1  ;;  %v15845_v17 = vpop.f32.mrb[62].mxu0 }
0x16e6   :  { %v15824_v21 = vpop.f32.mrb[63].mxu1  ;;  %v15846_v24 = vpop.f32.mrb[63].mxu0 }
0x16e7   :  { %v4697_v25 = vadd.f32 %v15844_v14, %v15822_v12  ;;  %v15825_v26 = vadd.f32 %v15824_v21, %v15823_v16  ;;  %v15847_v27 = vadd.f32 %v15846_v24, %v15845_v17 }
0x16e9   :  { %v4703_v44 = vadd.f32 %v4697_v25, %v4195_v36  ;;  %v4700_v29 = vadd.f32 %v15847_v27, %v15825_v26 }
0x16eb   :  { %v4704_v20 = vadd.f32 %v4700_v29, %v4196_v10  ;;  %v4712_v56 = vadd.f32 %v14559_v28, %v4703_v44 }
0x16ed   :  { %v4714_v30 = vadd.f32 %v4712_v56, %v18055_v34  ;;  %v4713_v31 = vadd.f32 %v14559_v28, %v4704_v20 }
0x16ef   :  { %v4718_v32 = vsel %vm67_vm0, %v4714_v30, 0.0  ;;  %v4715_v33 = vadd.f32 %v4713_v31, %v18057_v35  ;;  %v14562_v35 = vld [vmem:[%s20487_s1 + $0x18] sm:$0xff] }
0x16f0   :  { %4719 = vadd.xlane.f32.xlu1 %v4718_v32  ;;  %v16837_v3 = vpack.c.bf16 %v14563_v2, %v14562_v35 }
0x16f1   :  { %v4721_v37 = vsel %vm67_vm0, %v4715_v33, 0.0 }
0x16f2   :  { %4722 = vadd.xlane.f32.xlu0 %v4721_v37  ;;  %16838 = vmatprep.subr.bf16.mxu1 %v16837_v3 }
0x16f3   :  { %16840 = vmatpush3.bf16.msra.mxu1 %v16837_v3 }
0x16f4   :  { %16501 = vmatprep.subr.msk.mxu1 %vm74_vm1, %v14564_v4 }
0x16f7   :  { %16502 = vmatpush3.msk.msra.mxu1 %vm74_vm1, %v14564_v4 }
0x16f8   :  { %16511 = vmatprep.subr.mxu1 %v17541_v6 }
0x177d   :  { %v4720_v39 = vpop.xlane.xlu1 %4719 }
0x177e   :  { %v4724_v40 = vmul.f32 0.04761905, %v4720_v39 }
0x177f   :  { %v4723_v13 = vpop.xlane.xlu0 %4722 }
0x1780   :  { %v4726_v41 = vsub.f32 %v4714_v30, %v4724_v40  ;;  %v4725_v62 = vmul.f32 0.04761905, %v4723_v13 }
0x1782   :  { %v4727_v36 = vsub.f32 %v4715_v33, %v4725_v62  ;;  %v4728_v63 = vmul.f32 %v4726_v41, %v4726_v41 }
0x1784   :  { %v4730_v10 = vsel %vm67_vm0, %v4728_v63, 0.0  ;;  %v4729_v0 = vmul.f32 %v4727_v36, %v4727_v36 }
0x1785   :  { %4731 = vadd.xlane.f32.xlu1 %v4730_v10 }
0x1786   :  { %v4733_v34 = vsel %vm67_vm0, %v4729_v0, 0.0 }
0x1787   :  { %4734 = vadd.xlane.f32.xlu0 %v4733_v34 }
0x1812   :  { %v4732_v43 = vpop.xlane.xlu1 %4731 }
0x1813   :  { %v4736_v38 = vmul.f32 0.04761905, %v4732_v43 }
0x1814   :  { %v4735_v15 = vpop.xlane.xlu0 %4734 }
0x1815   :  { %v4738_v45 = vadd.f32 1e-05, %v4736_v38  ;;  %v4737_v46 = vmul.f32 0.04761905, %v4735_v15 }
0x1817   :  { %17383 = vrsqrt.f32 %v4738_v45  ;;  %v4739_v49 = vadd.f32 1e-05, %v4737_v46 }
0x1819   :  { %17385 = vrsqrt.f32 %v4739_v49 }
0x1821   :  { %v17384_v22 = vpop.eup %17383 }
0x1822   :  { %v4742_v51 = vmul.f32 %v17384_v22, %v4726_v41 }
0x1823   :  { %v17386_v52 = vpop.eup %17385 }
0x1824   :  { %v4743_v50 = vmul.f32 %v17386_v52, %v4727_v36  ;;  %v4750_v54 = vmul.f32 %v14560_v48, %v4742_v51 }
0x1826   :  { %v4751_v55 = vmul.f32 %v14560_v48, %v4743_v50  ;;  %v18617_v11 = vadd.f32 %v14561_v53, %v4750_v54 }
0x1828   :  { %v18619_v47 = vadd.f32 %v14561_v53, %v4751_v55  ;;  %16503 = vmatprep.mubr.msk.f32.mxu1 %vm67_vm0, %v18617_v11 }
0x182a   :  { %16504 = vmatmul.mubr.msk.f32.vlgmr.msra.gmra.mrb[30].mxu1 %vm67_vm0, %v18619_v47 }
0x182b   :  { %16513 = vmatprep.mubr.msk.f32.mxu1 %vm17542_vm2, %v17541_v6 }
0x18fd   :  { %v16505_v58 = vpop.f32.mrb[30].mxu1 }
0x18fe   :  { %v18630_v59 = vadd.f32 %v16505_v58, %v14566_v57  ;;  %v4847_v60 = vpop.f32.mrb[31].mxu1 }
0x18ff   :  { %v18632_v1 = vadd.f32 %v14566_v57, %v4847_v60 }
0x1900   :  { %4934 = vrot.lane.b32.xlu0 %v18630_v59, %s20554_s19 }
0x1901   :  { %4857 = vrot.lane.b32.xlu1 %v18632_v1, %s20554_s19  ;;  %s20599_s19 = smov 89  }
0x1972   :  { %v4935_v5 = vpop.permute.xlu0 %4934 }
0x1973   :  { %16512 = vmatpush3.xpose.msk.msra.mxu1 %vm156_vm3, %v4935_v5  ;;  %v4858_v7 = vpop.permute.xlu1 %4857 }
0x1974   :  { %16507 = vmatpush3.xpose.msk.msra.mxu0 %vm156_vm3, %v4858_v7  ;;  %16521 = vmatprep.subr.mxu1 %v17541_v6 }
0x1975   :  { %16516 = vmatprep.subr.mxu0 %v17541_v6 }
0x1976   :  { %16514 = vmatmul.mubr.msk.f32.vlgmr.msra.gmra.mrb[64].mxu1 %vm156_vm3, %v18630_v59 }
0x1977   :  { %16509 = vmatmul.mubr.msk.f32.vlgmr.msra.gmra.mrb[30].mxu0 %vm156_vm3, %v18632_v1  ;;  %16523 = vmatprep.mubr.msk.f32.mxu1 %vm17542_vm2, %v17541_v6 }
0x1978   :  { %16518 = vmatprep.mubr.msk.f32.mxu0 %vm17542_vm2, %v17541_v6 }
0x1a49   :  { %v5006_v9 = vpop.f32.mrb[64].mxu1 }
0x1a4a   :  { %v4929_v12 = vpop.f32.mrb[30].mxu0  ;;  %v16515_v14 = vpop.f32.mrb[65].mxu1  ;;  %v5013_v16 = vsel %vm308_vm4, %v5006_v9, -inf }
0x1a4b   :  { %5014 = vmax.xlane.f32.xlu0 %v5013_v16  ;;  %v16510_v17 = vpop.f32.mrb[31].mxu0  ;;  %v5010_v21 = vsel %vm308_vm4, %v4929_v12, -inf }
0x1a4c   :  { %5011 = vmax.xlane.f32.xlu1 %v5010_v21 }
0x1a5d   :  { %5032 = vrot.lane.b32.xlu1 %v18632_v1, %s20552_s20 }
0x1a61   :  { %5108 = vrot.lane.b32.xlu0 %v18630_v59, %s20552_s20  ;;  %5186 = vrot.lane.b32.xlu1 %v18632_v1, %s20550_s21  ;;  %s20598_s20 = smov 71  }
0x1a65   :  { %5264 = vrot.lane.b32.xlu1 %v18630_v59, %s20550_s21  ;;  %s20597_s21 = smov 113  }
0x1ad8   :  { %v5015_v24 = vpop.xlane.xlu0 %5014 }
0x1ad9   :  { %v5017_v25 = vsub.f32 %v5006_v9, %v5015_v24  ;;  %v5012_v26 = vpop.xlane.xlu1 %5011 }
0x1ada   :  { %v5016_v27 = vsub.f32 %v4929_v12, %v5012_v26 }
0x1adb   :  { %v5020_v28 = vmul.f32 1.442695, %v5017_v25 }
0x1adc   :  { %v5018_v44 = vmul.f32 1.442695, %v5016_v27  ;;  %v5109_v29 = vpop.permute.xlu0 %5108 }
0x1add   :  { %17387 = vpow2.f32 %v5020_v28  ;;  %16522 = vmatpush3.msra.mxu1 %v5109_v29  ;;  %v5033_v20 = vpop.permute.xlu1 %5032 }
0x1ade   :  { %17389 = vpow2.f32 %v5018_v44  ;;  %16517 = vmatpush3.msra.mxu0 %v5033_v20  ;;  %16531 = vmatprep.subr.mxu1 %v17541_v6 }
0x1adf   :  { %16526 = vmatprep.subr.mxu0 %v17541_v6 }
0x1ae1   :  { %v5187_v33 = vpop.permute.xlu1 %5186 }
0x1ae5   :  { %v5265_v37 = vpop.permute.xlu1 %5264 }
0x1ae7   :  { %v17388_v56 = vpop.eup %17387 }
0x1ae8   :  { %v17390_v30 = vpop.eup %17389  ;;  %v5025_v31 = vsel %vm308_vm4, %v17388_v56, 0.0 }
0x1ae9   :  { %5026 = vadd.xlane.f32.xlu0 %v5025_v31  ;;  %v5022_v32 = vsel %vm308_vm4, %v17390_v30, 0.0 }
0x1aea   :  { %5023 = vadd.xlane.f32.xlu1 %v5022_v32 }
0x1afb   :  { %5262 = vrot.lane.b32.xlu1 %v18630_v59, %s20585_s29 }
0x1aff   :  { %5184 = vrot.lane.b32.xlu0 %v18632_v1, %s20585_s29 }
0x1b76   :  { %v5027_v39 = vpop.xlane.xlu0 %5026 }
0x1b77   :  { %17391 = vrcp.f32 %v5027_v39  ;;  %v5024_v40 = vpop.xlane.xlu1 %5023 }
0x1b78   :  { %17393 = vrcp.f32 %v5024_v40 }
0x1b7a   :  { %v5185_v10 = vpop.permute.xlu0 %5184 }
0x1b7b   :  { %v5263_v63 = vpop.permute.xlu1 %5262 }
0x1b81   :  { %v17392_v13 = vpop.eup %17391 }
0x1b82   :  { %v17394_v41 = vpop.eup %17393  ;;  %v5031_v62 = vmul.f32 %v17392_v13, %v17388_v56 }
0x1b83   :  { %v5030_v36 = vmul.f32 %v17394_v41, %v17390_v30 }
0x1b84   :  { %16524 = vmatmul.mubr.msk.f32.vlgmr.msra.gmra.mrb[66].mxu1 %vm308_vm4, %v5031_v62 }
0x1b85   :  { %16532 = vmatpush3.xpose.msk.msra.mxu1 %vm156_vm3, %v5265_v37  ;;  %16519 = vmatmul.mubr.msk.f32.vlgmr.msra.gmra.mrb[64].mxu0 %vm308_vm4, %v5030_v36 }
0x1b86   :  { %16527 = vmatpush3.xpose.msk.msra.mxu0 %vm156_vm3, %v5187_v33  ;;  %16533 = vmatprep.mubr.msk.f32.mxu1 %vm17542_vm2, %v17541_v6 }
0x1b87   :  { %16528 = vmatprep.mubr.msk.f32.mxu0 %vm17542_vm2, %v17541_v6  ;;  %16536 = vmatprep.subr.mxu0 %v17541_v6 }
0x1b88   :  { %16534 = vmatmul.mubr.msk.f32.vlgmr.msra.gmra.mrb[68].mxu1 %vm156_vm3, %v5263_v63  ;;  %16541 = vmatprep.subr.mxu1 %v17541_v6 }
0x1b89   :  { %16529 = vmatmul.mubr.msk.f32.vlgmr.msra.gmra.mrb[66].mxu0 %vm156_vm3, %v5185_v10  ;;  %16543 = vmatprep.mubr.msk.f32.mxu1 %vm17542_vm2, %v17541_v6 }
0x1b8a   :  { %16538 = vmatprep.mubr.msk.f32.mxu0 %vm17542_vm2, %v17541_v6 }
0x1c57   :  { %v18684_v0 = vpop.f32.mrb[66].mxu1 }
0x1c58   :  { %v18686_v34 = vpop.f32.mrb[64].mxu0  ;;  %v16525_v35 = vpop.f32.mrb[67].mxu1 }
0x1c59   :  { %v16520_v2 = vpop.f32.mrb[65].mxu0 }
0x1c5b   :  { %v5336_v3 = vpop.f32.mrb[68].mxu1 }
0x1c5c   :  { %v5258_v4 = vpop.f32.mrb[66].mxu0  ;;  %v16535_v43 = vpop.f32.mrb[69].mxu1  ;;  %v5343_v38 = vsel %vm308_vm4, %v5336_v3, -inf }
0x1c5d   :  { %5344 = vmax.xlane.f32.xlu1 %v5343_v38  ;;  %v16530_v15 = vpop.f32.mrb[67].mxu0  ;;  %v5340_v45 = vsel %vm308_vm4, %v5258_v4, -inf }
0x1c5e   :  { %5341 = vmax.xlane.f32.xlu0 %v5340_v45 }
0x1c6e   :  { %5362 = vrot.lane.b32.xlu1 %v18632_v1, %s20586_s27 }
0x1c72   :  { %5516 = vrot.lane.b32.xlu1 %v18632_v1, %s20587_s24 }
0x1c74   :  { %5438 = vrot.lane.b32.xlu0 %v18630_v59, %s20586_s27 }
0x1c76   :  { %5594 = vrot.lane.b32.xlu1 %v18630_v59, %s20587_s24 }
0x1c7a   :  { %5592 = vrot.lane.b32.xlu1 %v18630_v59, %s20588_s25 }
0x1cea   :  { %v5345_v46 = vpop.xlane.xlu1 %5344 }
0x1ceb   :  { %v5347_v49 = vsub.f32 %v5336_v3, %v5345_v46  ;;  %v5342_v22 = vpop.xlane.xlu0 %5341 }
0x1cec   :  { %v5346_v48 = vsub.f32 %v5258_v4, %v5342_v22 }
0x1ced   :  { %v5350_v51 = vmul.f32 1.442695, %v5347_v49 }
0x1cee   :  { %v5348_v52 = vmul.f32 1.442695, %v5346_v48  ;;  %v5363_v53 = vpop.permute.xlu1 %5362 }
0x1cef   :  { %17395 = vpow2.f32 %v5350_v51  ;;  %16537 = vmatpush3.msra.mxu0 %v5363_v53  ;;  %v5439_v50 = vpop.permute.xlu0 %5438 }
0x1cf0   :  { %16542 = vmatpush3.msra.mxu1 %v5439_v50  ;;  %16546 = vmatprep.subr.mxu0 %v17541_v6  ;;  %17397 = vpow2.f32 %v5348_v52 }
0x1cf1   :  { %16551 = vmatprep.subr.mxu1 %v17541_v6 }
0x1cf2   :  { %v5517_v7 = vpop.permute.xlu1 %5516 }
0x1cf6   :  { %v5595_v12 = vpop.permute.xlu1 %5594 }
0x1cf9   :  { %v17396_v54 = vpop.eup %17395 }
0x1cfa   :  { %v5355_v55 = vsel %vm308_vm4, %v17396_v54, 0.0  ;;  %v17398_v57 = vpop.eup %17397  ;;  %v5593_v21 = vpop.permute.xlu1 %5592 }
0x1cfb   :  { %5356 = vadd.xlane.f32.xlu0 %v5355_v55  ;;  %v5352_v58 = vsel %vm308_vm4, %v17398_v57, 0.0 }
0x1cff   :  { %5353 = vadd.xlane.f32.xlu0 %v5352_v58 }
0x1d15   :  { %5514 = vrot.lane.b32.xlu0 %v18632_v1, %s20588_s25 }
0x1d88   :  { %v5357_v60 = vpop.xlane.xlu0 %5356 }
0x1d89   :  { %17399 = vrcp.f32 %v5357_v60 }
0x1d8c   :  { %v5354_v5 = vpop.xlane.xlu0 %5353 }
0x1d8d   :  { %17401 = vrcp.f32 %v5354_v5 }
0x1d90   :  { %v5515_v24 = vpop.permute.xlu0 %5514 }
0x1d93   :  { %v17400_v9 = vpop.eup %17399 }
0x1d94   :  { %v5361_v14 = vmul.f32 %v17400_v9, %v17396_v54 }
0x1d96   :  { %16544 = vmatmul.mubr.msk.f32.vlgmr.msra.gmra.mrb[70].mxu1 %vm308_vm4, %v5361_v14 }
0x1d97   :  { %v17402_v16 = vpop.eup %17401  ;;  %16552 = vmatpush3.xpose.msk.msra.mxu1 %vm156_vm3, %v5595_v12  ;;  %16553 = vmatprep.mubr.msk.f32.mxu1 %vm17542_vm2, %v17541_v6 }
0x1d98   :  { %v5360_v17 = vmul.f32 %v17402_v16, %v17398_v57  ;;  %16561 = vmatprep.subr.mxu1 %v17541_v6 }
0x1d9a   :  { %16539 = vmatmul.mubr.msk.f32.vlgmr.msra.gmra.mrb[68].mxu0 %vm308_vm4, %v5360_v17  ;;  %16554 = vmatmul.mubr.msk.f32.vlgmr.msra.gmra.mrb[72].mxu1 %vm156_vm3, %v5593_v21 }
0x1d9b   :  { %16547 = vmatpush3.xpose.msk.msra.mxu0 %vm156_vm3, %v5517_v7  ;;  %16548 = vmatprep.mubr.msk.f32.mxu0 %vm17542_vm2, %v17541_v6 }
0x1d9c   :  { %16556 = vmatprep.subr.mxu0 %v17541_v6  ;;  %16563 = vmatprep.mubr.msk.f32.mxu1 %vm17542_vm2, %v17541_v6 }
0x1d9e   :  { %16549 = vmatmul.mubr.msk.f32.vlgmr.msra.gmra.mrb[70].mxu0 %vm156_vm3, %v5515_v24 }
0x1d9f   :  { %16558 = vmatprep.mubr.msk.f32.mxu0 %vm17542_vm2, %v17541_v6 }
0x1e69   :  { %v18722_v25 = vpop.f32.mrb[70].mxu1 }
0x1e6a   :  { %v16545_v26 = vpop.f32.mrb[71].mxu1 }
0x1e6d   :  { %v18724_v27 = vpop.f32.mrb[68].mxu0  ;;  %v5666_v28 = vpop.f32.mrb[72].mxu1 }
0x1e6e   :  { %v16540_v44 = vpop.f32.mrb[69].mxu0  ;;  %v16555_v29 = vpop.f32.mrb[73].mxu1  ;;  %v5673_v20 = vsel %vm308_vm4, %v5666_v28, -inf }
0x1e6f   :  { %5674 = vmax.xlane.f32.xlu1 %v5673_v20 }
0x1e71   :  { %v5588_v56 = vpop.f32.mrb[70].mxu0 }
0x1e72   :  { %v16550_v30 = vpop.f32.mrb[71].mxu0  ;;  %v5670_v31 = vsel %vm308_vm4, %v5588_v56, -inf }
0x1e73   :  { %5671 = vmax.xlane.f32.xlu0 %v5670_v31 }
0x1e80   :  { %5692 = vrot.lane.b32.xlu1 %v18632_v1, %s20589_s26 }
0x1e84   :  { %5846 = vrot.lane.b32.xlu1 %v18632_v1, %s20590_s28 }
0x1e88   :  { %5924 = vrot.lane.b32.xlu1 %v18630_v59, %s20590_s28 }
0x1e89   :  { %5768 = vrot.lane.b32.xlu0 %v18630_v59, %s20589_s26 }
0x1e8c   :  { %5922 = vrot.lane.b32.xlu1 %v18630_v59, %s20591_s30 }
0x1efc   :  { %v5675_v32 = vpop.xlane.xlu1 %5674 }
0x1efd   :  { %v5677_v33 = vsub.f32 %v5666_v28, %v5675_v32 }
0x1eff   :  { %v5680_v37 = vmul.f32 1.442695, %v5677_v33 }
0x1f00   :  { %v5693_v39 = vpop.permute.xlu1 %5692  ;;  %v5672_v40 = vpop.xlane.xlu0 %5671 }
0x1f01   :  { %17403 = vpow2.f32 %v5680_v37  ;;  %v5676_v13 = vsub.f32 %v5588_v56, %v5672_v40  ;;  %16557 = vmatpush3.msra.mxu0 %v5693_v39 }
0x1f02   :  { %16566 = vmatprep.subr.mxu0 %v17541_v6 }
0x1f03   :  { %v5678_v41 = vmul.f32 1.442695, %v5676_v13 }
0x1f04   :  { %v5769_v62 = vpop.permute.xlu0 %5768  ;;  %v5847_v4 = vpop.permute.xlu1 %5846 }
0x1f05   :  { %17405 = vpow2.f32 %v5678_v41  ;;  %16562 = vmatpush3.msra.mxu1 %v5769_v62 }
0x1f06   :  { %16571 = vmatprep.subr.mxu1 %v17541_v6 }
0x1f08   :  { %v5925_v38 = vpop.permute.xlu1 %5924 }
0x1f0b   :  { %v17404_v36 = vpop.eup %17403 }
0x1f0c   :  { %v5685_v63 = vsel %vm308_vm4, %v17404_v36, 0.0  ;;  %v5923_v49 = vpop.permute.xlu1 %5922 }
0x1f0d   :  { %5686 = vadd.xlane.f32.xlu0 %v5685_v63 }
0x1f0f   :  { %v17406_v10 = vpop.eup %17405 }
0x1f10   :  { %v5682_v35 = vsel %vm308_vm4, %v17406_v10, 0.0 }
0x1f11   :  { %5683 = vadd.xlane.f32.xlu0 %v5682_v35 }
0x1f27   :  { %5844 = vrot.lane.b32.xlu0 %v18632_v1, %s20591_s30 }
0x1f9a   :  { %v5687_v2 = vpop.xlane.xlu0 %5686 }
0x1f9b   :  { %17407 = vrcp.f32 %v5687_v2 }
0x1f9e   :  { %v5684_v3 = vpop.xlane.xlu0 %5683 }
0x1f9f   :  { %17409 = vrcp.f32 %v5684_v3 }
0x1fa2   :  { %v5845_v22 = vpop.permute.xlu0 %5844 }
0x1fa5   :  { %v17408_v43 = vpop.eup %17407 }
0x1fa6   :  { %v5691_v15 = vmul.f32 %v17408_v43, %v17404_v36 }
0x1fa8   :  { %16564 = vmatmul.mubr.msk.f32.vlgmr.msra.gmra.mrb[74].mxu1 %vm308_vm4, %v5691_v15 }
0x1fa9   :  { %v17410_v45 = vpop.eup %17409  ;;  %16572 = vmatpush3.xpose.msk.msra.mxu1 %vm156_vm3, %v5925_v38  ;;  %16573 = vmatprep.mubr.msk.f32.mxu1 %vm17542_vm2, %v17541_v6 }
0x1faa   :  { %v5690_v46 = vmul.f32 %v17410_v45, %v17406_v10  ;;  %16581 = vmatprep.subr.mxu1 %v17541_v6 }
0x1fac   :  { %16559 = vmatmul.mubr.msk.f32.vlgmr.msra.gmra.mrb[72].mxu0 %vm308_vm4, %v5690_v46  ;;  %16574 = vmatmul.mubr.msk.f32.vlgmr.msra.gmra.mrb[76].mxu1 %vm156_vm3, %v5923_v49 }
0x1fad   :  { %16567 = vmatpush3.xpose.msk.msra.mxu0 %vm156_vm3, %v5847_v4  ;;  %16568 = vmatprep.mubr.msk.f32.mxu0 %vm17542_vm2, %v17541_v6 }
0x1fae   :  { %16576 = vmatprep.subr.mxu0 %v17541_v6  ;;  %16583 = vmatprep.mubr.msk.f32.mxu1 %vm17542_vm2, %v17541_v6 }
0x1fb0   :  { %16569 = vmatmul.mubr.msk.f32.vlgmr.msra.gmra.mrb[74].mxu0 %vm156_vm3, %v5845_v22 }
0x1fb1   :  { %16578 = vmatprep.mubr.msk.f32.mxu0 %vm17542_vm2, %v17541_v6 }
0x207b   :  { %v18760_v48 = vpop.f32.mrb[74].mxu1 }
0x207c   :  { %v16565_v51 = vpop.f32.mrb[75].mxu1 }
0x207f   :  { %v18762_v52 = vpop.f32.mrb[72].mxu0  ;;  %v5996_v53 = vpop.f32.mrb[76].mxu1 }
0x2080   :  { %v16560_v50 = vpop.f32.mrb[73].mxu0  ;;  %v16575_v54 = vpop.f32.mrb[77].mxu1  ;;  %v6003_v55 = vsel %vm308_vm4, %v5996_v53, -inf }
0x2081   :  { %6004 = vmax.xlane.f32.xlu1 %v6003_v55 }
0x2083   :  { %v5918_v57 = vpop.f32.mrb[74].mxu0 }
0x2084   :  { %v16570_v58 = vpop.f32.mrb[75].mxu0  ;;  %v6000_v60 = vsel %vm308_vm4, %v5918_v57, -inf }
0x2085   :  { %6001 = vmax.xlane.f32.xlu0 %v6000_v60 }
0x2092   :  { %6022 = vrot.lane.b32.xlu1 %v18632_v1, %s20592_s0 }
0x2096   :  { %6176 = vrot.lane.b32.xlu1 %v18632_v1, %s20593_s17 }
0x209a   :  { %6254 = vrot.lane.b32.xlu1 %v18630_v59, %s20593_s17 }
0x209b   :  { %6098 = vrot.lane.b32.xlu0 %v18630_v59, %s20592_s0 }
0x209e   :  { %6252 = vrot.lane.b32.xlu1 %v18630_v59, %s20594_s18 }
0x210e   :  { %v6005_v5 = vpop.xlane.xlu1 %6004 }
0x210f   :  { %v6007_v7 = vsub.f32 %v5996_v53, %v6005_v5 }
0x2111   :  { %v6010_v9 = vmul.f32 1.442695, %v6007_v7 }
0x2112   :  { %v6023_v12 = vpop.permute.xlu1 %6022  ;;  %v6002_v14 = vpop.xlane.xlu0 %6001 }
0x2113   :  { %17411 = vpow2.f32 %v6010_v9  ;;  %v6006_v16 = vsub.f32 %v5918_v57, %v6002_v14  ;;  %16577 = vmatpush3.msra.mxu0 %v6023_v12 }
0x2114   :  { %16586 = vmatprep.subr.mxu0 %v17541_v6 }
0x2115   :  { %v6008_v17 = vmul.f32 1.442695, %v6006_v16 }
0x2116   :  { %v6099_v21 = vpop.permute.xlu0 %6098  ;;  %v6177_v56 = vpop.permute.xlu1 %6176 }
0x2117   :  { %17413 = vpow2.f32 %v6008_v17  ;;  %16582 = vmatpush3.msra.mxu1 %v6099_v21 }
0x2118   :  { %16591 = vmatprep.subr.mxu1 %v17541_v6 }
0x211a   :  { %v6255_v31 = vpop.permute.xlu1 %6254 }
0x211d   :  { %v17412_v24 = vpop.eup %17411 }
0x211e   :  { %v6015_v26 = vsel %vm308_vm4, %v17412_v24, 0.0  ;;  %v6253_v39 = vpop.permute.xlu1 %6252 }
0x211f   :  { %6016 = vadd.xlane.f32.xlu0 %v6015_v26 }
0x2121   :  { %v17414_v28 = vpop.eup %17413 }
0x2122   :  { %v6012_v44 = vsel %vm308_vm4, %v17414_v28, 0.0 }
0x2123   :  { %6013 = vadd.xlane.f32.xlu0 %v6012_v44 }
0x2139   :  { %6174 = vrot.lane.b32.xlu0 %v18632_v1, %s20594_s18 }
0x21ac   :  { %v6017_v29 = vpop.xlane.xlu0 %6016 }
0x21ad   :  { %17415 = vrcp.f32 %v6017_v29 }
0x21b0   :  { %v6014_v20 = vpop.xlane.xlu0 %6013 }
0x21b1   :  { %17417 = vrcp.f32 %v6014_v20 }
0x21b4   :  { %v6175_v40 = vpop.permute.xlu0 %6174 }
0x21b7   :  { %v17416_v30 = vpop.eup %17415 }
0x21b8   :  { %v6021_v32 = vmul.f32 %v17416_v30, %v17412_v24 }
0x21ba   :  { %16584 = vmatmul.mubr.msk.f32.vlgmr.msra.gmra.mrb[78].mxu1 %vm308_vm4, %v6021_v32 }
0x21bb   :  { %v17418_v33 = vpop.eup %17417  ;;  %16592 = vmatpush3.xpose.msk.msra.mxu1 %vm156_vm3, %v6255_v31  ;;  %16593 = vmatprep.mubr.msk.f32.mxu1 %vm17542_vm2, %v17541_v6 }
0x21bc   :  { %v6020_v37 = vmul.f32 %v17418_v33, %v17414_v28  ;;  %16601 = vmatprep.subr.mxu1 %v17541_v6 }
0x21be   :  { %16579 = vmatmul.mubr.msk.f32.vlgmr.msra.gmra.mrb[76].mxu0 %vm308_vm4, %v6020_v37  ;;  %16594 = vmatmul.mubr.msk.f32.vlgmr.msra.gmra.mrb[80].mxu1 %vm156_vm3, %v6253_v39 }
0x21bf   :  { %16587 = vmatpush3.xpose.msk.msra.mxu0 %vm156_vm3, %v6177_v56  ;;  %16588 = vmatprep.mubr.msk.f32.mxu0 %vm17542_vm2, %v17541_v6 }
0x21c0   :  { %16596 = vmatprep.subr.mxu0 %v17541_v6  ;;  %16603 = vmatprep.mubr.msk.f32.mxu1 %vm17542_vm2, %v17541_v6 }
0x21c2   :  { %16589 = vmatmul.mubr.msk.f32.vlgmr.msra.gmra.mrb[78].mxu0 %vm156_vm3, %v6175_v40 }
0x21c3   :  { %16598 = vmatprep.mubr.msk.f32.mxu0 %vm17542_vm2, %v17541_v6 }
0x228d   :  { %v18798_v13 = vpop.f32.mrb[78].mxu1 }
0x228e   :  { %v16585_v41 = vpop.f32.mrb[79].mxu1 }
0x2291   :  { %v18800_v62 = vpop.f32.mrb[76].mxu0  ;;  %v6326_v36 = vpop.f32.mrb[80].mxu1 }
0x2292   :  { %v16580_v63 = vpop.f32.mrb[77].mxu0  ;;  %v16595_v10 = vpop.f32.mrb[81].mxu1  ;;  %v6333_v35 = vsel %vm308_vm4, %v6326_v36, -inf }
0x2293   :  { %6334 = vmax.xlane.f32.xlu1 %v6333_v35 }
0x2295   :  { %v6248_v2 = vpop.f32.mrb[78].mxu0 }
0x2296   :  { %v16590_v3 = vpop.f32.mrb[79].mxu0  ;;  %v6330_v4 = vsel %vm308_vm4, %v6248_v2, -inf }
0x2297   :  { %6331 = vmax.xlane.f32.xlu0 %v6330_v4 }
0x22a4   :  { %6352 = vrot.lane.b32.xlu1 %v18632_v1, %s20595_s22 }
0x22a8   :  { %6506 = vrot.lane.b32.xlu1 %v18632_v1, %s20596_s23 }
0x22ac   :  { %6584 = vrot.lane.b32.xlu1 %v18630_v59, %s20596_s23 }
0x22ad   :  { %6428 = vrot.lane.b32.xlu0 %v18630_v59, %s20595_s22 }
0x22b0   :  { %6582 = vrot.lane.b32.xlu1 %v18630_v59, %s20597_s21 }
0x2320   :  { %v6335_v43 = vpop.xlane.xlu1 %6334 }
0x2321   :  { %v6337_v38 = vsub.f32 %v6326_v36, %v6335_v43 }
0x2323   :  { %v6340_v15 = vmul.f32 1.442695, %v6337_v38 }
0x2324   :  { %v6353_v45 = vpop.permute.xlu1 %6352  ;;  %v6332_v46 = vpop.xlane.xlu0 %6331 }
0x2325   :  { %17419 = vpow2.f32 %v6340_v15  ;;  %v6336_v49 = vsub.f32 %v6248_v2, %v6332_v46  ;;  %16597 = vmatpush3.msra.mxu0 %v6353_v45 }
0x2326   :  { %16606 = vmatprep.subr.mxu0 %v17541_v6 }
0x2327   :  { %v6338_v22 = vmul.f32 1.442695, %v6336_v49 }
0x2328   :  { %v6429_v51 = vpop.permute.xlu0 %6428  ;;  %v6507_v60 = vpop.permute.xlu1 %6506 }
0x2329   :  { %17421 = vpow2.f32 %v6338_v22  ;;  %16602 = vmatpush3.msra.mxu1 %v6429_v51 }
0x232a   :  { %16611 = vmatprep.subr.mxu1 %v17541_v6 }
0x232c   :  { %v6585_v7 = vpop.permute.xlu1 %6584 }
0x232f   :  { %v17420_v53 = vpop.eup %17419 }
0x2330   :  { %v6345_v50 = vsel %vm308_vm4, %v17420_v53, 0.0  ;;  %v6583_v16 = vpop.permute.xlu1 %6582 }
0x2331   :  { %6346 = vadd.xlane.f32.xlu0 %v6345_v50 }
0x2333   :  { %v17422_v54 = vpop.eup %17421 }
0x2334   :  { %v6342_v55 = vsel %vm308_vm4, %v17422_v54, 0.0 }
0x2335   :  { %6343 = vadd.xlane.f32.xlu0 %v6342_v55 }
0x234b   :  { %6504 = vrot.lane.b32.xlu0 %v18632_v1, %s20597_s21  ;;  %s20607_s21 = smov 18  }
0x23be   :  { %v6347_v57 = vpop.xlane.xlu0 %6346 }
0x23bf   :  { %17423 = vrcp.f32 %v6347_v57 }
0x23c2   :  { %v6344_v58 = vpop.xlane.xlu0 %6343 }
0x23c3   :  { %17425 = vrcp.f32 %v6344_v58 }
0x23c6   :  { %v6505_v17 = vpop.permute.xlu0 %6504 }
0x23c9   :  { %v17424_v5 = vpop.eup %17423 }
0x23ca   :  { %v6351_v9 = vmul.f32 %v17424_v5, %v17420_v53 }
0x23cc   :  { %16604 = vmatmul.mubr.msk.f32.vlgmr.msra.gmra.mrb[82].mxu1 %vm308_vm4, %v6351_v9 }
0x23cd   :  { %v17426_v12 = vpop.eup %17425  ;;  %16612 = vmatpush3.xpose.msk.msra.mxu1 %vm156_vm3, %v6585_v7  ;;  %16613 = vmatprep.mubr.msk.f32.mxu1 %vm17542_vm2, %v17541_v6 }
0x23ce   :  { %v6350_v14 = vmul.f32 %v17426_v12, %v17422_v54  ;;  %16621 = vmatprep.subr.mxu1 %v17541_v6 }
0x23d0   :  { %16599 = vmatmul.mubr.msk.f32.vlgmr.msra.gmra.mrb[80].mxu0 %vm308_vm4, %v6350_v14  ;;  %16614 = vmatmul.mubr.msk.f32.vlgmr.msra.gmra.mrb[84].mxu1 %vm156_vm3, %v6583_v16 }
0x23d1   :  { %16607 = vmatpush3.xpose.msk.msra.mxu0 %vm156_vm3, %v6507_v60  ;;  %16608 = vmatprep.mubr.msk.f32.mxu0 %vm17542_vm2, %v17541_v6 }
0x23d2   :  { %16616 = vmatprep.subr.mxu0 %v17541_v6  ;;  %16623 = vmatprep.mubr.msk.f32.mxu1 %vm17542_vm2, %v17541_v6 }
0x23d4   :  { %16609 = vmatmul.mubr.msk.f32.vlgmr.msra.gmra.mrb[82].mxu0 %vm156_vm3, %v6505_v17 }
0x23d5   :  { %16618 = vmatprep.mubr.msk.f32.mxu0 %vm17542_vm2, %v17541_v6 }
0x249f   :  { %v18836_v21 = vpop.f32.mrb[82].mxu1 }
0x24a0   :  { %v16605_v24 = vpop.f32.mrb[83].mxu1 }
0x24a3   :  { %v18838_v26 = vpop.f32.mrb[80].mxu0  ;;  %v6656_v28 = vpop.f32.mrb[84].mxu1 }
0x24a4   :  { %v16600_v44 = vpop.f32.mrb[81].mxu0  ;;  %v16615_v29 = vpop.f32.mrb[85].mxu1  ;;  %v6663_v20 = vsel %vm308_vm4, %v6656_v28, -inf }
0x24a5   :  { %6664 = vmax.xlane.f32.xlu1 %v6663_v20 }
0x24a7   :  { %v6578_v56 = vpop.f32.mrb[82].mxu0 }
0x24a8   :  { %v16610_v30 = vpop.f32.mrb[83].mxu0  ;;  %v6660_v31 = vsel %vm308_vm4, %v6578_v56, -inf }
0x24a9   :  { %6661 = vmax.xlane.f32.xlu0 %v6660_v31 }
0x24b6   :  { %6682 = vrot.lane.b32.xlu1 %v18632_v1, %s20598_s20 }
0x24ba   :  { %6836 = vrot.lane.b32.xlu1 %v18632_v1, %s20599_s19 }
0x24be   :  { %6914 = vrot.lane.b32.xlu1 %v18630_v59, %s20599_s19  ;;  %s20605_s19 = smov 12  }
0x24bf   :  { %6758 = vrot.lane.b32.xlu0 %v18630_v59, %s20598_s20  ;;  %s20606_s20 = smov 15  }
0x24c2   :  { %6912 = vrot.lane.b32.xlu1 %v18630_v59, %s20600_s16 }
0x2532   :  { %v6665_v32 = vpop.xlane.xlu1 %6664 }
0x2533   :  { %v6667_v33 = vsub.f32 %v6656_v28, %v6665_v32  ;;  %v14614_v32 = vld [vmem:[%s20489_s3 + $0x28] sm:$0x1f] }
0x2535   :  { %v6670_v37 = vmul.f32 1.442695, %v6667_v33 }
0x2536   :  { %v6683_v39 = vpop.permute.xlu1 %6682  ;;  %v6662_v40 = vpop.xlane.xlu0 %6661 }
0x2537   :  { %17427 = vpow2.f32 %v6670_v37  ;;  %v6666_v41 = vsub.f32 %v6578_v56, %v6662_v40  ;;  %16617 = vmatpush3.msra.mxu0 %v6683_v39 }
0x2538   :  { %16626 = vmatprep.subr.mxu0 %v17541_v6 }
0x2539   :  { %v6668_v36 = vmul.f32 1.442695, %v6666_v41 }
0x253a   :  { %v6759_v63 = vpop.permute.xlu0 %6758  ;;  %v6837_v38 = vpop.permute.xlu1 %6836 }
0x253b   :  { %17429 = vpow2.f32 %v6668_v36  ;;  %16622 = vmatpush3.msra.mxu1 %v6759_v63 }
0x253c   :  { %16631 = vmatprep.subr.mxu1 %v17541_v6 }
0x253e   :  { %v6915_v45 = vpop.permute.xlu1 %6914 }
0x2541   :  { %v17428_v10 = vpop.eup %17427 }
0x2542   :  { %v6675_v35 = vsel %vm308_vm4, %v17428_v10, 0.0  ;;  %v6913_v51 = vpop.permute.xlu1 %6912 }
0x2543   :  { %6676 = vadd.xlane.f32.xlu0 %v6675_v35 }
0x2545   :  { %v17430_v2 = vpop.eup %17429 }
0x2546   :  { %v6672_v3 = vsel %vm308_vm4, %v17430_v2, 0.0 }
0x2547   :  { %6673 = vadd.xlane.f32.xlu0 %v6672_v3 }
0x255d   :  { %6834 = vrot.lane.b32.xlu0 %v18632_v1, %s20600_s16  ;;  %s20604_s16 = smov 9  }
0x25d0   :  { %v6677_v4 = vpop.xlane.xlu0 %6676 }
0x25d1   :  { %17431 = vrcp.f32 %v6677_v4 }
0x25d4   :  { %v6674_v43 = vpop.xlane.xlu0 %6673 }
0x25d5   :  { %17433 = vrcp.f32 %v6674_v43 }
0x25d8   :  { %v6835_v53 = vpop.permute.xlu0 %6834 }
0x25db   :  { %v17432_v15 = vpop.eup %17431 }
0x25dc   :  { %v6681_v46 = vmul.f32 %v17432_v15, %v17428_v10 }
0x25de   :  { %16624 = vmatmul.mubr.msk.f32.vlgmr.msra.gmra.mrb[86].mxu1 %vm308_vm4, %v6681_v46 }
0x25df   :  { %v17434_v49 = vpop.eup %17433  ;;  %16632 = vmatpush3.xpose.msk.msra.mxu1 %vm156_vm3, %v6915_v45  ;;  %16633 = vmatprep.mubr.msk.f32.mxu1 %vm17542_vm2, %v17541_v6 }
0x25e0   :  { %v6680_v22 = vmul.f32 %v17434_v49, %v17430_v2  ;;  %16641 = vmatprep.subr.mxu1 %v17541_v6 }
0x25e2   :  { %16619 = vmatmul.mubr.msk.f32.vlgmr.msra.gmra.mrb[84].mxu0 %vm308_vm4, %v6680_v22  ;;  %16634 = vmatmul.mubr.msk.f32.vlgmr.msra.gmra.mrb[88].mxu1 %vm156_vm3, %v6913_v51 }
0x25e3   :  { %16627 = vmatpush3.xpose.msk.msra.mxu0 %vm156_vm3, %v6837_v38  ;;  %16628 = vmatprep.mubr.msk.f32.mxu0 %vm17542_vm2, %v17541_v6 }
0x25e4   :  { %16636 = vmatprep.subr.mxu0 %v17541_v6  ;;  %16643 = vmatprep.mubr.msk.f32.mxu1 %vm17542_vm2, %v17541_v6 }
0x25e6   :  { %16629 = vmatmul.mubr.msk.f32.vlgmr.msra.gmra.mrb[86].mxu0 %vm156_vm3, %v6835_v53 }
0x25e7   :  { %16638 = vmatprep.mubr.msk.f32.mxu0 %vm17542_vm2, %v17541_v6 }
0x26b1   :  { %v6830_v50 = vpop.f32.mrb[86].mxu1 }
0x26b2   :  { %v16625_v54 = vpop.f32.mrb[87].mxu1 }
0x26b5   :  { %v6754_v55 = vpop.f32.mrb[84].mxu0  ;;  %v6986_v57 = vpop.f32.mrb[88].mxu1 }
0x26b6   :  { %v16620_v58 = vpop.f32.mrb[85].mxu0  ;;  %v16635_v60 = vpop.f32.mrb[89].mxu1  ;;  %v6993_v5 = vsel %vm308_vm4, %v6986_v57, -inf }
0x26b7   :  { %6994 = vmax.xlane.f32.xlu1 %v6993_v5  ;;  %v14616_v60 = vld [vmem:[%s20490_s4 + $0x1] ss:$0 sm:$0xff]  ;;  %s20622_s4 = sld [smem:[#allocation6_spill]] }
0x26b9   :  { %v6908_v7 = vpop.f32.mrb[86].mxu0 }
0x26ba   :  { %v16630_v9 = vpop.f32.mrb[87].mxu0  ;;  %v6990_v12 = vsel %vm308_vm4, %v6908_v7, -inf }
0x26bb   :  { %6991 = vmax.xlane.f32.xlu0 %v6990_v12 }
0x26c8   :  { %7012 = vrot.lane.b32.xlu1 %v18632_v1, %s20601_s15 }
0x26cc   :  { %7166 = vrot.lane.b32.xlu1 %v18724_v27, %s20602_s13 }
0x26d0   :  { %7168 = vrot.lane.b32.xlu1 %v18722_v25, %s20602_s13  ;;  %s20625_s13 = sld [smem:[#allocation8_spill]] }
0x26d4   :  { %7176 = vrot.lane.b32.xlu1 %v18760_v48, %s20603_s14 }
0x26d8   :  { %7184 = vrot.lane.b32.xlu1 %v18798_v13, %s20604_s16 }
0x26dc   :  { %7192 = vrot.lane.b32.xlu1 %v18836_v21, %s20605_s19 }
0x26e0   :  { %7200 = vrot.lane.b32.xlu1 %v6830_v50, %s20606_s20 }
0x2744   :  { %v6995_v14 = vpop.xlane.xlu1 %6994 }
0x2745   :  { %v6997_v16 = vsub.f32 %v6986_v57, %v6995_v14 }
0x2747   :  { %v7000_v1 = vmul.f32 1.442695, %v6997_v16 }
0x2748   :  { %v7013_v17 = vpop.permute.xlu1 %7012  ;;  %v6992_v24 = vpop.xlane.xlu0 %6991 }
0x2749   :  { %17435 = vpow2.f32 %v7000_v1  ;;  %v6996_v27 = vsub.f32 %v6908_v7, %v6992_v24  ;;  %16637 = vmatpush3.msra.mxu0 %v7013_v17 }
0x274b   :  { %v6998_v25 = vmul.f32 1.442695, %v6996_v27 }
0x274c   :  { %v7167_v41 = vpop.permute.xlu1 %7166 }
0x274d   :  { %17437 = vpow2.f32 %v6998_v25  ;;  %v7212_v38 = vsel %vm156_vm3, %v18686_v34, %v7167_v41 }
0x2750   :  { %v7169_v36 = vpop.permute.xlu1 %7168 }
0x2751   :  { %v7213_v45 = vsel %vm156_vm3, %v18684_v0, %v7169_v36 }
0x2753   :  { %v17436_v28 = vpop.eup %17435 }
0x2754   :  { %v7005_v48 = vsel %vm308_vm4, %v17436_v28, 0.0  ;;  %v7177_v63 = vpop.permute.xlu1 %7176 }
0x2755   :  { %7006 = vadd.xlane.f32.xlu0 %v7005_v48  ;;  %v7215_v49 = vsel %vm2513_vm5, %v7213_v45, %v7177_v63 }
0x2757   :  { %v17438_v13 = vpop.eup %17437 }
0x2758   :  { %v7002_v44 = vsel %vm308_vm4, %v17438_v13, 0.0  ;;  %v7185_v35 = vpop.permute.xlu1 %7184 }
0x2759   :  { %7003 = vadd.xlane.f32.xlu0 %v7002_v44  ;;  %v7217_v51 = vsel %vm2516_vm6, %v7215_v49, %v7185_v35  ;;  %v14705_v35 = vld [vmem:[%s20495_s9 + $0xd0] sm:$0xff] }
0x275c   :  { %v7193_v3 = vpop.permute.xlu1 %7192 }
0x275d   :  { %v7219_v54 = vsel %vm2519_vm7, %v7217_v51, %v7193_v3  ;;  %v14706_v3 = vld [vmem:[%s20495_s9 + $0xd8] sm:$0xff] }
0x2760   :  { %v7201_v43 = vpop.permute.xlu1 %7200 }
0x2761   :  { %v7221_v57 = vsel %vm2522_vm9, %v7219_v54, %v7201_v43  ;;  %v14708_v43 = vld [vmem:[%s20495_s9 + $0x118] sm:$0xff] }
0x2762   :  { %v14715_v45 = vcombine.high %v14706_v3, %v14708_v43 }
0x276f   :  { %7088 = vrot.lane.b32.xlu0 %v18630_v59, %s20601_s15  ;;  %s20610_s15 = smov 104  }
0x2773   :  { %7174 = vrot.lane.b32.xlu0 %v18762_v52, %s20603_s14 }
0x2777   :  { %7182 = vrot.lane.b32.xlu0 %v18800_v62, %s20604_s16  ;;  %v14612_v62 = vld [vmem:[%s20489_s3 + $0x18] sm:$0xff] }
0x277b   :  { %7190 = vrot.lane.b32.xlu0 %v18838_v26, %s20605_s19  ;;  %v14613_v26 = vld [vmem:[%s20489_s3 + $0x20] sm:$0xff] }
0x277c   :  { %v16841_v31 = vpack.c.bf16 %v14613_v26, %v14612_v62 }
0x277e   :  { %16842 = vmatprep.subr.bf16.mxu0 %v16841_v31 }
0x277f   :  { %7198 = vrot.lane.b32.xlu0 %v6754_v55, %s20606_s20 }
0x27e2   :  { %v7007_v21 = vpop.xlane.xlu0 %7006 }
0x27e3   :  { %17439 = vrcp.f32 %v7007_v21 }
0x27e6   :  { %v7004_v29 = vpop.xlane.xlu0 %7003 }
0x27e7   :  { %17441 = vrcp.f32 %v7004_v29 }
0x27ea   :  { %v7089_v20 = vpop.permute.xlu0 %7088 }
0x27eb   :  { %16642 = vmatpush3.msra.mxu1 %v7089_v20  ;;  %v14626_v20 = vld [vmem:[%s20495_s9 + $0x100] sm:$0xff] }
0x27ed   :  { %v17440_v56 = vpop.eup %17439 }
0x27ee   :  { %v7011_v30 = vmul.f32 %v17440_v56, %v17436_v28  ;;  %v7175_v10 = vpop.permute.xlu0 %7174  ;;  %v14625_v56 = vld [vmem:[%s20495_s9 + $0xc8] sm:$0xff] }
0x27ef   :  { %v7214_v46 = vsel %vm2513_vm5, %v7212_v38, %v7175_v10 }
0x27f0   :  { %16644 = vmatmul.mubr.msk.f32.vlgmr.msra.gmra.mrb[90].mxu1 %vm308_vm4, %v7011_v30 }
0x27f1   :  { %v17442_v59 = vpop.eup %17441  ;;  %7476 = vmatprep.mubr.bf16.mxu1 %v17570_v8 }
0x27f2   :  { %v7010_v52 = vmul.f32 %v17442_v59, %v17438_v13  ;;  %v7183_v2 = vpop.permute.xlu0 %7182  ;;  %v14627_v59 = vld [vmem:[%s20495_s9 + $0x108] sm:$0xff] }
0x27f3   :  { %v7216_v22 = vsel %vm2516_vm6, %v7214_v46, %v7183_v2  ;;  %v14633_v62 = vcombine.low %v14625_v56, %v14627_v59  ;;  %v14634_v26 = vcombine.high %v14625_v56, %v14627_v59  ;;  %v14707_v2 = vld [vmem:[%s20495_s9 + $0x110] sm:$0xff]  ;;  %v17049_v56 = vld [vmem:[%s20497_s11 + $0x508] sm:$0xff]  }
0x27f4   :  { %16639 = vmatmul.mubr.msk.f32.vlgmr.msra.gmra.mrb[88].mxu0 %vm308_vm4, %v7010_v52  ;;  %v14712_v38 = vcombine.low %v14705_v35, %v14707_v2  ;;  %v17051_v59 = vld [vmem:[%s20497_s11 + $0x550] sm:$0xff]  }
0x27f5   :  { %16844 = vmatpush3.bf16.msra.mxu0 %v16841_v31  ;;  %v14628_v31 = vld [vmem:[%s20495_s9 + $0x140] sm:$0x77] }
0x27f6   :  { %16650 = vmatprep.subr.msk.mxu0 %vm74_vm1, %v14614_v32  ;;  %v7191_v4 = vpop.permute.xlu0 %7190 }
0x27f7   :  { %v7218_v53 = vsel %vm2519_vm7, %v7216_v22, %v7191_v4  ;;  %v14713_v4 = vcombine.high %v14705_v35, %v14707_v2  ;;  %v17065_v35 = vld [vmem:[%s20497_s11 + $0x528] sm:$0xff]  }
0x27f8   :  { %v17066_v2 = vld [vmem:[%s20497_s11 + $0x5a8] sm:$0xff]  }
0x27f9   :  { %16651 = vmatpush3.msk.msra.mxu0 %vm74_vm1, %v14614_v32  ;;  %v14629_v32 = vld [vmem:[%s20495_s9 + $0x148] sm:$0x77] }
0x27fa   :  { %v7199_v15 = vpop.permute.xlu0 %7198  ;;  %7487 = vmatprep.subr.bf16.mxu0 %v14634_v26  ;;  %v17054_v26 = vld [vmem:[%s20497_s11 + $0x590] sm:$0xff]  }
0x27fb   :  { %v7220_v55 = vsel %vm2522_vm9, %v7218_v53, %v7199_v15  ;;  %v14714_v15 = vcombine.low %v14706_v3, %v14708_v43  ;;  %v17067_v3 = vld [vmem:[%s20497_s11 + $0x570] sm:$0xff]  }
0x27fc   :  { %v17069_v43 = vld [vmem:[%s20497_s11 + $0x530] sm:$0xff]  }
0x28c3   :  { %v7160_v33 = vpop.f32.mrb[90].mxu1 }
0x28c4   :  { %7208 = vrot.lane.b32.xlu1 %v7160_v33, %s20607_s21  ;;  %v16645_v37 = vpop.f32.mrb[91].mxu1  ;;  %v14636_v33 = vcombine.high %v14628_v31, %v14628_v31 }
0x28c5   :  { %v14638_v37 = vcombine.high %v14629_v32, %v14629_v32 }
0x28c6   :  { %v7436_v41 = vand.u32 %v14636_v33, %v18022_v61  ;;  %v17057_v33 = vld [vmem:[%s20497_s11 + $0x518] sm:$0xff]  }
0x28c7   :  { %v7084_v39 = vpop.f32.mrb[88].mxu0  ;;  %v7442_v36 = vand.u32 %v14638_v37, %v18022_v61  ;;  %v17058_v37 = vld [vmem:[%s20497_s11 + $0x598] sm:$0xff]  }
0x28c8   :  { %7206 = vrot.lane.b32.xlu0 %v7084_v39, %s20607_s21  ;;  %v16640_v40 = vpop.f32.mrb[89].mxu0  ;;  %v14635_v39 = vcombine.low %v14628_v31, %v14628_v31  ;;  %v17055_v31 = vld [vmem:[%s20497_s11 + $0x558] sm:$0xff]  }
0x28c9   :  { %v14637_v40 = vcombine.low %v14629_v32, %v14629_v32  ;;  %v17056_v32 = vld [vmem:[%s20497_s11 + $0x5d8] sm:$0xff]  }
0x28ca   :  { %v7433_v63 = vand.u32 %v14635_v39, %v18022_v61  ;;  %v17059_v39 = vld [vmem:[%s20497_s11 + $0x560] sm:$0xff]  }
0x28cb   :  { %v7439_v10 = vand.u32 %v14637_v40, %v18022_v61  ;;  %v17060_v40 = vld [vmem:[%s20497_s11 + $0x5e0] sm:$0xff]  }
0x2936   :  { %v7209_v50 = vpop.permute.xlu1 %7208 }
0x2937   :  { %v7223_v58 = vsel %vm2525_vm8, %v7221_v57, %v7209_v50 }
0x293a   :  { %v7207_v34 = vpop.permute.xlu0 %7206 }
0x293b   :  { %v7222_v0 = vsel %vm2525_vm8, %v7220_v55, %v7207_v34  ;;  %v14622_v34 = vld [vmem:[%s20491_s5 + $0x1] ss:$0 sm:$0xff]  ;;  %s20624_s5 = sld [smem:[#allocation7_spill]] }
0x293c   :  { %16652 = vmatprep.mubr.msk.f32.mxu0 %vm67_vm0, %v7222_v0  ;;  %v14709_v0 = vld [vmem:[%s20495_s9 + $0x150] sm:$0x77] }
0x293d   :  { %16653 = vmatmul.mubr.msk.f32.vlgmr.msra.gmra.mrb[90].mxu0 %vm67_vm0, %v7223_v58  ;;  %v14710_v58 = vld [vmem:[%s20495_s9 + $0x158] sm:$0x77] }
0x293e   :  { %7519 = vmatprep.mubr.bf16.mxu0 %v17570_v8  ;;  %7488 = vmatpush1.bf16.msra.mxu0 %v14633_v62  ;;  %v17053_v62 = vld [vmem:[%s20497_s11 + $0x510] sm:$0xff]  }
0x293f   :  { %7489 = vmatprep.subr.bf16.mxu0 %v7442_v36  ;;  %v17062_v36 = vld [vmem:[%s20497_s11 + $0x5a0] sm:$0xff]  }
0x2942   :  { %7490 = vmatpush1.bf16.msra.mxu0 %v7439_v10  ;;  %v17064_v10 = vld [vmem:[%s20497_s11 + $0x5e8] sm:$0xff]  }
0x2943   :  { %7720 = vmatprep.subr.bf16.mxu0 %v14715_v45  ;;  %v17072_v45 = vld [vmem:[%s20497_s11 + $0x5f8] sm:$0xff]  }
0x2a10   :  { %v16654_v5 = vpop.f32.mrb[90].mxu0 }
0x2a11   :  { %v7317_v7 = vadd.f32 %v16654_v5, %v14616_v60  ;;  %v7311_v9 = vpop.f32.mrb[91].mxu0 }
0x2a12   :  { %v7312_v12 = vadd.f32 %v14616_v60, %v7311_v9 }
0x2a13   :  { %v7321_v14 = vadd.f32 %v7317_v7, %v18619_v47  ;;  %v14623_v7 = vld [vmem:[%s20492_s6 + $0x1] ss:$0 sm:$0xff]  ;;  %s20608_s6 = smov 107  }
0x2a14   :  { %v7320_v16 = vadd.f32 %v7312_v12, %v18617_v11  ;;  %v14624_v11 = vld [vmem:[%s20495_s9 + $0xc0] sm:$0xff]  ;;  %v14717_v12 = vcombine.high %v14709_v0, %v14709_v0 }
0x2a15   :  { %v7329_v1 = vsel %vm67_vm0, %v7321_v14, 0.0  ;;  %v14632_v30 = vcombine.high %v14624_v11, %v14626_v20  ;;  %v14631_v52 = vcombine.low %v14624_v11, %v14626_v20  ;;  %v17047_v11 = vld [vmem:[%s20497_s11 + $0x548] sm:$0xff]  }
0x2a16   :  { %7330 = vadd.xlane.f32.xlu1 %v7329_v1  ;;  %v7326_v17 = vsel %vm67_vm0, %v7320_v16, 0.0  ;;  %v17048_v20 = vld [vmem:[%s20497_s11 + $0x5c8] sm:$0xff]  }
0x2a17   :  { %7327 = vadd.xlane.f32.xlu0 %v7326_v17  ;;  %7444 = vmatprep.subr.bf16.mxu1 %v14632_v30  ;;  %v14716_v17 = vcombine.low %v14709_v0, %v14709_v0  ;;  %v17050_v30 = vld [vmem:[%s20497_s11 + $0x588] sm:$0xff]  }
0x2a18   :  { %7445 = vmatpush1.bf16.msra.mxu1 %v14631_v52  ;;  %v17052_v52 = vld [vmem:[%s20497_s11 + $0x5d0] sm:$0xff]  }
0x2a19   :  { %7446 = vmatprep.subr.bf16.mxu1 %v7436_v41  ;;  %v17061_v41 = vld [vmem:[%s20497_s11 + $0x520] sm:$0xff]  }
0x2a1c   :  { %7447 = vmatpush1.bf16.msra.mxu1 %v7433_v63  ;;  %v17063_v63 = vld [vmem:[%s20497_s11 + $0x568] sm:$0xff]  }
0x2a1d   :  { %7677 = vmatprep.subr.bf16.mxu1 %v14713_v4  ;;  %v17068_v4 = vld [vmem:[%s20497_s11 + $0x5f0] sm:$0xff]  }
0x2aa3   :  { %v7331_v24 = vpop.xlane.xlu1 %7330 }
0x2aa4   :  { %v7333_v27 = vmul.f32 0.04761905, %v7331_v24  ;;  %v7328_v25 = vpop.xlane.xlu0 %7327  ;;  %v14718_v24 = vcombine.low %v14710_v58, %v14710_v58 }
0x2aa5   :  { %v7332_v28 = vmul.f32 0.04761905, %v7328_v25  ;;  %v7669_v25 = vand.u32 %v14717_v12, %v18022_v61 }
0x2aa6   :  { %v7335_v48 = vsub.f32 %v7321_v14, %v7333_v27  ;;  %v14719_v14 = vcombine.high %v14710_v58, %v14710_v58  ;;  %v14711_v58 = vld [vmem:[%s20496_s10 + $0x14] sm:$0xf] }
0x2aa7   :  { %v7334_v13 = vsub.f32 %v7320_v16, %v7332_v28 }
0x2aa8   :  { %v7337_v29 = vmul.f32 %v7335_v48, %v7335_v48  ;;  %v7675_v28 = vand.u32 %v14719_v14, %v18022_v61 }
0x2aa9   :  { %v7336_v44 = vmul.f32 %v7334_v13, %v7334_v13 }
0x2aaa   :  { %v7341_v47 = vsel %vm67_vm0, %v7337_v29, 0.0  ;;  %v17045_v29 = vld [vmem:[%s20497_s11 + $0x500] sm:$0xff]  }
0x2aab   :  { %v7338_v21 = vsel %vm67_vm0, %v7336_v44, 0.0  ;;  %v17043_v44 = vld [vmem:[%s20497_s11 + $0x540] sm:$0xff]  }
0x2aac   :  { %7339 = vadd.xlane.f32.xlu0 %v7338_v21  ;;  %v17044_v21 = vld [vmem:[%s20497_s11 + $0x5c0] sm:$0xff]  }
0x2ab0   :  { %7342 = vadd.xlane.f32.xlu0 %v7341_v47  ;;  %v17046_v47 = vld [vmem:[%s20497_s11 + $0x580] sm:$0xff]  }
0x2b39   :  { %v7340_v46 = vpop.xlane.xlu0 %7339 }
0x2b3a   :  { %v7344_v49 = vmul.f32 0.04761905, %v7340_v46  ;;  %v17073_v46 = vld [vmem:[%s20497_s11 + $0x538] sm:$0xff]  }
0x2b3c   :  { %v7346_v22 = vadd.f32 1e-05, %v7344_v49  ;;  %v17074_v49 = vld [vmem:[%s20497_s11 + $0x5b8] sm:$0xff]  }
0x2b3d   :  { %v7343_v51 = vpop.xlane.xlu0 %7342 }
0x2b3e   :  { %17443 = vrsqrt.f32 %v7346_v22  ;;  %v7345_v53 = vmul.f32 0.04761905, %v7343_v51  ;;  %v17075_v22 = vld [vmem:[%s20497_s11 + $0x440] sm:$0xff]  }
0x2b3f   :  { %v17076_v51 = vld [vmem:[%s20497_s11 + $0x4c0] sm:$0xff]  }
0x2b40   :  { %v7347_v50 = vadd.f32 1e-05, %v7345_v53  ;;  %v14630_v53 = vld [vmem:[%s20496_s10 + $0x10] sm:$0xf] }
0x2b42   :  { %17445 = vrsqrt.f32 %v7347_v50  ;;  %v7382_v50 = vrot.slane %v14630_v53, %v18179_v18 }
0x2b48   :  { %v17444_v54 = vpop.eup %17443 }
0x2b49   :  { %v7350_v55 = vmul.f32 %v17444_v54, %v7334_v13  ;;  %v7672_v13 = vand.u32 %v14718_v24, %v18022_v61  ;;  %v7390_v54 = vrot.slane %v14630_v53, %v18181_v19 }
0x2b4b   :  { %v7358_v60 = vmul.f32 %v14622_v34, %v7350_v55  ;;  %v7386_v55 = vrot.slane %v14630_v53, %v18186_v42 }
0x2b4c   :  { %v17446_v57 = vpop.eup %17445 }
0x2b4d   :  { %v7351_v5 = vmul.f32 %v17446_v57, %v7335_v48  ;;  %v18988_v16 = vadd.f32 %v14623_v7, %v7358_v60  ;;  %v7666_v48 = vand.u32 %v14716_v17, %v18022_v61 }
0x2b4f   :  { %v7359_v9 = vmul.f32 %v14622_v34, %v7351_v5  ;;  %v7394_v34 = vrot.slane %v14630_v53, %v18188_v23 }
0x2b51   :  { %v18990_v1 = vadd.f32 %v14623_v7, %v7359_v9 }
0x2b53   :  { %v18994_v27 = vpack.c.bf16 %v18990_v1, %v18988_v16 }
0x2b55   :  { %14639 = vmatmul.mubr.msk.bf16.vlgmr.msra.gmra.mrb[92].mxu1 %vm67_vm0, %v18994_v27  ;;  %14640 = vmatmul.mubr.msk.bf16.vlgmr.msra.gmra.mrb[92].mxu0 %vm67_vm0, %v18994_v27 }
0x2b56   :  { %7678 = vmatpush1.bf16.msra.mxu1 %v14712_v38  ;;  %7721 = vmatpush1.bf16.msra.mxu0 %v14714_v15  ;;  %v17070_v38 = vld [vmem:[%s20497_s11 + $0x5b0] sm:$0xff]   ;;  %v17071_v15 = vld [vmem:[%s20497_s11 + $0x578] sm:$0xff]  }
0x2b57   :  { %7679 = vmatprep.subr.bf16.mxu1 %v7669_v25  ;;  %7722 = vmatprep.subr.bf16.mxu0 %v7675_v28 }
0x2b58   :  { %7709 = vmatprep.mubr.bf16.mxu1 %v17570_v8  ;;  %7752 = vmatprep.mubr.bf16.mxu0 %v17570_v8 }
0x2b5a   :  { %7680 = vmatpush1.bf16.msra.mxu1 %v7666_v48  ;;  %7723 = vmatpush1.bf16.msra.mxu0 %v7672_v13 }
0x2b5b   :  { %15914 = vmatprep.subr.bf16.mxu1 %v17043_v44  ;;  %15936 = vmatprep.subr.bf16.mxu0 %v17044_v21  ;;  %v7618_v44 = vrot.slane %v14711_v58, %v18179_v18  ;;  %v7626_v21 = vrot.slane %v14711_v58, %v18181_v19 }
0x2b5d   :  { %14720 = vmatmul.mubr.msk.bf16.vlgmr.msra.gmra.mrb[96].mxu1 %vm67_vm0, %v18994_v27  ;;  %14721 = vmatmul.mubr.msk.bf16.vlgmr.msra.gmra.mrb[96].mxu0 %vm67_vm0, %v18994_v27 }
0x2b5e   :  { %15915 = vmatpush3.bf16.msra.mxu1 %v17045_v29  ;;  %15937 = vmatpush3.bf16.msra.mxu0 %v17046_v47 }
0x2b5f   :  { %15916 = vmatprep.subr.bf16.mxu1 %v17047_v11  ;;  %15938 = vmatprep.subr.bf16.mxu0 %v17048_v20  ;;  %v7622_v11 = vrot.slane %v14711_v58, %v18186_v42  ;;  %v7630_v20 = vrot.slane %v14711_v58, %v18188_v23 }
0x2b62   :  { %15917 = vmatpush3.bf16.msra.mxu1 %v17049_v56  ;;  %15939 = vmatpush3.bf16.msra.mxu0 %v17050_v30 }
0x2b63   :  { %15918 = vmatprep.subr.bf16.mxu1 %v17051_v59  ;;  %15940 = vmatprep.subr.bf16.mxu0 %v17052_v52 }
0x2b66   :  { %15919 = vmatpush3.bf16.msra.mxu1 %v17053_v62  ;;  %15941 = vmatpush3.bf16.msra.mxu0 %v17054_v26 }
0x2b67   :  { %15920 = vmatprep.subr.bf16.mxu1 %v17055_v31  ;;  %15942 = vmatprep.subr.bf16.mxu0 %v17056_v32 }
0x2b6a   :  { %15921 = vmatpush3.bf16.msra.mxu1 %v17057_v33  ;;  %15943 = vmatpush3.bf16.msra.mxu0 %v17058_v37 }
0x2b6b   :  { %15922 = vmatprep.subr.bf16.mxu1 %v17059_v39  ;;  %15944 = vmatprep.subr.bf16.mxu0 %v17060_v40 }
0x2b6e   :  { %15923 = vmatpush3.bf16.msra.mxu1 %v17061_v41  ;;  %15945 = vmatpush3.bf16.msra.mxu0 %v17062_v36 }
0x2b6f   :  { %15924 = vmatprep.subr.bf16.mxu1 %v17063_v63  ;;  %15946 = vmatprep.subr.bf16.mxu0 %v17064_v10 }
0x2b72   :  { %15925 = vmatpush3.bf16.msra.mxu1 %v17065_v35  ;;  %15947 = vmatpush3.bf16.msra.mxu0 %v17066_v2 }
0x2b73   :  { %15926 = vmatprep.subr.bf16.mxu1 %v17067_v3  ;;  %15948 = vmatprep.subr.bf16.mxu0 %v17068_v4 }
0x2b76   :  { %15927 = vmatpush3.bf16.msra.mxu1 %v17069_v43  ;;  %15949 = vmatpush3.bf16.msra.mxu0 %v17070_v38 }
0x2b77   :  { %15928 = vmatprep.subr.bf16.mxu1 %v17071_v15  ;;  %15950 = vmatprep.subr.bf16.mxu0 %v17072_v45 }
0x2b7a   :  { %15929 = vmatpush3.bf16.msra.mxu1 %v17073_v46  ;;  %15951 = vmatpush3.bf16.msra.mxu0 %v17074_v49 }
0x2b7b   :  { %15958 = vmatprep.subr.bf16.mxu1 %v17075_v22  ;;  %15980 = vmatprep.subr.bf16.mxu0 %v17076_v51 }
0x2c28   :  { %v7478_v57 = vpop.f32.mrb[92].mxu1  ;;  %v7521_v0 = vpop.f32.mrb[92].mxu0 }
0x2c29   :  { %v7479_v60 = vadd.f32 %v7478_v57, %v7382_v50  ;;  %v7522_v5 = vadd.f32 %v7521_v0, %v7390_v54  ;;  %v7480_v7 = vpop.f32.mrb[93].mxu1  ;;  %v7523_v9 = vpop.f32.mrb[93].mxu0 }
0x2c2a   :  { %v7481_v12 = vadd.f32 %v7480_v7, %v7386_v55  ;;  %v7524_v14 = vadd.f32 %v7523_v9, %v7394_v34  ;;  %v7482_v17 = vpop.f32.mrb[94].mxu1  ;;  %v7525_v24 = vpop.f32.mrb[94].mxu0 }
0x2c2b   :  { %v7483_v25 = vadd.f32 %v7482_v17, %v7382_v50  ;;  %v7526_v28 = vadd.f32 %v7525_v24, %v7390_v54  ;;  %v7484_v48 = vpop.f32.mrb[95].mxu1  ;;  %v7527_v13 = vpop.f32.mrb[95].mxu0  ;;  %v7530_v56 = vmax.f32 %v7479_v60, 0.0  ;;  %v7532_v30 = vmax.f32 %v7522_v5, 0.0  ;;  %v17079_v17 = vld [vmem:[%s20497_s11 + $0x448] sm:$0xff]  }
0x2c2c   :  { %v7485_v29 = vadd.f32 %v7484_v48, %v7386_v55  ;;  %v7528_v47 = vadd.f32 %v7527_v13, %v7394_v34  ;;  %v7531_v62 = vmax.f32 %v7481_v12, 0.0  ;;  %v7533_v26 = vmax.f32 %v7524_v14, 0.0  ;;  %v17077_v12 = vld [vmem:[%s20497_s11 + $0x400] sm:$0xff]   ;;  %v17080_v24 = vld [vmem:[%s20497_s11 + $0x4c8] sm:$0xff]   ;;  %v17083_v48 = vld [vmem:[%s20497_s11 + $0x450] sm:$0xff]  }
0x2c2d   :  { %v7534_v59 = vmax.f32 %v7483_v25, 0.0  ;;  %v7536_v52 = vmax.f32 %v7526_v28, 0.0  ;;  %v17078_v14 = vld [vmem:[%s20497_s11 + $0x480] sm:$0xff]   ;;  %v17081_v25 = vld [vmem:[%s20497_s11 + $0x408] sm:$0xff]   ;;  %v17084_v13 = vld [vmem:[%s20497_s11 + $0x4d0] sm:$0xff]  }
0x2c2e   :  { %v7535_v31 = vmax.f32 %v7485_v29, 0.0  ;;  %v7537_v32 = vmax.f32 %v7528_v47, 0.0  ;;  %v17082_v28 = vld [vmem:[%s20497_s11 + $0x488] sm:$0xff]   ;;  %v17087_v29 = vld [vmem:[%s20497_s11 + $0x458] sm:$0xff]  }
0x2c2f   :  { %v19126_v33 = vpack.c.bf16 %v7534_v59, %v7530_v56  ;;  %v19128_v37 = vpack.c.bf16 %v7536_v52, %v7532_v30  ;;  %v17088_v47 = vld [vmem:[%s20497_s11 + $0x4d8] sm:$0xff]   ;;  %v17091_v56 = vld [vmem:[%s20497_s11 + $0x460] sm:$0xff]  }
0x2c30   :  { %v7539_v39 = vpack.c.bf16 %v7535_v31, %v7531_v62  ;;  %v7541_v40 = vpack.c.bf16 %v7537_v32, %v7533_v26  ;;  %v7711_v41 = vpop.f32.mrb[96].mxu1  ;;  %v7754_v36 = vpop.f32.mrb[96].mxu0  ;;  %v17092_v30 = vld [vmem:[%s20497_s11 + $0x4e0] sm:$0xff]   ;;  %v17095_v62 = vld [vmem:[%s20497_s11 + $0x468] sm:$0xff]  }
0x2c31   :  { %v7712_v63 = vadd.f32 %v7711_v41, %v7618_v44  ;;  %v7755_v10 = vadd.f32 %v7754_v36, %v7626_v21  ;;  %v7713_v35 = vpop.f32.mrb[97].mxu1  ;;  %v7756_v2 = vpop.f32.mrb[97].mxu0  ;;  %v17093_v59 = vld [vmem:[%s20497_s11 + $0x420] sm:$0xff]   ;;  %v17096_v26 = vld [vmem:[%s20497_s11 + $0x4e8] sm:$0xff]   ;;  %v17101_v41 = vld [vmem:[%s20497_s11 + $0x430] sm:$0xff]  }
0x2c32   :  { %v7714_v3 = vadd.f32 %v7713_v35, %v7622_v11  ;;  %v7757_v4 = vadd.f32 %v7756_v2, %v7630_v20  ;;  %v7715_v43 = vpop.f32.mrb[98].mxu1  ;;  %v7758_v38 = vpop.f32.mrb[98].mxu0  ;;  %v17094_v52 = vld [vmem:[%s20497_s11 + $0x4a0] sm:$0xff]   ;;  %v17097_v31 = vld [vmem:[%s20497_s11 + $0x428] sm:$0xff]   ;;  %v17102_v36 = vld [vmem:[%s20497_s11 + $0x4b0] sm:$0xff]  }
0x2c33   :  { %v7716_v15 = vadd.f32 %v7715_v43, %v7618_v44  ;;  %v7759_v45 = vadd.f32 %v7758_v38, %v7626_v21  ;;  %v7717_v46 = vpop.f32.mrb[99].mxu1  ;;  %v7760_v49 = vpop.f32.mrb[99].mxu0  ;;  %v7763_v53 = vmax.f32 %v7712_v63, 0.0  ;;  %v7765_v50 = vmax.f32 %v7755_v10, 0.0  ;;  %v17085_v44 = vld [vmem:[%s20497_s11 + $0x410] sm:$0xff]   ;;  %v17098_v32 = vld [vmem:[%s20497_s11 + $0x4a8] sm:$0xff]  }
0x2c34   :  { %v7718_v22 = vadd.f32 %v7717_v46, %v7622_v11  ;;  %v7761_v51 = vadd.f32 %v7760_v49, %v7630_v20  ;;  %v7764_v34 = vmax.f32 %v7714_v3, 0.0  ;;  %v7766_v57 = vmax.f32 %v7757_v4, 0.0  ;;  %v17086_v21 = vld [vmem:[%s20497_s11 + $0x490] sm:$0xff]   ;;  %v17089_v11 = vld [vmem:[%s20497_s11 + $0x418] sm:$0xff]   ;;  %v14850_v35 = vld [vmem:[%s20495_s9 + $0xe0] sm:$0xff] }
0x2c35   :  { %v7767_v54 = vmax.f32 %v7716_v15, 0.0  ;;  %v7769_v55 = vmax.f32 %v7759_v45, 0.0  ;;  %v17090_v20 = vld [vmem:[%s20497_s11 + $0x498] sm:$0xff]   ;;  %v14852_v2 = vld [vmem:[%s20495_s9 + $0x120] sm:$0xff]  ;;  %v14851_v3 = vld [vmem:[%s20495_s9 + $0xe8] sm:$0xff] }
0x2c36   :  { %v7768_v0 = vmax.f32 %v7718_v22, 0.0  ;;  %v7770_v58 = vmax.f32 %v7761_v51, 0.0  ;;  %v17103_v63 = vld [vmem:[%s20497_s11 + $0x478] sm:$0xff]   ;;  %v14853_v4 = vld [vmem:[%s20495_s9 + $0x128] sm:$0xff]  ;;  %v14854_v43 = vld [vmem:[%s20495_s9 + $0x160] sm:$0x77]  ;;  %v14858_v46 = vcombine.high %v14850_v35, %v14852_v2 }
0x2c37   :  { %v7771_v60 = vpack.c.bf16 %v7767_v54, %v7763_v53  ;;  %v7773_v5 = vpack.c.bf16 %v7769_v55, %v7765_v50  ;;  %v17104_v10 = vld [vmem:[%s20497_s11 + $0x4f8] sm:$0xff]   ;;  %v14855_v38 = vld [vmem:[%s20495_s9 + $0x168] sm:$0x77]  ;;  %v14860_v49 = vcombine.high %v14851_v3, %v14853_v4  ;;  %v14862_v22 = vcombine.high %v14854_v43, %v14854_v43 }
0x2c38   :  { %v7772_v7 = vpack.c.bf16 %v7768_v0, %v7764_v34  ;;  %v7774_v9 = vpack.c.bf16 %v7770_v58, %v7766_v57  ;;  %v17105_v15 = vld [vmem:[%s20497_s11 + $0x438] sm:$0xff]   ;;  %v14864_v51 = vcombine.high %v14855_v38, %v14855_v38  ;;  %v14857_v53 = vcombine.low %v14850_v35, %v14852_v2 }
0x2c39   :  { %v17106_v45 = vld [vmem:[%s20497_s11 + $0x4b8] sm:$0xff]   ;;  %v14859_v50 = vcombine.low %v14851_v3, %v14853_v4  ;;  %v14861_v54 = vcombine.low %v14854_v43, %v14854_v43  ;;  %v14863_v55 = vcombine.low %v14855_v38, %v14855_v38  ;;  %v8449_v34 = vand.u32 %v14862_v22, %v18022_v61 }
0x2c3a   :  { %8063 = vmatprep.mubr.bf16.mxu1 %v7772_v7  ;;  %8104 = vmatprep.mubr.bf16.mxu0 %v7774_v9  ;;  %v8455_v57 = vand.u32 %v14864_v51, %v18022_v61  ;;  %v17115_v7 = vld [vmem:[%s20497_s11 + $0x648] sm:$0xff]   ;;  %v19359_v35 = vld [vmem:[%s20495_s9 + $0xf8] sm:$0xff] }
0x2c3b   :  { %8064 = vmatmul.mubr.bf16.vlgmr.msra.gmra.mrb[100].mxu1 %v7771_v60  ;;  %8105 = vmatmul.mubr.bf16.vlgmr.msra.gmra.mrb[100].mxu0 %v7773_v5  ;;  %v8446_v0 = vand.u32 %v14861_v54, %v18022_v61  ;;  %v8452_v58 = vand.u32 %v14863_v55, %v18022_v61  ;;  %v17113_v60 = vld [vmem:[%s20497_s11 + $0x600] sm:$0xff]   ;;  %v17116_v9 = vld [vmem:[%s20497_s11 + $0x6c8] sm:$0xff]   ;;  %v19366_v3 = vld [vmem:[%s20495_s9 + $0x138] sm:$0xff] }
0x2c3c   :  { %15959 = vmatpush3.bf16.msra.mxu1 %v17077_v12  ;;  %15981 = vmatpush3.bf16.msra.mxu0 %v17078_v14  ;;  %v17114_v5 = vld [vmem:[%s20497_s11 + $0x680] sm:$0xff]   ;;  %v17117_v12 = vld [vmem:[%s20497_s11 + $0x608] sm:$0xff]   ;;  %v14972_v43 = vcombine.low %v19359_v35, %v19366_v3  ;;  %v14973_v38 = vcombine.high %v19359_v35, %v19366_v3 }
0x2c3d   :  { %8337 = vmatprep.mubr.bf16.mxu1 %v7539_v39  ;;  %8378 = vmatprep.mubr.bf16.mxu0 %v7541_v40  ;;  %v17099_v39 = vld [vmem:[%s20497_s11 + $0x470] sm:$0xff]   ;;  %v17118_v14 = vld [vmem:[%s20497_s11 + $0x688] sm:$0xff]  }
0x2c3e   :  { %15960 = vmatprep.subr.bf16.mxu1 %v17079_v17  ;;  %15982 = vmatprep.subr.bf16.mxu0 %v17080_v24  ;;  %v17100_v40 = vld [vmem:[%s20497_s11 + $0x4f0] sm:$0xff]   ;;  %v17151_v35 = vld [vmem:[%s20497_s11 + $0x748] sm:$0xff]  }
0x2c3f   :  { %v17119_v17 = vld [vmem:[%s20497_s11 + $0x650] sm:$0xff]   ;;  %v17152_v3 = vld [vmem:[%s20497_s11 + $0x7c8] sm:$0xff]  }
0x2c40   :  { %15961 = vmatpush3.bf16.msra.mxu1 %v17081_v25  ;;  %15983 = vmatpush3.bf16.msra.mxu0 %v17082_v28  ;;  %v17120_v24 = vld [vmem:[%s20497_s11 + $0x6d0] sm:$0xff]  }
0x2c41   :  { %15962 = vmatprep.subr.bf16.mxu1 %v17083_v48  ;;  %15984 = vmatprep.subr.bf16.mxu0 %v17084_v13  ;;  %v17121_v25 = vld [vmem:[%s20497_s11 + $0x610] sm:$0xff]   ;;  %v17123_v48 = vld [vmem:[%s20497_s11 + $0x658] sm:$0xff]  }
0x2c42   :  { %v17122_v28 = vld [vmem:[%s20497_s11 + $0x690] sm:$0xff]   ;;  %v17124_v13 = vld [vmem:[%s20497_s11 + $0x6d8] sm:$0xff]  }
0x2c44   :  { %15963 = vmatpush3.bf16.msra.mxu1 %v17085_v44  ;;  %15985 = vmatpush3.bf16.msra.mxu0 %v17086_v21  ;;  %v17125_v44 = vld [vmem:[%s20497_s11 + $0x618] sm:$0xff]  }
0x2c45   :  { %15964 = vmatprep.subr.bf16.mxu1 %v17087_v29  ;;  %15986 = vmatprep.subr.bf16.mxu0 %v17088_v47  ;;  %v17126_v21 = vld [vmem:[%s20497_s11 + $0x698] sm:$0xff]   ;;  %v17127_v29 = vld [vmem:[%s20497_s11 + $0x660] sm:$0xff]  }
0x2c46   :  { %v17128_v47 = vld [vmem:[%s20497_s11 + $0x6e0] sm:$0xff]  }
0x2c48   :  { %15965 = vmatpush3.bf16.msra.mxu1 %v17089_v11  ;;  %15987 = vmatpush3.bf16.msra.mxu0 %v17090_v20  ;;  %v17129_v11 = vld [vmem:[%s20497_s11 + $0x620] sm:$0xff]  }
0x2c49   :  { %15966 = vmatprep.subr.bf16.mxu1 %v17091_v56  ;;  %15988 = vmatprep.subr.bf16.mxu0 %v17092_v30  ;;  %v17130_v20 = vld [vmem:[%s20497_s11 + $0x6a0] sm:$0xff]   ;;  %v17131_v56 = vld [vmem:[%s20497_s11 + $0x668] sm:$0xff]  }
0x2c4a   :  { %v17132_v30 = vld [vmem:[%s20497_s11 + $0x6e8] sm:$0xff]  }
0x2c4c   :  { %15967 = vmatpush3.bf16.msra.mxu1 %v17093_v59  ;;  %15989 = vmatpush3.bf16.msra.mxu0 %v17094_v52  ;;  %v17133_v59 = vld [vmem:[%s20497_s11 + $0x628] sm:$0xff]  }
0x2c4d   :  { %15968 = vmatprep.subr.bf16.mxu1 %v17095_v62  ;;  %15990 = vmatprep.subr.bf16.mxu0 %v17096_v26  ;;  %v17134_v52 = vld [vmem:[%s20497_s11 + $0x6a8] sm:$0xff]   ;;  %v17135_v62 = vld [vmem:[%s20497_s11 + $0x670] sm:$0xff]  }
0x2c4e   :  { %v17136_v26 = vld [vmem:[%s20497_s11 + $0x6f0] sm:$0xff]  }
0x2c50   :  { %15969 = vmatpush3.bf16.msra.mxu1 %v17097_v31  ;;  %15991 = vmatpush3.bf16.msra.mxu0 %v17098_v32  ;;  %v17137_v31 = vld [vmem:[%s20497_s11 + $0x630] sm:$0xff]  }
0x2c51   :  { %15970 = vmatprep.subr.bf16.mxu1 %v17099_v39  ;;  %15992 = vmatprep.subr.bf16.mxu0 %v17100_v40  ;;  %v17138_v32 = vld [vmem:[%s20497_s11 + $0x6b0] sm:$0xff]   ;;  %v17139_v39 = vld [vmem:[%s20497_s11 + $0x678] sm:$0xff]  }
0x2c52   :  { %v17140_v40 = vld [vmem:[%s20497_s11 + $0x6f8] sm:$0xff]  }
0x2c54   :  { %15971 = vmatpush3.bf16.msra.mxu1 %v17101_v41  ;;  %15993 = vmatpush3.bf16.msra.mxu0 %v17102_v36  ;;  %v17141_v41 = vld [vmem:[%s20497_s11 + $0x638] sm:$0xff]  }
0x2c55   :  { %15972 = vmatprep.subr.bf16.mxu1 %v17103_v63  ;;  %15994 = vmatprep.subr.bf16.mxu0 %v17104_v10  ;;  %v17142_v36 = vld [vmem:[%s20497_s11 + $0x6b8] sm:$0xff]   ;;  %v19349_v63 = vld [vmem:[%s20495_s9 + $0xf0] sm:$0xff] }
0x2c56   :  { %v19354_v10 = vld [vmem:[%s20495_s9 + $0x130] sm:$0xff] }
0x2c57   :  { %v14971_v2 = vcombine.high %v19349_v63, %v19354_v10  ;;  %v14970_v4 = vcombine.low %v19349_v63, %v19354_v10  ;;  %v17149_v63 = vld [vmem:[%s20497_s11 + $0x700] sm:$0xff]  }
0x2c58   :  { %15973 = vmatpush3.bf16.msra.mxu1 %v17105_v15  ;;  %15995 = vmatpush3.bf16.msra.mxu0 %v17106_v45  ;;  %v17150_v10 = vld [vmem:[%s20497_s11 + $0x780] sm:$0xff]  }
0x2c59   :  { %8457 = vmatprep.subr.bf16.mxu1 %v14858_v46  ;;  %8500 = vmatprep.subr.bf16.mxu0 %v14860_v49 }
0x2c5b   :  { %8338 = vmatmul.mubr.bf16.vlgmr.msra.gmra.mrb[104].mxu1 %v19126_v33  ;;  %8379 = vmatmul.mubr.bf16.vlgmr.msra.gmra.mrb[104].mxu0 %v19128_v37  ;;  %v17111_v33 = vld [vmem:[%s20497_s11 + $0x640] sm:$0xff]  }
0x2c5c   :  { %8458 = vmatpush1.bf16.msra.mxu1 %v14857_v53  ;;  %8501 = vmatpush1.bf16.msra.mxu0 %v14859_v50  ;;  %v17112_v37 = vld [vmem:[%s20497_s11 + $0x6c0] sm:$0xff]  }
0x2c5d   :  { %8459 = vmatprep.subr.bf16.mxu1 %v8449_v34  ;;  %8502 = vmatprep.subr.bf16.mxu0 %v8455_v57 }
0x2c5e   :  { %8489 = vmatprep.mubr.bf16.mxu1 %v17570_v8  ;;  %8532 = vmatprep.mubr.bf16.mxu0 %v17570_v8 }
0x2c60   :  { %8460 = vmatpush1.bf16.msra.mxu1 %v8446_v0  ;;  %8503 = vmatpush1.bf16.msra.mxu0 %v8452_v58 }
0x2c61   :  { %16002 = vmatprep.subr.bf16.mxu1 %v17111_v33  ;;  %16024 = vmatprep.subr.bf16.mxu0 %v17112_v37 }
0x2c63   :  { %14865 = vmatmul.mubr.msk.bf16.vlgmr.msra.gmra.mrb[108].mxu1 %vm67_vm0, %v18994_v27  ;;  %14866 = vmatmul.mubr.msk.bf16.vlgmr.msra.gmra.mrb[108].mxu0 %vm67_vm0, %v18994_v27 }
0x2c64   :  { %16003 = vmatpush3.bf16.msra.mxu1 %v17113_v60  ;;  %16025 = vmatpush3.bf16.msra.mxu0 %v17114_v5 }
0x2c65   :  { %16004 = vmatprep.subr.bf16.mxu1 %v17115_v7  ;;  %16026 = vmatprep.subr.bf16.mxu0 %v17116_v9 }
0x2c68   :  { %16005 = vmatpush3.bf16.msra.mxu1 %v17117_v12  ;;  %16027 = vmatpush3.bf16.msra.mxu0 %v17118_v14 }
0x2c69   :  { %16006 = vmatprep.subr.bf16.mxu1 %v17119_v17  ;;  %16028 = vmatprep.subr.bf16.mxu0 %v17120_v24  ;;  %v14856_v17 = vld [vmem:[%s20496_s10 + $0x18] sm:$0xf] }
0x2c6c   :  { %16007 = vmatpush3.bf16.msra.mxu1 %v17121_v25  ;;  %16029 = vmatpush3.bf16.msra.mxu0 %v17122_v28 }
0x2c6d   :  { %16008 = vmatprep.subr.bf16.mxu1 %v17123_v48  ;;  %16030 = vmatprep.subr.bf16.mxu0 %v17124_v13 }
0x2c70   :  { %16009 = vmatpush3.bf16.msra.mxu1 %v17125_v44  ;;  %16031 = vmatpush3.bf16.msra.mxu0 %v17126_v21  ;;  %v8398_v44 = vrot.slane %v14856_v17, %v18179_v18  ;;  %v8406_v21 = vrot.slane %v14856_v17, %v18181_v19 }
0x2c71   :  { %16010 = vmatprep.subr.bf16.mxu1 %v17127_v29  ;;  %16032 = vmatprep.subr.bf16.mxu0 %v17128_v47 }
0x2c74   :  { %16011 = vmatpush3.bf16.msra.mxu1 %v17129_v11  ;;  %16033 = vmatpush3.bf16.msra.mxu0 %v17130_v20  ;;  %v8402_v11 = vrot.slane %v14856_v17, %v18186_v42  ;;  %v8410_v20 = vrot.slane %v14856_v17, %v18188_v23 }
0x2c75   :  { %16012 = vmatprep.subr.bf16.mxu1 %v17131_v56  ;;  %16034 = vmatprep.subr.bf16.mxu0 %v17132_v30 }
0x2c78   :  { %16013 = vmatpush3.bf16.msra.mxu1 %v17133_v59  ;;  %16035 = vmatpush3.bf16.msra.mxu0 %v17134_v52 }
0x2c79   :  { %16014 = vmatprep.subr.bf16.mxu1 %v17135_v62  ;;  %16036 = vmatprep.subr.bf16.mxu0 %v17136_v26 }
0x2c7c   :  { %16015 = vmatpush3.bf16.msra.mxu1 %v17137_v31  ;;  %16037 = vmatpush3.bf16.msra.mxu0 %v17138_v32  ;;  %v14967_v32 = vld [vmem:[%s20495_s9 + $0x170] sm:$0x77] }
0x2c7d   :  { %16016 = vmatprep.subr.bf16.mxu1 %v17139_v39  ;;  %16038 = vmatprep.subr.bf16.mxu0 %v17140_v40  ;;  %v14968_v39 = vld [vmem:[%s20495_s9 + $0x178] sm:$0x77] }
0x2c80   :  { %16017 = vmatpush3.bf16.msra.mxu1 %v17141_v41  ;;  %16039 = vmatpush3.bf16.msra.mxu0 %v17142_v36 }
0x2c81   :  { %8965 = vmatprep.subr.bf16.mxu1 %v14971_v2  ;;  %9008 = vmatprep.subr.bf16.mxu0 %v14973_v38 }
0x2d0e   :  { %v15930_v15 = vpop.f32.mrb[100].mxu1  ;;  %v15952_v45 = vpop.f32.mrb[100].mxu0 }
0x2d0f   :  { %v15931_v46 = vpop.f32.mrb[101].mxu1  ;;  %v15953_v49 = vpop.f32.mrb[101].mxu0 }
0x2d10   :  { %v15932_v22 = vadd.f32 %v15931_v46, %v15930_v15  ;;  %v15954_v51 = vadd.f32 %v15953_v49, %v15952_v45  ;;  %v15933_v53 = vpop.f32.mrb[102].mxu1  ;;  %v15955_v50 = vpop.f32.mrb[102].mxu0 }
0x2d11   :  { %v15934_v54 = vpop.f32.mrb[103].mxu1  ;;  %v15956_v55 = vpop.f32.mrb[103].mxu0 }
0x2d12   :  { %v8107_v34 = vadd.f32 %v15954_v51, %v15932_v22  ;;  %v15935_v57 = vadd.f32 %v15934_v54, %v15933_v53  ;;  %v15957_v0 = vadd.f32 %v15956_v55, %v15955_v50  ;;  %v14975_v51 = vcombine.high %v14967_v32, %v14967_v32 }
0x2d13   :  { %v14977_v53 = vcombine.high %v14968_v39, %v14968_v39 }
0x2d14   :  { %v8110_v58 = vadd.f32 %v15957_v0, %v15935_v57 }
0x2d15   :  { %v8963_v17 = vand.u32 %v14977_v53, %v18022_v61 }
0x2d2e   :  { %v15974_v33 = vpop.f32.mrb[104].mxu1  ;;  %v15996_v37 = vpop.f32.mrb[104].mxu0 }
0x2d2f   :  { %v15975_v60 = vpop.f32.mrb[105].mxu1  ;;  %v15997_v5 = vpop.f32.mrb[105].mxu0 }
0x2d30   :  { %v15976_v7 = vadd.f32 %v15975_v60, %v15974_v33  ;;  %v15998_v9 = vadd.f32 %v15997_v5, %v15996_v37  ;;  %v15977_v12 = vpop.f32.mrb[106].mxu1  ;;  %v15999_v14 = vpop.f32.mrb[106].mxu0 }
0x2d31   :  { %v15978_v24 = vpop.f32.mrb[107].mxu1  ;;  %v16000_v25 = vpop.f32.mrb[107].mxu0 }
0x2d32   :  { %v8340_v28 = vadd.f32 %v15976_v7, %v8107_v34  ;;  %v15979_v48 = vadd.f32 %v15978_v24, %v15977_v12  ;;  %v16001_v13 = vadd.f32 %v16000_v25, %v15999_v14  ;;  %v14976_v12 = vcombine.low %v14968_v39, %v14968_v39  ;;  %v17169_v39 = vld [vmem:[%s20497_s11 + $0x728] sm:$0xff]  }
0x2d33   :  { %v8957_v14 = vand.u32 %v14975_v51, %v18022_v61 }
0x2d34   :  { %v19379_v29 = vadd.f32 %v15998_v9, %v8340_v28  ;;  %v8343_v47 = vadd.f32 %v15979_v48, %v8110_v58  ;;  %v14974_v9 = vcombine.low %v14967_v32, %v14967_v32  ;;  %v8960_v25 = vand.u32 %v14976_v12, %v18022_v61  ;;  %v17147_v28 = vld [vmem:[%s20497_s11 + $0x740] sm:$0xff]   ;;  %v17168_v32 = vld [vmem:[%s20497_s11 + $0x7e8] sm:$0xff]  }
0x2d35   :  { %v17148_v48 = vld [vmem:[%s20497_s11 + $0x7c0] sm:$0xff]  }
0x2d36   :  { %v19383_v56 = vadd.f32 %v16001_v13, %v8343_v47  ;;  %v8491_v30 = vpop.f32.mrb[108].mxu1  ;;  %v8534_v59 = vpop.f32.mrb[108].mxu0  ;;  %v8954_v24 = vand.u32 %v14974_v9, %v18022_v61  ;;  %v17155_v13 = vld [vmem:[%s20497_s11 + $0x750] sm:$0xff]   ;;  %v17159_v47 = vld [vmem:[%s20497_s11 + $0x758] sm:$0xff]  }
0x2d37   :  { %v8492_v52 = vadd.f32 %v8491_v30, %v8398_v44  ;;  %v8535_v62 = vadd.f32 %v8534_v59, %v8406_v21  ;;  %v8493_v26 = vpop.f32.mrb[109].mxu1  ;;  %v8536_v31 = vpop.f32.mrb[109].mxu0  ;;  %v17162_v30 = vld [vmem:[%s20497_s11 + $0x798] sm:$0xff]   ;;  %v17163_v59 = vld [vmem:[%s20497_s11 + $0x760] sm:$0xff]  }
0x2d38   :  { %v8494_v40 = vadd.f32 %v8493_v26, %v8402_v11  ;;  %v8537_v41 = vadd.f32 %v8536_v31, %v8410_v20  ;;  %v8495_v36 = vpop.f32.mrb[110].mxu1  ;;  %v8538_v2 = vpop.f32.mrb[110].mxu0  ;;  %v17166_v26 = vld [vmem:[%s20497_s11 + $0x7a0] sm:$0xff]   ;;  %v17167_v31 = vld [vmem:[%s20497_s11 + $0x768] sm:$0xff]  }
0x2d39   :  { %v8496_v38 = vadd.f32 %v8495_v36, %v8398_v44  ;;  %v8539_v15 = vadd.f32 %v8538_v2, %v8406_v21  ;;  %v8497_v45 = vpop.f32.mrb[111].mxu1  ;;  %v8540_v46 = vpop.f32.mrb[111].mxu0  ;;  %v8543_v50 = vmax.f32 %v8492_v52, 0.0  ;;  %v8545_v54 = vmax.f32 %v8535_v62, 0.0  ;;  %v17157_v44 = vld [vmem:[%s20497_s11 + $0x710] sm:$0xff]   ;;  %v17164_v52 = vld [vmem:[%s20497_s11 + $0x7e0] sm:$0xff]  }
0x2d3a   :  { %v8498_v49 = vadd.f32 %v8497_v45, %v8402_v11  ;;  %v8541_v22 = vadd.f32 %v8540_v46, %v8410_v20  ;;  %v8544_v57 = vmax.f32 %v8494_v40, 0.0  ;;  %v8546_v0 = vmax.f32 %v8537_v41, 0.0  ;;  %v17158_v21 = vld [vmem:[%s20497_s11 + $0x790] sm:$0xff]   ;;  %v17160_v11 = vld [vmem:[%s20497_s11 + $0x7d8] sm:$0xff]   ;;  %v17165_v62 = vld [vmem:[%s20497_s11 + $0x720] sm:$0xff]  }
0x2d3b   :  { %v8547_v55 = vmax.f32 %v8496_v38, 0.0  ;;  %v8549_v34 = vmax.f32 %v8539_v15, 0.0  ;;  %v17161_v20 = vld [vmem:[%s20497_s11 + $0x718] sm:$0xff]   ;;  %v17170_v40 = vld [vmem:[%s20497_s11 + $0x7a8] sm:$0xff]   ;;  %v17171_v41 = vld [vmem:[%s20497_s11 + $0x770] sm:$0xff]  }
0x2d3c   :  { %v8548_v58 = vmax.f32 %v8498_v49, 0.0  ;;  %v8550_v33 = vmax.f32 %v8541_v22, 0.0  ;;  %v17172_v36 = vld [vmem:[%s20497_s11 + $0x7f0] sm:$0xff]   ;;  %v17175_v15 = vld [vmem:[%s20497_s11 + $0x778] sm:$0xff]  }
0x2d3d   :  { %v8551_v37 = vpack.c.bf16 %v8547_v55, %v8543_v50  ;;  %v8553_v60 = vpack.c.bf16 %v8549_v34, %v8545_v54  ;;  %v17173_v2 = vld [vmem:[%s20497_s11 + $0x730] sm:$0xff]   ;;  %v17176_v45 = vld [vmem:[%s20497_s11 + $0x7f8] sm:$0xff]  }
0x2d3e   :  { %v8552_v5 = vpack.c.bf16 %v8548_v58, %v8544_v57  ;;  %v8554_v7 = vpack.c.bf16 %v8550_v33, %v8546_v0  ;;  %v17174_v38 = vld [vmem:[%s20497_s11 + $0x7b0] sm:$0xff]   ;;  %v17177_v46 = vld [vmem:[%s20497_s11 + $0x738] sm:$0xff]  }
0x2d3f   :  { %v17178_v49 = vld [vmem:[%s20497_s11 + $0x7b8] sm:$0xff]  }
0x2d40   :  { %8843 = vmatprep.mubr.bf16.mxu1 %v8552_v5  ;;  %8884 = vmatprep.mubr.bf16.mxu0 %v8554_v7  ;;  %v14969_v0 = vld [vmem:[%s20496_s10 + $0x1c] sm:$0xf] }
0x2d41   :  { %8844 = vmatmul.mubr.bf16.vlgmr.msra.gmra.mrb[112].mxu1 %v8551_v37  ;;  %8885 = vmatmul.mubr.bf16.vlgmr.msra.gmra.mrb[112].mxu0 %v8553_v60  ;;  %v8906_v7 = vrot.slane %v14969_v0, %v18179_v18  ;;  %v8914_v9 = vrot.slane %v14969_v0, %v18181_v19 }
0x2d42   :  { %8966 = vmatpush1.bf16.msra.mxu1 %v14970_v4  ;;  %9009 = vmatpush1.bf16.msra.mxu0 %v14972_v43  ;;  %v17153_v4 = vld [vmem:[%s20497_s11 + $0x708] sm:$0xff]  }
0x2d43   :  { %8967 = vmatprep.subr.bf16.mxu1 %v8957_v14  ;;  %9010 = vmatprep.subr.bf16.mxu0 %v8963_v17  ;;  %v17154_v43 = vld [vmem:[%s20497_s11 + $0x788] sm:$0xff]   ;;  %v8910_v17 = vrot.slane %v14969_v0, %v18186_v42 }
0x2d44   :  { %8997 = vmatprep.mubr.bf16.mxu1 %v17570_v8  ;;  %9040 = vmatprep.mubr.bf16.mxu0 %v17570_v8 }
0x2d46   :  { %8968 = vmatpush1.bf16.msra.mxu1 %v8954_v24  ;;  %9011 = vmatpush1.bf16.msra.mxu0 %v8960_v25  ;;  %v8918_v24 = vrot.slane %v14969_v0, %v18188_v23 }
0x2d47   :  { %16046 = vmatprep.subr.bf16.mxu1 %v17147_v28  ;;  %16068 = vmatprep.subr.bf16.mxu0 %v17148_v48 }
0x2d49   :  { %14978 = vmatmul.mubr.msk.bf16.vlgmr.msra.gmra.mrb[116].mxu1 %vm67_vm0, %v18994_v27  ;;  %14979 = vmatmul.mubr.msk.bf16.vlgmr.msra.gmra.mrb[116].mxu0 %vm67_vm0, %v18994_v27  ;;  %v17156_v27 = vld [vmem:[%s20497_s11 + $0x7d0] sm:$0xff]  }
0x2d4a   :  { %16047 = vmatpush3.bf16.msra.mxu1 %v17149_v63  ;;  %16069 = vmatpush3.bf16.msra.mxu0 %v17150_v10 }
0x2d4b   :  { %16048 = vmatprep.subr.bf16.mxu1 %v17151_v35  ;;  %16070 = vmatprep.subr.bf16.mxu0 %v17152_v3 }
0x2d4e   :  { %16049 = vmatpush3.bf16.msra.mxu1 %v17153_v4  ;;  %16071 = vmatpush3.bf16.msra.mxu0 %v17154_v43 }
0x2d4f   :  { %16050 = vmatprep.subr.bf16.mxu1 %v17155_v13  ;;  %16072 = vmatprep.subr.bf16.mxu0 %v17156_v27 }
0x2d52   :  { %16051 = vmatpush3.bf16.msra.mxu1 %v17157_v44  ;;  %16073 = vmatpush3.bf16.msra.mxu0 %v17158_v21 }
0x2d53   :  { %16052 = vmatprep.subr.bf16.mxu1 %v17159_v47  ;;  %16074 = vmatprep.subr.bf16.mxu0 %v17160_v11 }
0x2d56   :  { %16053 = vmatpush3.bf16.msra.mxu1 %v17161_v20  ;;  %16075 = vmatpush3.bf16.msra.mxu0 %v17162_v30 }
0x2d57   :  { %16054 = vmatprep.subr.bf16.mxu1 %v17163_v59  ;;  %16076 = vmatprep.subr.bf16.mxu0 %v17164_v52 }
0x2d5a   :  { %16055 = vmatpush3.bf16.msra.mxu1 %v17165_v62  ;;  %16077 = vmatpush3.bf16.msra.mxu0 %v17166_v26 }
0x2d5b   :  { %16056 = vmatprep.subr.bf16.mxu1 %v17167_v31  ;;  %16078 = vmatprep.subr.bf16.mxu0 %v17168_v32 }
0x2d5e   :  { %16057 = vmatpush3.bf16.msra.mxu1 %v17169_v39  ;;  %16079 = vmatpush3.bf16.msra.mxu0 %v17170_v40 }
0x2d5f   :  { %16058 = vmatprep.subr.bf16.mxu1 %v17171_v41  ;;  %16080 = vmatprep.subr.bf16.mxu0 %v17172_v36 }
0x2d62   :  { %16059 = vmatpush3.bf16.msra.mxu1 %v17173_v2  ;;  %16081 = vmatpush3.bf16.msra.mxu0 %v17174_v38 }
0x2d63   :  { %16060 = vmatprep.subr.bf16.mxu1 %v17175_v15  ;;  %16082 = vmatprep.subr.bf16.mxu0 %v17176_v45 }
0x2d66   :  { %16061 = vmatpush3.bf16.msra.mxu1 %v17177_v46  ;;  %16083 = vmatpush3.bf16.msra.mxu0 %v17178_v49 }
0x2d67   :  { %16669 = vmatprep.subr.mxu0 %v17541_v6 }
0x2e14   :  { %v16018_v22 = vpop.f32.mrb[112].mxu1  ;;  %v16040_v51 = vpop.f32.mrb[112].mxu0 }
0x2e15   :  { %v16019_v53 = vpop.f32.mrb[113].mxu1  ;;  %v16041_v50 = vpop.f32.mrb[113].mxu0 }
0x2e16   :  { %v16020_v54 = vadd.f32 %v16019_v53, %v16018_v22  ;;  %v16042_v55 = vadd.f32 %v16041_v50, %v16040_v51  ;;  %v16021_v34 = vpop.f32.mrb[114].mxu1  ;;  %v16043_v57 = vpop.f32.mrb[114].mxu0 }
0x2e17   :  { %v16022_v58 = vpop.f32.mrb[115].mxu1  ;;  %v16044_v33 = vpop.f32.mrb[115].mxu0 }
0x2e18   :  { %v8887_v37 = vadd.f32 %v16042_v55, %v16020_v54  ;;  %v16023_v60 = vadd.f32 %v16022_v58, %v16021_v34  ;;  %v16045_v5 = vadd.f32 %v16044_v33, %v16043_v57  ;;  %v15077_v57 = vld [vmem:[%s20498_s12 + $0x1] ss:$0 sm:$0xff] }
0x2e1a   :  { %v8893_v12 = vadd.f32 %v8887_v37, %v19379_v29  ;;  %v8890_v14 = vadd.f32 %v16045_v5, %v16023_v60 }
0x2e1c   :  { %v8894_v25 = vadd.f32 %v8890_v14, %v19383_v56  ;;  %v8999_v28 = vpop.f32.mrb[116].mxu1  ;;  %v9042_v48 = vpop.f32.mrb[116].mxu0 }
0x2e1d   :  { %v9000_v63 = vadd.f32 %v8999_v28, %v8906_v7  ;;  %v9043_v10 = vadd.f32 %v9042_v48, %v8914_v9  ;;  %v9001_v35 = vpop.f32.mrb[117].mxu1  ;;  %v9044_v3 = vpop.f32.mrb[117].mxu0 }
0x2e1e   :  { %v9002_v4 = vadd.f32 %v9001_v35, %v8910_v17  ;;  %v9045_v43 = vadd.f32 %v9044_v3, %v8918_v24  ;;  %v9003_v13 = vpop.f32.mrb[118].mxu1  ;;  %v9046_v27 = vpop.f32.mrb[118].mxu0  ;;  %v15083_v3 = vld [vmem:[%s20487_s1 + $0x38] sm:$0xff] }
0x2e1f   :  { %v9004_v44 = vadd.f32 %v9003_v13, %v8906_v7  ;;  %v9047_v21 = vadd.f32 %v9046_v27, %v8914_v9  ;;  %v9005_v29 = vpop.f32.mrb[119].mxu1  ;;  %v9048_v47 = vpop.f32.mrb[119].mxu0  ;;  %v9051_v30 = vmax.f32 %v9000_v63, 0.0  ;;  %v9053_v59 = vmax.f32 %v9043_v10, 0.0 }
0x2e20   :  { %v9006_v11 = vadd.f32 %v9005_v29, %v8910_v17  ;;  %v9049_v20 = vadd.f32 %v9048_v47, %v8918_v24  ;;  %v9052_v62 = vmax.f32 %v9002_v4, 0.0  ;;  %v9054_v26 = vmax.f32 %v9045_v43, 0.0  ;;  %v15084_v43 = vld [vmem:[%s20487_s1 + $0x40] sm:$0x1f] }
0x2e21   :  { %v9055_v52 = vmax.f32 %v9004_v44, 0.0  ;;  %v9057_v56 = vmax.f32 %v9047_v21, 0.0 }
0x2e22   :  { %v9056_v31 = vmax.f32 %v9006_v11, 0.0  ;;  %v9058_v32 = vmax.f32 %v9049_v20, 0.0  ;;  %v15080_v20 = vld [vmem:[%s20493_s7 + $0x1] ss:$0 sm:$0xff] }
0x2e23   :  { %v9059_v39 = vpack.c.bf16 %v9055_v52, %v9051_v30  ;;  %v9061_v40 = vpack.c.bf16 %v9057_v56, %v9053_v59  ;;  %v15081_v52 = vld [vmem:[%s20494_s8 + $0x1] ss:$0 sm:$0xff] }
0x2e24   :  { %v9060_v41 = vpack.c.bf16 %v9056_v31, %v9052_v62  ;;  %v9062_v36 = vpack.c.bf16 %v9058_v32, %v9054_v26 }
0x2e26   :  { %9351 = vmatprep.mubr.bf16.mxu1 %v9060_v41  ;;  %9392 = vmatprep.mubr.bf16.mxu0 %v9062_v36 }
0x2e27   :  { %9352 = vmatmul.mubr.bf16.vlgmr.msra.gmra.mrb[120].mxu1 %v9059_v39  ;;  %9393 = vmatmul.mubr.bf16.vlgmr.msra.gmra.mrb[120].mxu0 %v9061_v40  ;;  %v15086_v39 = vld [vmem:[%s20488_s2 + $0x2] ss:$0 sm:$0xff]  ;;  %s20609_s2 = smov 86  }
0x2e28   :  { %16671 = vmatprep.mubr.msk.f32.mxu0 %vm17542_vm2, %v17541_v6 }
0x2efa   :  { %v16062_v2 = vpop.f32.mrb[120].mxu1  ;;  %v16084_v38 = vpop.f32.mrb[120].mxu0 }
0x2efb   :  { %v16063_v15 = vpop.f32.mrb[121].mxu1  ;;  %v16085_v45 = vpop.f32.mrb[121].mxu0 }
0x2efc   :  { %v16064_v46 = vadd.f32 %v16063_v15, %v16062_v2  ;;  %v16086_v49 = vadd.f32 %v16085_v45, %v16084_v38  ;;  %v16065_v22 = vpop.f32.mrb[122].mxu1  ;;  %v16087_v51 = vpop.f32.mrb[122].mxu0 }
0x2efd   :  { %v16066_v53 = vpop.f32.mrb[123].mxu1  ;;  %v16088_v50 = vpop.f32.mrb[123].mxu0 }
0x2efe   :  { %v9395_v54 = vadd.f32 %v16086_v49, %v16064_v46  ;;  %v16067_v55 = vadd.f32 %v16066_v53, %v16065_v22  ;;  %v16089_v34 = vadd.f32 %v16088_v50, %v16087_v51 }
0x2f00   :  { %v9401_v0 = vadd.f32 %v9395_v54, %v8893_v12  ;;  %v9398_v58 = vadd.f32 %v16089_v34, %v16067_v55 }
0x2f02   :  { %v9402_v33 = vadd.f32 %v9398_v58, %v8894_v25  ;;  %v9411_v37 = vadd.f32 %v15077_v57, %v9401_v0 }
0x2f04   :  { %v9413_v60 = vadd.f32 %v9411_v37, %v18988_v16  ;;  %v9412_v5 = vadd.f32 %v15077_v57, %v9402_v33 }
0x2f06   :  { %v9419_v7 = vsel %vm67_vm0, %v9413_v60, 0.0  ;;  %v9414_v9 = vadd.f32 %v9412_v5, %v18990_v1  ;;  %v15082_v1 = vld [vmem:[%s20487_s1 + $0x30] sm:$0xff]  ;;  %s20623_s1 = smov 18  }
0x2f07   :  { %9420 = vadd.xlane.f32.xlu1 %v9419_v7  ;;  %v16845_v4 = vpack.c.bf16 %v15083_v3, %v15082_v1 }
0x2f08   :  { %v9422_v14 = vsel %vm67_vm0, %v9414_v9, 0.0 }
0x2f09   :  { %9423 = vadd.xlane.f32.xlu0 %v9422_v14  ;;  %16846 = vmatprep.subr.bf16.mxu1 %v16845_v4 }
0x2f0a   :  { %16848 = vmatpush3.bf16.msra.mxu1 %v16845_v4 }
0x2f0b   :  { %16659 = vmatprep.subr.msk.mxu1 %vm74_vm1, %v15084_v43 }
0x2f0e   :  { %16660 = vmatpush3.msk.msra.mxu1 %vm74_vm1, %v15084_v43 }
0x2f0f   :  { %16664 = vmatprep.subr.mxu1 %v17541_v6 }
0x2f94   :  { %v9421_v17 = vpop.xlane.xlu1 %9420 }
0x2f95   :  { %v9425_v24 = vmul.f32 0.04761905, %v9421_v17 }
0x2f96   :  { %v9424_v28 = vpop.xlane.xlu0 %9423 }
0x2f97   :  { %v9427_v48 = vsub.f32 %v9413_v60, %v9425_v24  ;;  %v9426_v63 = vmul.f32 0.04761905, %v9424_v28 }
0x2f99   :  { %v9428_v12 = vsub.f32 %v9414_v9, %v9426_v63  ;;  %v9429_v10 = vmul.f32 %v9427_v48, %v9427_v48 }
0x2f9b   :  { %v9431_v25 = vsel %vm67_vm0, %v9429_v10, 0.0  ;;  %v9430_v35 = vmul.f32 %v9428_v12, %v9428_v12 }
0x2f9c   :  { %9432 = vadd.xlane.f32.xlu1 %v9431_v25 }
0x2f9d   :  { %v9434_v16 = vsel %vm67_vm0, %v9430_v35, 0.0 }
0x2f9e   :  { %9435 = vadd.xlane.f32.xlu0 %v9434_v16 }
0x3029   :  { %v9433_v13 = vpop.xlane.xlu1 %9432 }
0x302a   :  { %v9437_v27 = vmul.f32 0.04761905, %v9433_v13 }
0x302b   :  { %v9436_v44 = vpop.xlane.xlu0 %9435 }
0x302c   :  { %v9439_v21 = vadd.f32 1e-05, %v9437_v27  ;;  %v9438_v29 = vmul.f32 0.04761905, %v9436_v44 }
0x302e   :  { %17447 = vrsqrt.f32 %v9439_v21  ;;  %v9440_v47 = vadd.f32 1e-05, %v9438_v29 }
0x3030   :  { %17449 = vrsqrt.f32 %v9440_v47 }
0x3038   :  { %v17448_v11 = vpop.eup %17447 }
0x3039   :  { %v9443_v30 = vmul.f32 %v17448_v11, %v9427_v48 }
0x303a   :  { %v17450_v59 = vpop.eup %17449 }
0x303b   :  { %v9444_v56 = vmul.f32 %v17450_v59, %v9428_v12  ;;  %v9451_v62 = vmul.f32 %v15080_v20, %v9443_v30 }
0x303d   :  { %v9452_v26 = vmul.f32 %v15080_v20, %v9444_v56  ;;  %v19542_v31 = vadd.f32 %v15081_v52, %v9451_v62 }
0x303f   :  { %v19544_v32 = vadd.f32 %v15081_v52, %v9452_v26  ;;  %16661 = vmatprep.mubr.msk.f32.mxu1 %vm67_vm0, %v19542_v31 }
0x3041   :  { %16662 = vmatmul.mubr.msk.f32.vlgmr.msra.gmra.mrb[124].mxu1 %vm67_vm0, %v19544_v32 }
0x3042   :  { %16666 = vmatprep.mubr.msk.f32.mxu1 %vm17542_vm2, %v17541_v6 }
0x3114   :  { %v16663_v40 = vpop.f32.mrb[124].mxu1 }
0x3115   :  { %v19555_v41 = vadd.f32 %v16663_v40, %v15086_v39  ;;  %v9548_v36 = vpop.f32.mrb[125].mxu1 }
0x3116   :  { %v19557_v2 = vadd.f32 %v15086_v39, %v9548_v36 }
0x3117   :  { %9635 = vrot.lane.b32.xlu0 %v19555_v41, %s20608_s6 }
0x3118   :  { %9558 = vrot.lane.b32.xlu1 %v19557_v2, %s20608_s6 }
0x3189   :  { %v9636_v38 = vpop.permute.xlu0 %9635 }
0x318a   :  { %16670 = vmatpush3.xpose.msk.msra.mxu0 %vm156_vm3, %v9636_v38  ;;  %v9559_v15 = vpop.permute.xlu1 %9558 }
0x318b   :  { %16665 = vmatpush3.xpose.msk.msra.mxu1 %vm156_vm3, %v9559_v15  ;;  %16679 = vmatprep.subr.mxu0 %v17541_v6 }
0x318c   :  { %16674 = vmatprep.subr.mxu1 %v17541_v6 }
0x318d   :  { %16672 = vmatmul.mubr.msk.f32.vlgmr.msra.gmra.mrb[124].mxu0 %vm156_vm3, %v19555_v41 }
0x318e   :  { %16667 = vmatmul.mubr.msk.f32.vlgmr.msra.gmra.mrb[126].mxu1 %vm156_vm3, %v19557_v2  ;;  %16681 = vmatprep.mubr.msk.f32.mxu0 %vm17542_vm2, %v17541_v6 }
0x318f   :  { %16676 = vmatprep.mubr.msk.f32.mxu1 %vm17542_vm2, %v17541_v6 }
0x3260   :  { %v9707_v45 = vpop.f32.mrb[124].mxu0 }
0x3261   :  { %v9630_v46 = vpop.f32.mrb[126].mxu1  ;;  %v16673_v49 = vpop.f32.mrb[125].mxu0  ;;  %v9714_v22 = vsel %vm308_vm4, %v9707_v45, -inf }
0x3262   :  { %9715 = vmax.xlane.f32.xlu0 %v9714_v22  ;;  %v16668_v51 = vpop.f32.mrb[127].mxu1  ;;  %v9711_v53 = vsel %vm308_vm4, %v9630_v46, -inf }
0x3263   :  { %9712 = vmax.xlane.f32.xlu1 %v9711_v53 }
0x3274   :  { %9733 = vrot.lane.b32.xlu1 %v19557_v2, %s20609_s2 }
0x3278   :  { %9809 = vrot.lane.b32.xlu0 %v19555_v41, %s20609_s2  ;;  %9887 = vrot.lane.b32.xlu1 %v19557_v2, %s20610_s15 }
0x327c   :  { %9965 = vrot.lane.b32.xlu1 %v19555_v41, %s20610_s15 }
0x32ef   :  { %v9716_v50 = vpop.xlane.xlu0 %9715 }
0x32f0   :  { %v9718_v54 = vsub.f32 %v9707_v45, %v9716_v50  ;;  %v9713_v55 = vpop.xlane.xlu1 %9712 }
0x32f1   :  { %v9717_v34 = vsub.f32 %v9630_v46, %v9713_v55 }
0x32f2   :  { %v9721_v57 = vmul.f32 1.442695, %v9718_v54 }
0x32f3   :  { %v9719_v0 = vmul.f32 1.442695, %v9717_v34  ;;  %v9810_v58 = vpop.permute.xlu0 %9809 }
0x32f4   :  { %17451 = vpow2.f32 %v9721_v57  ;;  %16680 = vmatpush3.msra.mxu0 %v9810_v58  ;;  %v9734_v33 = vpop.permute.xlu1 %9733 }
0x32f5   :  { %17453 = vpow2.f32 %v9719_v0  ;;  %16675 = vmatpush3.msra.mxu1 %v9734_v33  ;;  %16689 = vmatprep.subr.mxu0 %v17541_v6 }
0x32f6   :  { %16684 = vmatprep.subr.mxu1 %v17541_v6 }
0x32f8   :  { %v9888_v9 = vpop.permute.xlu1 %9887 }
0x32fc   :  { %v9966_v14 = vpop.permute.xlu1 %9965 }
0x32fe   :  { %v17452_v37 = vpop.eup %17451 }
0x32ff   :  { %v17454_v60 = vpop.eup %17453  ;;  %v9726_v5 = vsel %vm308_vm4, %v17452_v37, 0.0 }
0x3300   :  { %9727 = vadd.xlane.f32.xlu0 %v9726_v5  ;;  %v9723_v7 = vsel %vm308_vm4, %v17454_v60, 0.0 }
0x3301   :  { %9724 = vadd.xlane.f32.xlu1 %v9723_v7 }
0x3312   :  { %9963 = vrot.lane.b32.xlu1 %v19555_v41, %s20585_s29 }
0x3316   :  { %9885 = vrot.lane.b32.xlu0 %v19557_v2, %s20585_s29  ;;  %s20611_s29 = smov 92  }
0x338d   :  { %v9728_v17 = vpop.xlane.xlu0 %9727 }
0x338e   :  { %17455 = vrcp.f32 %v9728_v17  ;;  %v9725_v24 = vpop.xlane.xlu1 %9724 }
0x338f   :  { %17457 = vrcp.f32 %v9725_v24 }
0x3391   :  { %v9886_v25 = vpop.permute.xlu0 %9885 }
0x3392   :  { %v9964_v10 = vpop.permute.xlu1 %9963 }
0x3398   :  { %v17456_v28 = vpop.eup %17455 }
0x3399   :  { %v17458_v48 = vpop.eup %17457  ;;  %v9732_v63 = vmul.f32 %v17456_v28, %v17452_v37 }
0x339a   :  { %v9731_v12 = vmul.f32 %v17458_v48, %v17454_v60 }
0x339b   :  { %16682 = vmatmul.mubr.msk.f32.vlgmr.msra.gmra.mrb[126].mxu0 %vm308_vm4, %v9732_v63 }
0x339c   :  { %16690 = vmatpush3.xpose.msk.msra.mxu0 %vm156_vm3, %v9966_v14  ;;  %16677 = vmatmul.mubr.msk.f32.vlgmr.msra.gmra.mrb[128].mxu1 %vm308_vm4, %v9731_v12 }
0x339d   :  { %16685 = vmatpush3.xpose.msk.msra.mxu1 %vm156_vm3, %v9888_v9  ;;  %16691 = vmatprep.mubr.msk.f32.mxu0 %vm17542_vm2, %v17541_v6 }
0x339e   :  { %16686 = vmatprep.mubr.msk.f32.mxu1 %vm17542_vm2, %v17541_v6  ;;  %16694 = vmatprep.subr.mxu1 %v17541_v6 }
0x339f   :  { %16692 = vmatmul.mubr.msk.f32.vlgmr.msra.gmra.mrb[128].mxu0 %vm156_vm3, %v9964_v10  ;;  %16699 = vmatprep.subr.mxu0 %v17541_v6 }
0x33a0   :  { %16687 = vmatmul.mubr.msk.f32.vlgmr.msra.gmra.mrb[130].mxu1 %vm156_vm3, %v9886_v25  ;;  %16701 = vmatprep.mubr.msk.f32.mxu0 %vm17542_vm2, %v17541_v6 }
0x33a1   :  { %16696 = vmatprep.mubr.msk.f32.mxu1 %vm17542_vm2, %v17541_v6 }
0x346e   :  { %v19609_v35 = vpop.f32.mrb[126].mxu0 }
0x346f   :  { %v19611_v16 = vpop.f32.mrb[128].mxu1  ;;  %v16683_v1 = vpop.f32.mrb[127].mxu0 }
0x3470   :  { %v16678_v3 = vpop.f32.mrb[129].mxu1 }
0x3472   :  { %v10037_v4 = vpop.f32.mrb[128].mxu0 }
0x3473   :  { %v9959_v43 = vpop.f32.mrb[130].mxu1  ;;  %v16693_v13 = vpop.f32.mrb[129].mxu0  ;;  %v10044_v27 = vsel %vm308_vm4, %v10037_v4, -inf }
0x3474   :  { %10045 = vmax.xlane.f32.xlu1 %v10044_v27  ;;  %v16688_v44 = vpop.f32.mrb[131].mxu1  ;;  %v10041_v21 = vsel %vm308_vm4, %v9959_v43, -inf }
0x3475   :  { %10042 = vmax.xlane.f32.xlu0 %v10041_v21 }
0x3485   :  { %10063 = vrot.lane.b32.xlu1 %v19557_v2, %s20586_s27 }
0x3489   :  { %10217 = vrot.lane.b32.xlu1 %v19557_v2, %s20587_s24 }
0x348b   :  { %10139 = vrot.lane.b32.xlu0 %v19555_v41, %s20586_s27  ;;  %s20612_s27 = smov 113  }
0x348d   :  { %10295 = vrot.lane.b32.xlu1 %v19555_v41, %s20587_s24  ;;  %s20613_s24 = smov 71  }
0x3491   :  { %10293 = vrot.lane.b32.xlu1 %v19555_v41, %s20588_s25 }
0x3501   :  { %v10046_v29 = vpop.xlane.xlu1 %10045 }
0x3502   :  { %v10048_v47 = vsub.f32 %v10037_v4, %v10046_v29  ;;  %v10043_v11 = vpop.xlane.xlu0 %10042 }
0x3503   :  { %v10047_v20 = vsub.f32 %v9959_v43, %v10043_v11 }
0x3504   :  { %v10051_v30 = vmul.f32 1.442695, %v10048_v47 }
0x3505   :  { %v10049_v59 = vmul.f32 1.442695, %v10047_v20  ;;  %v10064_v52 = vpop.permute.xlu1 %10063 }
0x3506   :  { %17459 = vpow2.f32 %v10051_v30  ;;  %16695 = vmatpush3.msra.mxu1 %v10064_v52  ;;  %v10140_v56 = vpop.permute.xlu0 %10139 }
0x3507   :  { %16700 = vmatpush3.msra.mxu0 %v10140_v56  ;;  %16704 = vmatprep.subr.mxu1 %v17541_v6  ;;  %17461 = vpow2.f32 %v10049_v59 }
0x3508   :  { %16709 = vmatprep.subr.mxu0 %v17541_v6 }
0x3509   :  { %v10218_v15 = vpop.permute.xlu1 %10217 }
0x350d   :  { %v10296_v46 = vpop.permute.xlu1 %10295 }
0x3510   :  { %v17460_v62 = vpop.eup %17459 }
0x3511   :  { %v10056_v26 = vsel %vm308_vm4, %v17460_v62, 0.0  ;;  %v17462_v39 = vpop.eup %17461  ;;  %v10294_v53 = vpop.permute.xlu1 %10293 }
0x3512   :  { %10057 = vadd.xlane.f32.xlu0 %v10056_v26  ;;  %v10053_v40 = vsel %vm308_vm4, %v17462_v39, 0.0 }
0x3516   :  { %10054 = vadd.xlane.f32.xlu0 %v10053_v40 }
0x352c   :  { %10215 = vrot.lane.b32.xlu0 %v19557_v2, %s20588_s25  ;;  %s20614_s25 = smov 89  }
0x359f   :  { %v10058_v36 = vpop.xlane.xlu0 %10057 }
0x35a0   :  { %17463 = vrcp.f32 %v10058_v36 }
0x35a3   :  { %v10055_v38 = vpop.xlane.xlu0 %10054 }
0x35a4   :  { %17465 = vrcp.f32 %v10055_v38 }
0x35a7   :  { %v10216_v50 = vpop.permute.xlu0 %10215 }
0x35aa   :  { %v17464_v45 = vpop.eup %17463 }
0x35ab   :  { %v10062_v49 = vmul.f32 %v17464_v45, %v17460_v62 }
0x35ad   :  { %16702 = vmatmul.mubr.msk.f32.vlgmr.msra.gmra.mrb[130].mxu0 %vm308_vm4, %v10062_v49 }
0x35ae   :  { %v17466_v22 = vpop.eup %17465  ;;  %16710 = vmatpush3.xpose.msk.msra.mxu0 %vm156_vm3, %v10296_v46  ;;  %16711 = vmatprep.mubr.msk.f32.mxu0 %vm17542_vm2, %v17541_v6 }
0x35af   :  { %v10061_v51 = vmul.f32 %v17466_v22, %v17462_v39  ;;  %16719 = vmatprep.subr.mxu0 %v17541_v6 }
0x35b1   :  { %16697 = vmatmul.mubr.msk.f32.vlgmr.msra.gmra.mrb[132].mxu1 %vm308_vm4, %v10061_v51  ;;  %16712 = vmatmul.mubr.msk.f32.vlgmr.msra.gmra.mrb[132].mxu0 %vm156_vm3, %v10294_v53 }
0x35b2   :  { %16705 = vmatpush3.xpose.msk.msra.mxu1 %vm156_vm3, %v10218_v15  ;;  %16706 = vmatprep.mubr.msk.f32.mxu1 %vm17542_vm2, %v17541_v6 }
0x35b3   :  { %16714 = vmatprep.subr.mxu1 %v17541_v6  ;;  %16721 = vmatprep.mubr.msk.f32.mxu0 %vm17542_vm2, %v17541_v6 }
0x35b5   :  { %16707 = vmatmul.mubr.msk.f32.vlgmr.msra.gmra.mrb[134].mxu1 %vm156_vm3, %v10216_v50 }
0x35b6   :  { %16716 = vmatprep.mubr.msk.f32.mxu1 %vm17542_vm2, %v17541_v6 }
0x3680   :  { %v19647_v54 = vpop.f32.mrb[130].mxu0 }
0x3681   :  { %v16703_v55 = vpop.f32.mrb[131].mxu0 }
0x3684   :  { %v19649_v34 = vpop.f32.mrb[132].mxu1  ;;  %v10367_v57 = vpop.f32.mrb[132].mxu0 }
0x3685   :  { %v16698_v0 = vpop.f32.mrb[133].mxu1  ;;  %v16713_v58 = vpop.f32.mrb[133].mxu0  ;;  %v10374_v33 = vsel %vm308_vm4, %v10367_v57, -inf }
0x3686   :  { %10375 = vmax.xlane.f32.xlu1 %v10374_v33 }
0x3688   :  { %v10289_v37 = vpop.f32.mrb[134].mxu1 }
0x3689   :  { %v16708_v60 = vpop.f32.mrb[135].mxu1  ;;  %v10371_v5 = vsel %vm308_vm4, %v10289_v37, -inf }
0x368a   :  { %10372 = vmax.xlane.f32.xlu0 %v10371_v5 }
0x3697   :  { %10393 = vrot.lane.b32.xlu1 %v19557_v2, %s20589_s26 }
0x369b   :  { %10547 = vrot.lane.b32.xlu1 %v19557_v2, %s20590_s28 }
0x369f   :  { %10625 = vrot.lane.b32.xlu1 %v19555_v41, %s20590_s28  ;;  %s20616_s28 = smov 68  }
0x36a0   :  { %10469 = vrot.lane.b32.xlu0 %v19555_v41, %s20589_s26  ;;  %s20615_s26 = smov 110  }
0x36a3   :  { %10623 = vrot.lane.b32.xlu1 %v19555_v41, %s20591_s30 }
0x3713   :  { %v10376_v7 = vpop.xlane.xlu1 %10375 }
0x3714   :  { %v10378_v9 = vsub.f32 %v10367_v57, %v10376_v7 }
0x3716   :  { %v10381_v14 = vmul.f32 1.442695, %v10378_v9 }
0x3717   :  { %v10394_v17 = vpop.permute.xlu1 %10393  ;;  %v10373_v24 = vpop.xlane.xlu0 %10372 }
0x3718   :  { %17467 = vpow2.f32 %v10381_v14  ;;  %v10377_v28 = vsub.f32 %v10289_v37, %v10373_v24  ;;  %16715 = vmatpush3.msra.mxu1 %v10394_v17 }
0x3719   :  { %16724 = vmatprep.subr.mxu1 %v17541_v6 }
0x371a   :  { %v10379_v48 = vmul.f32 1.442695, %v10377_v28 }
0x371b   :  { %v10470_v63 = vpop.permute.xlu0 %10469  ;;  %v10548_v43 = vpop.permute.xlu1 %10547 }
0x371c   :  { %17469 = vpow2.f32 %v10379_v48  ;;  %16720 = vmatpush3.msra.mxu0 %v10470_v63 }
0x371d   :  { %16729 = vmatprep.subr.mxu0 %v17541_v6 }
0x371f   :  { %v10626_v27 = vpop.permute.xlu1 %10625 }
0x3722   :  { %v17468_v12 = vpop.eup %17467 }
0x3723   :  { %v10386_v10 = vsel %vm308_vm4, %v17468_v12, 0.0  ;;  %v10624_v47 = vpop.permute.xlu1 %10623 }
0x3724   :  { %10387 = vadd.xlane.f32.xlu0 %v10386_v10 }
0x3726   :  { %v17470_v25 = vpop.eup %17469 }
0x3727   :  { %v10383_v1 = vsel %vm308_vm4, %v17470_v25, 0.0 }
0x3728   :  { %10384 = vadd.xlane.f32.xlu0 %v10383_v1 }
0x373e   :  { %10545 = vrot.lane.b32.xlu0 %v19557_v2, %s20591_s30  ;;  %s20617_s30 = smov 3  }
0x37b1   :  { %v10388_v3 = vpop.xlane.xlu0 %10387 }
0x37b2   :  { %17471 = vrcp.f32 %v10388_v3 }
0x37b5   :  { %v10385_v4 = vpop.xlane.xlu0 %10384 }
0x37b6   :  { %17473 = vrcp.f32 %v10385_v4 }
0x37b9   :  { %v10546_v11 = vpop.permute.xlu0 %10545 }
0x37bc   :  { %v17472_v13 = vpop.eup %17471 }
0x37bd   :  { %v10392_v44 = vmul.f32 %v17472_v13, %v17468_v12 }
0x37bf   :  { %16722 = vmatmul.mubr.msk.f32.vlgmr.msra.gmra.mrb[134].mxu0 %vm308_vm4, %v10392_v44 }
0x37c0   :  { %v17474_v21 = vpop.eup %17473  ;;  %16730 = vmatpush3.xpose.msk.msra.mxu0 %vm156_vm3, %v10626_v27  ;;  %16731 = vmatprep.mubr.msk.f32.mxu0 %vm17542_vm2, %v17541_v6 }
0x37c1   :  { %v10391_v29 = vmul.f32 %v17474_v21, %v17470_v25  ;;  %16739 = vmatprep.subr.mxu0 %v17541_v6 }
0x37c3   :  { %16717 = vmatmul.mubr.msk.f32.vlgmr.msra.gmra.mrb[136].mxu1 %vm308_vm4, %v10391_v29  ;;  %16732 = vmatmul.mubr.msk.f32.vlgmr.msra.gmra.mrb[136].mxu0 %vm156_vm3, %v10624_v47 }
0x37c4   :  { %16725 = vmatpush3.xpose.msk.msra.mxu1 %vm156_vm3, %v10548_v43  ;;  %16726 = vmatprep.mubr.msk.f32.mxu1 %vm17542_vm2, %v17541_v6 }
0x37c5   :  { %16734 = vmatprep.subr.mxu1 %v17541_v6  ;;  %16741 = vmatprep.mubr.msk.f32.mxu0 %vm17542_vm2, %v17541_v6 }
0x37c7   :  { %16727 = vmatmul.mubr.msk.f32.vlgmr.msra.gmra.mrb[138].mxu1 %vm156_vm3, %v10546_v11 }
0x37c8   :  { %16736 = vmatprep.mubr.msk.f32.mxu1 %vm17542_vm2, %v17541_v6 }
0x3892   :  { %v19685_v20 = vpop.f32.mrb[134].mxu0 }
0x3893   :  { %v16723_v30 = vpop.f32.mrb[135].mxu0 }
0x3896   :  { %v19687_v59 = vpop.f32.mrb[136].mxu1  ;;  %v10697_v52 = vpop.f32.mrb[136].mxu0 }
0x3897   :  { %v16718_v56 = vpop.f32.mrb[137].mxu1  ;;  %v16733_v62 = vpop.f32.mrb[137].mxu0  ;;  %v10704_v26 = vsel %vm308_vm4, %v10697_v52, -inf }
0x3898   :  { %10705 = vmax.xlane.f32.xlu1 %v10704_v26 }
0x389a   :  { %v10619_v39 = vpop.f32.mrb[138].mxu1 }
0x389b   :  { %v16728_v40 = vpop.f32.mrb[139].mxu1  ;;  %v10701_v36 = vsel %vm308_vm4, %v10619_v39, -inf }
0x389c   :  { %10702 = vmax.xlane.f32.xlu0 %v10701_v36 }
0x38a9   :  { %10723 = vrot.lane.b32.xlu1 %v19557_v2, %s20592_s0 }
0x38ad   :  { %10877 = vrot.lane.b32.xlu1 %v19557_v2, %s20593_s17 }
0x38b1   :  { %10955 = vrot.lane.b32.xlu1 %v19555_v41, %s20593_s17  ;;  %s20619_s17 = smov 9  }
0x38b2   :  { %10799 = vrot.lane.b32.xlu0 %v19555_v41, %s20592_s0  ;;  %s20618_s0 = smov 6  }
0x38b5   :  { %10953 = vrot.lane.b32.xlu1 %v19555_v41, %s20594_s18 }
0x3925   :  { %v10706_v38 = vpop.xlane.xlu1 %10705 }
0x3926   :  { %v10708_v15 = vsub.f32 %v10697_v52, %v10706_v38 }
0x3928   :  { %v10711_v45 = vmul.f32 1.442695, %v10708_v15 }
0x3929   :  { %v10724_v46 = vpop.permute.xlu1 %10723  ;;  %v10703_v49 = vpop.xlane.xlu0 %10702 }
0x392a   :  { %17475 = vpow2.f32 %v10711_v45  ;;  %v10707_v22 = vsub.f32 %v10619_v39, %v10703_v49  ;;  %16735 = vmatpush3.msra.mxu1 %v10724_v46 }
0x392b   :  { %16744 = vmatprep.subr.mxu1 %v17541_v6 }
0x392c   :  { %v10709_v51 = vmul.f32 1.442695, %v10707_v22 }
0x392d   :  { %v10800_v53 = vpop.permute.xlu0 %10799  ;;  %v10878_v37 = vpop.permute.xlu1 %10877 }
0x392e   :  { %17477 = vpow2.f32 %v10709_v51  ;;  %16740 = vmatpush3.msra.mxu0 %v10800_v53 }
0x392f   :  { %16749 = vmatprep.subr.mxu0 %v17541_v6 }
0x3931   :  { %v10956_v5 = vpop.permute.xlu1 %10955 }
0x3934   :  { %v17476_v50 = vpop.eup %17475 }
0x3935   :  { %v10716_v55 = vsel %vm308_vm4, %v17476_v50, 0.0  ;;  %v10954_v17 = vpop.permute.xlu1 %10953 }
0x3936   :  { %10717 = vadd.xlane.f32.xlu0 %v10716_v55 }
0x3938   :  { %v17478_v57 = vpop.eup %17477 }
0x3939   :  { %v10713_v0 = vsel %vm308_vm4, %v17478_v57, 0.0 }
0x393a   :  { %10714 = vadd.xlane.f32.xlu0 %v10713_v0 }
0x3950   :  { %10875 = vrot.lane.b32.xlu0 %v19557_v2, %s20594_s18  ;;  %s20620_s18 = smov 12  }
0x39c3   :  { %v10718_v58 = vpop.xlane.xlu0 %10717 }
0x39c4   :  { %17479 = vrcp.f32 %v10718_v58 }
0x39c7   :  { %v10715_v33 = vpop.xlane.xlu0 %10714 }
0x39c8   :  { %17481 = vrcp.f32 %v10715_v33 }
0x39cb   :  { %v10876_v24 = vpop.permute.xlu0 %10875 }
0x39ce   :  { %v17480_v60 = vpop.eup %17479 }
0x39cf   :  { %v10722_v7 = vmul.f32 %v17480_v60, %v17476_v50 }
0x39d1   :  { %16742 = vmatmul.mubr.msk.f32.vlgmr.msra.gmra.mrb[138].mxu0 %vm308_vm4, %v10722_v7 }
0x39d2   :  { %v17482_v9 = vpop.eup %17481  ;;  %16750 = vmatpush3.xpose.msk.msra.mxu0 %vm156_vm3, %v10956_v5  ;;  %16751 = vmatprep.mubr.msk.f32.mxu0 %vm17542_vm2, %v17541_v6 }
0x39d3   :  { %v10721_v14 = vmul.f32 %v17482_v9, %v17478_v57  ;;  %16759 = vmatprep.subr.mxu0 %v17541_v6 }
0x39d5   :  { %16737 = vmatmul.mubr.msk.f32.vlgmr.msra.gmra.mrb[140].mxu1 %vm308_vm4, %v10721_v14  ;;  %16752 = vmatmul.mubr.msk.f32.vlgmr.msra.gmra.mrb[140].mxu0 %vm156_vm3, %v10954_v17 }
0x39d6   :  { %16745 = vmatpush3.xpose.msk.msra.mxu1 %vm156_vm3, %v10878_v37  ;;  %16746 = vmatprep.mubr.msk.f32.mxu1 %vm17542_vm2, %v17541_v6 }
0x39d7   :  { %16754 = vmatprep.subr.mxu1 %v17541_v6  ;;  %16761 = vmatprep.mubr.msk.f32.mxu0 %vm17542_vm2, %v17541_v6 }
0x39d9   :  { %16747 = vmatmul.mubr.msk.f32.vlgmr.msra.gmra.mrb[142].mxu1 %vm156_vm3, %v10876_v24 }
0x39da   :  { %16756 = vmatprep.mubr.msk.f32.mxu1 %vm17542_vm2, %v17541_v6 }
0x3aa4   :  { %v19723_v28 = vpop.f32.mrb[138].mxu0 }
0x3aa5   :  { %v16743_v48 = vpop.f32.mrb[139].mxu0 }
0x3aa8   :  { %v19725_v63 = vpop.f32.mrb[140].mxu1  ;;  %v11027_v12 = vpop.f32.mrb[140].mxu0 }
0x3aa9   :  { %v16738_v10 = vpop.f32.mrb[141].mxu1  ;;  %v16753_v25 = vpop.f32.mrb[141].mxu0  ;;  %v11034_v1 = vsel %vm308_vm4, %v11027_v12, -inf }
0x3aaa   :  { %11035 = vmax.xlane.f32.xlu1 %v11034_v1 }
0x3aac   :  { %v10949_v3 = vpop.f32.mrb[142].mxu1 }
0x3aad   :  { %v16748_v4 = vpop.f32.mrb[143].mxu1  ;;  %v11031_v43 = vsel %vm308_vm4, %v10949_v3, -inf }
0x3aae   :  { %11032 = vmax.xlane.f32.xlu0 %v11031_v43 }
0x3abb   :  { %11053 = vrot.lane.b32.xlu1 %v19557_v2, %s20595_s22 }
0x3abf   :  { %11207 = vrot.lane.b32.xlu1 %v19557_v2, %s20611_s29 }
0x3ac3   :  { %11285 = vrot.lane.b32.xlu1 %v19555_v41, %s20611_s29  ;;  %s20629_s29 = sld [smem:[#allocation12_spill]] }
0x3ac4   :  { %11129 = vrot.lane.b32.xlu0 %v19555_v41, %s20595_s22  ;;  %s20621_s22 = smov 15  }
0x3ac7   :  { %11283 = vrot.lane.b32.xlu1 %v19555_v41, %s20612_s27 }
0x3b37   :  { %v11036_v13 = vpop.xlane.xlu1 %11035 }
0x3b38   :  { %v11038_v27 = vsub.f32 %v11027_v12, %v11036_v13 }
0x3b3a   :  { %v11041_v44 = vmul.f32 1.442695, %v11038_v27 }
0x3b3b   :  { %v11054_v21 = vpop.permute.xlu1 %11053  ;;  %v11033_v29 = vpop.xlane.xlu0 %11032 }
0x3b3c   :  { %17483 = vpow2.f32 %v11041_v44  ;;  %v11037_v47 = vsub.f32 %v10949_v3, %v11033_v29  ;;  %16755 = vmatpush3.msra.mxu1 %v11054_v21 }
0x3b3d   :  { %16764 = vmatprep.subr.mxu1 %v17541_v6 }
0x3b3e   :  { %v11039_v11 = vmul.f32 1.442695, %v11037_v47 }
0x3b3f   :  { %v11130_v30 = vpop.permute.xlu0 %11129  ;;  %v11208_v36 = vpop.permute.xlu1 %11207 }
0x3b40   :  { %17485 = vpow2.f32 %v11039_v11  ;;  %16760 = vmatpush3.msra.mxu0 %v11130_v30 }
0x3b41   :  { %16769 = vmatprep.subr.mxu0 %v17541_v6 }
0x3b43   :  { %v11286_v15 = vpop.permute.xlu1 %11285 }
0x3b46   :  { %v17484_v52 = vpop.eup %17483 }
0x3b47   :  { %v11046_v56 = vsel %vm308_vm4, %v17484_v52, 0.0  ;;  %v11284_v22 = vpop.permute.xlu1 %11283 }
0x3b48   :  { %11047 = vadd.xlane.f32.xlu0 %v11046_v56 }
0x3b4a   :  { %v17486_v62 = vpop.eup %17485 }
0x3b4b   :  { %v11043_v26 = vsel %vm308_vm4, %v17486_v62, 0.0 }
0x3b4c   :  { %11044 = vadd.xlane.f32.xlu0 %v11043_v26 }
0x3b62   :  { %11205 = vrot.lane.b32.xlu0 %v19557_v2, %s20612_s27  ;;  %s20626_s27 = sld [smem:[#allocation9_spill]] }
0x3bd5   :  { %v11048_v39 = vpop.xlane.xlu0 %11047 }
0x3bd6   :  { %17487 = vrcp.f32 %v11048_v39 }
0x3bd9   :  { %v11045_v40 = vpop.xlane.xlu0 %11044 }
0x3bda   :  { %17489 = vrcp.f32 %v11045_v40 }
0x3bdd   :  { %v11206_v51 = vpop.permute.xlu0 %11205 }
0x3be0   :  { %v17488_v38 = vpop.eup %17487 }
0x3be1   :  { %v11052_v45 = vmul.f32 %v17488_v38, %v17484_v52 }
0x3be3   :  { %16762 = vmatmul.mubr.msk.f32.vlgmr.msra.gmra.mrb[142].mxu0 %vm308_vm4, %v11052_v45 }
0x3be4   :  { %v17490_v46 = vpop.eup %17489  ;;  %16770 = vmatpush3.xpose.msk.msra.mxu0 %vm156_vm3, %v11286_v15  ;;  %16771 = vmatprep.mubr.msk.f32.mxu0 %vm17542_vm2, %v17541_v6 }
0x3be5   :  { %v11051_v49 = vmul.f32 %v17490_v46, %v17486_v62  ;;  %16779 = vmatprep.subr.mxu0 %v17541_v6 }
0x3be7   :  { %16757 = vmatmul.mubr.msk.f32.vlgmr.msra.gmra.mrb[144].mxu1 %vm308_vm4, %v11051_v49  ;;  %16772 = vmatmul.mubr.msk.f32.vlgmr.msra.gmra.mrb[144].mxu0 %vm156_vm3, %v11284_v22 }
0x3be8   :  { %16765 = vmatpush3.xpose.msk.msra.mxu1 %vm156_vm3, %v11208_v36  ;;  %16766 = vmatprep.mubr.msk.f32.mxu1 %vm17542_vm2, %v17541_v6 }
0x3be9   :  { %16774 = vmatprep.subr.mxu1 %v17541_v6  ;;  %16781 = vmatprep.mubr.msk.f32.mxu0 %vm17542_vm2, %v17541_v6 }
0x3beb   :  { %16767 = vmatmul.mubr.msk.f32.vlgmr.msra.gmra.mrb[146].mxu1 %vm156_vm3, %v11206_v51 }
0x3bec   :  { %16776 = vmatprep.mubr.msk.f32.mxu1 %vm17542_vm2, %v17541_v6 }
0x3cb6   :  { %v19761_v53 = vpop.f32.mrb[142].mxu0 }
0x3cb7   :  { %v16763_v50 = vpop.f32.mrb[143].mxu0 }
0x3cba   :  { %v19763_v55 = vpop.f32.mrb[144].mxu1  ;;  %v11357_v57 = vpop.f32.mrb[144].mxu0 }
0x3cbb   :  { %v16758_v0 = vpop.f32.mrb[145].mxu1  ;;  %v16773_v58 = vpop.f32.mrb[145].mxu0  ;;  %v11364_v33 = vsel %vm308_vm4, %v11357_v57, -inf }
0x3cbc   :  { %11365 = vmax.xlane.f32.xlu1 %v11364_v33 }
0x3cbe   :  { %v11279_v37 = vpop.f32.mrb[146].mxu1 }
0x3cbf   :  { %v16768_v60 = vpop.f32.mrb[147].mxu1  ;;  %v11361_v5 = vsel %vm308_vm4, %v11279_v37, -inf }
0x3cc0   :  { %11362 = vmax.xlane.f32.xlu0 %v11361_v5 }
0x3ccd   :  { %11383 = vrot.lane.b32.xlu1 %v19557_v2, %s20613_s24 }
0x3cd1   :  { %11537 = vrot.lane.b32.xlu1 %v19557_v2, %s20614_s25 }
0x3cd5   :  { %11615 = vrot.lane.b32.xlu1 %v19555_v41, %s20614_s25 }
0x3cd6   :  { %11459 = vrot.lane.b32.xlu0 %v19555_v41, %s20613_s24 }
0x3cd9   :  { %11613 = vrot.lane.b32.xlu1 %v19555_v41, %s20615_s26 }
0x3d49   :  { %v11366_v7 = vpop.xlane.xlu1 %11365 }
0x3d4a   :  { %v11368_v9 = vsub.f32 %v11357_v57, %v11366_v7  ;;  %v15134_v7 = vld [vmem:[%s20622_s4 + $0x40] sm:$0x1f] }
0x3d4c   :  { %v11371_v14 = vmul.f32 1.442695, %v11368_v9 }
0x3d4d   :  { %v11384_v17 = vpop.permute.xlu1 %11383  ;;  %v11363_v24 = vpop.xlane.xlu0 %11362 }
0x3d4e   :  { %17491 = vpow2.f32 %v11371_v14  ;;  %v11367_v48 = vsub.f32 %v11279_v37, %v11363_v24  ;;  %16775 = vmatpush3.msra.mxu1 %v11384_v17 }
0x3d4f   :  { %16784 = vmatprep.subr.mxu1 %v17541_v6 }
0x3d50   :  { %v11369_v12 = vmul.f32 1.442695, %v11367_v48 }
0x3d51   :  { %v11460_v10 = vpop.permute.xlu0 %11459  ;;  %v11538_v27 = vpop.permute.xlu1 %11537 }
0x3d52   :  { %17493 = vpow2.f32 %v11369_v12  ;;  %16780 = vmatpush3.msra.mxu0 %v11460_v10 }
0x3d53   :  { %16789 = vmatprep.subr.mxu0 %v17541_v6 }
0x3d55   :  { %v11616_v21 = vpop.permute.xlu1 %11615 }
0x3d58   :  { %v17492_v25 = vpop.eup %17491 }
0x3d59   :  { %v11376_v1 = vsel %vm308_vm4, %v17492_v25, 0.0  ;;  %v11614_v30 = vpop.permute.xlu1 %11613 }
0x3d5a   :  { %11377 = vadd.xlane.f32.xlu0 %v11376_v1 }
0x3d5c   :  { %v17494_v3 = vpop.eup %17493 }
0x3d5d   :  { %v11373_v4 = vsel %vm308_vm4, %v17494_v3, 0.0 }
0x3d5e   :  { %11374 = vadd.xlane.f32.xlu0 %v11373_v4 }
0x3d74   :  { %11535 = vrot.lane.b32.xlu0 %v19557_v2, %s20615_s26 }
0x3de7   :  { %v11378_v43 = vpop.xlane.xlu0 %11377 }
0x3de8   :  { %17495 = vrcp.f32 %v11378_v43 }
0x3deb   :  { %v11375_v13 = vpop.xlane.xlu0 %11374 }
0x3dec   :  { %17497 = vrcp.f32 %v11375_v13 }
0x3def   :  { %v11536_v52 = vpop.permute.xlu0 %11535 }
0x3df2   :  { %v17496_v44 = vpop.eup %17495 }
0x3df3   :  { %v11382_v29 = vmul.f32 %v17496_v44, %v17492_v25 }
0x3df5   :  { %16782 = vmatmul.mubr.msk.f32.vlgmr.msra.gmra.mrb[146].mxu0 %vm308_vm4, %v11382_v29 }
0x3df6   :  { %v17498_v47 = vpop.eup %17497  ;;  %16790 = vmatpush3.xpose.msk.msra.mxu0 %vm156_vm3, %v11616_v21  ;;  %16791 = vmatprep.mubr.msk.f32.mxu0 %vm17542_vm2, %v17541_v6 }
0x3df7   :  { %v11381_v11 = vmul.f32 %v17498_v47, %v17494_v3  ;;  %16799 = vmatprep.subr.mxu0 %v17541_v6 }
0x3df9   :  { %16777 = vmatmul.mubr.msk.f32.vlgmr.msra.gmra.mrb[148].mxu1 %vm308_vm4, %v11381_v11  ;;  %16792 = vmatmul.mubr.msk.f32.vlgmr.msra.gmra.mrb[148].mxu0 %vm156_vm3, %v11614_v30 }
0x3dfa   :  { %16785 = vmatpush3.xpose.msk.msra.mxu1 %vm156_vm3, %v11538_v27  ;;  %16786 = vmatprep.mubr.msk.f32.mxu1 %vm17542_vm2, %v17541_v6 }
0x3dfb   :  { %16794 = vmatprep.subr.mxu1 %v17541_v6  ;;  %16801 = vmatprep.mubr.msk.f32.mxu0 %vm17542_vm2, %v17541_v6 }
0x3dfd   :  { %16787 = vmatmul.mubr.msk.f32.vlgmr.msra.gmra.mrb[150].mxu1 %vm156_vm3, %v11536_v52 }
0x3dfe   :  { %16796 = vmatprep.mubr.msk.f32.mxu1 %vm17542_vm2, %v17541_v6 }
0x3ec8   :  { %v11531_v56 = vpop.f32.mrb[146].mxu0 }
0x3ec9   :  { %v16783_v62 = vpop.f32.mrb[147].mxu0 }
0x3ecc   :  { %v11455_v26 = vpop.f32.mrb[148].mxu1  ;;  %v11687_v39 = vpop.f32.mrb[148].mxu0 }
0x3ecd   :  { %v16778_v40 = vpop.f32.mrb[149].mxu1  ;;  %v16793_v36 = vpop.f32.mrb[149].mxu0  ;;  %v11694_v38 = vsel %vm308_vm4, %v11687_v39, -inf }
0x3ece   :  { %11695 = vmax.xlane.f32.xlu1 %v11694_v38  ;;  %v15136_v36 = vld [vmem:[%s20624_s5 + $0x2] ss:$0 sm:$0xff] }
0x3ed0   :  { %v11609_v15 = vpop.f32.mrb[150].mxu1 }
0x3ed1   :  { %v16788_v45 = vpop.f32.mrb[151].mxu1  ;;  %v11691_v46 = vsel %vm308_vm4, %v11609_v15, -inf }
0x3ed2   :  { %11692 = vmax.xlane.f32.xlu0 %v11691_v46 }
0x3edf   :  { %11713 = vrot.lane.b32.xlu1 %v19557_v2, %s20616_s28 }
0x3ee3   :  { %11867 = vrot.lane.b32.xlu1 %v19649_v34, %s20617_s30 }
0x3ee7   :  { %11869 = vrot.lane.b32.xlu1 %v19647_v54, %s20617_s30 }
0x3eeb   :  { %11877 = vrot.lane.b32.xlu1 %v19685_v20, %s20618_s0 }
0x3eef   :  { %11885 = vrot.lane.b32.xlu1 %v19723_v28, %s20619_s17 }
0x3ef3   :  { %11893 = vrot.lane.b32.xlu1 %v19761_v53, %s20620_s18 }
0x3ef7   :  { %11901 = vrot.lane.b32.xlu1 %v11531_v56, %s20621_s22 }
0x3f5b   :  { %v11696_v49 = vpop.xlane.xlu1 %11695 }
0x3f5c   :  { %v11698_v22 = vsub.f32 %v11687_v39, %v11696_v49 }
0x3f5e   :  { %v11701_v2 = vmul.f32 1.442695, %v11698_v22 }
0x3f5f   :  { %v11714_v51 = vpop.permute.xlu1 %11713  ;;  %v11693_v50 = vpop.xlane.xlu0 %11692 }
0x3f60   :  { %17499 = vpow2.f32 %v11701_v2  ;;  %v11697_v34 = vsub.f32 %v11609_v15, %v11693_v50  ;;  %16795 = vmatpush3.msra.mxu1 %v11714_v51 }
0x3f62   :  { %v11699_v54 = vmul.f32 1.442695, %v11697_v34 }
0x3f63   :  { %v11868_v48 = vpop.permute.xlu1 %11867 }
0x3f64   :  { %17501 = vpow2.f32 %v11699_v54  ;;  %v11913_v27 = vsel %vm156_vm3, %v19611_v16, %v11868_v48 }
0x3f67   :  { %v11870_v12 = vpop.permute.xlu1 %11869 }
0x3f68   :  { %v11914_v21 = vsel %vm156_vm3, %v19609_v35, %v11870_v12 }
0x3f6a   :  { %v17500_v57 = vpop.eup %17499 }
0x3f6b   :  { %v11706_v20 = vsel %vm308_vm4, %v17500_v57, 0.0  ;;  %v11878_v10 = vpop.permute.xlu1 %11877 }
0x3f6c   :  { %11707 = vadd.xlane.f32.xlu0 %v11706_v20  ;;  %v11916_v47 = vsel %vm2513_vm5, %v11914_v21, %v11878_v10 }
0x3f6e   :  { %v17502_v28 = vpop.eup %17501 }
0x3f6f   :  { %v11703_v0 = vsel %vm308_vm4, %v17502_v28, 0.0  ;;  %v11886_v1 = vpop.permute.xlu1 %11885 }
0x3f70   :  { %11704 = vadd.xlane.f32.xlu0 %v11703_v0  ;;  %v11918_v30 = vsel %vm2516_vm6, %v11916_v47, %v11886_v1  ;;  %v15225_v1 = vld [vmem:[%s20495_s9 + $0x190] sm:$0xff] }
0x3f73   :  { %v11894_v4 = vpop.permute.xlu1 %11893 }
0x3f74   :  { %v11920_v62 = vsel %vm2519_vm7, %v11918_v30, %v11894_v4  ;;  %v15226_v4 = vld [vmem:[%s20495_s9 + $0x198] sm:$0xff] }
0x3f77   :  { %v11902_v13 = vpop.permute.xlu1 %11901 }
0x3f78   :  { %v11922_v39 = vsel %vm2522_vm9, %v11920_v62, %v11902_v13  ;;  %v15228_v13 = vld [vmem:[%s20495_s9 + $0x1d8] sm:$0xff] }
0x3f79   :  { %v15235_v21 = vcombine.high %v15226_v4, %v15228_v13 }
0x3f86   :  { %11789 = vrot.lane.b32.xlu0 %v19555_v41, %s20616_s28 }
0x3f8a   :  { %11875 = vrot.lane.b32.xlu0 %v19687_v59, %s20618_s0 }
0x3f8e   :  { %11883 = vrot.lane.b32.xlu0 %v19725_v63, %s20619_s17  ;;  %v15132_v63 = vld [vmem:[%s20622_s4 + $0x30] sm:$0xff] }
0x3f92   :  { %11891 = vrot.lane.b32.xlu0 %v19763_v55, %s20620_s18  ;;  %v15133_v55 = vld [vmem:[%s20622_s4 + $0x38] sm:$0xff]  ;;  %s20627_s4 = sld [smem:[#allocation11_spill]] }
0x3f93   :  { %v16849_v5 = vpack.c.bf16 %v15133_v55, %v15132_v63 }
0x3f95   :  { %16850 = vmatprep.subr.bf16.mxu1 %v16849_v5 }
0x3f96   :  { %11899 = vrot.lane.b32.xlu0 %v11455_v26, %s20621_s22 }
0x3ff9   :  { %v11708_v53 = vpop.xlane.xlu0 %11707 }
0x3ffa   :  { %17503 = vrcp.f32 %v11708_v53 }
0x3ffd   :  { %v11705_v58 = vpop.xlane.xlu0 %11704 }
0x3ffe   :  { %17505 = vrcp.f32 %v11705_v58 }
0x4001   :  { %v11790_v33 = vpop.permute.xlu0 %11789 }
0x4002   :  { %16800 = vmatpush3.msra.mxu0 %v11790_v33  ;;  %v15146_v33 = vld [vmem:[%s20495_s9 + $0x1c0] sm:$0xff] }
0x4004   :  { %v17504_v37 = vpop.eup %17503 }
0x4005   :  { %v11712_v60 = vmul.f32 %v17504_v37, %v17500_v57  ;;  %v11876_v25 = vpop.permute.xlu0 %11875  ;;  %v15145_v37 = vld [vmem:[%s20495_s9 + $0x188] sm:$0xff] }
0x4006   :  { %v11915_v29 = vsel %vm2513_vm5, %v11913_v27, %v11876_v25 }
0x4007   :  { %16802 = vmatmul.mubr.msk.f32.vlgmr.msra.gmra.mrb[150].mxu0 %vm308_vm4, %v11712_v60 }
0x4008   :  { %v17506_v41 = vpop.eup %17505  ;;  %12177 = vmatprep.mubr.bf16.mxu0 %v17570_v8 }
0x4009   :  { %v11711_v59 = vmul.f32 %v17506_v41, %v17502_v28  ;;  %v11884_v3 = vpop.permute.xlu0 %11883  ;;  %v15147_v41 = vld [vmem:[%s20495_s9 + $0x1c8] sm:$0xff] }
0x400a   :  { %v11917_v11 = vsel %vm2516_vm6, %v11915_v29, %v11884_v3  ;;  %v15153_v63 = vcombine.low %v15145_v37, %v15147_v41  ;;  %v15154_v55 = vcombine.high %v15145_v37, %v15147_v41  ;;  %v15227_v3 = vld [vmem:[%s20495_s9 + $0x1d0] sm:$0xff]  ;;  %v17193_v37 = vld [vmem:[%s20497_s11 + $0x908] sm:$0xff]  }
0x400b   :  { %16797 = vmatmul.mubr.msk.f32.vlgmr.msra.gmra.mrb[152].mxu1 %vm308_vm4, %v11711_v59  ;;  %v15232_v27 = vcombine.low %v15225_v1, %v15227_v3  ;;  %v17195_v41 = vld [vmem:[%s20497_s11 + $0x950] sm:$0xff]  }
0x400c   :  { %16852 = vmatpush3.bf16.msra.mxu1 %v16849_v5  ;;  %v15148_v5 = vld [vmem:[%s20495_s9 + $0x200] sm:$0x77] }
0x400d   :  { %16808 = vmatprep.subr.msk.mxu1 %vm74_vm1, %v15134_v7  ;;  %v11892_v43 = vpop.permute.xlu0 %11891 }
0x400e   :  { %v11919_v52 = vsel %vm2519_vm7, %v11917_v11, %v11892_v43  ;;  %v15233_v43 = vcombine.high %v15225_v1, %v15227_v3  ;;  %v17209_v1 = vld [vmem:[%s20497_s11 + $0x928] sm:$0xff]  }
0x400f   :  { %v17210_v3 = vld [vmem:[%s20497_s11 + $0x9a8] sm:$0xff]  }
0x4010   :  { %16809 = vmatpush3.msk.msra.mxu1 %vm74_vm1, %v15134_v7  ;;  %v15149_v7 = vld [vmem:[%s20495_s9 + $0x208] sm:$0x77] }
0x4011   :  { %v11900_v44 = vpop.permute.xlu0 %11899  ;;  %12188 = vmatprep.subr.bf16.mxu1 %v15154_v55  ;;  %v17198_v55 = vld [vmem:[%s20497_s11 + $0x990] sm:$0xff]  }
0x4012   :  { %v11921_v26 = vsel %vm2522_vm9, %v11919_v52, %v11900_v44  ;;  %v15234_v44 = vcombine.low %v15226_v4, %v15228_v13  ;;  %v17211_v4 = vld [vmem:[%s20497_s11 + $0x970] sm:$0xff]  }
0x4013   :  { %v17213_v13 = vld [vmem:[%s20497_s11 + $0x930] sm:$0xff]  }
0x40da   :  { %v11861_v9 = vpop.f32.mrb[150].mxu0 }
0x40db   :  { %11909 = vrot.lane.b32.xlu1 %v11861_v9, %s20623_s1  ;;  %v16803_v14 = vpop.f32.mrb[151].mxu0  ;;  %v15156_v9 = vcombine.high %v15148_v5, %v15148_v5 }
0x40dc   :  { %v15158_v14 = vcombine.high %v15149_v7, %v15149_v7 }
0x40dd   :  { %v12137_v48 = vand.u32 %v15156_v9, %v18022_v61  ;;  %v17201_v9 = vld [vmem:[%s20497_s11 + $0x918] sm:$0xff]  }
0x40de   :  { %v11785_v17 = vpop.f32.mrb[152].mxu1  ;;  %v12143_v12 = vand.u32 %v15158_v14, %v18022_v61  ;;  %v17202_v14 = vld [vmem:[%s20497_s11 + $0x998] sm:$0xff]  }
0x40df   :  { %11907 = vrot.lane.b32.xlu0 %v11785_v17, %s20623_s1  ;;  %v16798_v24 = vpop.f32.mrb[153].mxu1  ;;  %v15155_v17 = vcombine.low %v15148_v5, %v15148_v5  ;;  %v17199_v5 = vld [vmem:[%s20497_s11 + $0x958] sm:$0xff]  }
0x40e0   :  { %v15157_v24 = vcombine.low %v15149_v7, %v15149_v7  ;;  %v17200_v7 = vld [vmem:[%s20497_s11 + $0x9d8] sm:$0xff]  }
0x40e1   :  { %v12134_v10 = vand.u32 %v15155_v17, %v18022_v61  ;;  %v17203_v17 = vld [vmem:[%s20497_s11 + $0x960] sm:$0xff]  }
0x40e2   :  { %v12140_v25 = vand.u32 %v15157_v24, %v18022_v61  ;;  %v17204_v24 = vld [vmem:[%s20497_s11 + $0x9e0] sm:$0xff]  }
0x414d   :  { %v11910_v56 = vpop.permute.xlu1 %11909 }
0x414e   :  { %v11924_v40 = vsel %vm2525_vm8, %v11922_v39, %v11910_v56 }
0x4151   :  { %v11908_v16 = vpop.permute.xlu0 %11907 }
0x4152   :  { %v11923_v35 = vsel %vm2525_vm8, %v11921_v26, %v11908_v16  ;;  %v15142_v16 = vld [vmem:[%s20625_s13 + $0x2] ss:$0 sm:$0xff] }
0x4153   :  { %16810 = vmatprep.mubr.msk.f32.mxu1 %vm67_vm0, %v11923_v35  ;;  %v15229_v35 = vld [vmem:[%s20495_s9 + $0x210] sm:$0x77] }
0x4154   :  { %16811 = vmatmul.mubr.msk.f32.vlgmr.msra.gmra.mrb[154].mxu1 %vm67_vm0, %v11924_v40  ;;  %v15230_v40 = vld [vmem:[%s20495_s9 + $0x218] sm:$0x77] }
0x4155   :  { %12220 = vmatprep.mubr.bf16.mxu1 %v17570_v8  ;;  %12189 = vmatpush1.bf16.msra.mxu1 %v15153_v63  ;;  %v17197_v63 = vld [vmem:[%s20497_s11 + $0x910] sm:$0xff]  }
0x4156   :  { %12190 = vmatprep.subr.bf16.mxu1 %v12143_v12  ;;  %v17206_v12 = vld [vmem:[%s20497_s11 + $0x9a0] sm:$0xff]  }
0x4159   :  { %12191 = vmatpush1.bf16.msra.mxu1 %v12140_v25  ;;  %v17208_v25 = vld [vmem:[%s20497_s11 + $0x9e8] sm:$0xff]  }
0x415a   :  { %12421 = vmatprep.subr.bf16.mxu1 %v15235_v21  ;;  %v17216_v21 = vld [vmem:[%s20497_s11 + $0x9f8] sm:$0xff]  }
0x4227   :  { %v16812_v38 = vpop.f32.mrb[154].mxu1 }
0x4228   :  { %v12018_v15 = vadd.f32 %v16812_v38, %v15136_v36  ;;  %v12012_v45 = vpop.f32.mrb[155].mxu1 }
0x4229   :  { %v12013_v46 = vadd.f32 %v15136_v36, %v12012_v45 }
0x422a   :  { %v12022_v49 = vadd.f32 %v12018_v15, %v19544_v32  ;;  %v15143_v15 = vld [vmem:[%s20626_s27 + $0x2] ss:$0 sm:$0xff] }
0x422b   :  { %v12021_v22 = vadd.f32 %v12013_v46, %v19542_v31  ;;  %v15144_v31 = vld [vmem:[%s20495_s9 + $0x180] sm:$0xff]  ;;  %v15237_v46 = vcombine.high %v15229_v35, %v15229_v35 }
0x422c   :  { %v12030_v2 = vsel %vm67_vm0, %v12022_v49, 0.0  ;;  %v15152_v60 = vcombine.high %v15144_v31, %v15146_v33  ;;  %v15151_v59 = vcombine.low %v15144_v31, %v15146_v33  ;;  %v17191_v31 = vld [vmem:[%s20497_s11 + $0x948] sm:$0xff]  }
0x422d   :  { %12031 = vadd.xlane.f32.xlu1 %v12030_v2  ;;  %v12027_v51 = vsel %vm67_vm0, %v12021_v22, 0.0  ;;  %v17192_v33 = vld [vmem:[%s20497_s11 + $0x9c8] sm:$0xff]  }
0x422e   :  { %12028 = vadd.xlane.f32.xlu0 %v12027_v51  ;;  %12145 = vmatprep.subr.bf16.mxu0 %v15152_v60  ;;  %v15236_v51 = vcombine.low %v15229_v35, %v15229_v35  ;;  %v17194_v60 = vld [vmem:[%s20497_s11 + $0x988] sm:$0xff]  }
0x422f   :  { %12146 = vmatpush1.bf16.msra.mxu0 %v15151_v59  ;;  %v17196_v59 = vld [vmem:[%s20497_s11 + $0x9d0] sm:$0xff]  }
0x4230   :  { %12147 = vmatprep.subr.bf16.mxu0 %v12137_v48  ;;  %v17205_v48 = vld [vmem:[%s20497_s11 + $0x920] sm:$0xff]  }
0x4233   :  { %12148 = vmatpush1.bf16.msra.mxu0 %v12134_v10  ;;  %v17207_v10 = vld [vmem:[%s20497_s11 + $0x968] sm:$0xff]  }
0x4234   :  { %12378 = vmatprep.subr.bf16.mxu0 %v15233_v43  ;;  %v17212_v43 = vld [vmem:[%s20497_s11 + $0x9f0] sm:$0xff]  }
0x42ba   :  { %v12032_v50 = vpop.xlane.xlu1 %12031 }
0x42bb   :  { %v12034_v34 = vmul.f32 0.04761905, %v12032_v50  ;;  %v12029_v54 = vpop.xlane.xlu0 %12028  ;;  %v15238_v50 = vcombine.low %v15230_v40, %v15230_v40 }
0x42bc   :  { %v12033_v57 = vmul.f32 0.04761905, %v12029_v54  ;;  %v12370_v54 = vand.u32 %v15237_v46, %v18022_v61 }
0x42bd   :  { %v12036_v20 = vsub.f32 %v12022_v49, %v12034_v34  ;;  %v15239_v49 = vcombine.high %v15230_v40, %v15230_v40  ;;  %v15231_v40 = vld [vmem:[%s20496_s10 + $0x24] sm:$0xf] }
0x42be   :  { %v12035_v28 = vsub.f32 %v12021_v22, %v12033_v57 }
0x42bf   :  { %v12038_v58 = vmul.f32 %v12036_v20, %v12036_v20  ;;  %v12376_v57 = vand.u32 %v15239_v49, %v18022_v61 }
0x42c0   :  { %v12037_v0 = vmul.f32 %v12035_v28, %v12035_v28 }
0x42c1   :  { %v12042_v32 = vsel %vm67_vm0, %v12038_v58, 0.0  ;;  %v17189_v58 = vld [vmem:[%s20497_s11 + $0x900] sm:$0xff]  }
0x42c2   :  { %v12039_v53 = vsel %vm67_vm0, %v12037_v0, 0.0  ;;  %v17187_v0 = vld [vmem:[%s20497_s11 + $0x940] sm:$0xff]  }
0x42c3   :  { %12040 = vadd.xlane.f32.xlu0 %v12039_v53  ;;  %v17188_v53 = vld [vmem:[%s20497_s11 + $0x9c0] sm:$0xff]  }
0x42c7   :  { %12043 = vadd.xlane.f32.xlu0 %v12042_v32  ;;  %v17190_v32 = vld [vmem:[%s20497_s11 + $0x980] sm:$0xff]  }
0x4350   :  { %v12041_v29 = vpop.xlane.xlu0 %12040 }
0x4351   :  { %v12045_v47 = vmul.f32 0.04761905, %v12041_v29  ;;  %v17217_v29 = vld [vmem:[%s20497_s11 + $0x938] sm:$0xff]  }
0x4353   :  { %v12047_v11 = vadd.f32 1e-05, %v12045_v47  ;;  %v17218_v47 = vld [vmem:[%s20497_s11 + $0x9b8] sm:$0xff]  }
0x4354   :  { %v12044_v30 = vpop.xlane.xlu0 %12043 }
0x4355   :  { %17507 = vrsqrt.f32 %v12047_v11  ;;  %v12046_v52 = vmul.f32 0.04761905, %v12044_v30  ;;  %v17219_v11 = vld [vmem:[%s20497_s11 + $0x840] sm:$0xff]  }
0x4356   :  { %v17220_v30 = vld [vmem:[%s20497_s11 + $0x8c0] sm:$0xff]  }
0x4357   :  { %v12048_v56 = vadd.f32 1e-05, %v12046_v52  ;;  %v15150_v52 = vld [vmem:[%s20496_s10 + $0x20] sm:$0xf] }
0x4359   :  { %17509 = vrsqrt.f32 %v12048_v56  ;;  %v12083_v56 = vrot.slane %v15150_v52, %v18179_v18 }
0x435f   :  { %v17508_v62 = vpop.eup %17507 }
0x4360   :  { %v12051_v26 = vmul.f32 %v17508_v62, %v12035_v28  ;;  %v12373_v28 = vand.u32 %v15238_v50, %v18022_v61  ;;  %v12091_v62 = vrot.slane %v15150_v52, %v18181_v19 }
0x4362   :  { %v12059_v36 = vmul.f32 %v15142_v16, %v12051_v26  ;;  %v12087_v26 = vrot.slane %v15150_v52, %v18186_v42 }
0x4363   :  { %v17510_v39 = vpop.eup %17509 }
0x4364   :  { %v12052_v38 = vmul.f32 %v17510_v39, %v12036_v20  ;;  %v19913_v22 = vadd.f32 %v15143_v15, %v12059_v36  ;;  %v12367_v20 = vand.u32 %v15236_v51, %v18022_v61 }
0x4366   :  { %v12060_v45 = vmul.f32 %v15142_v16, %v12052_v38  ;;  %v12095_v16 = vrot.slane %v15150_v52, %v18188_v23 }
0x4368   :  { %v19915_v2 = vadd.f32 %v15143_v15, %v12060_v45 }
0x436a   :  { %v19919_v34 = vpack.c.bf16 %v19915_v2, %v19913_v22 }
0x436c   :  { %15159 = vmatmul.mubr.msk.bf16.vlgmr.msra.gmra.mrb[152].mxu0 %vm67_vm0, %v19919_v34  ;;  %15160 = vmatmul.mubr.msk.bf16.vlgmr.msra.gmra.mrb[156].mxu1 %vm67_vm0, %v19919_v34 }
0x436d   :  { %12379 = vmatpush1.bf16.msra.mxu0 %v15232_v27  ;;  %12422 = vmatpush1.bf16.msra.mxu1 %v15234_v44  ;;  %v17214_v27 = vld [vmem:[%s20497_s11 + $0x9b0] sm:$0xff]   ;;  %v17215_v44 = vld [vmem:[%s20497_s11 + $0x978] sm:$0xff]  }
0x436e   :  { %12380 = vmatprep.subr.bf16.mxu0 %v12370_v54  ;;  %12423 = vmatprep.subr.bf16.mxu1 %v12376_v57 }
0x436f   :  { %12410 = vmatprep.mubr.bf16.mxu0 %v17570_v8  ;;  %12453 = vmatprep.mubr.bf16.mxu1 %v17570_v8 }
0x4371   :  { %12381 = vmatpush1.bf16.msra.mxu0 %v12367_v20  ;;  %12424 = vmatpush1.bf16.msra.mxu1 %v12373_v28 }
0x4372   :  { %16156 = vmatprep.subr.bf16.mxu0 %v17187_v0  ;;  %16178 = vmatprep.subr.bf16.mxu1 %v17188_v53  ;;  %v12319_v0 = vrot.slane %v15231_v40, %v18179_v18  ;;  %v12327_v53 = vrot.slane %v15231_v40, %v18181_v19 }
0x4374   :  { %15240 = vmatmul.mubr.msk.bf16.vlgmr.msra.gmra.mrb[156].mxu0 %vm67_vm0, %v19919_v34  ;;  %15241 = vmatmul.mubr.msk.bf16.vlgmr.msra.gmra.mrb[160].mxu1 %vm67_vm0, %v19919_v34 }
0x4375   :  { %16157 = vmatpush3.bf16.msra.mxu0 %v17189_v58  ;;  %16179 = vmatpush3.bf16.msra.mxu1 %v17190_v32 }
0x4376   :  { %16158 = vmatprep.subr.bf16.mxu0 %v17191_v31  ;;  %16180 = vmatprep.subr.bf16.mxu1 %v17192_v33  ;;  %v12323_v31 = vrot.slane %v15231_v40, %v18186_v42  ;;  %v12331_v33 = vrot.slane %v15231_v40, %v18188_v23 }
0x4379   :  { %16159 = vmatpush3.bf16.msra.mxu0 %v17193_v37  ;;  %16181 = vmatpush3.bf16.msra.mxu1 %v17194_v60 }
0x437a   :  { %16160 = vmatprep.subr.bf16.mxu0 %v17195_v41  ;;  %16182 = vmatprep.subr.bf16.mxu1 %v17196_v59 }
0x437d   :  { %16161 = vmatpush3.bf16.msra.mxu0 %v17197_v63  ;;  %16183 = vmatpush3.bf16.msra.mxu1 %v17198_v55 }
0x437e   :  { %16162 = vmatprep.subr.bf16.mxu0 %v17199_v5  ;;  %16184 = vmatprep.subr.bf16.mxu1 %v17200_v7 }
0x4381   :  { %16163 = vmatpush3.bf16.msra.mxu0 %v17201_v9  ;;  %16185 = vmatpush3.bf16.msra.mxu1 %v17202_v14 }
0x4382   :  { %16164 = vmatprep.subr.bf16.mxu0 %v17203_v17  ;;  %16186 = vmatprep.subr.bf16.mxu1 %v17204_v24 }
0x4385   :  { %16165 = vmatpush3.bf16.msra.mxu0 %v17205_v48  ;;  %16187 = vmatpush3.bf16.msra.mxu1 %v17206_v12 }
0x4386   :  { %16166 = vmatprep.subr.bf16.mxu0 %v17207_v10  ;;  %16188 = vmatprep.subr.bf16.mxu1 %v17208_v25 }
0x4389   :  { %16167 = vmatpush3.bf16.msra.mxu0 %v17209_v1  ;;  %16189 = vmatpush3.bf16.msra.mxu1 %v17210_v3 }
0x438a   :  { %16168 = vmatprep.subr.bf16.mxu0 %v17211_v4  ;;  %16190 = vmatprep.subr.bf16.mxu1 %v17212_v43 }
0x438d   :  { %16169 = vmatpush3.bf16.msra.mxu0 %v17213_v13  ;;  %16191 = vmatpush3.bf16.msra.mxu1 %v17214_v27 }
0x438e   :  { %16170 = vmatprep.subr.bf16.mxu0 %v17215_v44  ;;  %16192 = vmatprep.subr.bf16.mxu1 %v17216_v21 }
0x4391   :  { %16171 = vmatpush3.bf16.msra.mxu0 %v17217_v29  ;;  %16193 = vmatpush3.bf16.msra.mxu1 %v17218_v47 }
0x4392   :  { %16200 = vmatprep.subr.bf16.mxu0 %v17219_v11  ;;  %16222 = vmatprep.subr.bf16.mxu1 %v17220_v30 }
0x443f   :  { %v12179_v39 = vpop.f32.mrb[152].mxu0  ;;  %v12222_v35 = vpop.f32.mrb[156].mxu1 }
0x4440   :  { %v12180_v36 = vadd.f32 %v12179_v39, %v12083_v56  ;;  %v12223_v38 = vadd.f32 %v12222_v35, %v12091_v62  ;;  %v12181_v15 = vpop.f32.mrb[153].mxu0  ;;  %v12224_v45 = vpop.f32.mrb[157].mxu1 }
0x4441   :  { %v12182_v46 = vadd.f32 %v12181_v15, %v12087_v26  ;;  %v12225_v49 = vadd.f32 %v12224_v45, %v12095_v16  ;;  %v12183_v51 = vpop.f32.mrb[154].mxu0  ;;  %v12226_v50 = vpop.f32.mrb[158].mxu1 }
0x4442   :  { %v12184_v54 = vadd.f32 %v12183_v51, %v12083_v56  ;;  %v12227_v57 = vadd.f32 %v12226_v50, %v12091_v62  ;;  %v12185_v20 = vpop.f32.mrb[155].mxu0  ;;  %v12228_v28 = vpop.f32.mrb[159].mxu1  ;;  %v12231_v37 = vmax.f32 %v12180_v36, 0.0  ;;  %v12233_v60 = vmax.f32 %v12223_v38, 0.0  ;;  %v17223_v51 = vld [vmem:[%s20497_s11 + $0x848] sm:$0xff]  }
0x4443   :  { %v12186_v58 = vadd.f32 %v12185_v20, %v12087_v26  ;;  %v12229_v32 = vadd.f32 %v12228_v28, %v12095_v16  ;;  %v12232_v63 = vmax.f32 %v12182_v46, 0.0  ;;  %v12234_v55 = vmax.f32 %v12225_v49, 0.0  ;;  %v17221_v46 = vld [vmem:[%s20497_s11 + $0x800] sm:$0xff]   ;;  %v17224_v50 = vld [vmem:[%s20497_s11 + $0x8c8] sm:$0xff]   ;;  %v17227_v20 = vld [vmem:[%s20497_s11 + $0x850] sm:$0xff]  }
0x4444   :  { %v12235_v41 = vmax.f32 %v12184_v54, 0.0  ;;  %v12237_v59 = vmax.f32 %v12227_v57, 0.0  ;;  %v17222_v49 = vld [vmem:[%s20497_s11 + $0x880] sm:$0xff]   ;;  %v17225_v54 = vld [vmem:[%s20497_s11 + $0x808] sm:$0xff]   ;;  %v17228_v28 = vld [vmem:[%s20497_s11 + $0x8d0] sm:$0xff]  }
0x4445   :  { %v12236_v5 = vmax.f32 %v12186_v58, 0.0  ;;  %v12238_v7 = vmax.f32 %v12229_v32, 0.0  ;;  %v17226_v57 = vld [vmem:[%s20497_s11 + $0x888] sm:$0xff]   ;;  %v17231_v58 = vld [vmem:[%s20497_s11 + $0x858] sm:$0xff]  }
0x4446   :  { %v20051_v9 = vpack.c.bf16 %v12235_v41, %v12231_v37  ;;  %v20053_v14 = vpack.c.bf16 %v12237_v59, %v12233_v60  ;;  %v17232_v32 = vld [vmem:[%s20497_s11 + $0x8d8] sm:$0xff]   ;;  %v17235_v37 = vld [vmem:[%s20497_s11 + $0x860] sm:$0xff]  }
0x4447   :  { %v12240_v17 = vpack.c.bf16 %v12236_v5, %v12232_v63  ;;  %v12242_v24 = vpack.c.bf16 %v12238_v7, %v12234_v55  ;;  %v12412_v48 = vpop.f32.mrb[156].mxu0  ;;  %v12455_v12 = vpop.f32.mrb[160].mxu1  ;;  %v17236_v60 = vld [vmem:[%s20497_s11 + $0x8e0] sm:$0xff]   ;;  %v17239_v63 = vld [vmem:[%s20497_s11 + $0x868] sm:$0xff]  }
0x4448   :  { %v12413_v10 = vadd.f32 %v12412_v48, %v12319_v0  ;;  %v12456_v25 = vadd.f32 %v12455_v12, %v12327_v53  ;;  %v12414_v1 = vpop.f32.mrb[157].mxu0  ;;  %v12457_v3 = vpop.f32.mrb[161].mxu1  ;;  %v17237_v41 = vld [vmem:[%s20497_s11 + $0x820] sm:$0xff]   ;;  %v17240_v55 = vld [vmem:[%s20497_s11 + $0x8e8] sm:$0xff]   ;;  %v17245_v48 = vld [vmem:[%s20497_s11 + $0x830] sm:$0xff]  }
0x4449   :  { %v12415_v4 = vadd.f32 %v12414_v1, %v12323_v31  ;;  %v12458_v43 = vadd.f32 %v12457_v3, %v12331_v33  ;;  %v12416_v13 = vpop.f32.mrb[158].mxu0  ;;  %v12459_v27 = vpop.f32.mrb[162].mxu1  ;;  %v17238_v59 = vld [vmem:[%s20497_s11 + $0x8a0] sm:$0xff]   ;;  %v17241_v5 = vld [vmem:[%s20497_s11 + $0x828] sm:$0xff]   ;;  %v17246_v12 = vld [vmem:[%s20497_s11 + $0x8b0] sm:$0xff]  }
0x444a   :  { %v12417_v44 = vadd.f32 %v12416_v13, %v12319_v0  ;;  %v12460_v21 = vadd.f32 %v12459_v27, %v12327_v53  ;;  %v12418_v29 = vpop.f32.mrb[159].mxu0  ;;  %v12461_v47 = vpop.f32.mrb[163].mxu1  ;;  %v12464_v52 = vmax.f32 %v12413_v10, 0.0  ;;  %v12466_v56 = vmax.f32 %v12456_v25, 0.0  ;;  %v17229_v0 = vld [vmem:[%s20497_s11 + $0x810] sm:$0xff]   ;;  %v17242_v7 = vld [vmem:[%s20497_s11 + $0x8a8] sm:$0xff]  }
0x444b   :  { %v12419_v11 = vadd.f32 %v12418_v29, %v12323_v31  ;;  %v12462_v30 = vadd.f32 %v12461_v47, %v12331_v33  ;;  %v12465_v16 = vmax.f32 %v12415_v4, 0.0  ;;  %v12467_v39 = vmax.f32 %v12458_v43, 0.0  ;;  %v17230_v53 = vld [vmem:[%s20497_s11 + $0x890] sm:$0xff]   ;;  %v17233_v31 = vld [vmem:[%s20497_s11 + $0x818] sm:$0xff]   ;;  %v15370_v1 = vld [vmem:[%s20495_s9 + $0x1a0] sm:$0xff] }
0x444c   :  { %v12468_v62 = vmax.f32 %v12417_v44, 0.0  ;;  %v12470_v26 = vmax.f32 %v12460_v21, 0.0  ;;  %v17234_v33 = vld [vmem:[%s20497_s11 + $0x898] sm:$0xff]   ;;  %v15372_v3 = vld [vmem:[%s20495_s9 + $0x1e0] sm:$0xff]  ;;  %v15371_v4 = vld [vmem:[%s20495_s9 + $0x1a8] sm:$0xff] }
0x444d   :  { %v12469_v35 = vmax.f32 %v12419_v11, 0.0  ;;  %v12471_v40 = vmax.f32 %v12462_v30, 0.0  ;;  %v17247_v10 = vld [vmem:[%s20497_s11 + $0x878] sm:$0xff]   ;;  %v15373_v43 = vld [vmem:[%s20495_s9 + $0x1e8] sm:$0xff]  ;;  %v15374_v13 = vld [vmem:[%s20495_s9 + $0x220] sm:$0x77]  ;;  %v15378_v29 = vcombine.high %v15370_v1, %v15372_v3 }
0x444e   :  { %v12472_v36 = vpack.c.bf16 %v12468_v62, %v12464_v52  ;;  %v12474_v38 = vpack.c.bf16 %v12470_v26, %v12466_v56  ;;  %v17248_v25 = vld [vmem:[%s20497_s11 + $0x8f8] sm:$0xff]   ;;  %v15375_v27 = vld [vmem:[%s20495_s9 + $0x228] sm:$0x77]  ;;  %v15380_v47 = vcombine.high %v15371_v4, %v15373_v43  ;;  %v15382_v11 = vcombine.high %v15374_v13, %v15374_v13 }
0x444f   :  { %v12473_v15 = vpack.c.bf16 %v12469_v35, %v12465_v16  ;;  %v12475_v45 = vpack.c.bf16 %v12471_v40, %v12467_v39  ;;  %v17249_v44 = vld [vmem:[%s20497_s11 + $0x838] sm:$0xff]   ;;  %v15384_v30 = vcombine.high %v15375_v27, %v15375_v27  ;;  %v15377_v52 = vcombine.low %v15370_v1, %v15372_v3 }
0x4450   :  { %v17250_v21 = vld [vmem:[%s20497_s11 + $0x8b8] sm:$0xff]   ;;  %v15379_v56 = vcombine.low %v15371_v4, %v15373_v43  ;;  %v15381_v62 = vcombine.low %v15374_v13, %v15374_v13  ;;  %v15383_v26 = vcombine.low %v15375_v27, %v15375_v27  ;;  %v13150_v16 = vand.u32 %v15382_v11, %v18022_v61 }
0x4451   :  { %12764 = vmatprep.mubr.bf16.mxu0 %v12473_v15  ;;  %12805 = vmatprep.mubr.bf16.mxu1 %v12475_v45  ;;  %v13156_v39 = vand.u32 %v15384_v30, %v18022_v61  ;;  %v17259_v15 = vld [vmem:[%s20497_s11 + $0xa48] sm:$0xff]   ;;  %v20284_v1 = vld [vmem:[%s20495_s9 + $0x1b8] sm:$0xff] }
0x4452   :  { %12765 = vmatmul.mubr.bf16.vlgmr.msra.gmra.mrb[160].mxu0 %v12472_v36  ;;  %12806 = vmatmul.mubr.bf16.vlgmr.msra.gmra.mrb[164].mxu1 %v12474_v38  ;;  %v13147_v35 = vand.u32 %v15381_v62, %v18022_v61  ;;  %v13153_v40 = vand.u32 %v15383_v26, %v18022_v61  ;;  %v17257_v36 = vld [vmem:[%s20497_s11 + $0xa00] sm:$0xff]   ;;  %v17260_v45 = vld [vmem:[%s20497_s11 + $0xac8] sm:$0xff]   ;;  %v20291_v4 = vld [vmem:[%s20495_s9 + $0x1f8] sm:$0xff] }
0x4453   :  { %16201 = vmatpush3.bf16.msra.mxu0 %v17221_v46  ;;  %16223 = vmatpush3.bf16.msra.mxu1 %v17222_v49  ;;  %v17258_v38 = vld [vmem:[%s20497_s11 + $0xa80] sm:$0xff]   ;;  %v17261_v46 = vld [vmem:[%s20497_s11 + $0xa08] sm:$0xff]   ;;  %v15492_v13 = vcombine.low %v20284_v1, %v20291_v4  ;;  %v15493_v27 = vcombine.high %v20284_v1, %v20291_v4 }
0x4454   :  { %13038 = vmatprep.mubr.bf16.mxu0 %v12240_v17  ;;  %13079 = vmatprep.mubr.bf16.mxu1 %v12242_v24  ;;  %v17243_v17 = vld [vmem:[%s20497_s11 + $0x870] sm:$0xff]   ;;  %v17262_v49 = vld [vmem:[%s20497_s11 + $0xa88] sm:$0xff]  }
0x4455   :  { %16202 = vmatprep.subr.bf16.mxu0 %v17223_v51  ;;  %16224 = vmatprep.subr.bf16.mxu1 %v17224_v50  ;;  %v17244_v24 = vld [vmem:[%s20497_s11 + $0x8f0] sm:$0xff]   ;;  %v17297_v1 = vld [vmem:[%s20497_s11 + $0xb08] sm:$0xff]  }
0x4456   :  { %v17263_v51 = vld [vmem:[%s20497_s11 + $0xa50] sm:$0xff]   ;;  %v17298_v4 = vld [vmem:[%s20497_s11 + $0xb88] sm:$0xff]  }
0x4457   :  { %16203 = vmatpush3.bf16.msra.mxu0 %v17225_v54  ;;  %16225 = vmatpush3.bf16.msra.mxu1 %v17226_v57  ;;  %v17264_v50 = vld [vmem:[%s20497_s11 + $0xad0] sm:$0xff]  }
0x4458   :  { %16204 = vmatprep.subr.bf16.mxu0 %v17227_v20  ;;  %16226 = vmatprep.subr.bf16.mxu1 %v17228_v28  ;;  %v17265_v54 = vld [vmem:[%s20497_s11 + $0xa10] sm:$0xff]   ;;  %v17267_v20 = vld [vmem:[%s20497_s11 + $0xa58] sm:$0xff]  }
0x4459   :  { %v17266_v57 = vld [vmem:[%s20497_s11 + $0xa90] sm:$0xff]   ;;  %v17268_v28 = vld [vmem:[%s20497_s11 + $0xad8] sm:$0xff]  }
0x445b   :  { %16205 = vmatpush3.bf16.msra.mxu0 %v17229_v0  ;;  %16227 = vmatpush3.bf16.msra.mxu1 %v17230_v53  ;;  %v17269_v0 = vld [vmem:[%s20497_s11 + $0xa18] sm:$0xff]  }
0x445c   :  { %16206 = vmatprep.subr.bf16.mxu0 %v17231_v58  ;;  %16228 = vmatprep.subr.bf16.mxu1 %v17232_v32  ;;  %v17270_v53 = vld [vmem:[%s20497_s11 + $0xa98] sm:$0xff]   ;;  %v17271_v58 = vld [vmem:[%s20497_s11 + $0xa60] sm:$0xff]  }
0x445d   :  { %v17272_v32 = vld [vmem:[%s20497_s11 + $0xae0] sm:$0xff]  }
0x445f   :  { %16207 = vmatpush3.bf16.msra.mxu0 %v17233_v31  ;;  %16229 = vmatpush3.bf16.msra.mxu1 %v17234_v33  ;;  %v17273_v31 = vld [vmem:[%s20497_s11 + $0xa20] sm:$0xff]  }
0x4460   :  { %16208 = vmatprep.subr.bf16.mxu0 %v17235_v37  ;;  %16230 = vmatprep.subr.bf16.mxu1 %v17236_v60  ;;  %v17274_v33 = vld [vmem:[%s20497_s11 + $0xaa0] sm:$0xff]   ;;  %v17275_v37 = vld [vmem:[%s20497_s11 + $0xa68] sm:$0xff]  }
0x4461   :  { %v17276_v60 = vld [vmem:[%s20497_s11 + $0xae8] sm:$0xff]  }
0x4463   :  { %16209 = vmatpush3.bf16.msra.mxu0 %v17237_v41  ;;  %16231 = vmatpush3.bf16.msra.mxu1 %v17238_v59  ;;  %v17277_v41 = vld [vmem:[%s20497_s11 + $0xa28] sm:$0xff]  }
0x4464   :  { %16210 = vmatprep.subr.bf16.mxu0 %v17239_v63  ;;  %16232 = vmatprep.subr.bf16.mxu1 %v17240_v55  ;;  %v17278_v59 = vld [vmem:[%s20497_s11 + $0xaa8] sm:$0xff]   ;;  %v17279_v63 = vld [vmem:[%s20497_s11 + $0xa70] sm:$0xff]  }
0x4465   :  { %v17280_v55 = vld [vmem:[%s20497_s11 + $0xaf0] sm:$0xff]  }
0x4467   :  { %16211 = vmatpush3.bf16.msra.mxu0 %v17241_v5  ;;  %16233 = vmatpush3.bf16.msra.mxu1 %v17242_v7  ;;  %v17281_v5 = vld [vmem:[%s20497_s11 + $0xa30] sm:$0xff]  }
0x4468   :  { %16212 = vmatprep.subr.bf16.mxu0 %v17243_v17  ;;  %16234 = vmatprep.subr.bf16.mxu1 %v17244_v24  ;;  %v17282_v7 = vld [vmem:[%s20497_s11 + $0xab0] sm:$0xff]   ;;  %v17283_v17 = vld [vmem:[%s20497_s11 + $0xa78] sm:$0xff]  }
0x4469   :  { %v17284_v24 = vld [vmem:[%s20497_s11 + $0xaf8] sm:$0xff]  }
0x446b   :  { %16213 = vmatpush3.bf16.msra.mxu0 %v17245_v48  ;;  %16235 = vmatpush3.bf16.msra.mxu1 %v17246_v12  ;;  %v17285_v48 = vld [vmem:[%s20497_s11 + $0xa38] sm:$0xff]  }
0x446c   :  { %16214 = vmatprep.subr.bf16.mxu0 %v17247_v10  ;;  %16236 = vmatprep.subr.bf16.mxu1 %v17248_v25  ;;  %v17286_v12 = vld [vmem:[%s20497_s11 + $0xab8] sm:$0xff]   ;;  %v20274_v10 = vld [vmem:[%s20495_s9 + $0x1b0] sm:$0xff] }
0x446d   :  { %v20279_v25 = vld [vmem:[%s20495_s9 + $0x1f0] sm:$0xff] }
0x446e   :  { %v15491_v3 = vcombine.high %v20274_v10, %v20279_v25  ;;  %v15490_v43 = vcombine.low %v20274_v10, %v20279_v25  ;;  %v17294_v10 = vld [vmem:[%s20497_s11 + $0xb80] sm:$0xff]   ;;  %v17295_v25 = vld [vmem:[%s20497_s11 + $0xb48] sm:$0xff]  }
0x446f   :  { %16215 = vmatpush3.bf16.msra.mxu0 %v17249_v44  ;;  %16237 = vmatpush3.bf16.msra.mxu1 %v17250_v21 }
0x4470   :  { %13158 = vmatprep.subr.bf16.mxu0 %v15378_v29  ;;  %13201 = vmatprep.subr.bf16.mxu1 %v15380_v47 }
0x4472   :  { %13039 = vmatmul.mubr.bf16.vlgmr.msra.gmra.mrb[164].mxu0 %v20051_v9  ;;  %13080 = vmatmul.mubr.bf16.vlgmr.msra.gmra.mrb[168].mxu1 %v20053_v14  ;;  %v17255_v9 = vld [vmem:[%s20497_s11 + $0xa40] sm:$0xff]  }
0x4473   :  { %13159 = vmatpush1.bf16.msra.mxu0 %v15377_v52  ;;  %13202 = vmatpush1.bf16.msra.mxu1 %v15379_v56  ;;  %v17256_v14 = vld [vmem:[%s20497_s11 + $0xac0] sm:$0xff]  }
0x4474   :  { %13160 = vmatprep.subr.bf16.mxu0 %v13150_v16  ;;  %13203 = vmatprep.subr.bf16.mxu1 %v13156_v39 }
0x4475   :  { %13190 = vmatprep.mubr.bf16.mxu0 %v17570_v8  ;;  %13233 = vmatprep.mubr.bf16.mxu1 %v17570_v8 }
0x4477   :  { %13161 = vmatpush1.bf16.msra.mxu0 %v13147_v35  ;;  %13204 = vmatpush1.bf16.msra.mxu1 %v13153_v40 }
0x4478   :  { %16244 = vmatprep.subr.bf16.mxu0 %v17255_v9  ;;  %16266 = vmatprep.subr.bf16.mxu1 %v17256_v14 }
0x447a   :  { %15385 = vmatmul.mubr.msk.bf16.vlgmr.msra.gmra.mrb[168].mxu0 %vm67_vm0, %v19919_v34  ;;  %15386 = vmatmul.mubr.msk.bf16.vlgmr.msra.gmra.mrb[172].mxu1 %vm67_vm0, %v19919_v34 }
0x447b   :  { %16245 = vmatpush3.bf16.msra.mxu0 %v17257_v36  ;;  %16267 = vmatpush3.bf16.msra.mxu1 %v17258_v38 }
0x447c   :  { %16246 = vmatprep.subr.bf16.mxu0 %v17259_v15  ;;  %16268 = vmatprep.subr.bf16.mxu1 %v17260_v45 }
0x447f   :  { %16247 = vmatpush3.bf16.msra.mxu0 %v17261_v46  ;;  %16269 = vmatpush3.bf16.msra.mxu1 %v17262_v49 }
0x4480   :  { %16248 = vmatprep.subr.bf16.mxu0 %v17263_v51  ;;  %16270 = vmatprep.subr.bf16.mxu1 %v17264_v50  ;;  %v15376_v51 = vld [vmem:[%s20496_s10 + $0x28] sm:$0xf] }
0x4483   :  { %16249 = vmatpush3.bf16.msra.mxu0 %v17265_v54  ;;  %16271 = vmatpush3.bf16.msra.mxu1 %v17266_v57 }
0x4484   :  { %16250 = vmatprep.subr.bf16.mxu0 %v17267_v20  ;;  %16272 = vmatprep.subr.bf16.mxu1 %v17268_v28 }
0x4487   :  { %16251 = vmatpush3.bf16.msra.mxu0 %v17269_v0  ;;  %16273 = vmatpush3.bf16.msra.mxu1 %v17270_v53  ;;  %v13099_v0 = vrot.slane %v15376_v51, %v18179_v18  ;;  %v13107_v53 = vrot.slane %v15376_v51, %v18181_v19 }
0x4488   :  { %16252 = vmatprep.subr.bf16.mxu0 %v17271_v58  ;;  %16274 = vmatprep.subr.bf16.mxu1 %v17272_v32 }
0x448b   :  { %16253 = vmatpush3.bf16.msra.mxu0 %v17273_v31  ;;  %16275 = vmatpush3.bf16.msra.mxu1 %v17274_v33  ;;  %v13103_v31 = vrot.slane %v15376_v51, %v18186_v42  ;;  %v13111_v33 = vrot.slane %v15376_v51, %v18188_v23 }
0x448c   :  { %16254 = vmatprep.subr.bf16.mxu0 %v17275_v37  ;;  %16276 = vmatprep.subr.bf16.mxu1 %v17276_v60 }
0x448f   :  { %16255 = vmatpush3.bf16.msra.mxu0 %v17277_v41  ;;  %16277 = vmatpush3.bf16.msra.mxu1 %v17278_v59 }
0x4490   :  { %16256 = vmatprep.subr.bf16.mxu0 %v17279_v63  ;;  %16278 = vmatprep.subr.bf16.mxu1 %v17280_v55 }
0x4493   :  { %16257 = vmatpush3.bf16.msra.mxu0 %v17281_v5  ;;  %16279 = vmatpush3.bf16.msra.mxu1 %v17282_v7  ;;  %v15487_v7 = vld [vmem:[%s20495_s9 + $0x230] sm:$0x77] }
0x4494   :  { %16258 = vmatprep.subr.bf16.mxu0 %v17283_v17  ;;  %16280 = vmatprep.subr.bf16.mxu1 %v17284_v24  ;;  %v15488_v17 = vld [vmem:[%s20495_s9 + $0x238] sm:$0x77]  ;;  %s20628_s9 = sld [smem:[#allocation10_spill]] }
0x4497   :  { %16259 = vmatpush3.bf16.msra.mxu0 %v17285_v48  ;;  %16281 = vmatpush3.bf16.msra.mxu1 %v17286_v12 }
0x4498   :  { %13666 = vmatprep.subr.bf16.mxu0 %v15491_v3  ;;  %13709 = vmatprep.subr.bf16.mxu1 %v15493_v27 }
0x4525   :  { %v16172_v44 = vpop.f32.mrb[160].mxu0  ;;  %v16194_v21 = vpop.f32.mrb[164].mxu1 }
0x4526   :  { %v16173_v29 = vpop.f32.mrb[161].mxu0  ;;  %v16195_v47 = vpop.f32.mrb[165].mxu1 }
0x4527   :  { %v16174_v11 = vadd.f32 %v16173_v29, %v16172_v44  ;;  %v16196_v30 = vadd.f32 %v16195_v47, %v16194_v21  ;;  %v16175_v52 = vpop.f32.mrb[162].mxu0  ;;  %v16197_v56 = vpop.f32.mrb[166].mxu1 }
0x4528   :  { %v16176_v62 = vpop.f32.mrb[163].mxu0  ;;  %v16198_v26 = vpop.f32.mrb[167].mxu1 }
0x4529   :  { %v12808_v16 = vadd.f32 %v16196_v30, %v16174_v11  ;;  %v16177_v39 = vadd.f32 %v16176_v62, %v16175_v52  ;;  %v16199_v35 = vadd.f32 %v16198_v26, %v16197_v56  ;;  %v15495_v30 = vcombine.high %v15487_v7, %v15487_v7 }
0x452a   :  { %v15497_v52 = vcombine.high %v15488_v17, %v15488_v17 }
0x452b   :  { %v12811_v40 = vadd.f32 %v16199_v35, %v16177_v39 }
0x452c   :  { %v13664_v51 = vand.u32 %v15497_v52, %v18022_v61 }
0x4545   :  { %v16216_v9 = vpop.f32.mrb[164].mxu0  ;;  %v16238_v14 = vpop.f32.mrb[168].mxu1 }
0x4546   :  { %v16217_v36 = vpop.f32.mrb[165].mxu0  ;;  %v16239_v38 = vpop.f32.mrb[169].mxu1 }
0x4547   :  { %v16218_v15 = vadd.f32 %v16217_v36, %v16216_v9  ;;  %v16240_v45 = vadd.f32 %v16239_v38, %v16238_v14  ;;  %v16219_v46 = vpop.f32.mrb[166].mxu0  ;;  %v16241_v49 = vpop.f32.mrb[170].mxu1 }
0x4548   :  { %v16220_v50 = vpop.f32.mrb[167].mxu0  ;;  %v16242_v54 = vpop.f32.mrb[171].mxu1 }
0x4549   :  { %v13041_v57 = vadd.f32 %v16218_v15, %v12808_v16  ;;  %v16221_v20 = vadd.f32 %v16220_v50, %v16219_v46  ;;  %v16243_v28 = vadd.f32 %v16242_v54, %v16241_v49  ;;  %v15496_v46 = vcombine.low %v15488_v17, %v15488_v17  ;;  %v17315_v17 = vld [vmem:[%s20497_s11 + $0xb70] sm:$0xff]  }
0x454a   :  { %v13658_v49 = vand.u32 %v15495_v30, %v18022_v61 }
0x454b   :  { %v20304_v58 = vadd.f32 %v16240_v45, %v13041_v57  ;;  %v13044_v32 = vadd.f32 %v16221_v20, %v12811_v40  ;;  %v15494_v45 = vcombine.low %v15487_v7, %v15487_v7  ;;  %v13661_v54 = vand.u32 %v15496_v46, %v18022_v61  ;;  %v17291_v57 = vld [vmem:[%s20497_s11 + $0xb40] sm:$0xff]   ;;  %v17314_v7 = vld [vmem:[%s20497_s11 + $0xba8] sm:$0xff]  }
0x454c   :  { %v17292_v20 = vld [vmem:[%s20497_s11 + $0xbc0] sm:$0xff]  }
0x454d   :  { %v20308_v37 = vadd.f32 %v16243_v28, %v13044_v32  ;;  %v13192_v60 = vpop.f32.mrb[168].mxu0  ;;  %v13235_v41 = vpop.f32.mrb[172].mxu1  ;;  %v13655_v50 = vand.u32 %v15494_v45, %v18022_v61  ;;  %v17293_v61 = vld [vmem:[%s20497_s11 + $0xb00] sm:$0xff]   ;;  %v17302_v28 = vld [vmem:[%s20497_s11 + $0xb90] sm:$0xff]   ;;  %v17305_v32 = vld [vmem:[%s20497_s11 + $0xb18] sm:$0xff]  }
0x454e   :  { %v13193_v59 = vadd.f32 %v13192_v60, %v13099_v0  ;;  %v13236_v63 = vadd.f32 %v13235_v41, %v13107_v53  ;;  %v13194_v55 = vpop.f32.mrb[169].mxu0  ;;  %v13237_v5 = vpop.f32.mrb[173].mxu1  ;;  %v17308_v60 = vld [vmem:[%s20497_s11 + $0xbe0] sm:$0xff]  }
0x454f   :  { %v13195_v24 = vadd.f32 %v13194_v55, %v13103_v31  ;;  %v13238_v48 = vadd.f32 %v13237_v5, %v13111_v33  ;;  %v13196_v12 = vpop.f32.mrb[170].mxu0  ;;  %v13239_v3 = vpop.f32.mrb[174].mxu1  ;;  %v17309_v41 = vld [vmem:[%s20497_s11 + $0xb20] sm:$0xff]   ;;  %v17312_v55 = vld [vmem:[%s20497_s11 + $0xbe8] sm:$0xff]  }
0x4550   :  { %v13197_v27 = vadd.f32 %v13196_v12, %v13099_v0  ;;  %v13240_v44 = vadd.f32 %v13239_v3, %v13107_v53  ;;  %v13198_v21 = vpop.f32.mrb[171].mxu0  ;;  %v13241_v29 = vpop.f32.mrb[175].mxu1  ;;  %v13244_v56 = vmax.f32 %v13193_v59, 0.0  ;;  %v13246_v62 = vmax.f32 %v13236_v63, 0.0  ;;  %v17303_v0 = vld [vmem:[%s20497_s11 + $0xb58] sm:$0xff]   ;;  %v17310_v59 = vld [vmem:[%s20497_s11 + $0xba0] sm:$0xff]  }
0x4551   :  { %v13199_v47 = vadd.f32 %v13198_v21, %v13103_v31  ;;  %v13242_v11 = vadd.f32 %v13241_v29, %v13111_v33  ;;  %v13245_v39 = vmax.f32 %v13195_v24, 0.0  ;;  %v13247_v35 = vmax.f32 %v13238_v48, 0.0  ;;  %v17304_v53 = vld [vmem:[%s20497_s11 + $0xbd8] sm:$0xff]   ;;  %v17307_v33 = vld [vmem:[%s20497_s11 + $0xb60] sm:$0xff]   ;;  %v17311_v63 = vld [vmem:[%s20497_s11 + $0xb68] sm:$0xff]  }
0x4552   :  { %v13248_v26 = vmax.f32 %v13197_v27, 0.0  ;;  %v13250_v16 = vmax.f32 %v13240_v44, 0.0  ;;  %v17306_v31 = vld [vmem:[%s20497_s11 + $0xb98] sm:$0xff]   ;;  %v17313_v5 = vld [vmem:[%s20497_s11 + $0xb28] sm:$0xff]   ;;  %v17316_v24 = vld [vmem:[%s20497_s11 + $0xbf0] sm:$0xff]  }
0x4553   :  { %v13249_v40 = vmax.f32 %v13199_v47, 0.0  ;;  %v13251_v9 = vmax.f32 %v13242_v11, 0.0  ;;  %v17317_v48 = vld [vmem:[%s20497_s11 + $0xb30] sm:$0xff]   ;;  %v17319_v3 = vld [vmem:[%s20497_s11 + $0xb78] sm:$0xff]  }
0x4554   :  { %v13252_v14 = vpack.c.bf16 %v13248_v26, %v13244_v56  ;;  %v13254_v36 = vpack.c.bf16 %v13250_v16, %v13246_v62  ;;  %v17318_v12 = vld [vmem:[%s20497_s11 + $0xbb0] sm:$0xff]   ;;  %v17320_v27 = vld [vmem:[%s20497_s11 + $0xbf8] sm:$0xff]   ;;  %v15489_v16 = vld [vmem:[%s20496_s10 + $0x2c] sm:$0xf] }
0x4555   :  { %v13253_v38 = vpack.c.bf16 %v13249_v40, %v13245_v39  ;;  %v13255_v15 = vpack.c.bf16 %v13251_v9, %v13247_v35  ;;  %v17321_v44 = vld [vmem:[%s20497_s11 + $0xb38] sm:$0xff]   ;;  %v13611_v46 = vrot.slane %v15489_v16, %v18186_v42 }
0x4556   :  { %v17322_v21 = vld [vmem:[%s20497_s11 + $0xbb8] sm:$0xff]  }
0x4557   :  { %13544 = vmatprep.mubr.bf16.mxu0 %v13253_v38  ;;  %13585 = vmatprep.mubr.bf16.mxu1 %v13255_v15  ;;  %v13615_v38 = vrot.slane %v15489_v16, %v18181_v19 }
0x4558   :  { %13545 = vmatmul.mubr.bf16.vlgmr.msra.gmra.mrb[172].mxu0 %v13252_v14  ;;  %13586 = vmatmul.mubr.bf16.vlgmr.msra.gmra.mrb[176].mxu1 %v13254_v36  ;;  %v13607_v36 = vrot.slane %v15489_v16, %v18179_v18 }
0x4559   :  { %13667 = vmatpush1.bf16.msra.mxu0 %v15490_v43  ;;  %13710 = vmatpush1.bf16.msra.mxu1 %v15492_v13  ;;  %v17299_v43 = vld [vmem:[%s20497_s11 + $0xb50] sm:$0xff]  }
0x455a   :  { %13668 = vmatprep.subr.bf16.mxu0 %v13658_v49  ;;  %13711 = vmatprep.subr.bf16.mxu1 %v13664_v51  ;;  %v17301_v13 = vld [vmem:[%s20497_s11 + $0xb10] sm:$0xff]   ;;  %v13619_v49 = vrot.slane %v15489_v16, %v18188_v23 }
0x455b   :  { %13698 = vmatprep.mubr.bf16.mxu0 %v17570_v8  ;;  %13741 = vmatprep.mubr.bf16.mxu1 %v17570_v8  ;;  %v17296_v8 = vld [vmem:[%s20497_s11 + $0xbc8] sm:$0xff]  }
0x455d   :  { %13669 = vmatpush1.bf16.msra.mxu0 %v13655_v50  ;;  %13712 = vmatpush1.bf16.msra.mxu1 %v13661_v54 }
0x455e   :  { %16288 = vmatprep.subr.bf16.mxu0 %v17291_v57  ;;  %16310 = vmatprep.subr.bf16.mxu1 %v17292_v20 }
0x4560   :  { %15498 = vmatmul.mubr.msk.bf16.vlgmr.msra.gmra.mrb[176].mxu0 %vm67_vm0, %v19919_v34  ;;  %15499 = vmatmul.mubr.msk.bf16.vlgmr.msra.gmra.mrb[180].mxu1 %vm67_vm0, %v19919_v34  ;;  %v17300_v34 = vld [vmem:[%s20497_s11 + $0xbd0] sm:$0xff]  }
0x4561   :  { %16289 = vmatpush3.bf16.msra.mxu0 %v17293_v61  ;;  %16311 = vmatpush3.bf16.msra.mxu1 %v17294_v10 }
0x4562   :  { %16290 = vmatprep.subr.bf16.mxu0 %v17295_v25  ;;  %16312 = vmatprep.subr.bf16.mxu1 %v17296_v8 }
0x4565   :  { %16291 = vmatpush3.bf16.msra.mxu0 %v17297_v1  ;;  %16313 = vmatpush3.bf16.msra.mxu1 %v17298_v4 }
0x4566   :  { %16292 = vmatprep.subr.bf16.mxu0 %v17299_v43  ;;  %16314 = vmatprep.subr.bf16.mxu1 %v17300_v34 }
0x4569   :  { %16293 = vmatpush3.bf16.msra.mxu0 %v17301_v13  ;;  %16315 = vmatpush3.bf16.msra.mxu1 %v17302_v28 }
0x456a   :  { %16294 = vmatprep.subr.bf16.mxu0 %v17303_v0  ;;  %16316 = vmatprep.subr.bf16.mxu1 %v17304_v53 }
0x456d   :  { %16295 = vmatpush3.bf16.msra.mxu0 %v17305_v32  ;;  %16317 = vmatpush3.bf16.msra.mxu1 %v17306_v31 }
0x456e   :  { %16296 = vmatprep.subr.bf16.mxu0 %v17307_v33  ;;  %16318 = vmatprep.subr.bf16.mxu1 %v17308_v60 }
0x4571   :  { %16297 = vmatpush3.bf16.msra.mxu0 %v17309_v41  ;;  %16319 = vmatpush3.bf16.msra.mxu1 %v17310_v59 }
0x4572   :  { %16298 = vmatprep.subr.bf16.mxu0 %v17311_v63  ;;  %16320 = vmatprep.subr.bf16.mxu1 %v17312_v55 }
0x4575   :  { %16299 = vmatpush3.bf16.msra.mxu0 %v17313_v5  ;;  %16321 = vmatpush3.bf16.msra.mxu1 %v17314_v7 }
0x4576   :  { %16300 = vmatprep.subr.bf16.mxu0 %v17315_v17  ;;  %16322 = vmatprep.subr.bf16.mxu1 %v17316_v24 }
0x4579   :  { %16301 = vmatpush3.bf16.msra.mxu0 %v17317_v48  ;;  %16323 = vmatpush3.bf16.msra.mxu1 %v17318_v12 }
0x457a   :  { %16302 = vmatprep.subr.bf16.mxu0 %v17319_v3  ;;  %16324 = vmatprep.subr.bf16.mxu1 %v17320_v27 }
0x457d   :  { %16303 = vmatpush3.bf16.msra.mxu0 %v17321_v44  ;;  %16325 = vmatpush3.bf16.msra.mxu1 %v17322_v21 }
0x462b   :  { %v16260_v29 = vpop.f32.mrb[172].mxu0  ;;  %v16282_v47 = vpop.f32.mrb[176].mxu1 }
0x462c   :  { %v16261_v11 = vpop.f32.mrb[173].mxu0  ;;  %v16283_v30 = vpop.f32.mrb[177].mxu1 }
0x462d   :  { %v16262_v52 = vadd.f32 %v16261_v11, %v16260_v29  ;;  %v16284_v56 = vadd.f32 %v16283_v30, %v16282_v47  ;;  %v16263_v62 = vpop.f32.mrb[174].mxu0  ;;  %v16285_v26 = vpop.f32.mrb[178].mxu1  ;;  %v15597_v47 = vld [vmem:[%s20498_s12 + $0x2] ss:$0 sm:$0xff] }
0x462e   :  { %v16264_v39 = vpop.f32.mrb[175].mxu0  ;;  %v16286_v35 = vpop.f32.mrb[179].mxu1 }
0x462f   :  { %v13588_v40 = vadd.f32 %v16284_v56, %v16262_v52  ;;  %v16265_v9 = vadd.f32 %v16264_v39, %v16263_v62  ;;  %v16287_v14 = vadd.f32 %v16286_v35, %v16285_v26 }
0x4631   :  { %v13594_v15 = vadd.f32 %v13588_v40, %v20304_v58  ;;  %v13591_v45 = vadd.f32 %v16287_v14, %v16265_v9 }
0x4633   :  { %v13595_v51 = vadd.f32 %v13591_v45, %v20308_v37  ;;  %v13700_v50 = vpop.f32.mrb[176].mxu0  ;;  %v13743_v54 = vpop.f32.mrb[180].mxu1 }
0x4634   :  { %v13701_v57 = vadd.f32 %v13700_v50, %v13607_v36  ;;  %v13744_v20 = vadd.f32 %v13743_v54, %v13615_v38  ;;  %v13702_v61 = vpop.f32.mrb[177].mxu0  ;;  %v13745_v10 = vpop.f32.mrb[181].mxu1  ;;  %v14238_v50 = vld [vmem:[%s20627_s4 + $0x8] sm:$0xff] }
0x4635   :  { %v13703_v25 = vadd.f32 %v13702_v61, %v13611_v46  ;;  %v13746_v8 = vadd.f32 %v13745_v10, %v13619_v49  ;;  %v13704_v18 = vpop.f32.mrb[178].mxu0  ;;  %v13747_v1 = vpop.f32.mrb[182].mxu1 }
0x4636   :  { %v13705_v19 = vadd.f32 %v13704_v18, %v13607_v36  ;;  %v13748_v4 = vadd.f32 %v13747_v1, %v13615_v38  ;;  %v13706_v58 = vpop.f32.mrb[179].mxu0  ;;  %v13749_v43 = vpop.f32.mrb[183].mxu1  ;;  %v13752_v13 = vmax.f32 %v13701_v57, 0.0  ;;  %v13754_v23 = vmax.f32 %v13744_v20, 0.0  ;;  %v14239_v57 = vld [vmem:[%s20627_s4 + $0x10] sm:$0x1f] }
0x4637   :  { %v13707_v34 = vadd.f32 %v13706_v58, %v13611_v46  ;;  %v13750_v42 = vadd.f32 %v13749_v43, %v13619_v49  ;;  %v13753_v0 = vmax.f32 %v13703_v25, 0.0  ;;  %v13755_v53 = vmax.f32 %v13746_v8, 0.0 }
0x4638   :  { %v13756_v28 = vmax.f32 %v13705_v19, 0.0  ;;  %v13758_v37 = vmax.f32 %v13748_v4, 0.0  ;;  %v15600_v19 = vld [vmem:[%s20493_s7 + $0x2] ss:$0 sm:$0xff] }
0x4639   :  { %v13757_v32 = vmax.f32 %v13707_v34, 0.0  ;;  %v13759_v31 = vmax.f32 %v13750_v42, 0.0  ;;  %v15601_v34 = vld [vmem:[%s20494_s8 + $0x2] ss:$0 sm:$0xff]  ;;  %s17572_s8 = smov [#allocation2]  }
0x463a   :  { %v13760_v33 = vpack.c.bf16 %v13756_v28, %v13752_v13  ;;  %v13762_v60 = vpack.c.bf16 %v13758_v37, %v13754_v23  ;;  %v14162_v37 = vld [vmem:[%s20628_s9] sm:$0x3]  ;;  %s14331_s27 = sshll.u32 %s17572_s8, 4  ;;  %s14332_s27 = int_to_ptr.vmem [resolvable:$true] %s14331_s27 }
0x463b   :  { %v13761_v41 = vpack.c.bf16 %v13757_v32, %v13753_v0  ;;  %v13763_v59 = vpack.c.bf16 %v13759_v31, %v13755_v53  ;;  %v15603_v32 = vld [vmem:[%s20629_s29] ss:$0 sm:$0xff]  ;;  %s17517_s24 = scalar_lea.vmem %s14332_s27, 32  ;;  %p17522_p1 = scmp.lt.s32.totalorder %s14332_s27, %s14332_s27 }
0x463c   :  { %p17518_p0 = scmp.ne.s32.totalorder %s14332_s27, %s17517_s24  ;;  %p17523_p2 = scmp.lt.s32.totalorder %s17517_s24, %s17517_s24 }
0x463d   :  { %14052 = vmatprep.mubr.bf16.mxu0 %v13761_v41  ;;  %14093 = vmatprep.mubr.bf16.mxu1 %v13763_v59 }
0x463e   :  { %14053 = vmatmul.mubr.bf16.vlgmr.msra.gmra.mrb[180].mxu0 %v13760_v33  ;;  %14094 = vmatmul.mubr.bf16.vlgmr.msra.gmra.mrb[184].mxu1 %v13762_v60  ;;  %p17524_p3 = por %p17523_p2, %p17522_p1 }
0x463f   :  { %16817 = vmatprep.mubr.msk.f32.mxu0 %vm17542_vm2, %v17541_v6  ;;  %16826 = vmatprep.mubr.msk.f32.mxu1 %vm17542_vm2, %v17541_v6 }
0x4640   :  { %p17525_p4 = pnand %p17524_p3, %p17518_p0 }
0x4711   :  { %v16304_v63 = vpop.f32.mrb[180].mxu0  ;;  %v16326_v55 = vpop.f32.mrb[184].mxu1 }
0x4712   :  { %v16305_v5 = vpop.f32.mrb[181].mxu0  ;;  %v16327_v7 = vpop.f32.mrb[185].mxu1 }
0x4713   :  { %v16306_v17 = vadd.f32 %v16305_v5, %v16304_v63  ;;  %v16328_v24 = vadd.f32 %v16327_v7, %v16326_v55  ;;  %v16307_v48 = vpop.f32.mrb[182].mxu0  ;;  %v16329_v12 = vpop.f32.mrb[186].mxu1 }
0x4714   :  { %v16308_v3 = vpop.f32.mrb[183].mxu0  ;;  %v16330_v27 = vpop.f32.mrb[187].mxu1 }
0x4715   :  { %v14096_v44 = vadd.f32 %v16328_v24, %v16306_v17  ;;  %v16309_v21 = vadd.f32 %v16308_v3, %v16307_v48  ;;  %v16331_v29 = vadd.f32 %v16330_v27, %v16329_v12 }
0x4717   :  { %v14102_v11 = vadd.f32 %v14096_v44, %v13594_v15  ;;  %v14099_v30 = vadd.f32 %v16331_v29, %v16309_v21 }
0x4719   :  { %v14103_v52 = vadd.f32 %v14099_v30, %v13595_v51  ;;  %v14112_v56 = vadd.f32 %v15597_v47, %v14102_v11  ;;  %v17571_v51 = vmov 0.0|0.0  }
0x471a   :  { %16853 = vmatprep.subr.bf16.mxu0 %v17571_v51  ;;  %16856 = vmatprep.subr.bf16.mxu1 %v17571_v51 }
0x471b   :  { %v14114_v62 = vadd.f32 %v14112_v56, %v19913_v22  ;;  %v14113_v26 = vadd.f32 %v15597_v47, %v14103_v52 }
0x471d   :  { %v14120_v16 = vsel %vm67_vm0, %v14114_v62, 0.0  ;;  %v14115_v39 = vadd.f32 %v14113_v26, %v19915_v2  ;;  %v14237_v2 = vld [vmem:[%s20627_s4] sm:$0xff] }
0x471e   :  { %14121 = vadd.xlane.f32.xlu1 %v14120_v16  ;;  %v16857_v54 = vpack.c.bf16 %v14238_v50, %v14237_v2 }
0x471f   :  { %v14123_v35 = vsel %vm67_vm0, %v14115_v39, 0.0 }
0x4720   :  { %14124 = vadd.xlane.f32.xlu0 %v14123_v35  ;;  %16858 = vmatpush3.bf16.msra.mxu1 %v16857_v54 }
0x4721   :  { %16824 = vmatprep.subr.mxu1 %v17541_v6 }
0x4724   :  { %16825 = vmatpush3.msk.msra.mxu1 %vm74_vm1, %v14239_v57 }
0x47ab   :  { %v14122_v40 = vpop.xlane.xlu1 %14121 }
0x47ac   :  { %v14126_v9 = vmul.f32 0.04761905, %v14122_v40 }
0x47ad   :  { %v14125_v14 = vpop.xlane.xlu0 %14124 }
0x47ae   :  { %v14128_v36 = vsub.f32 %v14114_v62, %v14126_v9  ;;  %v14127_v38 = vmul.f32 0.04761905, %v14125_v14 }
0x47b0   :  { %v14129_v15 = vsub.f32 %v14115_v39, %v14127_v38  ;;  %v14130_v45 = vmul.f32 %v14128_v36, %v14128_v36 }
0x47b2   :  { %v14132_v46 = vsel %vm67_vm0, %v14130_v45, 0.0  ;;  %v14131_v49 = vmul.f32 %v14129_v15, %v14129_v15 }
0x47b3   :  { %14133 = vadd.xlane.f32.xlu1 %v14132_v46 }
0x47b4   :  { %v14135_v22 = vsel %vm67_vm0, %v14131_v49, 0.0 }
0x47b5   :  { %14136 = vadd.xlane.f32.xlu0 %v14135_v22 }
0x4840   :  { %v14134_v20 = vpop.xlane.xlu1 %14133 }
0x4841   :  { %v14138_v61 = vmul.f32 0.04761905, %v14134_v20 }
0x4842   :  { %v14137_v10 = vpop.xlane.xlu0 %14136 }
0x4843   :  { %v14140_v25 = vadd.f32 1e-05, %v14138_v61  ;;  %v14139_v8 = vmul.f32 0.04761905, %v14137_v10 }
0x4845   :  { %17511 = vrsqrt.f32 %v14140_v25  ;;  %v14141_v18 = vadd.f32 1e-05, %v14139_v8 }
0x4847   :  { %17513 = vrsqrt.f32 %v14141_v18 }
0x484f   :  { %v17512_v1 = vpop.eup %17511 }
0x4850   :  { %v14144_v6 = vmul.f32 %v17512_v1, %v14128_v36 }
0x4851   :  { %v17514_v4 = vpop.eup %17513 }
0x4852   :  { %v14145_v58 = vmul.f32 %v17514_v4, %v14129_v15  ;;  %v14152_v43 = vmul.f32 %v15600_v19, %v14144_v6 }
0x4854   :  { %v14153_v42 = vmul.f32 %v15600_v19, %v14145_v58  ;;  %v14160_v13 = vadd.f32 %v15601_v34, %v14152_v43 }
0x4856   :  { %v14161_v23 = vadd.f32 %v15601_v34, %v14153_v42 }
0x4858   :  { %v16854_v28 = vpack.c.bf16 %v14161_v23, %v14160_v13 }
0x485a   :  { %16855 = vmatpush3.bf16.msra.mxu0 %v16854_v28 }
0x485d   :  { %16818 = vmatmul.mubr.msk.f32.vlgmr.msra.gmra.mrb[184].mxu0 %vm14163_vm12, %v14162_v37 }
0x4930   :  { %v14233_v0 = vpop.f32.mrb[184].mxu0 }
0x4931   :  { %v16819_v53 = vpop.f32.mrb[185].mxu0  ;;  %16827 = vmatmul.mubr.msk.f32.vlgmr.msra.gmra.mrb[188].mxu1 %vm67_vm0, %v14233_v0 }
0x4a04   :  { %v14319_v31 = vpop.f32.mrb[188].mxu1 }
0x4a05   :  { %v14320_v33 = vadd.f32 %v15603_v32, %v14319_v31  ;;  %v16828_v60 = vpop.f32.mrb[189].mxu1 }
0x4a07   :  { %14324 = vst.msk [vmem:[#allocation2] sm:$0x3] %vm14323_vm13, %v14320_v33 }
0x4a08   :  { %17528 = shalt.err (!%p17525_p4)
}
0x4a09   :  { %s20630_s28 = sld [smem:[#allocation13_spill]] }
0x4a0f   :  { %s17529_s30 = scalar_lea.hbm %s20630_s28, 32 }
0x4a10   :  { %p17530_p5 = scmp.ne.s32.totalorder %s20630_s28, %s17529_s30  ;;  %p17533_p6 = scmp.lt.u32.totalorder %s17529_s30, %s20630_s28 }
0x4a12   :  { %p17535_p7 = pnand %p17533_p6, %p17530_p5 }
0x4a14   :  { %17538 = shalt.err (!%p17535_p7)
}
0x4a15   :  { %14334 = dma.vmem_to_hbm [thread:$0]  %s14332_s27, 32, %s20630_s28, [#allocation3]  }
0x4a16   :  { %17539 = dma.done.wait [#allocation3], 32  }
0x4a17   :  { %17540 = vsyncadd [#allocation3], 4294967264 }
0x4a18   :  { %14338 = vsyncpa [#allocation3], 1 }

</bundles_post_ra>
